<compile_context>
chip_gen: v6e
topology: v6e:2x2x1
jax: 0.10.0
libtpu: 0.0.40
codegen_flags: <defaults>
</compile_context>

<pallas_src>
import functools

import jax
import jax.numpy as jnp
from jax.experimental import pallas as pl
from jax.experimental.pallas import tpu as pltpu

# ---- dinov2-small config ----------------------------------------------------
PATCH = 14
IN_CH = 3
HIDDEN = 384
HEADS = 6
HEAD_DIM = HIDDEN // HEADS
MLP = 4 * HIDDEN
LAYERS = 12
EPS = 1e-6
INV_SQRT2 = 0.7071067811865476

# Row tile for the linear kernels. Sized so (x tile f32 + bf16 weights + out tile
# f32) x double-buffering stays well under v5e's 16 MiB scoped-VMEM default and
# v7x's 64 MiB physical VMEM (fc1 worst case: ~0.4MB x + ~1.2MB W + 1.5MB out).
TM = 256

_PARALLEL = pltpu.CompilerParams(dimension_semantics=("parallel",))


# ---- in-kernel helpers -------------------------------------------------------
def _layernorm(x, g, b):
    # single-pass LayerNorm: one sweep producing sum and sum-of-squares.
    inv_c = 1.0 / x.shape[-1]
    s1 = jnp.sum(x, axis=-1, keepdims=True)
    s2 = jnp.sum(x * x, axis=-1, keepdims=True)
    mu = s1 * inv_c
    var = s2 * inv_c - mu * mu
    return (x - mu) * jax.lax.rsqrt(var + EPS) * g + b


def _gelu(y):
    # exact (erf) GELU, matching torch.nn.functional.gelu default used by HF "gelu"
    return 0.5 * y * (1.0 + jax.lax.erf(y * INV_SQRT2))


# ---- Pallas kernels ----------------------------------------------------------
def _linear_kernel(x_ref, w_ref, b_ref, o_ref):
    # plain bias-matmul (patch embed). bf16 operands, f32 accumulate.
    o_ref[...] = (
        jnp.dot(
            x_ref[...].astype(jnp.bfloat16), w_ref[...],
            preferred_element_type=jnp.float32,
        )
        + b_ref[...]
    )


def _ln_linear_kernel(x_ref, g_ref, b_ref, w_ref, wb_ref, o_ref, *, gelu):
    # fused: LayerNorm (f32) -> matmul (bf16, f32 acc) -> bias -> optional GELU
    xn = _layernorm(x_ref[...], g_ref[...], b_ref[...])
    y = (
        jnp.dot(
            xn.astype(jnp.bfloat16), w_ref[...],
            preferred_element_type=jnp.float32,
        )
        + wb_ref[...]
    )
    o_ref[...] = _gelu(y) if gelu else y


def _linear_scale_res_kernel(x_ref, w_ref, b_ref, g_ref, r_ref, o_ref):
    # fused: matmul -> bias -> LayerScale (lambda * y) -> residual add
    y = (
        jnp.dot(
            x_ref[...].astype(jnp.bfloat16), w_ref[...],
            preferred_element_type=jnp.float32,
        )
        + b_ref[...]
    )
    o_ref[...] = r_ref[...] + y * g_ref[...]


def _layernorm_kernel(x_ref, g_ref, b_ref, o_ref):
    # standalone LN (final LayerNorm only)
    o_ref[...] = _layernorm(x_ref[...], g_ref[...], b_ref[...])


def _attention_kernel(q_ref, k_ref, v_ref, o_ref, *, scale):
    # One grid step = one batch element, all heads batched on the MXU via einsum
    # (no explicit k.T transpose). Softmax math in f32; normalization deferred to
    # the PV output and done with an EUP reciprocal.
    # TODO(synk): block-diagonal 2-head packing (128-wide contraction) and
    # flash-style KV tiling for S >~ 4k are not implemented here.
    q = (q_ref[0] * scale).astype(jnp.bfloat16)      # fold 1/sqrt(D) into q
    k = k_ref[0].astype(jnp.bfloat16)
    v = v_ref[0].astype(jnp.bfloat16)
    s = jnp.einsum("hqd,hkd->hqk", q, k, preferred_element_type=jnp.float32)
    m = jnp.max(s, axis=-1, keepdims=True)
    p = jnp.exp(s - m)
    denom = jnp.sum(p, axis=-1, keepdims=True)
    ctx = jnp.einsum(
        "hqk,hkd->hqd", p.astype(jnp.bfloat16), v,
        preferred_element_type=jnp.float32,
    )
    o_ref[0] = ctx * pl.reciprocal(denom, approx=True)


# ---- Pallas wrappers ---------------------------------------------------------
def _row_tiles(M):
    tm = M if M <= TM else TM
    return tm, pl.cdiv(M, tm)


def linear(x, w, b):
    M, K = x.shape
    N = w.shape[1]
    tm, gm = _row_tiles(M)
    return pl.pallas_call(
        _linear_kernel,
        out_shape=jax.ShapeDtypeStruct((M, N), jnp.float32),
        grid=(gm,),
        in_specs=[
            pl.BlockSpec((tm, K), lambda i: (i, 0)),
            pl.BlockSpec((K, N), lambda i: (0, 0)),
            pl.BlockSpec((1, N), lambda i: (0, 0)),
        ],
        out_specs=pl.BlockSpec((tm, N), lambda i: (i, 0)),
        compiler_params=_PARALLEL,
    )(x, w, b.reshape(1, N))


def ln_linear(x, ln_g, ln_b, w, b, activation=None):
    M, K = x.shape
    N = w.shape[1]
    tm, gm = _row_tiles(M)
    kernel = functools.partial(_ln_linear_kernel, gelu=(activation == "gelu"))
    return pl.pallas_call(
        kernel,
        out_shape=jax.ShapeDtypeStruct((M, N), jnp.float32),
        grid=(gm,),
        in_specs=[
            pl.BlockSpec((tm, K), lambda i: (i, 0)),
            pl.BlockSpec((1, K), lambda i: (0, 0)),
            pl.BlockSpec((1, K), lambda i: (0, 0)),
            pl.BlockSpec((K, N), lambda i: (0, 0)),
            pl.BlockSpec((1, N), lambda i: (0, 0)),
        ],
        out_specs=pl.BlockSpec((tm, N), lambda i: (i, 0)),
        compiler_params=_PARALLEL,
    )(x, ln_g.reshape(1, K), ln_b.reshape(1, K), w, b.reshape(1, N))


def linear_scale_residual(x, w, b, gamma, res):
    M, K = x.shape
    N = w.shape[1]
    tm, gm = _row_tiles(M)
    return pl.pallas_call(
        _linear_scale_res_kernel,
        out_shape=jax.ShapeDtypeStruct((M, N), jnp.float32),
        grid=(gm,),
        in_specs=[
            pl.BlockSpec((tm, K), lambda i: (i, 0)),
            pl.BlockSpec((K, N), lambda i: (0, 0)),
            pl.BlockSpec((1, N), lambda i: (0, 0)),
            pl.BlockSpec((1, N), lambda i: (0, 0)),
            pl.BlockSpec((tm, N), lambda i: (i, 0)),
        ],
        out_specs=pl.BlockSpec((tm, N), lambda i: (i, 0)),
        compiler_params=_PARALLEL,
    )(x, w, b.reshape(1, N), gamma.reshape(1, N), res)


def layernorm(x, g, b):
    M, C = x.shape
    tm, gm = _row_tiles(M)
    return pl.pallas_call(
        _layernorm_kernel,
        out_shape=jax.ShapeDtypeStruct((M, C), jnp.float32),
        grid=(gm,),
        in_specs=[
            pl.BlockSpec((tm, C), lambda i: (i, 0)),
            pl.BlockSpec((1, C), lambda i: (0, 0)),
            pl.BlockSpec((1, C), lambda i: (0, 0)),
        ],
        out_specs=pl.BlockSpec((tm, C), lambda i: (i, 0)),
        compiler_params=_PARALLEL,
    )(x, g.reshape(1, C), b.reshape(1, C))


def multihead_attention(q, k, v, scale):
    # q, k, v: (B, HEADS, S, D) — one grid step per batch, all heads in-kernel.
    B, H, S, D = q.shape
    spec = pl.BlockSpec((1, H, S, D), lambda b: (b, 0, 0, 0))
    return pl.pallas_call(
        functools.partial(_attention_kernel, scale=scale),
        out_shape=jax.ShapeDtypeStruct((B, H, S, D), jnp.float32),
        grid=(B,),
        in_specs=[spec, spec, spec],
        out_specs=spec,
        compiler_params=_PARALLEL,
    )(q, k, v)


# ---- model -------------------------------------------------------------------
def init_params(key, num_patches):
    def nrm(k, shape, std=0.02):
        return std * jax.random.normal(k, shape, dtype=jnp.float32)

    def nrm_bf16(k, shape, std=0.02):
        return nrm(k, shape, std).astype(jnp.bfloat16)   # matmul weights live in bf16

    ks = jax.random.split(key, 3 + LAYERS)
    params = {
        "patch_w": nrm_bf16(ks[0], (IN_CH * PATCH * PATCH, HIDDEN)),
        "patch_b": jnp.zeros((HIDDEN,), jnp.float32),
        "cls": nrm(ks[1], (1, 1, HIDDEN)),
        # TODO(synk): HF bicubically interpolates a pretrained 37x37 pos-emb grid;
        # with synthetic weights we size the pos embedding directly to (1, 1+n, C).
        "pos": nrm(ks[2], (1, 1 + num_patches, HIDDEN)),
        "ln_g": jnp.ones((HIDDEN,), jnp.float32),
        "ln_b": jnp.zeros((HIDDEN,), jnp.float32),
        "layers": [],
    }
    for i in range(LAYERS):
        lk = jax.random.split(ks[3 + i], 4)
        params["layers"].append(
            {
                "ln1_g": jnp.ones((HIDDEN,), jnp.float32),
                "ln1_b": jnp.zeros((HIDDEN,), jnp.float32),
                "qkv_w": nrm_bf16(lk[0], (HIDDEN, 3 * HIDDEN)),
                "qkv_b": jnp.zeros((3 * HIDDEN,), jnp.float32),
                "proj_w": nrm_bf16(lk[1], (HIDDEN, HIDDEN)),
                "proj_b": jnp.zeros((HIDDEN,), jnp.float32),
                "ls1": jnp.ones((HIDDEN,), jnp.float32),  # HF layerscale_value = 1.0
                "ln2_g": jnp.ones((HIDDEN,), jnp.float32),
                "ln2_b": jnp.zeros((HIDDEN,), jnp.float32),
                "fc1_w": nrm_bf16(lk[2], (HIDDEN, MLP)),
                "fc1_b": jnp.zeros((MLP,), jnp.float32),
                "fc2_w": nrm_bf16(lk[3], (MLP, HIDDEN)),
                "fc2_b": jnp.zeros((HIDDEN,), jnp.float32),
                "ls2": jnp.ones((HIDDEN,), jnp.float32),
            }
        )
    return params


def dino_feature_pyramid(params, x):
    """x: (B, C, H, W) float32 NCHW  ->  (B, H//14, W//14, HIDDEN) float32."""
    B, C, H, W = x.shape
    h, w = H // PATCH, W // PATCH
    n = h * w

    # patch-embed conv(k=14, s=14) == non-overlapping patch extraction + matmul.
    # Flatten order (C, kh, kw) matches PyTorch conv weight.reshape(out, C*kh*kw).
    patches = x.reshape(B, C, h, PATCH, w, PATCH)
    patches = patches.transpose(0, 2, 4, 1, 3, 5).reshape(B * n, C * PATCH * PATCH)
    tok = linear(patches, params["patch_w"], params["patch_b"]).reshape(B, n, HIDDEN)

    cls = jnp.broadcast_to(params["cls"], (B, 1, HIDDEN))
    seq = jnp.concatenate([cls, tok], axis=1) + params["pos"]  # (B, 1+n, HIDDEN)
    S = 1 + n
    hs = seq.reshape(B * S, HIDDEN)

    scale = 1.0 / (HEAD_DIM ** 0.5)
    # TODO(synk): a further step would fuse each whole transformer block into a
    # single pallas_call (weights fit VMEM); kept at 5 fused calls/layer here.
    for lp in params["layers"]:
        # --- self-attention block (pre-LN fused into QKV, LayerScale+residual
        #     fused into the output projection) ---
        qkv = ln_linear(hs, lp["ln1_g"], lp["ln1_b"], lp["qkv_w"], lp["qkv_b"])
        qkv = qkv.reshape(B, S, 3, HEADS, HEAD_DIM).transpose(2, 0, 3, 1, 4)
        ctx = multihead_attention(qkv[0], qkv[1], qkv[2], scale)   # (B, H, S, D)
        ctx = ctx.transpose(0, 2, 1, 3).reshape(B * S, HIDDEN)
        hs = linear_scale_residual(ctx, lp["proj_w"], lp["proj_b"], lp["ls1"], hs)

        # --- MLP block (pre-LN + GELU fused into fc1, LayerScale+residual into fc2) ---
        y = ln_linear(hs, lp["ln2_g"], lp["ln2_b"], lp["fc1_w"], lp["fc1_b"],
                      activation="gelu")
        hs = linear_scale_residual(y, lp["fc2_w"], lp["fc2_b"], lp["ls2"], hs)

    hs = layernorm(hs, params["ln_g"], params["ln_b"])        # final LayerNorm
    seq_out = hs.reshape(B, S, HIDDEN)
    patch_out = seq_out[:, 1:]                                # drop CLS token
    return patch_out.reshape(B, h, w, HIDDEN)                 # 'b (h w) c -> b h w c'


if __name__ == "__main__":
    key = jax.random.PRNGKey(0)
    pkey, xkey = jax.random.split(key)

    B, C, H, W = 2, 3, 28, 28                 # smallest multiple of patch_size=14
    x = jax.random.normal(xkey, (B, C, H, W), dtype=jnp.float32)

    num_patches = (H // PATCH) * (W // PATCH)
    params = init_params(pkey, num_patches)

    fwd = jax.jit(dino_feature_pyramid)
    out = fwd(params, x)
    jax.block_until_ready(out)

    assert out.shape == (B, H // PATCH, W // PATCH, HIDDEN), out.shape
    assert out.dtype == jnp.float32
    print("KERNEL_OK")
</pallas_src>

<mosaic_0001>
module attributes {stable_mosaic.version = 11 : i64} {
  func.func @_linear_kernel(%arg0: i32, %arg1: memref<8x588xf32, #tpu.memory_space<vmem>>, %arg2: memref<588x384xbf16, #tpu.memory_space<vmem>>, %arg3: memref<1x384xf32, #tpu.memory_space<vmem>>, %arg4: memref<8x384xf32, #tpu.memory_space<vmem>>) attributes {dimension_semantics = [#tpu.dimension_semantics<parallel>], iteration_bounds = array<i64: 1>, scalar_prefetch = 0 : i64, scratch_operands = 0 : i64, tpu.core_type = #tpu.core_type<tc>, window_params = [{transform_indices = @transform_0, window_bounds = array<i64: 8, 588>}, {pipeline_mode = #tpu.pipeline_mode<synchronous>, transform_indices = @transform_1, window_bounds = array<i64: 588, 384>}, {pipeline_mode = #tpu.pipeline_mode<synchronous>, transform_indices = @transform_2, window_bounds = array<i64: 1, 384>}, {transform_indices = @transform_3, window_bounds = array<i64: 8, 384>}]} {
    %c0 = arith.constant 0 : index
    %c0_0 = arith.constant 0 : index
    %0 = vector.load %arg1[%c0, %c0_0] : memref<8x588xf32, #tpu.memory_space<vmem>>, vector<8x588xf32>
    %1 = arith.truncf %0 : vector<8x588xf32> to vector<8x588xbf16>
    %c0_1 = arith.constant 0 : index
    %c0_2 = arith.constant 0 : index
    %2 = vector.load %arg2[%c0_1, %c0_2] : memref<588x384xbf16, #tpu.memory_space<vmem>>, vector<588x384xbf16>
    %cst = arith.constant dense<0.000000e+00> : vector<8x384xf32>
    %3 = tpu.matmul %1, %2, %cst {dimension_numbers = #tpu.dot_dimension_numbers<[1], [0], [0], [1], [0, 0, 1, 1], [], []>} : vector<8x588xbf16>, vector<588x384xbf16>, vector<8x384xf32> -> vector<8x384xf32>
    %c0_3 = arith.constant 0 : index
    %c0_4 = arith.constant 0 : index
    %4 = vector.load %arg3[%c0_3, %c0_4] : memref<1x384xf32, #tpu.memory_space<vmem>>, vector<1x384xf32>
    %5 = vector.broadcast %4 : vector<1x384xf32> to vector<8x384xf32>
    %6 = arith.addf %3, %5 : vector<8x384xf32>
    %c0_5 = arith.constant 0 : index
    %c0_6 = arith.constant 0 : index
    %7 = vector.load %arg4[%c0_5, %c0_6] : memref<8x384xf32, #tpu.memory_space<vmem>>, vector<8x384xf32>
    tpu.vector_store %arg4[%c0_5, %c0_6], %6 {strides = array<i32>} : memref<8x384xf32, #tpu.memory_space<vmem>>, vector<8x384xf32>,
    return
  }
  func.func @transform_0(%arg0: i32) -> (i32, i32) {
    %c0_i32 = arith.constant 0 : i32
    %c0_i32_0 = arith.constant 0 : i32
    return %arg0, %c0_i32 : i32, i32
  }
  func.func @transform_1(%arg0: i32) -> (i32, i32) {
    %c0_i32 = arith.constant 0 : i32
    %c0_i32_0 = arith.constant 0 : i32
    %c0_i32_1 = arith.constant 0 : i32
    return %c0_i32, %c0_i32_0 : i32, i32
  }
  func.func @transform_2(%arg0: i32) -> (i32, i32) {
    %c0_i32 = arith.constant 0 : i32
    %c0_i32_0 = arith.constant 0 : i32
    %c0_i32_1 = arith.constant 0 : i32
    return %c0_i32, %c0_i32_0 : i32, i32
  }
  func.func @transform_3(%arg0: i32) -> (i32, i32) {
    %c0_i32 = arith.constant 0 : i32
    %c0_i32_0 = arith.constant 0 : i32
    return %arg0, %c0_i32 : i32, i32
  }
}

module attributes {stable_mosaic.version = 11 : i64} {
  func.func @_ln_linear_kernel(%arg0: i32, %arg1: memref<10x384xf32, #tpu.memory_space<vmem>>, %arg2: memref<1x384xf32, #tpu.memory_space<vmem>>, %arg3: memref<1x384xf32, #tpu.memory_space<vmem>>, %arg4: memref<384x1152xbf16, #tpu.memory_space<vmem>>, %arg5: memref<1x1152xf32, #tpu.memory_space<vmem>>, %arg6: memref<10x1152xf32, #tpu.memory_space<vmem>>) attributes {dimension_semantics = [#tpu.dimension_semantics<parallel>], iteration_bounds = array<i64: 1>, scalar_prefetch = 0 : i64, scratch_operands = 0 : i64, tpu.core_type = #tpu.core_type<tc>, window_params = [{transform_indices = @transform_0, window_bounds = array<i64: 10, 384>}, {pipeline_mode = #tpu.pipeline_mode<synchronous>, transform_indices = @transform_1, window_bounds = array<i64: 1, 384>}, {pipeline_mode = #tpu.pipeline_mode<synchronous>, transform_indices = @transform_2, window_bounds = array<i64: 1, 384>}, {pipeline_mode = #tpu.pipeline_mode<synchronous>, transform_indices = @transform_3, window_bounds = array<i64: 384, 1152>}, {pipeline_mode = #tpu.pipeline_mode<synchronous>, transform_indices = @transform_4, window_bounds = array<i64: 1, 1152>}, {transform_indices = @transform_5, window_bounds = array<i64: 10, 1152>}]} {
    %c0 = arith.constant 0 : index
    %c0_0 = arith.constant 0 : index
    %0 = vector.load %arg1[%c0, %c0_0] : memref<10x384xf32, #tpu.memory_space<vmem>>, vector<10x384xf32>
    %c0_1 = arith.constant 0 : index
    %c0_2 = arith.constant 0 : index
    %1 = vector.load %arg2[%c0_1, %c0_2] : memref<1x384xf32, #tpu.memory_space<vmem>>, vector<1x384xf32>
    %c0_3 = arith.constant 0 : index
    %c0_4 = arith.constant 0 : index
    %2 = vector.load %arg3[%c0_3, %c0_4] : memref<1x384xf32, #tpu.memory_space<vmem>>, vector<1x384xf32>
    %cst = arith.constant dense<0.000000e+00> : vector<10xf32>
    %3 = vector.multi_reduction <add>, %0, %cst [1] : vector<10x384xf32> to vector<10xf32>
    %4 = vector.shape_cast %3 : vector<10xf32> to vector<10x1xf32>
    %5 = arith.mulf %0, %0 : vector<10x384xf32>
    %cst_5 = arith.constant dense<0.000000e+00> : vector<10xf32>
    %6 = vector.multi_reduction <add>, %5, %cst_5 [1] : vector<10x384xf32> to vector<10xf32>
    %7 = vector.shape_cast %6 : vector<10xf32> to vector<10x1xf32>
    %cst_6 = arith.constant 0.00260416674 : f32
    %8 = vector.broadcast %cst_6 : f32 to vector<10x1xf32>
    %9 = arith.mulf %4, %8 : vector<10x1xf32>
    %cst_7 = arith.constant 0.00260416674 : f32
    %10 = vector.broadcast %cst_7 : f32 to vector<10x1xf32>
    %11 = arith.mulf %7, %10 : vector<10x1xf32>
    %12 = arith.mulf %9, %9 : vector<10x1xf32>
    %13 = arith.subf %11, %12 : vector<10x1xf32>
    %14 = vector.broadcast %9 : vector<10x1xf32> to vector<10x384xf32>
    %15 = arith.subf %0, %14 : vector<10x384xf32>
    %cst_8 = arith.constant 9.99999997E-7 : f32
    %16 = vector.broadcast %cst_8 : f32 to vector<10x1xf32>
    %17 = arith.addf %13, %16 : vector<10x1xf32>
    %18 = math.rsqrt %17 : vector<10x1xf32>
    %19 = vector.broadcast %18 : vector<10x1xf32> to vector<10x384xf32>
    %20 = arith.mulf %15, %19 : vector<10x384xf32>
    %21 = vector.broadcast %1 : vector<1x384xf32> to vector<10x384xf32>
    %22 = arith.mulf %20, %21 : vector<10x384xf32>
    %23 = vector.broadcast %2 : vector<1x384xf32> to vector<10x384xf32>
    %24 = arith.addf %22, %23 : vector<10x384xf32>
    %25 = arith.truncf %24 : vector<10x384xf32> to vector<10x384xbf16>
    %c0_9 = arith.constant 0 : index
    %c0_10 = arith.constant 0 : index
    %26 = vector.load %arg4[%c0_9, %c0_10] : memref<384x1152xbf16, #tpu.memory_space<vmem>>, vector<384x1152xbf16>
    %cst_11 = arith.constant dense<0.000000e+00> : vector<10x1152xf32>
    %27 = tpu.matmul %25, %26, %cst_11 {dimension_numbers = #tpu.dot_dimension_numbers<[1], [0], [0], [1], [0, 0, 1, 1], [], []>} : vector<10x384xbf16>, vector<384x1152xbf16>, vector<10x1152xf32> -> vector<10x1152xf32>
    %c0_12 = arith.constant 0 : index
    %c0_13 = arith.constant 0 : index
    %28 = vector.load %arg5[%c0_12, %c0_13] : memref<1x1152xf32, #tpu.memory_space<vmem>>, vector<1x1152xf32>
    %29 = vector.broadcast %28 : vector<1x1152xf32> to vector<10x1152xf32>
    %30 = arith.addf %27, %29 : vector<10x1152xf32>
    %c0_14 = arith.constant 0 : index
    %c0_15 = arith.constant 0 : index
    %31 = vector.load %arg6[%c0_14, %c0_15] : memref<10x1152xf32, #tpu.memory_space<vmem>>, vector<10x1152xf32>
    tpu.vector_store %arg6[%c0_14, %c0_15], %30 {strides = array<i32>} : memref<10x1152xf32, #tpu.memory_space<vmem>>, vector<10x1152xf32>,
    return
  }
  func.func @transform_0(%arg0: i32) -> (i32, i32) {
    %c0_i32 = arith.constant 0 : i32
    %c0_i32_0 = arith.constant 0 : i32
    return %arg0, %c0_i32 : i32, i32
  }
  func.func @transform_1(%arg0: i32) -> (i32, i32) {
    %c0_i32 = arith.constant 0 : i32
    %c0_i32_0 = arith.constant 0 : i32
    %c0_i32_1 = arith.constant 0 : i32
    return %c0_i32, %c0_i32_0 : i32, i32
  }
  func.func @transform_2(%arg0: i32) -> (i32, i32) {
    %c0_i32 = arith.constant 0 : i32
    %c0_i32_0 = arith.constant 0 : i32
    %c0_i32_1 = arith.constant 0 : i32
    return %c0_i32, %c0_i32_0 : i32, i32
  }
  func.func @transform_3(%arg0: i32) -> (i32, i32) {
    %c0_i32 = arith.constant 0 : i32
    %c0_i32_0 = arith.constant 0 : i32
    %c0_i32_1 = arith.constant 0 : i32
    return %c0_i32, %c0_i32_0 : i32, i32
  }
  func.func @transform_4(%arg0: i32) -> (i32, i32) {
    %c0_i32 = arith.constant 0 : i32
    %c0_i32_0 = arith.constant 0 : i32
    %c0_i32_1 = arith.constant 0 : i32
    return %c0_i32, %c0_i32_0 : i32, i32
  }
  func.func @transform_5(%arg0: i32) -> (i32, i32) {
    %c0_i32 = arith.constant 0 : i32
    %c0_i32_0 = arith.constant 0 : i32
    return %arg0, %c0_i32 : i32, i32
  }
}

module attributes {stable_mosaic.version = 11 : i64} {
  func.func @_attention_kernel(%arg0: i32, %arg1: memref<1x6x5x64xf32, #tpu.memory_space<vmem>>, %arg2: memref<1x6x5x64xf32, #tpu.memory_space<vmem>>, %arg3: memref<1x6x5x64xf32, #tpu.memory_space<vmem>>, %arg4: memref<1x6x5x64xf32, #tpu.memory_space<vmem>>) attributes {dimension_semantics = [#tpu.dimension_semantics<parallel>], iteration_bounds = array<i64: 2>, scalar_prefetch = 0 : i64, scratch_operands = 0 : i64, tpu.core_type = #tpu.core_type<tc>, window_params = [{transform_indices = @transform_0, window_bounds = array<i64: 1, 6, 5, 64>}, {transform_indices = @transform_1, window_bounds = array<i64: 1, 6, 5, 64>}, {transform_indices = @transform_2, window_bounds = array<i64: 1, 6, 5, 64>}, {transform_indices = @transform_3, window_bounds = array<i64: 1, 6, 5, 64>}]} {
    %c0 = arith.constant 0 : index
    %c0_0 = arith.constant 0 : index
    %c0_1 = arith.constant 0 : index
    %c0_2 = arith.constant 0 : index
    %0 = vector.load %arg1[%c0, %c0_0, %c0_1, %c0_2] : memref<1x6x5x64xf32, #tpu.memory_space<vmem>>, vector<1x6x5x64xf32>
    %1 = vector.shape_cast %0 : vector<1x6x5x64xf32> to vector<6x5x64xf32>
    %cst = arith.constant 1.250000e-01 : f32
    %2 = vector.broadcast %cst : f32 to vector<6x5x64xf32>
    %3 = arith.mulf %1, %2 : vector<6x5x64xf32>
    %4 = arith.truncf %3 : vector<6x5x64xf32> to vector<6x5x64xbf16>
    %c0_3 = arith.constant 0 : index
    %c0_4 = arith.constant 0 : index
    %c0_5 = arith.constant 0 : index
    %c0_6 = arith.constant 0 : index
    %5 = vector.load %arg2[%c0_3, %c0_4, %c0_5, %c0_6] : memref<1x6x5x64xf32, #tpu.memory_space<vmem>>, vector<1x6x5x64xf32>
    %6 = vector.shape_cast %5 : vector<1x6x5x64xf32> to vector<6x5x64xf32>
    %7 = arith.truncf %6 : vector<6x5x64xf32> to vector<6x5x64xbf16>
    %c0_7 = arith.constant 0 : index
    %c0_8 = arith.constant 0 : index
    %c0_9 = arith.constant 0 : index
    %c0_10 = arith.constant 0 : index
    %8 = vector.load %arg3[%c0_7, %c0_8, %c0_9, %c0_10] : memref<1x6x5x64xf32, #tpu.memory_space<vmem>>, vector<1x6x5x64xf32>
    %9 = vector.shape_cast %8 : vector<1x6x5x64xf32> to vector<6x5x64xf32>
    %10 = arith.truncf %9 : vector<6x5x64xf32> to vector<6x5x64xbf16>
    "tpu.trace_start"() <{level = 10 : i32, message = "hqd,hkd->hqk"}> : () -> ()
    %cst_11 = arith.constant dense<0.000000e+00> : vector<6x5x5xf32>
    %11 = tpu.matmul %4, %7, %cst_11 {dimension_numbers = #tpu.dot_dimension_numbers<[2], [2], [1], [1], [0, 0, 0, 1, 1, 1], [0], [0]>} : vector<6x5x64xbf16>, vector<6x5x64xbf16>, vector<6x5x5xf32> -> vector<6x5x5xf32>
    "tpu.trace_stop"() : () -> ()
    %cst_12 = arith.constant dense<0xFF800000> : vector<6x5xf32>
    %12 = vector.multi_reduction <maximumf>, %11, %cst_12 [2] : vector<6x5x5xf32> to vector<6x5xf32>
    %13 = vector.shape_cast %12 : vector<6x5xf32> to vector<6x5x1xf32>
    %14 = vector.broadcast %13 : vector<6x5x1xf32> to vector<6x5x5xf32>
    %15 = arith.subf %11, %14 : vector<6x5x5xf32>
    %16 = math.exp %15 : vector<6x5x5xf32>
    %cst_13 = arith.constant dense<0.000000e+00> : vector<6x5xf32>
    %17 = vector.multi_reduction <add>, %16, %cst_13 [2] : vector<6x5x5xf32> to vector<6x5xf32>
    %18 = vector.shape_cast %17 : vector<6x5xf32> to vector<6x5x1xf32>
    %19 = arith.truncf %16 : vector<6x5x5xf32> to vector<6x5x5xbf16>
    "tpu.trace_start"() <{level = 10 : i32, message = "hqk,hkd->hqd"}> : () -> ()
    %cst_14 = arith.constant dense<0.000000e+00> : vector<6x5x64xf32>
    %20 = tpu.matmul %19, %10, %cst_14 {dimension_numbers = #tpu.dot_dimension_numbers<[2], [1], [1], [2], [0, 0, 0, 1, 1, 2], [0], [0]>} : vector<6x5x5xbf16>, vector<6x5x64xbf16>, vector<6x5x64xf32> -> vector<6x5x64xf32>
    "tpu.trace_stop"() : () -> ()
    %21 = tpu.reciprocal %18 {approx = true} : vector<6x5x1xf32> -> vector<6x5x1xf32>
    %22 = vector.broadcast %21 : vector<6x5x1xf32> to vector<6x5x64xf32>
    %23 = arith.mulf %20, %22 : vector<6x5x64xf32>
    %c0_15 = arith.constant 0 : index
    %c0_16 = arith.constant 0 : index
    %c0_17 = arith.constant 0 : index
    %c0_18 = arith.constant 0 : index
    %24 = vector.load %arg4[%c0_15, %c0_16, %c0_17, %c0_18] : memref<1x6x5x64xf32, #tpu.memory_space<vmem>>, vector<1x6x5x64xf32>
    %25 = vector.shape_cast %24 : vector<1x6x5x64xf32> to vector<6x5x64xf32>
    %26 = vector.shape_cast %23 : vector<6x5x64xf32> to vector<1x6x5x64xf32>
    tpu.vector_store %arg4[%c0_15, %c0_16, %c0_17, %c0_18], %26 {strides = array<i32>} : memref<1x6x5x64xf32, #tpu.memory_space<vmem>>, vector<1x6x5x64xf32>,
    return
  }
  func.func @transform_0(%arg0: i32) -> (i32, i32, i32, i32) {
    %c0_i32 = arith.constant 0 : i32
    %c0_i32_0 = arith.constant 0 : i32
    %c0_i32_1 = arith.constant 0 : i32
    %c0_i32_2 = arith.constant 0 : i32
    return %arg0, %c0_i32, %c0_i32_0, %c0_i32_1 : i32, i32, i32, i32
  }
  func.func @transform_1(%arg0: i32) -> (i32, i32, i32, i32) {
    %c0_i32 = arith.constant 0 : i32
    %c0_i32_0 = arith.constant 0 : i32
    %c0_i32_1 = arith.constant 0 : i32
    %c0_i32_2 = arith.constant 0 : i32
    return %arg0, %c0_i32, %c0_i32_0, %c0_i32_1 : i32, i32, i32, i32
  }
  func.func @transform_2(%arg0: i32) -> (i32, i32, i32, i32) {
    %c0_i32 = arith.constant 0 : i32
    %c0_i32_0 = arith.constant 0 : i32
    %c0_i32_1 = arith.constant 0 : i32
    %c0_i32_2 = arith.constant 0 : i32
    return %arg0, %c0_i32, %c0_i32_0, %c0_i32_1 : i32, i32, i32, i32
  }
  func.func @transform_3(%arg0: i32) -> (i32, i32, i32, i32) {
    %c0_i32 = arith.constant 0 : i32
    %c0_i32_0 = arith.constant 0 : i32
    %c0_i32_1 = arith.constant 0 : i32
    %c0_i32_2 = arith.constant 0 : i32
    return %arg0, %c0_i32, %c0_i32_0, %c0_i32_1 : i32, i32, i32, i32
  }
}

module attributes {stable_mosaic.version = 11 : i64} {
  func.func @_linear_scale_res_kernel(%arg0: i32, %arg1: memref<10x384xf32, #tpu.memory_space<vmem>>, %arg2: memref<384x384xbf16, #tpu.memory_space<vmem>>, %arg3: memref<1x384xf32, #tpu.memory_space<vmem>>, %arg4: memref<1x384xf32, #tpu.memory_space<vmem>>, %arg5: memref<10x384xf32, #tpu.memory_space<vmem>>, %arg6: memref<10x384xf32, #tpu.memory_space<vmem>>) attributes {dimension_semantics = [#tpu.dimension_semantics<parallel>], iteration_bounds = array<i64: 1>, scalar_prefetch = 0 : i64, scratch_operands = 0 : i64, tpu.core_type = #tpu.core_type<tc>, window_params = [{transform_indices = @transform_0, window_bounds = array<i64: 10, 384>}, {pipeline_mode = #tpu.pipeline_mode<synchronous>, transform_indices = @transform_1, window_bounds = array<i64: 384, 384>}, {pipeline_mode = #tpu.pipeline_mode<synchronous>, transform_indices = @transform_2, window_bounds = array<i64: 1, 384>}, {pipeline_mode = #tpu.pipeline_mode<synchronous>, transform_indices = @transform_3, window_bounds = array<i64: 1, 384>}, {transform_indices = @transform_4, window_bounds = array<i64: 10, 384>}, {transform_indices = @transform_5, window_bounds = array<i64: 10, 384>}]} {
    %c0 = arith.constant 0 : index
    %c0_0 = arith.constant 0 : index
    %0 = vector.load %arg1[%c0, %c0_0] : memref<10x384xf32, #tpu.memory_space<vmem>>, vector<10x384xf32>
    %1 = arith.truncf %0 : vector<10x384xf32> to vector<10x384xbf16>
    %c0_1 = arith.constant 0 : index
    %c0_2 = arith.constant 0 : index
    %2 = vector.load %arg2[%c0_1, %c0_2] : memref<384x384xbf16, #tpu.memory_space<vmem>>, vector<384x384xbf16>
    %cst = arith.constant dense<0.000000e+00> : vector<10x384xf32>
    %3 = tpu.matmul %1, %2, %cst {dimension_numbers = #tpu.dot_dimension_numbers<[1], [0], [0], [1], [0, 0, 1, 1], [], []>} : vector<10x384xbf16>, vector<384x384xbf16>, vector<10x384xf32> -> vector<10x384xf32>
    %c0_3 = arith.constant 0 : index
    %c0_4 = arith.constant 0 : index
    %4 = vector.load %arg3[%c0_3, %c0_4] : memref<1x384xf32, #tpu.memory_space<vmem>>, vector<1x384xf32>
    %5 = vector.broadcast %4 : vector<1x384xf32> to vector<10x384xf32>
    %6 = arith.addf %3, %5 : vector<10x384xf32>
    %c0_5 = arith.constant 0 : index
    %c0_6 = arith.constant 0 : index
    %7 = vector.load %arg5[%c0_5, %c0_6] : memref<10x384xf32, #tpu.memory_space<vmem>>, vector<10x384xf32>
    %c0_7 = arith.constant 0 : index
    %c0_8 = arith.constant 0 : index
    %8 = vector.load %arg4[%c0_7, %c0_8] : memref<1x384xf32, #tpu.memory_space<vmem>>, vector<1x384xf32>
    %9 = vector.broadcast %8 : vector<1x384xf32> to vector<10x384xf32>
    %10 = arith.mulf %6, %9 : vector<10x384xf32>
    %11 = arith.addf %7, %10 : vector<10x384xf32>
    %c0_9 = arith.constant 0 : index
    %c0_10 = arith.constant 0 : index
    %12 = vector.load %arg6[%c0_9, %c0_10] : memref<10x384xf32, #tpu.memory_space<vmem>>, vector<10x384xf32>
    tpu.vector_store %arg6[%c0_9, %c0_10], %11 {strides = array<i32>} : memref<10x384xf32, #tpu.memory_space<vmem>>, vector<10x384xf32>,
    return
  }
  func.func @transform_0(%arg0: i32) -> (i32, i32) {
    %c0_i32 = arith.constant 0 : i32
    %c0_i32_0 = arith.constant 0 : i32
    return %arg0, %c0_i32 : i32, i32
  }
  func.func @transform_1(%arg0: i32) -> (i32, i32) {
    %c0_i32 = arith.constant 0 : i32
    %c0_i32_0 = arith.constant 0 : i32
    %c0_i32_1 = arith.constant 0 : i32
    return %c0_i32, %c0_i32_0 : i32, i32
  }
  func.func @transform_2(%arg0: i32) -> (i32, i32) {
    %c0_i32 = arith.constant 0 : i32
    %c0_i32_0 = arith.constant 0 : i32
    %c0_i32_1 = arith.constant 0 : i32
    return %c0_i32, %c0_i32_0 : i32, i32
  }
  func.func @transform_3(%arg0: i32) -> (i32, i32) {
    %c0_i32 = arith.constant 0 : i32
    %c0_i32_0 = arith.constant 0 : i32
    %c0_i32_1 = arith.constant 0 : i32
    return %c0_i32, %c0_i32_0 : i32, i32
  }
  func.func @transform_4(%arg0: i32) -> (i32, i32) {
    %c0_i32 = arith.constant 0 : i32
    %c0_i32_0 = arith.constant 0 : i32
    return %arg0, %c0_i32 : i32, i32
  }
  func.func @transform_5(%arg0: i32) -> (i32, i32) {
    %c0_i32 = arith.constant 0 : i32
    %c0_i32_0 = arith.constant 0 : i32
    return %arg0, %c0_i32 : i32, i32
  }
}

module attributes {stable_mosaic.version = 11 : i64} {
  func.func @_linear_scale_res_kernel(%arg0: i32, %arg1: memref<10x1536xf32, #tpu.memory_space<vmem>>, %arg2: memref<1536x384xbf16, #tpu.memory_space<vmem>>, %arg3: memref<1x384xf32, #tpu.memory_space<vmem>>, %arg4: memref<1x384xf32, #tpu.memory_space<vmem>>, %arg5: memref<10x384xf32, #tpu.memory_space<vmem>>, %arg6: memref<10x384xf32, #tpu.memory_space<vmem>>) attributes {dimension_semantics = [#tpu.dimension_semantics<parallel>], iteration_bounds = array<i64: 1>, scalar_prefetch = 0 : i64, scratch_operands = 0 : i64, tpu.core_type = #tpu.core_type<tc>, window_params = [{transform_indices = @transform_0, window_bounds = array<i64: 10, 1536>}, {pipeline_mode = #tpu.pipeline_mode<synchronous>, transform_indices = @transform_1, window_bounds = array<i64: 1536, 384>}, {pipeline_mode = #tpu.pipeline_mode<synchronous>, transform_indices = @transform_2, window_bounds = array<i64: 1, 384>}, {pipeline_mode = #tpu.pipeline_mode<synchronous>, transform_indices = @transform_3, window_bounds = array<i64: 1, 384>}, {transform_indices = @transform_4, window_bounds = array<i64: 10, 384>}, {transform_indices = @transform_5, window_bounds = array<i64: 10, 384>}]} {
    %c0 = arith.constant 0 : index
    %c0_0 = arith.constant 0 : index
    %0 = vector.load %arg1[%c0, %c0_0] : memref<10x1536xf32, #tpu.memory_space<vmem>>, vector<10x1536xf32>
    %1 = arith.truncf %0 : vector<10x1536xf32> to vector<10x1536xbf16>
    %c0_1 = arith.constant 0 : index
    %c0_2 = arith.constant 0 : index
    %2 = vector.load %arg2[%c0_1, %c0_2] : memref<1536x384xbf16, #tpu.memory_space<vmem>>, vector<1536x384xbf16>
    %cst = arith.constant dense<0.000000e+00> : vector<10x384xf32>
    %3 = tpu.matmul %1, %2, %cst {dimension_numbers = #tpu.dot_dimension_numbers<[1], [0], [0], [1], [0, 0, 1, 1], [], []>} : vector<10x1536xbf16>, vector<1536x384xbf16>, vector<10x384xf32> -> vector<10x384xf32>
    %c0_3 = arith.constant 0 : index
    %c0_4 = arith.constant 0 : index
    %4 = vector.load %arg3[%c0_3, %c0_4] : memref<1x384xf32, #tpu.memory_space<vmem>>, vector<1x384xf32>
    %5 = vector.broadcast %4 : vector<1x384xf32> to vector<10x384xf32>
    %6 = arith.addf %3, %5 : vector<10x384xf32>
    %c0_5 = arith.constant 0 : index
    %c0_6 = arith.constant 0 : index
    %7 = vector.load %arg5[%c0_5, %c0_6] : memref<10x384xf32, #tpu.memory_space<vmem>>, vector<10x384xf32>
    %c0_7 = arith.constant 0 : index
    %c0_8 = arith.constant 0 : index
    %8 = vector.load %arg4[%c0_7, %c0_8] : memref<1x384xf32, #tpu.memory_space<vmem>>, vector<1x384xf32>
    %9 = vector.broadcast %8 : vector<1x384xf32> to vector<10x384xf32>
    %10 = arith.mulf %6, %9 : vector<10x384xf32>
    %11 = arith.addf %7, %10 : vector<10x384xf32>
    %c0_9 = arith.constant 0 : index
    %c0_10 = arith.constant 0 : index
    %12 = vector.load %arg6[%c0_9, %c0_10] : memref<10x384xf32, #tpu.memory_space<vmem>>, vector<10x384xf32>
    tpu.vector_store %arg6[%c0_9, %c0_10], %11 {strides = array<i32>} : memref<10x384xf32, #tpu.memory_space<vmem>>, vector<10x384xf32>,
    return
  }
  func.func @transform_0(%arg0: i32) -> (i32, i32) {
    %c0_i32 = arith.constant 0 : i32
    %c0_i32_0 = arith.constant 0 : i32
    return %arg0, %c0_i32 : i32, i32
  }
  func.func @transform_1(%arg0: i32) -> (i32, i32) {
    %c0_i32 = arith.constant 0 : i32
    %c0_i32_0 = arith.constant 0 : i32
    %c0_i32_1 = arith.constant 0 : i32
    return %c0_i32, %c0_i32_0 : i32, i32
  }
  func.func @transform_2(%arg0: i32) -> (i32, i32) {
    %c0_i32 = arith.constant 0 : i32
    %c0_i32_0 = arith.constant 0 : i32
    %c0_i32_1 = arith.constant 0 : i32
    return %c0_i32, %c0_i32_0 : i32, i32
  }
  func.func @transform_3(%arg0: i32) -> (i32, i32) {
    %c0_i32 = arith.constant 0 : i32
    %c0_i32_0 = arith.constant 0 : i32
    %c0_i32_1 = arith.constant 0 : i32
    return %c0_i32, %c0_i32_0 : i32, i32
  }
  func.func @transform_4(%arg0: i32) -> (i32, i32) {
    %c0_i32 = arith.constant 0 : i32
    %c0_i32_0 = arith.constant 0 : i32
    return %arg0, %c0_i32 : i32, i32
  }
  func.func @transform_5(%arg0: i32) -> (i32, i32) {
    %c0_i32 = arith.constant 0 : i32
    %c0_i32_0 = arith.constant 0 : i32
    return %arg0, %c0_i32 : i32, i32
  }
}

module attributes {stable_mosaic.version = 11 : i64} {
  func.func @_layernorm_kernel(%arg0: i32, %arg1: memref<10x384xf32, #tpu.memory_space<vmem>>, %arg2: memref<1x384xf32, #tpu.memory_space<vmem>>, %arg3: memref<1x384xf32, #tpu.memory_space<vmem>>, %arg4: memref<10x384xf32, #tpu.memory_space<vmem>>) attributes {dimension_semantics = [#tpu.dimension_semantics<parallel>], iteration_bounds = array<i64: 1>, scalar_prefetch = 0 : i64, scratch_operands = 0 : i64, tpu.core_type = #tpu.core_type<tc>, window_params = [{transform_indices = @transform_0, window_bounds = array<i64: 10, 384>}, {pipeline_mode = #tpu.pipeline_mode<synchronous>, transform_indices = @transform_1, window_bounds = array<i64: 1, 384>}, {pipeline_mode = #tpu.pipeline_mode<synchronous>, transform_indices = @transform_2, window_bounds = array<i64: 1, 384>}, {transform_indices = @transform_3, window_bounds = array<i64: 10, 384>}]} {
    %c0 = arith.constant 0 : index
    %c0_0 = arith.constant 0 : index
    %0 = vector.load %arg1[%c0, %c0_0] : memref<10x384xf32, #tpu.memory_space<vmem>>, vector<10x384xf32>
    %c0_1 = arith.constant 0 : index
    %c0_2 = arith.constant 0 : index
    %1 = vector.load %arg2[%c0_1, %c0_2] : memref<1x384xf32, #tpu.memory_space<vmem>>, vector<1x384xf32>
    %c0_3 = arith.constant 0 : index
    %c0_4 = arith.constant 0 : index
    %2 = vector.load %arg3[%c0_3, %c0_4] : memref<1x384xf32, #tpu.memory_space<vmem>>, vector<1x384xf32>
    %cst = arith.constant dense<0.000000e+00> : vector<10xf32>
    %3 = vector.multi_reduction <add>, %0, %cst [1] : vector<10x384xf32> to vector<10xf32>
    %4 = vector.shape_cast %3 : vector<10xf32> to vector<10x1xf32>
    %5 = arith.mulf %0, %0 : vector<10x384xf32>
    %cst_5 = arith.constant dense<0.000000e+00> : vector<10xf32>
    %6 = vector.multi_reduction <add>, %5, %cst_5 [1] : vector<10x384xf32> to vector<10xf32>
    %7 = vector.shape_cast %6 : vector<10xf32> to vector<10x1xf32>
    %cst_6 = arith.constant 0.00260416674 : f32
    %8 = vector.broadcast %cst_6 : f32 to vector<10x1xf32>
    %9 = arith.mulf %4, %8 : vector<10x1xf32>
    %cst_7 = arith.constant 0.00260416674 : f32
    %10 = vector.broadcast %cst_7 : f32 to vector<10x1xf32>
    %11 = arith.mulf %7, %10 : vector<10x1xf32>
    %12 = arith.mulf %9, %9 : vector<10x1xf32>
    %13 = arith.subf %11, %12 : vector<10x1xf32>
    %14 = vector.broadcast %9 : vector<10x1xf32> to vector<10x384xf32>
    %15 = arith.subf %0, %14 : vector<10x384xf32>
    %cst_8 = arith.constant 9.99999997E-7 : f32
    %16 = vector.broadcast %cst_8 : f32 to vector<10x1xf32>
    %17 = arith.addf %13, %16 : vector<10x1xf32>
    %18 = math.rsqrt %17 : vector<10x1xf32>
    %19 = vector.broadcast %18 : vector<10x1xf32> to vector<10x384xf32>
    %20 = arith.mulf %15, %19 : vector<10x384xf32>
    %21 = vector.broadcast %1 : vector<1x384xf32> to vector<10x384xf32>
    %22 = arith.mulf %20, %21 : vector<10x384xf32>
    %23 = vector.broadcast %2 : vector<1x384xf32> to vector<10x384xf32>
    %24 = arith.addf %22, %23 : vector<10x384xf32>
    %c0_9 = arith.constant 0 : index
    %c0_10 = arith.constant 0 : index
    %25 = vector.load %arg4[%c0_9, %c0_10] : memref<10x384xf32, #tpu.memory_space<vmem>>, vector<10x384xf32>
    tpu.vector_store %arg4[%c0_9, %c0_10], %24 {strides = array<i32>} : memref<10x384xf32, #tpu.memory_space<vmem>>, vector<10x384xf32>,
    return
  }
  func.func @transform_0(%arg0: i32) -> (i32, i32) {
    %c0_i32 = arith.constant 0 : i32
    %c0_i32_0 = arith.constant 0 : i32
    return %arg0, %c0_i32 : i32, i32
  }
  func.func @transform_1(%arg0: i32) -> (i32, i32) {
    %c0_i32 = arith.constant 0 : i32
    %c0_i32_0 = arith.constant 0 : i32
    %c0_i32_1 = arith.constant 0 : i32
    return %c0_i32, %c0_i32_0 : i32, i32
  }
  func.func @transform_2(%arg0: i32) -> (i32, i32) {
    %c0_i32 = arith.constant 0 : i32
    %c0_i32_0 = arith.constant 0 : i32
    %c0_i32_1 = arith.constant 0 : i32
    return %c0_i32, %c0_i32_0 : i32, i32
  }
  func.func @transform_3(%arg0: i32) -> (i32, i32) {
    %c0_i32 = arith.constant 0 : i32
    %c0_i32_0 = arith.constant 0 : i32
    return %arg0, %c0_i32 : i32, i32
  }
}

module attributes {stable_mosaic.version = 11 : i64} {
  func.func @_ln_linear_kernel(%arg0: i32, %arg1: memref<10x384xf32, #tpu.memory_space<vmem>>, %arg2: memref<1x384xf32, #tpu.memory_space<vmem>>, %arg3: memref<1x384xf32, #tpu.memory_space<vmem>>, %arg4: memref<384x1536xbf16, #tpu.memory_space<vmem>>, %arg5: memref<1x1536xf32, #tpu.memory_space<vmem>>, %arg6: memref<10x1536xf32, #tpu.memory_space<vmem>>) attributes {dimension_semantics = [#tpu.dimension_semantics<parallel>], iteration_bounds = array<i64: 1>, scalar_prefetch = 0 : i64, scratch_operands = 0 : i64, tpu.core_type = #tpu.core_type<tc>, window_params = [{transform_indices = @transform_0, window_bounds = array<i64: 10, 384>}, {pipeline_mode = #tpu.pipeline_mode<synchronous>, transform_indices = @transform_1, window_bounds = array<i64: 1, 384>}, {pipeline_mode = #tpu.pipeline_mode<synchronous>, transform_indices = @transform_2, window_bounds = array<i64: 1, 384>}, {pipeline_mode = #tpu.pipeline_mode<synchronous>, transform_indices = @transform_3, window_bounds = array<i64: 384, 1536>}, {pipeline_mode = #tpu.pipeline_mode<synchronous>, transform_indices = @transform_4, window_bounds = array<i64: 1, 1536>}, {transform_indices = @transform_5, window_bounds = array<i64: 10, 1536>}]} {
    %c0 = arith.constant 0 : index
    %c0_0 = arith.constant 0 : index
    %0 = vector.load %arg1[%c0, %c0_0] : memref<10x384xf32, #tpu.memory_space<vmem>>, vector<10x384xf32>
    %c0_1 = arith.constant 0 : index
    %c0_2 = arith.constant 0 : index
    %1 = vector.load %arg2[%c0_1, %c0_2] : memref<1x384xf32, #tpu.memory_space<vmem>>, vector<1x384xf32>
    %c0_3 = arith.constant 0 : index
    %c0_4 = arith.constant 0 : index
    %2 = vector.load %arg3[%c0_3, %c0_4] : memref<1x384xf32, #tpu.memory_space<vmem>>, vector<1x384xf32>
    %cst = arith.constant dense<0.000000e+00> : vector<10xf32>
    %3 = vector.multi_reduction <add>, %0, %cst [1] : vector<10x384xf32> to vector<10xf32>
    %4 = vector.shape_cast %3 : vector<10xf32> to vector<10x1xf32>
    %5 = arith.mulf %0, %0 : vector<10x384xf32>
    %cst_5 = arith.constant dense<0.000000e+00> : vector<10xf32>
    %6 = vector.multi_reduction <add>, %5, %cst_5 [1] : vector<10x384xf32> to vector<10xf32>
    %7 = vector.shape_cast %6 : vector<10xf32> to vector<10x1xf32>
    %cst_6 = arith.constant 0.00260416674 : f32
    %8 = vector.broadcast %cst_6 : f32 to vector<10x1xf32>
    %9 = arith.mulf %4, %8 : vector<10x1xf32>
    %cst_7 = arith.constant 0.00260416674 : f32
    %10 = vector.broadcast %cst_7 : f32 to vector<10x1xf32>
    %11 = arith.mulf %7, %10 : vector<10x1xf32>
    %12 = arith.mulf %9, %9 : vector<10x1xf32>
    %13 = arith.subf %11, %12 : vector<10x1xf32>
    %14 = vector.broadcast %9 : vector<10x1xf32> to vector<10x384xf32>
    %15 = arith.subf %0, %14 : vector<10x384xf32>
    %cst_8 = arith.constant 9.99999997E-7 : f32
    %16 = vector.broadcast %cst_8 : f32 to vector<10x1xf32>
    %17 = arith.addf %13, %16 : vector<10x1xf32>
    %18 = math.rsqrt %17 : vector<10x1xf32>
    %19 = vector.broadcast %18 : vector<10x1xf32> to vector<10x384xf32>
    %20 = arith.mulf %15, %19 : vector<10x384xf32>
    %21 = vector.broadcast %1 : vector<1x384xf32> to vector<10x384xf32>
    %22 = arith.mulf %20, %21 : vector<10x384xf32>
    %23 = vector.broadcast %2 : vector<1x384xf32> to vector<10x384xf32>
    %24 = arith.addf %22, %23 : vector<10x384xf32>
    %25 = arith.truncf %24 : vector<10x384xf32> to vector<10x384xbf16>
    %c0_9 = arith.constant 0 : index
    %c0_10 = arith.constant 0 : index
    %26 = vector.load %arg4[%c0_9, %c0_10] : memref<384x1536xbf16, #tpu.memory_space<vmem>>, vector<384x1536xbf16>
    %cst_11 = arith.constant dense<0.000000e+00> : vector<10x1536xf32>
    %27 = tpu.matmul %25, %26, %cst_11 {dimension_numbers = #tpu.dot_dimension_numbers<[1], [0], [0], [1], [0, 0, 1, 1], [], []>} : vector<10x384xbf16>, vector<384x1536xbf16>, vector<10x1536xf32> -> vector<10x1536xf32>
    %c0_12 = arith.constant 0 : index
    %c0_13 = arith.constant 0 : index
    %28 = vector.load %arg5[%c0_12, %c0_13] : memref<1x1536xf32, #tpu.memory_space<vmem>>, vector<1x1536xf32>
    %29 = vector.broadcast %28 : vector<1x1536xf32> to vector<10x1536xf32>
    %30 = arith.addf %27, %29 : vector<10x1536xf32>
    %cst_14 = arith.constant 5.000000e-01 : f32
    %31 = vector.broadcast %cst_14 : f32 to vector<10x1536xf32>
    %32 = arith.mulf %31, %30 : vector<10x1536xf32>
    %cst_15 = arith.constant 0.707106769 : f32
    %33 = vector.broadcast %cst_15 : f32 to vector<10x1536xf32>
    %34 = arith.mulf %30, %33 : vector<10x1536xf32>
    %35 = math.erf %34 : vector<10x1536xf32>
    %cst_16 = arith.constant 1.000000e+00 : f32
    %36 = vector.broadcast %cst_16 : f32 to vector<10x1536xf32>
    %37 = arith.addf %36, %35 : vector<10x1536xf32>
    %38 = arith.mulf %32, %37 : vector<10x1536xf32>
    %c0_17 = arith.constant 0 : index
    %c0_18 = arith.constant 0 : index
    %39 = vector.load %arg6[%c0_17, %c0_18] : memref<10x1536xf32, #tpu.memory_space<vmem>>, vector<10x1536xf32>
    tpu.vector_store %arg6[%c0_17, %c0_18], %38 {strides = array<i32>} : memref<10x1536xf32, #tpu.memory_space<vmem>>, vector<10x1536xf32>,
    return
  }
  func.func @transform_0(%arg0: i32) -> (i32, i32) {
    %c0_i32 = arith.constant 0 : i32
    %c0_i32_0 = arith.constant 0 : i32
    return %arg0, %c0_i32 : i32, i32
  }
  func.func @transform_1(%arg0: i32) -> (i32, i32) {
    %c0_i32 = arith.constant 0 : i32
    %c0_i32_0 = arith.constant 0 : i32
    %c0_i32_1 = arith.constant 0 : i32
    return %c0_i32, %c0_i32_0 : i32, i32
  }
  func.func @transform_2(%arg0: i32) -> (i32, i32) {
    %c0_i32 = arith.constant 0 : i32
    %c0_i32_0 = arith.constant 0 : i32
    %c0_i32_1 = arith.constant 0 : i32
    return %c0_i32, %c0_i32_0 : i32, i32
  }
  func.func @transform_3(%arg0: i32) -> (i32, i32) {
    %c0_i32 = arith.constant 0 : i32
    %c0_i32_0 = arith.constant 0 : i32
    %c0_i32_1 = arith.constant 0 : i32
    return %c0_i32, %c0_i32_0 : i32, i32
  }
  func.func @transform_4(%arg0: i32) -> (i32, i32) {
    %c0_i32 = arith.constant 0 : i32
    %c0_i32_0 = arith.constant 0 : i32
    %c0_i32_1 = arith.constant 0 : i32
    return %c0_i32, %c0_i32_0 : i32, i32
  }
  func.func @transform_5(%arg0: i32) -> (i32, i32) {
    %c0_i32 = arith.constant 0 : i32
    %c0_i32_0 = arith.constant 0 : i32
    return %arg0, %c0_i32 : i32, i32
  }
}

</mosaic_0001>

<bundles_post_ra>
// kernel: dino_feature_pyramid.64
= control target key start
LH: loop header
LB: loop body
LE: loop exit
PB: predicated region body
PF: predicated region fallthrough
CT: control target
= control target key end

     0   :  { %s1157_s12 = smov 0   ;;  %s1290_s0 = inlined_call_operand.vmem [shape: f32[2,6,5,64], index: 0, kind: input, shape index: {}]   ;;  %s1291_s1 = inlined_call_operand.vmem [shape: f32[2,6,5,64], index: 1, kind: input, shape index: {}]   ;;  %s1292_s2 = inlined_call_operand.vmem [shape: f32[2,6,5,64], index: 2, kind: input, shape index: {}]   ;;  %s1293_s3 = inlined_call_operand.vmem [shape: f32[2,6,5,64], index: 3, kind: output, shape index: {}]  }
   0x1 LB: > { %s971_s13 = sadd.s32 4294967295, %s1132_s12   ;;  %p975_p0 = scmp.ge.s32.totalorder %s1132_s12, 1  ;;  %s1132_s12 = sphi %s1157_s12, %s13_s12  }
   0x2   : > { %p157_p1 = scmp.lt.s32.totalorder %s1132_s12, 3 }
   0x4   : > { %p158_p2 = pnand %p975_p0, %p157_p1 }
   0x5   : > { %p191_p3 = scmp.lt.s32.totalorder (!%p158_p2), %s971_s13, 1 }
   0x6   : > { %161 = sbr.rel (%p158_p2) target bundleno = 597 (0x255), region = 32 }
   0xb   : > { %v1134_v0 = vmov 0.0   ;;  %s1295_s13 = smov (!%p191_p3, %s971_s13), 1  ;;  %vm1135_vm0 = vmmov 0   ;;  %vm254_vm1 = vcmask 523264   ;;  %vm531_vm2 = vcmask 36864  }
   0xc   : > { %1018 = vmatprep.subr.bf16.mxu0 %v1134_v0  ;;  %1024 = vmatprep.subr.bf16.mxu1 %v1134_v0  ;;  %s1171_s14 = smul.u32 48, %s1295_s13  ;;  %vm596_vm3 = vcmask 1041408   ;;  %vm597_vm4 = vcmask 1042432   ;;  %vm592_vm5 = vcmask 39936   ;;  %vm885_vm6 = vcmask 520192  }
   0xd   : > { %1020 = vmatprep.mubr.msk.bf16.mxu0 %vm1135_vm0, %v1134_v0  ;;  %1026 = vmatprep.mubr.msk.bf16.mxu1 %vm1135_vm0, %v1134_v0 }
   0xe   : > { %s200_s17 = scalar_lea.vmem %s1291_s1, %s1171_s14  ;;  %s1181_s20 = scalar_lea.vmem %s1290_s0, %s1171_s14 }
   0xf   : > { %v230_v1 = vld [vmem:[%s200_s17] sm:$0x1f]  ;;  %v231_v2 = vld [vmem:[%s200_s17 + $0x8] sm:$0x1f]  ;;  %v232_v7 = vld [vmem:[%s200_s17 + $0x10] sm:$0x1f]  ;;  %s205_s23 = scalar_lea.vmem %s1292_s2, %s1171_s14  ;;  %s1273_s26 = scalar_lea.vmem %s1293_s3, %s1171_s14 }
  0x10   : > { %v212_v3 = vld [vmem:[%s1181_s20] sm:$0x1f]  ;;  %v236_v4 = vpack.c.bf16 %v230_v1, %v230_v1  ;;  %v237_v5 = vpack.c.bf16 %v231_v2, %v231_v2  ;;  %v213_v6 = vld [vmem:[%s1181_s20 + $0x8] sm:$0x1f]  ;;  %v233_v8 = vld [vmem:[%s200_s17 + $0x18] sm:$0x1f]  ;;  %v238_v13 = vpack.c.bf16 %v232_v7, %v232_v7 }
  0x11   : > { %v218_v11 = vmul.f32 0.125, %v212_v3  ;;  %v219_v12 = vmul.f32 0.125, %v213_v6  ;;  %v239_v14 = vpack.c.bf16 %v233_v8, %v233_v8  ;;  %v214_v17 = vld [vmem:[%s1181_s20 + $0x10] sm:$0x1f]  ;;  %v215_v18 = vld [vmem:[%s1181_s20 + $0x18] sm:$0x1f] }
  0x12   : > { %v259_v9 = vsel %vm254_vm1, %v236_v4, 0  ;;  %v305_v10 = vsel %vm254_vm1, %v237_v5, 0  ;;  %v351_v19 = vsel %vm254_vm1, %v238_v13, 0  ;;  %v234_v21 = vld [vmem:[%s200_s17 + $0x20] sm:$0x1f]  ;;  %v220_v23 = vmul.f32 0.125, %v214_v17 }
  0x13   : > { %1019 = vmatpush3.bf16.xpose.msra.mxu0 %v259_v9  ;;  %1025 = vmatpush3.bf16.xpose.msra.mxu1 %v305_v10  ;;  %v224_v15 = vpack.c.bf16 %v218_v11, %v218_v11  ;;  %v225_v16 = vpack.c.bf16 %v219_v12, %v219_v12  ;;  %v397_v20 = vsel %vm254_vm1, %v239_v14, 0  ;;  %v235_v22 = vld [vmem:[%s200_s17 + $0x28] sm:$0x1f]  ;;  %v221_v24 = vmul.f32 0.125, %v215_v18  ;;  %v216_v29 = vld [vmem:[%s1181_s20 + $0x20] sm:$0x1f] }
  0x14   : > { %1030 = vmatprep.subr.bf16.mxu0 %v1134_v0  ;;  %1036 = vmatprep.subr.bf16.mxu1 %v1134_v0  ;;  %v240_v25 = vpack.c.bf16 %v234_v21, %v234_v21  ;;  %v241_v26 = vpack.c.bf16 %v235_v22, %v235_v22  ;;  %v226_v27 = vpack.c.bf16 %v220_v23, %v220_v23  ;;  %v217_v30 = vld [vmem:[%s1181_s20 + $0x28] sm:$0x1f]  ;;  %v222_v33 = vmul.f32 0.125, %v216_v29  ;;  %v242_v4 = vld [vmem:[%s205_s23] sm:$0x1f] }
  0x15   : > { %v227_v28 = vpack.c.bf16 %v221_v24, %v221_v24  ;;  %v223_v34 = vmul.f32 0.125, %v217_v30  ;;  %v248_v5 = vpack.c.bf16 %v242_v4, %v242_v4  ;;  %v1136_v6 = vmov 65535   ;;  %v243_v10 = vld [vmem:[%s205_s23 + $0x8] sm:$0x1f]  ;;  %v244_v13 = vld [vmem:[%s205_s23 + $0x10] sm:$0x1f] }
  0x16   : > { %v443_v31 = vsel %vm254_vm1, %v240_v25, 0  ;;  %v489_v32 = vsel %vm254_vm1, %v241_v26, 0  ;;  %v228_v35 = vpack.c.bf16 %v222_v33, %v222_v33  ;;  %v598_v7 = vsel %vm596_vm3, 4294967295, %v1136_v6  ;;  %v247_v22 = vld [vmem:[%s205_s23 + $0x28] sm:$0x1f] }
  0x17   : > { %v229_v36 = vpack.c.bf16 %v223_v34, %v223_v34  ;;  %v599_v8 = vsel %vm597_vm4, %v598_v7, 0  ;;  %v249_v11 = vpack.c.bf16 %v243_v10, %v243_v10  ;;  %v250_v14 = vpack.c.bf16 %v244_v13, %v244_v13 }
  0x18   : > { %v601_v9 = vand.u32 %v599_v8, %v248_v5  ;;  %v253_v23 = vpack.c.bf16 %v247_v22, %v247_v22 }
  0x19   : > { %v647_v12 = vand.u32 %v599_v8, %v249_v11 }
  0x1a   : > { %1021 = vmatmul.mubr.msk.bf16.vlgmr.msra.gmra.mxu0 %vm254_vm1, %v224_v15  ;;  %1027 = vmatmul.mubr.msk.bf16.vlgmr.msra.gmra.mxu1 %vm254_vm1, %v225_v16  ;;  %v693_v15 = vand.u32 %v599_v8, %v250_v14  ;;  %v245_v16 = vld [vmem:[%s205_s23 + $0x18] sm:$0x1f]  ;;  %v831_v24 = vand.u32 %v599_v8, %v253_v23 }
  0x1b   : > { %1031 = vmatpush3.bf16.xpose.msra.mxu0 %v351_v19  ;;  %1037 = vmatpush3.bf16.xpose.msra.mxu1 %v397_v20  ;;  %v251_v17 = vpack.c.bf16 %v245_v16, %v245_v16  ;;  %v246_v19 = vld [vmem:[%s205_s23 + $0x20] sm:$0x1f] }
  0x1c   : > { %1032 = vmatprep.mubr.msk.bf16.mxu0 %vm1135_vm0, %v1134_v0  ;;  %1038 = vmatprep.mubr.msk.bf16.mxu1 %vm1135_vm0, %v1134_v0  ;;  %v252_v20 = vpack.c.bf16 %v246_v19, %v246_v19 }
  0x1d   : > { %1042 = vmatprep.subr.bf16.mxu0 %v1134_v0  ;;  %1048 = vmatprep.subr.bf16.mxu1 %v1134_v0  ;;  %v739_v18 = vand.u32 %v599_v8, %v251_v17 }
  0x1e   : > { %v785_v21 = vand.u32 %v599_v8, %v252_v20 }
  0x22   : > { %1033 = vmatmul.mubr.msk.bf16.vlgmr.msra.gmra.mxu0 %vm254_vm1, %v226_v27  ;;  %1039 = vmatmul.mubr.msk.bf16.vlgmr.msra.gmra.mxu1 %vm254_vm1, %v227_v28 }
  0x23   : > { %1043 = vmatpush3.bf16.xpose.msra.mxu0 %v443_v31  ;;  %1049 = vmatpush3.bf16.xpose.msra.mxu1 %v489_v32 }
  0x24   : > { %1044 = vmatprep.mubr.msk.bf16.mxu0 %vm1135_vm0, %v1134_v0  ;;  %1050 = vmatprep.mubr.msk.bf16.mxu1 %vm1135_vm0, %v1134_v0 }
  0x25   : > { %1054 = vmatprep.subr.bf16.mxu0 %v1134_v0  ;;  %1060 = vmatprep.subr.bf16.mxu1 %v1134_v0 }
  0x2a   : > { %1045 = vmatmul.mubr.msk.bf16.vlgmr.msra.gmra.mxu0 %vm254_vm1, %v228_v35  ;;  %1051 = vmatmul.mubr.msk.bf16.vlgmr.msra.gmra.mxu1 %vm254_vm1, %v229_v36 }
  0x2b   : > { %1056 = vmatprep.mubr.msk.bf16.mxu0 %vm1135_vm0, %v1134_v0  ;;  %1062 = vmatprep.mubr.msk.bf16.mxu1 %vm1135_vm0, %v1134_v0 }
  0x2c   : > { %1055 = vmatpush3.bf16.msra.mxu0 %v601_v9  ;;  %1061 = vmatpush3.bf16.msra.mxu1 %v647_v12 }
  0x2d   : > { %1066 = vmatprep.subr.bf16.mxu0 %v1134_v0  ;;  %1072 = vmatprep.subr.bf16.mxu1 %v1134_v0 }
  0xda   : > { %v1219_v37 = vpop.f32.mrf.mxu0  ;;  %v1221_v38 = vpop.f32.mrf.mxu1 }
  0xdb   : > { %v532_v39 = vsel %vm531_vm2, %v1219_v37, -inf  ;;  %v535_v42 = vsel %vm531_vm2, %v1221_v38, -inf }
  0xdc   : > { %v1028_v40 = vpop.f32.mrf.mxu1  ;;  %533 = vmax.xlane.f32.xlu0 %v532_v39  ;;  %v1022_v41 = vpop.f32.mrf.mxu0 }
  0xde   : > { %v298_v43 = vpop.f32.mrf.mxu0  ;;  %v344_v44 = vpop.f32.mrf.mxu1 }
  0xe0   : > { %v1029_v45 = vpop.f32.mrf.mxu1  ;;  %536 = vmax.xlane.f32.xlu0 %v535_v42  ;;  %v1023_v46 = vpop.f32.mrf.mxu0 }
  0xe2   : > { %v387_v47 = vpop.f32.mrf.mxu0  ;;  %v1227_v48 = vpop.f32.mrf.mxu1 }
  0xe3   : > { %v538_v49 = vsel %vm531_vm2, %v387_v47, -inf  ;;  %v541_v52 = vsel %vm531_vm2, %v1227_v48, -inf }
  0xe4   : > { %v1040_v50 = vpop.f32.mrf.mxu1  ;;  %539 = vmax.xlane.f32.xlu1 %v538_v49  ;;  %v1034_v51 = vpop.f32.mrf.mxu0 }
  0xe6   : > { %v390_v53 = vpop.f32.mrf.mxu0  ;;  %v436_v54 = vpop.f32.mrf.mxu1 }
  0xe8   : > { %v1041_v55 = vpop.f32.mrf.mxu1  ;;  %542 = vmax.xlane.f32.xlu1 %v541_v52  ;;  %v1035_v56 = vpop.f32.mrf.mxu0 }
  0xea   : > { %v1232_v57 = vpop.f32.mrf.mxu0  ;;  %v525_v58 = vpop.f32.mrf.mxu1 }
  0xeb   : > { %v547_v59 = vsel %vm531_vm2, %v525_v58, -inf  ;;  %v544_v60 = vsel %vm531_vm2, %v1232_v57, -inf }
  0xec   : > { %v1052_v61 = vpop.f32.mrf.mxu1  ;;  %548 = vmax.xlane.f32.xlu1 %v547_v59  ;;  %545 = vmax.xlane.f32.xlu0 %v544_v60  ;;  %v1046_v62 = vpop.f32.mrf.mxu0 }
  0xee   : > { %v482_v63 = vpop.f32.mrf.mxu0  ;;  %v528_v1 = vpop.f32.mrf.mxu1 }
  0xf0   : > { %v1047_v2 = vpop.f32.mrf.mxu0  ;;  %v1053_v3 = vpop.f32.mrf.mxu1 }
 0x165   : > { %v534_v25 = vpop.xlane.xlu0 %533 }
 0x166   : > { %v550_v26 = vsub.f32 %v1219_v37, %v534_v25 }
 0x168   : > { %v556_v27 = vmul.f32 1.442695, %v550_v26 }
 0x169   : > { %v537_v28 = vpop.xlane.xlu0 %536 }
 0x16a   : > { %1102 = vpow2.f32 %v556_v27  ;;  %v551_v29 = vsub.f32 %v1221_v38, %v537_v28 }
 0x16c   : > { %v558_v30 = vmul.f32 1.442695, %v551_v29 }
 0x16d   : > { %v540_v31 = vpop.xlane.xlu1 %539 }
 0x16e   : > { %1104 = vpow2.f32 %v558_v30  ;;  %v552_v32 = vsub.f32 %v387_v47, %v540_v31 }
 0x170   : > { %v560_v33 = vmul.f32 1.442695, %v552_v32 }
 0x171   : > { %v543_v34 = vpop.xlane.xlu1 %542 }
 0x172   : > { %1106 = vpow2.f32 %v560_v33  ;;  %v553_v35 = vsub.f32 %v1227_v48, %v543_v34 }
 0x174   : > { %v562_v36 = vmul.f32 1.442695, %v553_v35 }
 0x175   : > { %v549_v39 = vpop.xlane.xlu1 %548  ;;  %v546_v40 = vpop.xlane.xlu0 %545 }
 0x176   : > { %1108 = vpow2.f32 %v562_v36  ;;  %v555_v41 = vsub.f32 %v525_v58, %v549_v39  ;;  %v554_v37 = vsub.f32 %v1232_v57, %v546_v40 }
 0x177   : > { %v1103_v42 = vpop.eup %1102 }
 0x178   : > { %v566_v43 = vmul.f32 1.442695, %v555_v41  ;;  %v564_v38 = vmul.f32 1.442695, %v554_v37  ;;  %v568_v44 = vsel %vm531_vm2, %v1103_v42, 0.0  ;;  %v586_v45 = vpack.c.bf16 %v1103_v42, %v1103_v42 }
 0x179   : > { %569 = vadd.xlane.f32.xlu0 %v568_v44 }
 0x17a   : > { %1110 = vpow2.f32 %v566_v43  ;;  %1057 = vmatmul.mubr.msk.bf16.vlgmr.msra.gmra.mxu0 %vm592_vm5, %v586_v45 }
 0x17b   : > { %v1105_v46 = vpop.eup %1104  ;;  %1112 = vpow2.f32 %v564_v38  ;;  %1067 = vmatpush3.bf16.msra.mxu0 %v693_v15  ;;  %1068 = vmatprep.mubr.msk.bf16.mxu0 %vm1135_vm0, %v1134_v0 }
 0x17c   : > { %v571_v47 = vsel %vm531_vm2, %v1105_v46, 0.0  ;;  %v587_v48 = vpack.c.bf16 %v1105_v46, %v1105_v46  ;;  %1078 = vmatprep.subr.bf16.mxu0 %v1134_v0 }
 0x17d   : > { %572 = vadd.xlane.f32.xlu1 %v571_v47 }
 0x17e   : > { %1063 = vmatmul.mubr.msk.bf16.vlgmr.msra.gmra.mxu1 %vm592_vm5, %v587_v48 }
 0x17f   : > { %v1107_v49 = vpop.eup %1106  ;;  %1073 = vmatpush3.bf16.msra.mxu1 %v739_v18  ;;  %1074 = vmatprep.mubr.msk.bf16.mxu1 %vm1135_vm0, %v1134_v0 }
 0x180   : > { %v574_v50 = vsel %vm531_vm2, %v1107_v49, 0.0  ;;  %v588_v51 = vpack.c.bf16 %v1107_v49, %v1107_v49  ;;  %1084 = vmatprep.subr.bf16.mxu1 %v1134_v0 }
 0x181   : > { %575 = vadd.xlane.f32.xlu0 %v574_v50 }
 0x182   : > { %1069 = vmatmul.mubr.msk.bf16.vlgmr.msra.gmra.mxu0 %vm592_vm5, %v588_v51 }
 0x183   : > { %v1109_v52 = vpop.eup %1108  ;;  %1079 = vmatpush3.bf16.msra.mxu0 %v785_v21  ;;  %1080 = vmatprep.mubr.msk.bf16.mxu0 %vm1135_vm0, %v1134_v0 }
 0x184   : > { %v577_v53 = vsel %vm531_vm2, %v1109_v52, 0.0  ;;  %v589_v54 = vpack.c.bf16 %v1109_v52, %v1109_v52 }
 0x185   : > { %578 = vadd.xlane.f32.xlu1 %v577_v53 }
 0x186   : > { %1075 = vmatmul.mubr.msk.bf16.vlgmr.msra.gmra.mxu1 %vm592_vm5, %v589_v54 }
 0x187   : > { %v1111_v55 = vpop.eup %1110  ;;  %1085 = vmatpush3.bf16.msra.mxu1 %v831_v24  ;;  %1086 = vmatprep.mubr.msk.bf16.mxu1 %vm1135_vm0, %v1134_v0 }
 0x188   : > { %v1113_v56 = vpop.eup %1112  ;;  %v583_v57 = vsel %vm531_vm2, %v1111_v55, 0.0  ;;  %v591_v60 = vpack.c.bf16 %v1111_v55, %v1111_v55 }
 0x189   : > { %584 = vadd.xlane.f32.xlu1 %v583_v57  ;;  %v580_v58 = vsel %vm531_vm2, %v1113_v56, 0.0  ;;  %v590_v59 = vpack.c.bf16 %v1113_v56, %v1113_v56 }
 0x18a   : > { %581 = vadd.xlane.f32.xlu0 %v580_v58 }
 0x18b   : > { %1081 = vmatmul.mubr.msk.bf16.vlgmr.msra.gmra.mxu0 %vm592_vm5, %v590_v59 }
 0x18e   : > { %1087 = vmatmul.mubr.msk.bf16.vlgmr.msra.gmra.mxu1 %vm592_vm5, %v591_v60 }
 0x202   : > { %v570_v61 = vpop.xlane.xlu0 %569 }
 0x203   : > { %1114 = vrcp.f32 %v570_v61 }
 0x206   : > { %v573_v62 = vpop.xlane.xlu1 %572 }
 0x207   : > { %1116 = vrcp.f32 %v573_v62 }
 0x20a   : > { %v576_v63 = vpop.xlane.xlu0 %575 }
 0x20b   : > { %1118 = vrcp.f32 %v576_v63 }
 0x20e   : > { %v579_v0 = vpop.xlane.xlu1 %578 }
 0x20f   : > { %1120 = vrcp.f32 %v579_v0 }
 0x210   : > { %v1115_v1 = vpop.eup %1114 }
 0x212   : > { %v585_v6 = vpop.xlane.xlu1 %584 }
 0x213   : > { %v582_v3 = vpop.xlane.xlu0 %581 }
 0x214   : > { %v1117_v7 = vpop.eup %1116  ;;  %1122 = vrcp.f32 %v582_v3 }
 0x215   : > { %1124 = vrcp.f32 %v585_v6 }
 0x218   : > { %v1119_v13 = vpop.eup %1118 }
 0x21c   : > { %v1121_v19 = vpop.eup %1120 }
 0x221   : > { %v1123_v26 = vpop.eup %1122 }
 0x222   : > { %v1125_v31 = vpop.eup %1124 }
 0x23a   : > { %v637_v2 = vpop.f32.mrf.mxu0 }
 0x23b   : > { %v879_v4 = vmul.f32 %v1115_v1, %v637_v2 }
 0x23c   : > { %v1058_v5 = vpop.f32.mrf.mxu0 }
 0x23d   : > { %886 = vst.msk [vmem:[%s1273_s26] sm:$0x1f] %vm885_vm6, %v879_v4 }
 0x23e   : > { %v640_v8 = vpop.f32.mrf.mxu0  ;;  %v683_v9 = vpop.f32.mrf.mxu1 }
 0x23f   : > { %v880_v10 = vmul.f32 %v1117_v7, %v683_v9 }
 0x240   : > { %v1059_v11 = vpop.f32.mrf.mxu0  ;;  %v1064_v12 = vpop.f32.mrf.mxu1 }
 0x241   : > { %887 = vst.msk [vmem:[%s1273_s26 + $0x8] sm:$0x1f] %vm885_vm6, %v880_v10 }
 0x242   : > { %v686_v14 = vpop.f32.mrf.mxu1  ;;  %v729_v15 = vpop.f32.mrf.mxu0 }
 0x243   : > { %v881_v16 = vmul.f32 %v1119_v13, %v729_v15 }
 0x244   : > { %v1065_v17 = vpop.f32.mrf.mxu1  ;;  %v1070_v18 = vpop.f32.mrf.mxu0 }
 0x245   : > { %888 = vst.msk [vmem:[%s1273_s26 + $0x10] sm:$0x1f] %vm885_vm6, %v881_v16 }
 0x246   : > { %v732_v20 = vpop.f32.mrf.mxu0  ;;  %v775_v21 = vpop.f32.mrf.mxu1 }
 0x247   : > { %v882_v22 = vmul.f32 %v1121_v19, %v775_v21 }
 0x248   : > { %v1071_v23 = vpop.f32.mrf.mxu0  ;;  %v1076_v24 = vpop.f32.mrf.mxu1 }
 0x249   : > { %889 = vst.msk [vmem:[%s1273_s26 + $0x18] sm:$0x1f] %vm885_vm6, %v882_v22 }
 0x24a   : > { %v778_v25 = vpop.f32.mrf.mxu1 }
 0x24b   : > { %v821_v27 = vpop.f32.mrf.mxu0 }
 0x24c   : > { %v883_v28 = vmul.f32 %v1123_v26, %v821_v27  ;;  %v1077_v29 = vpop.f32.mrf.mxu1 }
 0x24d   : > { %v1082_v30 = vpop.f32.mrf.mxu0 }
 0x24e   : > { %890 = vst.msk [vmem:[%s1273_s26 + $0x20] sm:$0x1f] %vm885_vm6, %v883_v28  ;;  %v867_v32 = vpop.f32.mrf.mxu1 }
 0x24f   : > { %v824_v33 = vpop.f32.mrf.mxu0  ;;  %v884_v34 = vmul.f32 %v1125_v31, %v867_v32 }
 0x250   : > { %v1088_v35 = vpop.f32.mrf.mxu1 }
 0x251   : > { %891 = vst.msk [vmem:[%s1273_s26 + $0x28] sm:$0x1f] %vm885_vm6, %v884_v34  ;;  %v1083_v36 = vpop.f32.mrf.mxu0 }
 0x252   : > { %v870_v39 = vpop.f32.mrf.mxu1 }
 0x254   : > { %v1089_v40 = vpop.f32.mrf.mxu1 }
 0x255 PF: > { %s13_s12 = sadd.s32 1, %s1132_s12  }
 0x256   : > { %p10_p4 = scmp.ge.s32.totalorder %s13_s12, 4  }
 0x258   :  { %12 = sbr.rel (!%p10_p4) target bundleno = 1 (0x1), region = 68 }

// kernel: dino_feature_pyramid.65
= control target key start
LH: loop header
LB: loop body
LE: loop exit
PB: predicated region body
PF: predicated region fallthrough
CT: control target
= control target key end

     0   :  { %v962_v1 = vmov 0   ;;  %vm964_vm0 = vmmov 0   ;;  %s1275_s1 = inlined_call_operand.vmem [shape: bf16[384,384], index: 1, kind: input, shape index: {}]   ;;  %s1276_s0 = inlined_call_operand.vmem [shape: f32[10,384], index: 0, kind: input, shape index: {}]   ;;  %s1277_s2 = inlined_call_operand.vmem [shape: f32[1,384], index: 2, kind: input, shape index: {}]   ;;  %s1278_s3 = inlined_call_operand.vmem [shape: f32[1,384], index: 3, kind: input, shape index: {}]   ;;  %s1279_s4 = inlined_call_operand.vmem [shape: f32[10,384], index: 4, kind: input, shape index: {}]   ;;  %s1280_s5 = inlined_call_operand.vmem [shape: f32[10,384], index: 5, kind: output, shape index: {}]  }
   0x1   :  { %v866_v0 = vld [vmem:[%s1275_s1 + $0xac] ss:$12 sps:$4 sm:$0xff]   ;;  %602 = vmatprep.mubr.bf16.mxu1 %v962_v1  ;;  %v868_v2 = vld [vmem:[%s1275_s1 + $0xa8] ss:$12 sps:$4 sm:$0xff]   ;;  %v871_v4 = vld [vmem:[%s1275_s1 + $0x90] ss:$12 sps:$4 sm:$0xff]  }
   0x2   :  { %527 = vmatprep.subr.bf16.mxu0 %v866_v0  ;;  %v869_v3 = vld [vmem:[%s1275_s1 + $0x94] ss:$12 sps:$4 sm:$0xff]   ;;  %v872_v5 = vld [vmem:[%s1275_s1 + $0x7c] ss:$12 sps:$4 sm:$0xff]   ;;  %v874_v6 = vld [vmem:[%s1275_s1 + $0x78] ss:$12 sps:$4 sm:$0xff]  }
   0x3   :  { %528 = vmatpush1.bf16.msra.mxu0 %v868_v2  ;;  %v875_v7 = vld [vmem:[%s1275_s1 + $0x64] ss:$12 sps:$4 sm:$0xff]   ;;  %v883_v8 = vld [vmem:[%s1275_s1 + $0x22c] ss:$12 sps:$4 sm:$0xff]   ;;  %v886_v9 = vld [vmem:[%s1275_s1 + $0x228] ss:$12 sps:$4 sm:$0xff]  }
   0x4   :  { %529 = vmatprep.subr.bf16.mxu0 %v869_v3  ;;  %570 = vmatprep.subr.bf16.mxu1 %v883_v8  ;;  %v877_v10 = vld [vmem:[%s1275_s1 + $0x60] ss:$12 sps:$4 sm:$0xff]   ;;  %v892_v12 = vld [vmem:[%s1275_s1 + $0x210] ss:$12 sps:$4 sm:$0xff]   ;;  %v880_v15 = vld [vmem:[%s1275_s1 + $0x48] ss:$12 sps:$4 sm:$0xff]  }
   0x5   :  { %571 = vmatpush1.bf16.msra.mxu1 %v886_v9  ;;  %v889_v11 = vld [vmem:[%s1275_s1 + $0x214] ss:$12 sps:$4 sm:$0xff]   ;;  %v878_v13 = vld [vmem:[%s1275_s1 + $0x4c] ss:$12 sps:$4 sm:$0xff]   ;;  %v895_v14 = vld [vmem:[%s1275_s1 + $0x1fc] ss:$12 sps:$4 sm:$0xff]  }
   0x6   :  { %572 = vmatprep.subr.bf16.mxu1 %v889_v11  ;;  %v898_v16 = vld [vmem:[%s1275_s1 + $0x1f8] ss:$12 sps:$4 sm:$0xff]   ;;  %v881_v17 = vld [vmem:[%s1275_s1 + $0x34] ss:$12 sps:$4 sm:$0xff]   ;;  %v885_v19 = vld [vmem:[%s1275_s1 + $0x30] ss:$12 sps:$4 sm:$0xff]  }
   0x7   :  { %530 = vmatpush1.bf16.msra.mxu0 %v871_v4  ;;  %v901_v18 = vld [vmem:[%s1275_s1 + $0x1e4] ss:$12 sps:$4 sm:$0xff]   ;;  %v887_v20 = vld [vmem:[%s1275_s1 + $0x1c] ss:$12 sps:$4 sm:$0xff]   ;;  %v904_v21 = vld [vmem:[%s1275_s1 + $0x1e0] ss:$12 sps:$4 sm:$0xff]  }
   0x8   :  { %531 = vmatprep.subr.bf16.mxu0 %v872_v5  ;;  %v907_v22 = vld [vmem:[%s1275_s1 + $0x1cc] ss:$12 sps:$4 sm:$0xff]   ;;  %v910_v24 = vld [vmem:[%s1275_s1 + $0x1c8] ss:$12 sps:$4 sm:$0xff]   ;;  %v893_v25 = vld [vmem:[%s1275_s1 + $0x4] ss:$12 sps:$4 sm:$0xff]  }
   0x9   :  { %573 = vmatpush1.bf16.msra.mxu1 %v892_v12  ;;  %v891_v23 = vld [vmem:[%s1275_s1 + $0x18] ss:$12 sps:$4 sm:$0xff]   ;;  %v913_v26 = vld [vmem:[%s1275_s1 + $0x1b4] ss:$12 sps:$4 sm:$0xff]   ;;  %v916_v29 = vld [vmem:[%s1275_s1 + $0x1b0] ss:$12 sps:$4 sm:$0xff]  }
   0xa   :  { %574 = vmatprep.subr.bf16.mxu1 %v895_v14  ;;  %v897_v27 = vld [vmem:[%s1275_s1] ss:$12 sps:$4 sm:$0xff]   ;;  %v919_v30 = vld [vmem:[%s1275_s1 + $0x19c] ss:$12 sps:$4 sm:$0xff]   ;;  %v922_v33 = vld [vmem:[%s1275_s1 + $0x198] ss:$12 sps:$4 sm:$0xff]  }
   0xb   :  { %532 = vmatpush1.bf16.msra.mxu0 %v874_v6  ;;  %v899_v28 = vld [vmem:[%s1275_s1 + $0x16c] ss:$12 sps:$4 sm:$0xff]   ;;  %v903_v31 = vld [vmem:[%s1275_s1 + $0x168] ss:$12 sps:$4 sm:$0xff]   ;;  %v925_v34 = vld [vmem:[%s1275_s1 + $0x184] ss:$12 sps:$4 sm:$0xff]  }
   0xc   :  { %533 = vmatprep.subr.bf16.mxu0 %v875_v7  ;;  %v905_v32 = vld [vmem:[%s1275_s1 + $0x154] ss:$12 sps:$4 sm:$0xff]   ;;  %v909_v35 = vld [vmem:[%s1275_s1 + $0x150] ss:$12 sps:$4 sm:$0xff]   ;;  %v26_v39 = vld [vmem:[%s1276_s0 + $0x28] sm:$0x3] }
   0xd   :  { %575 = vmatpush1.bf16.msra.mxu1 %v898_v16  ;;  %v928_v36 = vld [vmem:[%s1275_s1 + $0x180] ss:$12 sps:$4 sm:$0xff]   ;;  %v911_v37 = vld [vmem:[%s1275_s1 + $0x13c] ss:$12 sps:$4 sm:$0xff]   ;;  %v23_v38 = vld [vmem:[%s1276_s0 + $0x10] sm:$0xff]  ;;  %v963_v9 = vmov 0.0  }
   0xe   :  { %576 = vmatprep.subr.bf16.mxu1 %v901_v18  ;;  %v931_v40 = vld [vmem:[%s1275_s1 + $0x170] ss:$12 sps:$4 sm:$0xff]   ;;  %v915_v41 = vld [vmem:[%s1275_s1 + $0x138] ss:$12 sps:$4 sm:$0xff]   ;;  %v1118_v42 = vpack.c.bf16 %v26_v39, %v23_v38  ;;  %v22_v43 = vld [vmem:[%s1276_s0 + $0x8] sm:$0xff] }
   0xf   :  { %534 = vmatpush1.bf16.msra.mxu0 %v877_v10  ;;  %v917_v44 = vld [vmem:[%s1275_s1 + $0x124] ss:$12 sps:$4 sm:$0xff]   ;;  %v25_v46 = vld [vmem:[%s1276_s0 + $0x20] sm:$0x3]  ;;  %v923_v50 = vld [vmem:[%s1275_s1 + $0x10c] ss:$12 sps:$4 sm:$0xff]  }
  0x10   :  { %535 = vmatprep.subr.bf16.mxu0 %v878_v13  ;;  %v933_v45 = vld [vmem:[%s1275_s1 + $0xb0] ss:$12 sps:$4 sm:$0xff]   ;;  %v936_v47 = vld [vmem:[%s1275_s1 + $0x158] ss:$12 sps:$4 sm:$0xff]   ;;  %v28_v48 = vpack.c.bf16 %v25_v46, %v22_v43  ;;  %v921_v49 = vld [vmem:[%s1275_s1 + $0x120] ss:$12 sps:$4 sm:$0xff]  }
  0x11   :  { %577 = vmatpush1.bf16.msra.mxu1 %v904_v21  ;;  %v938_v51 = vld [vmem:[%s1275_s1 + $0x98] ss:$12 sps:$4 sm:$0xff]   ;;  %v941_v52 = vld [vmem:[%s1275_s1 + $0x140] ss:$12 sps:$4 sm:$0xff]   ;;  %v927_v53 = vld [vmem:[%s1275_s1 + $0x108] ss:$12 sps:$4 sm:$0xff]  }
  0x12   :  { %578 = vmatprep.subr.bf16.mxu1 %v907_v22  ;;  %559 = vmatprep.mubr.bf16.mxu0 %v28_v48  ;;  %v929_v54 = vld [vmem:[%s1275_s1 + $0xf4] ss:$12 sps:$4 sm:$0xff]   ;;  %v932_v57 = vld [vmem:[%s1275_s1 + $0xf0] ss:$12 sps:$4 sm:$0xff]   ;;  %v937_v61 = vld [vmem:[%s1275_s1 + $0xd8] ss:$12 sps:$4 sm:$0xff]  }
  0x13   :  { %536 = vmatpush1.bf16.msra.mxu0 %v880_v15  ;;  %v943_v55 = vld [vmem:[%s1275_s1 + $0x80] ss:$12 sps:$4 sm:$0xff]   ;;  %v944_v56 = vld [vmem:[%s1275_s1 + $0x128] ss:$12 sps:$4 sm:$0xff]   ;;  %v947_v60 = vld [vmem:[%s1275_s1 + $0x110] ss:$12 sps:$4 sm:$0xff]  }
  0x14   :  { %537 = vmatprep.subr.bf16.mxu0 %v881_v17  ;;  %v934_v58 = vld [vmem:[%s1275_s1 + $0xdc] ss:$12 sps:$4 sm:$0xff]   ;;  %v939_v62 = vld [vmem:[%s1275_s1 + $0xc4] ss:$12 sps:$4 sm:$0xff]   ;;  %v942_v1 = vld [vmem:[%s1275_s1 + $0xc0] ss:$12 sps:$4 sm:$0xff]  }
  0x15   :  { %579 = vmatpush1.bf16.msra.mxu1 %v910_v24  ;;  %v945_v59 = vld [vmem:[%s1275_s1 + $0x68] ss:$12 sps:$4 sm:$0xff]   ;;  %v948_v63 = vld [vmem:[%s1275_s1 + $0x50] ss:$12 sps:$4 sm:$0xff]   ;;  %v950_v0 = vld [vmem:[%s1275_s1 + $0xf8] ss:$12 sps:$4 sm:$0xff]  }
  0x16   :  { %580 = vmatprep.subr.bf16.mxu1 %v913_v26  ;;  %v21_v2 = vld [vmem:[%s1276_s0] sm:$0xff]  ;;  %v24_v3 = vld [vmem:[%s1276_s0 + $0x18] sm:$0x3]  ;;  %v946_v7 = vld [vmem:[%s1275_s1 + $0x230] ss:$12 sps:$4 sm:$0xff]  }
  0x17   :  { %538 = vmatpush1.bf16.msra.mxu0 %v885_v19  ;;  %v951_v4 = vld [vmem:[%s1275_s1 + $0x38] ss:$12 sps:$4 sm:$0xff]   ;;  %v953_v5 = vld [vmem:[%s1275_s1 + $0xe0] ss:$12 sps:$4 sm:$0xff]   ;;  %v27_v6 = vpack.c.bf16 %v24_v3, %v21_v2  ;;  %v956_v10 = vld [vmem:[%s1275_s1 + $0xc8] ss:$12 sps:$4 sm:$0xff]   ;;  %v128_v19 = vlaneseq }
  0x18   :  { %539 = vmatprep.subr.bf16.mxu0 %v887_v20  ;;  %v954_v8 = vld [vmem:[%s1275_s1 + $0x20] ss:$12 sps:$4 sm:$0xff]   ;;  %v949_v11 = vld [vmem:[%s1275_s1 + $0x218] ss:$12 sps:$4 sm:$0xff]   ;;  %v957_v12 = vld [vmem:[%s1275_s1 + $0x8] ss:$12 sps:$4 sm:$0xff]  }
  0x19   :  { %581 = vmatpush1.bf16.msra.mxu1 %v916_v29  ;;  %v952_v13 = vld [vmem:[%s1275_s1 + $0x200] ss:$12 sps:$4 sm:$0xff]   ;;  %v955_v14 = vld [vmem:[%s1275_s1 + $0x1e8] ss:$12 sps:$4 sm:$0xff]   ;;  %v958_v15 = vld [vmem:[%s1275_s1 + $0x1d0] ss:$12 sps:$4 sm:$0xff]  }
  0x1a   :  { %582 = vmatprep.subr.bf16.mxu1 %v919_v30  ;;  %v959_v16 = vld [vmem:[%s1275_s1 + $0x1b8] ss:$12 sps:$4 sm:$0xff]   ;;  %v960_v17 = vld [vmem:[%s1275_s1 + $0x1a0] ss:$12 sps:$4 sm:$0xff]   ;;  %v961_v18 = vld [vmem:[%s1275_s1 + $0x188] ss:$12 sps:$4 sm:$0xff]  }
  0x1b   :  { %540 = vmatpush1.bf16.msra.mxu0 %v891_v23  ;;  %v129_v20 = vshrl.u32 %v128_v19, 7  ;;  %v126_v22 = vld [vmem:[%s1277_s2] sm:$0x7] }
  0x1c   :  { %541 = vmatprep.subr.bf16.mxu0 %v893_v25  ;;  %v701_v26 = vld [vmem:[%s1278_s3] sm:$0x7] }
  0x1d   :  { %583 = vmatpush1.bf16.msra.mxu1 %v922_v33  ;;  %v130_v21 = vsub.s32 0, %v129_v20  ;;  %v134_v23 = vsub.s32 1, %v129_v20 }
  0x1e   :  { %584 = vmatprep.subr.bf16.mxu1 %v925_v34 }
  0x1f   :  { %542 = vmatpush1.bf16.msra.mxu0 %v897_v27  ;;  %v131_v25 = vrot.slane %v126_v22, %v130_v21  ;;  %v135_v27 = vrot.slane %v126_v22, %v134_v23 }
  0x20   :  { %543 = vmatprep.subr.bf16.mxu0 %v899_v28 }
  0x21   :  { %585 = vmatpush1.bf16.msra.mxu1 %v928_v36 }
  0x22   :  { %812 = vmatprep.subr.bf16.mxu1 %v931_v40 }
  0x23   :  { %544 = vmatpush2.bf16.msra.mxu0 %v903_v31  ;;  %v706_v31 = vrot.slane %v701_v26, %v130_v21 }
  0x24   :  { %545 = vmatprep.subr.bf16.mxu0 %v905_v32  ;;  %603 = vmatmul.mubr.bf16.vlgmr.msra.gmra.mxu1 %v1118_v42 }
  0x25   :  { %813 = vmatpush3.bf16.msra.mxu1 %v933_v45  ;;  %645 = vmatprep.mubr.bf16.mxu1 %v28_v48 }
  0x26   :  { %814 = vmatprep.subr.bf16.mxu1 %v936_v47 }
  0x27   :  { %546 = vmatpush2.bf16.msra.mxu0 %v909_v35  ;;  %v710_v35 = vrot.slane %v701_v26, %v134_v23 }
  0x28   :  { %547 = vmatprep.subr.bf16.mxu0 %v911_v37  ;;  %v695_v37 = vld [vmem:[%s1279_s4] sm:$0xff] }
  0x29   :  { %815 = vmatpush3.bf16.msra.mxu1 %v938_v51 }
  0x2a   :  { %816 = vmatprep.subr.bf16.mxu1 %v941_v52 }
  0x2b   :  { %548 = vmatpush2.bf16.msra.mxu0 %v915_v41 }
  0x2c   :  { %549 = vmatprep.subr.bf16.mxu0 %v917_v44 }
  0x2d   :  { %817 = vmatpush3.bf16.msra.mxu1 %v943_v55 }
  0x2e   :  { %818 = vmatprep.subr.bf16.mxu1 %v944_v56 }
  0x2f   :  { %550 = vmatpush2.bf16.msra.mxu0 %v921_v49  ;;  %v698_v49 = vld [vmem:[%s1279_s4 + $0x18] sm:$0x3] }
  0x30   :  { %551 = vmatprep.subr.bf16.mxu0 %v923_v50 }
  0x31   :  { %819 = vmatpush3.bf16.msra.mxu1 %v945_v59  ;;  %v138_v59 = vsub.s32 2, %v129_v20 }
  0x32   :  { %820 = vmatprep.subr.bf16.mxu1 %v947_v60 }
  0x33   :  { %552 = vmatpush2.bf16.msra.mxu0 %v927_v53  ;;  %v699_v53 = vld [vmem:[%s1279_s4 + $0x20] sm:$0x3]  ;;  %v714_v2 = vrot.slane %v701_v26, %v138_v59 }
  0x34   :  { %553 = vmatprep.subr.bf16.mxu0 %v929_v54 }
  0x35   :  { %821 = vmatpush3.bf16.msra.mxu1 %v948_v63 }
  0x36   :  { %822 = vmatprep.subr.bf16.mxu1 %v950_v0 }
  0x37   :  { %554 = vmatpush2.bf16.msra.mxu0 %v932_v57 }
  0x38   :  { %555 = vmatprep.subr.bf16.mxu0 %v934_v58 }
  0x39   :  { %823 = vmatpush3.bf16.msra.mxu1 %v951_v4 }
  0x3a   :  { %824 = vmatprep.subr.bf16.mxu1 %v953_v5  ;;  %v697_v5 = vld [vmem:[%s1279_s4 + $0x10] sm:$0xff] }
  0x3b   :  { %556 = vmatpush2.bf16.msra.mxu0 %v937_v61 }
  0x3c   :  { %557 = vmatprep.subr.bf16.mxu0 %v939_v62  ;;  %v139_v62 = vrot.slane %v126_v22, %v138_v59 }
  0x3d   :  { %825 = vmatpush3.bf16.msra.mxu1 %v954_v8 }
  0x3e   :  { %826 = vmatprep.subr.bf16.mxu1 %v956_v10 }
  0x3f   :  { %558 = vmatpush2.bf16.msra.mxu0 %v942_v1 }
  0x40   :  { %843 = vmatprep.subr.bf16.mxu0 %v963_v9 }
  0x41   :  { %827 = vmatpush3.bf16.msra.mxu1 %v957_v12  ;;  %v700_v12 = vld [vmem:[%s1279_s4 + $0x28] sm:$0x3] }
  0x42   :  { %560 = vmatmul.mubr.bf16.vlgmr.msra.gmra.mxu0 %v27_v6 }
  0x43   :  { %844 = vmatpush3.bf16.msra.mxu0 %v946_v7  ;;  %859 = vmatprep.mubr.msk.bf16.mxu0 %vm964_vm0, %v963_v9 }
  0x44   :  { %845 = vmatprep.subr.bf16.mxu0 %v963_v9  ;;  %646 = vmatmul.mubr.bf16.vlgmr.msra.gmra.mxu1 %v27_v6 }
  0x47   :  { %846 = vmatpush3.bf16.msra.mxu0 %v949_v11 }
  0x48   :  { %847 = vmatprep.subr.bf16.mxu0 %v963_v9 }
  0x4b   :  { %848 = vmatpush3.bf16.msra.mxu0 %v952_v13 }
  0x4c   :  { %849 = vmatprep.subr.bf16.mxu0 %v963_v9 }
  0x4f   :  { %850 = vmatpush3.bf16.msra.mxu0 %v955_v14 }
  0x50   :  { %851 = vmatprep.subr.bf16.mxu0 %v963_v9 }
  0x53   :  { %852 = vmatpush3.bf16.msra.mxu0 %v958_v15 }
  0x54   :  { %853 = vmatprep.subr.bf16.mxu0 %v963_v9 }
  0x57   :  { %854 = vmatpush3.bf16.msra.mxu0 %v959_v16 }
  0x58   :  { %855 = vmatprep.subr.bf16.mxu0 %v963_v9 }
  0x5b   :  { %856 = vmatpush3.bf16.msra.mxu0 %v960_v17 }
  0x5c   :  { %857 = vmatprep.subr.bf16.mxu0 %v963_v9 }
  0x5f   :  { %858 = vmatpush3.bf16.msra.mxu0 %v961_v18 }
  0x62   :  { %860 = vmatmul.mubr.bf16.vlgmr.msra.gmra.mxu0 %v1118_v42  ;;  %v696_v42 = vld [vmem:[%s1279_s4 + $0x8] sm:$0xff] }
  0xe4   :  { %v604_v24 = vpop.f32.mrf.mxu1 }
  0xe6   :  { %v606_v28 = vpop.f32.mrf.mxu1 }
  0xe8   :  { %v608_v36 = vpop.f32.mrf.mxu1 }
  0xea   :  { %v610_v48 = vpop.f32.mrf.mxu1 }
 0x102   :  { %v561_v29 = vpop.f32.mrf.mxu0 }
 0x103   :  { %v562_v30 = vadd.f32 %v561_v29, %v131_v25 }
 0x104   :  { %v563_v32 = vpop.f32.mrf.mxu0  ;;  %v828_v57 = vpop.f32.mrf.mxu1 }
 0x105   :  { %v605_v33 = vadd.f32 %v604_v24, %v562_v30  ;;  %v564_v34 = vadd.f32 %v563_v32, %v135_v27 }
 0x106   :  { %v565_v38 = vpop.f32.mrf.mxu0  ;;  %v829_v58 = vpop.f32.mrf.mxu1 }
 0x107   :  { %v718_v39 = vmul.f32 %v706_v31, %v605_v33  ;;  %v607_v40 = vadd.f32 %v606_v28, %v564_v34  ;;  %v566_v41 = vadd.f32 %v565_v38, %v131_v25  ;;  %v830_v61 = vadd.f32 %v829_v58, %v828_v57 }
 0x108   :  { %v567_v43 = vpop.f32.mrf.mxu0  ;;  %v831_v60 = vpop.f32.mrf.mxu1 }
 0x109   :  { %v724_v44 = vadd.f32 %v718_v39, %v695_v37  ;;  %v719_v45 = vmul.f32 %v710_v35, %v607_v40  ;;  %v609_v46 = vadd.f32 %v608_v36, %v566_v41  ;;  %v568_v47 = vadd.f32 %v567_v43, %v135_v27 }
 0x10a   :  { %v832_v63 = vpop.f32.mrf.mxu1  ;;  %v648_v1 = vadd.f32 %v830_v61, %v139_v62 }
 0x10b   :  { %730 = vst [vmem:[%s1280_s5] sm:$0xff] %v724_v44  ;;  %v725_v50 = vadd.f32 %v719_v45, %v696_v42  ;;  %v721_v51 = vmul.f32 %v706_v31, %v609_v46  ;;  %v611_v52 = vadd.f32 %v610_v48, %v568_v47  ;;  %v833_v0 = vadd.f32 %v832_v63, %v831_v60 }
 0x10d   :  { %731 = vst [vmem:[%s1280_s5 + $0x8] sm:$0xff] %v725_v50  ;;  %v727_v54 = vadd.f32 %v721_v51, %v698_v49  ;;  %v722_v55 = vmul.f32 %v710_v35, %v611_v52  ;;  %v651_v8 = vadd.f32 %v833_v0, %v139_v62 }
 0x10f   :  { %733 = vst [vmem:[%s1280_s5 + $0x18] sm:$0x3] %v727_v54  ;;  %v728_v56 = vadd.f32 %v722_v55, %v699_v53 }
 0x111   :  { %734 = vst [vmem:[%s1280_s5 + $0x20] sm:$0x3] %v728_v56 }
 0x122   :  { %v688_v3 = vpop.f32.mrf.mxu0 }
 0x123   :  { %v689_v4 = vadd.f32 %v688_v3, %v648_v1 }
 0x124   :  { %v861_v6 = vpop.f32.mrf.mxu0 }
 0x125   :  { %v720_v7 = vmul.f32 %v714_v2, %v689_v4 }
 0x126   :  { %v691_v9 = vpop.f32.mrf.mxu0 }
 0x127   :  { %v726_v10 = vadd.f32 %v720_v7, %v697_v5  ;;  %v692_v11 = vadd.f32 %v691_v9, %v651_v8 }
 0x128   :  { %v862_v13 = vpop.f32.mrf.mxu0 }
 0x129   :  { %732 = vst [vmem:[%s1280_s5 + $0x10] sm:$0xff] %v726_v10  ;;  %v723_v14 = vmul.f32 %v714_v2, %v692_v11 }
 0x12b   :  { %v729_v15 = vadd.f32 %v723_v14, %v700_v12 }
 0x12d   :  { %735 = vst [vmem:[%s1280_s5 + $0x28] sm:$0x3] %v729_v15 }

// kernel: dino_feature_pyramid.62
= control target key start
LH: loop header
LB: loop body
LE: loop exit
PB: predicated region body
PF: predicated region fallthrough
CT: control target
= control target key end

     0   :  { %vm783_vm0 = vcmask 1045504   ;;  %vm779_vm1 = vcmask 621568   ;;  %vm1374_vm2 = vmmov 0   ;;  %s1780_s1 = inlined_call_operand.vmem [shape: bf16[588,384], index: 1, kind: input, shape index: {}]   ;;  %s1781_s0 = inlined_call_operand.vmem [shape: f32[8,588], index: 0, kind: input, shape index: {}]   ;;  %s1782_s2 = inlined_call_operand.vmem [shape: f32[1,384], index: 2, kind: input, shape index: {}]   ;;  %s1783_s3 = inlined_call_operand.vmem [shape: f32[8,384], index: 3, kind: output, shape index: {}]  }
   0x1   :  { %v1224_v0 = vld [vmem:[%s1780_s1 + $0xac] ss:$12 sps:$4 sm:$0xff]   ;;  %v1228_v2 = vld [vmem:[%s1780_s1 + $0xa8] ss:$12 sps:$4 sm:$0xff]   ;;  %v1234_v6 = vld [vmem:[%s1780_s1 + $0x90] ss:$12 sps:$4 sm:$0xff]  }
   0x2   :  { %v1226_v1 = vld [vmem:[%s1780_s1 + $0x22c] ss:$12 sps:$4 sm:$0xff]   ;;  %793 = vmatprep.subr.bf16.mxu0 %v1224_v0  ;;  %v1229_v3 = vld [vmem:[%s1780_s1 + $0x228] ss:$12 sps:$4 sm:$0xff]   ;;  %v1235_v7 = vld [vmem:[%s1780_s1 + $0x210] ss:$12 sps:$4 sm:$0xff]  }
   0x3   :  { %834 = vmatprep.subr.bf16.mxu1 %v1226_v1  ;;  %v1230_v4 = vld [vmem:[%s1780_s1 + $0x94] ss:$12 sps:$4 sm:$0xff]   ;;  %794 = vmatpush1.bf16.msra.mxu0 %v1228_v2  ;;  %v1236_v8 = vld [vmem:[%s1780_s1 + $0x7c] ss:$12 sps:$4 sm:$0xff]   ;;  %v1240_v10 = vld [vmem:[%s1780_s1 + $0x78] ss:$12 sps:$4 sm:$0xff]  }
   0x4   :  { %835 = vmatpush1.bf16.msra.mxu1 %v1229_v3  ;;  %v1232_v5 = vld [vmem:[%s1780_s1 + $0x214] ss:$12 sps:$4 sm:$0xff]   ;;  %795 = vmatprep.subr.bf16.mxu0 %v1230_v4  ;;  %v1238_v9 = vld [vmem:[%s1780_s1 + $0x1fc] ss:$12 sps:$4 sm:$0xff]   ;;  %v1241_v11 = vld [vmem:[%s1780_s1 + $0x1f8] ss:$12 sps:$4 sm:$0xff]  }
   0x5   :  { %836 = vmatprep.subr.bf16.mxu1 %v1232_v5  ;;  %v1242_v12 = vld [vmem:[%s1780_s1 + $0x64] ss:$12 sps:$4 sm:$0xff]   ;;  %v1246_v14 = vld [vmem:[%s1780_s1 + $0x60] ss:$12 sps:$4 sm:$0xff]   ;;  %v1252_v18 = vld [vmem:[%s1780_s1 + $0x48] ss:$12 sps:$4 sm:$0xff]  }
   0x6   :  { %v1244_v13 = vld [vmem:[%s1780_s1 + $0x1e4] ss:$12 sps:$4 sm:$0xff]   ;;  %v1247_v15 = vld [vmem:[%s1780_s1 + $0x1e0] ss:$12 sps:$4 sm:$0xff]   ;;  %v1253_v19 = vld [vmem:[%s1780_s1 + $0x1c8] ss:$12 sps:$4 sm:$0xff]  }
   0x7   :  { %796 = vmatpush1.bf16.msra.mxu0 %v1234_v6  ;;  %v1248_v16 = vld [vmem:[%s1780_s1 + $0x4c] ss:$12 sps:$4 sm:$0xff]   ;;  %v1254_v20 = vld [vmem:[%s1780_s1 + $0x34] ss:$12 sps:$4 sm:$0xff]   ;;  %v1258_v22 = vld [vmem:[%s1780_s1 + $0x30] ss:$12 sps:$4 sm:$0xff]  }
   0x8   :  { %837 = vmatpush1.bf16.msra.mxu1 %v1235_v7  ;;  %797 = vmatprep.subr.bf16.mxu0 %v1236_v8  ;;  %v1250_v17 = vld [vmem:[%s1780_s1 + $0x1cc] ss:$12 sps:$4 sm:$0xff]   ;;  %v1256_v21 = vld [vmem:[%s1780_s1 + $0x1b4] ss:$12 sps:$4 sm:$0xff]   ;;  %v1259_v23 = vld [vmem:[%s1780_s1 + $0x1b0] ss:$12 sps:$4 sm:$0xff]  }
   0x9   :  { %838 = vmatprep.subr.bf16.mxu1 %v1238_v9  ;;  %v1260_v24 = vld [vmem:[%s1780_s1 + $0x1c] ss:$12 sps:$4 sm:$0xff]   ;;  %v1264_v26 = vld [vmem:[%s1780_s1 + $0x18] ss:$12 sps:$4 sm:$0xff]   ;;  %v1270_v30 = vld [vmem:[%s1780_s1] ss:$12 sps:$4 sm:$0xff]  }
   0xa   :  { %v1262_v25 = vld [vmem:[%s1780_s1 + $0x19c] ss:$12 sps:$4 sm:$0xff]   ;;  %v1265_v27 = vld [vmem:[%s1780_s1 + $0x198] ss:$12 sps:$4 sm:$0xff]   ;;  %v1271_v31 = vld [vmem:[%s1780_s1 + $0x180] ss:$12 sps:$4 sm:$0xff]  }
   0xb   :  { %798 = vmatpush1.bf16.msra.mxu0 %v1240_v10  ;;  %v1266_v28 = vld [vmem:[%s1780_s1 + $0x4] ss:$12 sps:$4 sm:$0xff]   ;;  %v1272_v32 = vld [vmem:[%s1780_s1 + $0x16c] ss:$12 sps:$4 sm:$0xff]   ;;  %v1276_v34 = vld [vmem:[%s1780_s1 + $0x168] ss:$12 sps:$4 sm:$0xff]  }
   0xc   :  { %839 = vmatpush1.bf16.msra.mxu1 %v1241_v11  ;;  %799 = vmatprep.subr.bf16.mxu0 %v1242_v12  ;;  %v1268_v29 = vld [vmem:[%s1780_s1 + $0x184] ss:$12 sps:$4 sm:$0xff]   ;;  %v1274_v33 = vld [vmem:[%s1780_s1 + $0x2ec] ss:$12 sps:$4 sm:$0xff]   ;;  %v1277_v35 = vld [vmem:[%s1780_s1 + $0x2e8] ss:$12 sps:$4 sm:$0xff]  }
   0xd   :  { %840 = vmatprep.subr.bf16.mxu1 %v1244_v13  ;;  %v1278_v36 = vld [vmem:[%s1780_s1 + $0x154] ss:$12 sps:$4 sm:$0xff]   ;;  %v1282_v38 = vld [vmem:[%s1780_s1 + $0x150] ss:$12 sps:$4 sm:$0xff]   ;;  %v1288_v42 = vld [vmem:[%s1780_s1 + $0x138] ss:$12 sps:$4 sm:$0xff]  }
   0xe   :  { %v1280_v37 = vld [vmem:[%s1780_s1 + $0x2d4] ss:$12 sps:$4 sm:$0xff]   ;;  %v1283_v39 = vld [vmem:[%s1780_s1 + $0x2d0] ss:$12 sps:$4 sm:$0xff]   ;;  %v1289_v43 = vld [vmem:[%s1780_s1 + $0x2b8] ss:$12 sps:$4 sm:$0xff]  }
   0xf   :  { %800 = vmatpush1.bf16.msra.mxu0 %v1246_v14  ;;  %v1284_v40 = vld [vmem:[%s1780_s1 + $0x13c] ss:$12 sps:$4 sm:$0xff]   ;;  %v1290_v44 = vld [vmem:[%s1780_s1 + $0x124] ss:$12 sps:$4 sm:$0xff]   ;;  %v1294_v47 = vld [vmem:[%s1780_s1 + $0x120] ss:$12 sps:$4 sm:$0xff]  }
  0x10   :  { %841 = vmatpush1.bf16.msra.mxu1 %v1247_v15  ;;  %801 = vmatprep.subr.bf16.mxu0 %v1248_v16  ;;  %v1286_v41 = vld [vmem:[%s1780_s1 + $0x2bc] ss:$12 sps:$4 sm:$0xff]   ;;  %v1292_v45 = vld [vmem:[%s1780_s1 + $0x2a4] ss:$12 sps:$4 sm:$0xff]   ;;  %v1295_v48 = vld [vmem:[%s1780_s1 + $0x2a0] ss:$12 sps:$4 sm:$0xff]  }
  0x11   :  { %842 = vmatprep.subr.bf16.mxu1 %v1250_v17  ;;  %v16_v46 = vld [vmem:[%s1781_s0 + $0x8] sm:$0xff]  ;;  %v18_v50 = vld [vmem:[%s1781_s0 + $0x18] sm:$0xff]  ;;  %v1302_v56 = vld [vmem:[%s1780_s1 + $0xf4] ss:$12 sps:$4 sm:$0xff]  }
  0x12   :  { %v1542_v49 = vpack.c.bf16 %v16_v46, %v16_v46  ;;  %v1296_v51 = vld [vmem:[%s1780_s1 + $0x10c] ss:$12 sps:$4 sm:$0xff]   ;;  %v1550_v52 = vpack.c.bf16 %v18_v50, %v18_v50  ;;  %v1300_v54 = vld [vmem:[%s1780_s1 + $0x108] ss:$12 sps:$4 sm:$0xff]   ;;  %v1306_v58 = vld [vmem:[%s1780_s1 + $0xf0] ss:$12 sps:$4 sm:$0xff]  }
  0x13   :  { %802 = vmatpush1.bf16.msra.mxu0 %v1252_v18  ;;  %v1298_v53 = vld [vmem:[%s1780_s1 + $0x28c] ss:$12 sps:$4 sm:$0xff]   ;;  %v1301_v55 = vld [vmem:[%s1780_s1 + $0x288] ss:$12 sps:$4 sm:$0xff]   ;;  %v1307_v59 = vld [vmem:[%s1780_s1 + $0x270] ss:$12 sps:$4 sm:$0xff]  }
  0x14   :  { %843 = vmatpush1.bf16.msra.mxu1 %v1253_v19  ;;  %803 = vmatprep.subr.bf16.mxu0 %v1254_v20  ;;  %v1304_v57 = vld [vmem:[%s1780_s1 + $0x274] ss:$12 sps:$4 sm:$0xff]   ;;  %v1308_v60 = vld [vmem:[%s1780_s1 + $0xdc] ss:$12 sps:$4 sm:$0xff]   ;;  %v1312_v62 = vld [vmem:[%s1780_s1 + $0xd8] ss:$12 sps:$4 sm:$0xff]  }
  0x15   :  { %844 = vmatprep.subr.bf16.mxu1 %v1256_v21  ;;  %825 = vmatprep.mubr.bf16.mxu0 %v1542_v49  ;;  %v1310_v61 = vld [vmem:[%s1780_s1 + $0x25c] ss:$12 sps:$4 sm:$0xff]   ;;  %v1313_v63 = vld [vmem:[%s1780_s1 + $0x258] ss:$12 sps:$4 sm:$0xff]   ;;  %v1318_v2 = vld [vmem:[%s1780_s1 + $0xc0] ss:$12 sps:$4 sm:$0xff]  }
  0x16   :  { %866 = vmatprep.mubr.bf16.mxu1 %v1550_v52  ;;  %v1314_v0 = vld [vmem:[%s1780_s1 + $0xc4] ss:$12 sps:$4 sm:$0xff]   ;;  %v1319_v3 = vld [vmem:[%s1780_s1 + $0x240] ss:$12 sps:$4 sm:$0xff]   ;;  %v1325_v15 = vld [vmem:[%s1780_s1 + $0x348] ss:$12 sps:$4 sm:$0xff]  }
  0x17   :  { %804 = vmatpush1.bf16.msra.mxu0 %v1258_v22  ;;  %v1316_v1 = vld [vmem:[%s1780_s1 + $0x244] ss:$12 sps:$4 sm:$0xff]   ;;  %v1323_v4 = vld [vmem:[%s1780_s1 + $0x360] ss:$12 sps:$4 sm:$0x3f]   ;;  %v1372_v20 = vmov 0  }
  0x18   :  { %845 = vmatpush1.bf16.msra.mxu1 %v1259_v23  ;;  %805 = vmatprep.subr.bf16.mxu0 %v1260_v24  ;;  %v15_v5 = vld [vmem:[%s1781_s0] sm:$0xff]  ;;  %v17_v6 = vld [vmem:[%s1781_s0 + $0x10] sm:$0xff]  ;;  %v785_v12 = vsel %vm783_vm0, %v1323_v4, 0  ;;  %v1327_v13 = vld [vmem:[%s1780_s1 + $0x34c] ss:$12 sps:$4 sm:$0xff]  }
  0x19   :  { %846 = vmatprep.subr.bf16.mxu1 %v1262_v25  ;;  %v1320_v7 = vld [vmem:[%s1780_s1 + $0x364] ss:$12 sps:$4 sm:$0x3f]   ;;  %v1617_v10 = vpack.c.bf16 %v15_v5, %v15_v5  ;;  %v1619_v11 = vpack.c.bf16 %v17_v6, %v17_v6  ;;  %v1332_v17 = vld [vmem:[%s1780_s1 + $0x334] ss:$12 sps:$4 sm:$0xff]  }
  0x1a   :  { %v1322_v8 = vld [vmem:[%s1780_s1 + $0x170] ss:$12 sps:$4 sm:$0xff]   ;;  %v1328_v14 = vld [vmem:[%s1780_s1 + $0x158] ss:$12 sps:$4 sm:$0xff]   ;;  %v1333_v18 = vld [vmem:[%s1780_s1 + $0x140] ss:$12 sps:$4 sm:$0xff]  }
  0x1b   :  { %806 = vmatpush1.bf16.msra.mxu0 %v1264_v26  ;;  %v1324_v9 = vld [vmem:[%s1780_s1 + $0xb0] ss:$12 sps:$4 sm:$0xff]   ;;  %v1329_v16 = vld [vmem:[%s1780_s1 + $0x98] ss:$12 sps:$4 sm:$0xff]   ;;  %v1334_v21 = vld [vmem:[%s1780_s1 + $0x80] ss:$12 sps:$4 sm:$0xff]  }
  0x1c   :  { %847 = vmatpush1.bf16.msra.mxu1 %v1265_v27  ;;  %807 = vmatprep.subr.bf16.mxu0 %v1266_v28  ;;  %v1330_v19 = vld [vmem:[%s1780_s1 + $0x330] ss:$12 sps:$4 sm:$0xff]   ;;  %v1338_v23 = vld [vmem:[%s1780_s1 + $0x128] ss:$12 sps:$4 sm:$0xff]   ;;  %v1335_v24 = vld [vmem:[%s1780_s1 + $0x318] ss:$12 sps:$4 sm:$0xff]  }
  0x1d   :  { %848 = vmatprep.subr.bf16.mxu1 %v1268_v29  ;;  %v1337_v22 = vld [vmem:[%s1780_s1 + $0x31c] ss:$12 sps:$4 sm:$0xff]   ;;  %v1342_v26 = vld [vmem:[%s1780_s1 + $0x304] ss:$12 sps:$4 sm:$0xff]   ;;  %v1340_v28 = vld [vmem:[%s1780_s1 + $0x300] ss:$12 sps:$4 sm:$0xff]  }
  0x1e   :  { %v1339_v25 = vld [vmem:[%s1780_s1 + $0x68] ss:$12 sps:$4 sm:$0xff]   ;;  %v1343_v27 = vld [vmem:[%s1780_s1 + $0x110] ss:$12 sps:$4 sm:$0xff]  }
  0x1f   :  { %808 = vmatpush1.bf16.msra.mxu0 %v1270_v30  ;;  %v1344_v29 = vld [vmem:[%s1780_s1 + $0x50] ss:$12 sps:$4 sm:$0xff]   ;;  %v19_v30 = vld [vmem:[%s1781_s0 + $0x20] sm:$0xff]  ;;  %v1358_v46 = vld [vmem:[%s1780_s1 + $0x1e8] ss:$12 sps:$4 sm:$0xff]  }
  0x20   :  { %849 = vmatpush1.bf16.msra.mxu1 %v1271_v31  ;;  %809 = vmatprep.subr.bf16.mxu0 %v1272_v32  ;;  %v1345_v31 = vld [vmem:[%s1780_s1 + $0xf8] ss:$12 sps:$4 sm:$0xff]   ;;  %v1346_v32 = vld [vmem:[%s1780_s1 + $0x2f0] ss:$12 sps:$4 sm:$0xff]  }
  0x21   :  { %850 = vmatprep.subr.bf16.mxu1 %v1274_v33  ;;  %v1347_v33 = vld [vmem:[%s1780_s1 + $0x38] ss:$12 sps:$4 sm:$0xff]   ;;  %v1361_v50 = vld [vmem:[%s1780_s1 + $0x1d0] ss:$12 sps:$4 sm:$0xff]  }
  0x23   :  { %810 = vmatpush2.bf16.msra.mxu0 %v1276_v34  ;;  %v1686_v34 = vpack.c.bf16 %v19_v30, %v19_v30 }
  0x24   :  { %851 = vmatpush2.bf16.msra.mxu1 %v1277_v35  ;;  %811 = vmatprep.subr.bf16.mxu0 %v1278_v36  ;;  %v1348_v35 = vld [vmem:[%s1780_s1 + $0x230] ss:$12 sps:$4 sm:$0xff]   ;;  %v1349_v36 = vld [vmem:[%s1780_s1 + $0xe0] ss:$12 sps:$4 sm:$0xff]  }
  0x25   :  { %852 = vmatprep.subr.bf16.mxu1 %v1280_v37  ;;  %v1350_v37 = vld [vmem:[%s1780_s1 + $0x2d8] ss:$12 sps:$4 sm:$0xff]  }
  0x27   :  { %812 = vmatpush2.bf16.msra.mxu0 %v1282_v38  ;;  %v1351_v38 = vld [vmem:[%s1780_s1 + $0x20] ss:$12 sps:$4 sm:$0xff]  }
  0x28   :  { %853 = vmatpush2.bf16.msra.mxu1 %v1283_v39  ;;  %813 = vmatprep.subr.bf16.mxu0 %v1284_v40  ;;  %v1352_v39 = vld [vmem:[%s1780_s1 + $0x218] ss:$12 sps:$4 sm:$0xff]   ;;  %v1353_v40 = vld [vmem:[%s1780_s1 + $0xc8] ss:$12 sps:$4 sm:$0xff]  }
  0x29   :  { %854 = vmatprep.subr.bf16.mxu1 %v1286_v41  ;;  %v1354_v41 = vld [vmem:[%s1780_s1 + $0x2c0] ss:$12 sps:$4 sm:$0xff]  }
  0x2b   :  { %814 = vmatpush2.bf16.msra.mxu0 %v1288_v42  ;;  %v1355_v42 = vld [vmem:[%s1780_s1 + $0x8] ss:$12 sps:$4 sm:$0xff]  }
  0x2c   :  { %855 = vmatpush2.bf16.msra.mxu1 %v1289_v43  ;;  %815 = vmatprep.subr.bf16.mxu0 %v1290_v44  ;;  %v1356_v43 = vld [vmem:[%s1780_s1 + $0x200] ss:$12 sps:$4 sm:$0xff]   ;;  %v1357_v44 = vld [vmem:[%s1780_s1 + $0x2a8] ss:$12 sps:$4 sm:$0xff]  }
  0x2d   :  { %856 = vmatprep.subr.bf16.mxu1 %v1292_v45  ;;  %v1359_v45 = vld [vmem:[%s1780_s1 + $0x368] ss:$12 sps:$4 sm:$0x3f]  }
  0x2f   :  { %816 = vmatpush2.bf16.msra.mxu0 %v1294_v47  ;;  %v1373_v47 = vmov 0.0  }
  0x30   :  { %857 = vmatpush2.bf16.msra.mxu1 %v1295_v48  ;;  %817 = vmatprep.subr.bf16.mxu0 %v1296_v51  ;;  %v791_v48 = vsel %vm783_vm0, %v1359_v45, 0  ;;  %v1362_v51 = vld [vmem:[%s1780_s1 + $0x350] ss:$12 sps:$4 sm:$0xff]  }
  0x31   :  { %858 = vmatprep.subr.bf16.mxu1 %v1298_v53  ;;  %v1364_v53 = vld [vmem:[%s1780_s1 + $0x1b8] ss:$12 sps:$4 sm:$0xff]  }
  0x33   :  { %818 = vmatpush2.bf16.msra.mxu0 %v1300_v54  ;;  %v1365_v54 = vld [vmem:[%s1780_s1 + $0x338] ss:$12 sps:$4 sm:$0xff]  }
  0x34   :  { %859 = vmatpush2.bf16.msra.mxu1 %v1301_v55  ;;  %819 = vmatprep.subr.bf16.mxu0 %v1302_v56  ;;  %v1366_v55 = vld [vmem:[%s1780_s1 + $0x260] ss:$12 sps:$4 sm:$0xff]  }
  0x35   :  { %860 = vmatprep.subr.bf16.mxu1 %v1304_v57  ;;  %v1367_v56 = vld [vmem:[%s1780_s1 + $0x1a0] ss:$12 sps:$4 sm:$0xff]  }
  0x36   :  { %v1368_v57 = vld [vmem:[%s1780_s1 + $0x320] ss:$12 sps:$4 sm:$0xff]  }
  0x37   :  { %820 = vmatpush2.bf16.msra.mxu0 %v1306_v58  ;;  %v1369_v58 = vld [vmem:[%s1780_s1 + $0x248] ss:$12 sps:$4 sm:$0xff]  }
  0x38   :  { %861 = vmatpush2.bf16.msra.mxu1 %v1307_v59  ;;  %821 = vmatprep.subr.bf16.mxu0 %v1308_v60  ;;  %v1370_v59 = vld [vmem:[%s1780_s1 + $0x188] ss:$12 sps:$4 sm:$0xff]  }
  0x39   :  { %862 = vmatprep.subr.bf16.mxu1 %v1310_v61  ;;  %v1371_v60 = vld [vmem:[%s1780_s1 + $0x308] ss:$12 sps:$4 sm:$0xff]   ;;  %v175_v61 = vlaneseq }
  0x3b   :  { %822 = vmatpush2.bf16.msra.mxu0 %v1312_v62 }
  0x3c   :  { %863 = vmatpush2.bf16.msra.mxu1 %v1313_v63  ;;  %823 = vmatprep.subr.bf16.mxu0 %v1314_v0 }
  0x3d   :  { %864 = vmatprep.subr.bf16.mxu1 %v1316_v1 }
  0x3f   :  { %824 = vmatpush2.bf16.msra.mxu0 %v1318_v2  ;;  %v176_v2 = vshrl.u32 %v175_v61, 7 }
  0x40   :  { %865 = vmatpush2.bf16.msra.mxu1 %v1319_v3  ;;  %1154 = vmatprep.subr.msk.bf16.mxu0 %vm783_vm0, %v1320_v7 }
  0x41   :  { %1157 = vmatprep.subr.bf16.mxu1 %v1322_v8  ;;  %v177_v7 = vsub.s32 0, %v176_v2  ;;  %v173_v8 = vld [vmem:[%s1782_s2] sm:$0x7] }
  0x42   :  { %826 = vmatmul.mubr.bf16.vlgmr.msra.gmra.mxu0 %v1617_v10 }
  0x43   :  { %867 = vmatmul.mubr.bf16.vlgmr.msra.gmra.mxu1 %v1619_v11  ;;  %882 = vmatpush1.bf16.msra.mxu0 %v785_v12 }
  0x44   :  { %1158 = vmatpush3.bf16.msra.mxu1 %v1324_v9  ;;  %883 = vmatprep.subr.bf16.mxu0 %v1327_v13  ;;  %v181_v9 = vsub.s32 1, %v176_v2 }
  0x45   :  { %1159 = vmatprep.subr.bf16.mxu1 %v1328_v14  ;;  %907 = vmatprep.mubr.bf16.mxu0 %v1372_v20 }
  0x46   :  { %948 = vmatprep.mubr.bf16.mxu1 %v1542_v49  ;;  %v1360_v49 = vld [vmem:[%s1780_s1 + $0x290] ss:$12 sps:$4 sm:$0xff]  }
  0x47   :  { %884 = vmatpush1.bf16.msra.mxu0 %v1325_v15 }
  0x48   :  { %1160 = vmatpush3.bf16.msra.mxu1 %v1329_v16  ;;  %885 = vmatprep.subr.bf16.mxu0 %v1332_v17 }
  0x49   :  { %1161 = vmatprep.subr.bf16.mxu1 %v1333_v18 }
  0x4b   :  { %886 = vmatpush1.bf16.msra.mxu0 %v1330_v19 }
  0x4c   :  { %1162 = vmatpush3.bf16.msra.mxu1 %v1334_v21  ;;  %887 = vmatprep.subr.bf16.mxu0 %v1337_v22 }
  0x4d   :  { %1163 = vmatprep.subr.bf16.mxu1 %v1338_v23 }
  0x4f   :  { %888 = vmatpush1.bf16.msra.mxu0 %v1335_v24 }
  0x50   :  { %1164 = vmatpush3.bf16.msra.mxu1 %v1339_v25  ;;  %889 = vmatprep.subr.bf16.mxu0 %v1342_v26  ;;  %v185_v26 = vsub.s32 2, %v176_v2 }
  0x51   :  { %1165 = vmatprep.subr.bf16.mxu1 %v1343_v27 }
  0x52   :  { %v186_v27 = vrot.slane %v173_v8, %v185_v26 }
  0x53   :  { %890 = vmatpush1.bf16.msra.mxu0 %v1340_v28 }
  0x54   :  { %1166 = vmatpush3.bf16.msra.mxu1 %v1344_v29  ;;  %1179 = vmatprep.subr.bf16.mxu0 %v1346_v32 }
  0x55   :  { %1167 = vmatprep.subr.bf16.mxu1 %v1345_v31 }
  0x56   :  { %1155 = vmatmul.mubr.msk.bf16.vlgmr.msra.gmra.mxu0 %vm779_vm1, %v1686_v34 }
  0x57   :  { %1180 = vmatpush3.bf16.msra.mxu0 %v1348_v35  ;;  %988 = vmatprep.mubr.bf16.mxu0 %v1550_v52  ;;  %v1363_v52 = vld [vmem:[%s1780_s1 + $0x278] ss:$12 sps:$4 sm:$0xff]  }
  0x58   :  { %1168 = vmatpush3.bf16.msra.mxu1 %v1347_v33  ;;  %1181 = vmatprep.subr.bf16.mxu0 %v1350_v37 }
  0x59   :  { %1169 = vmatprep.subr.bf16.mxu1 %v1349_v36 }
  0x5b   :  { %1182 = vmatpush3.bf16.msra.mxu0 %v1352_v39 }
  0x5c   :  { %1170 = vmatpush3.bf16.msra.mxu1 %v1351_v38  ;;  %1183 = vmatprep.subr.bf16.mxu0 %v1354_v41 }
  0x5d   :  { %1171 = vmatprep.subr.bf16.mxu1 %v1353_v40 }
  0x5f   :  { %1184 = vmatpush3.bf16.msra.mxu0 %v1356_v43 }
  0x60   :  { %1172 = vmatpush3.bf16.msra.mxu1 %v1355_v42  ;;  %1185 = vmatprep.subr.bf16.mxu0 %v1357_v44 }
  0x61   :  { %1207 = vmatprep.subr.bf16.mxu1 %v1373_v47 }
  0x63   :  { %949 = vmatmul.mubr.bf16.vlgmr.msra.gmra.mxu1 %v1617_v10  ;;  %1186 = vmatpush3.bf16.msra.mxu0 %v1358_v46  ;;  %v178_v10 = vrot.slane %v173_v8, %v177_v7 }
  0x64   :  { %1208 = vmatpush3.bf16.msra.mxu1 %v791_v48  ;;  %1187 = vmatprep.subr.bf16.mxu0 %v1360_v49 }
  0x65   :  { %1209 = vmatprep.subr.bf16.mxu1 %v1373_v47  ;;  %1217 = vmatprep.mubr.msk.bf16.mxu1 %vm1374_vm2, %v1373_v47 }
  0x67   :  { %1188 = vmatpush3.bf16.msra.mxu0 %v1361_v50 }
  0x68   :  { %1210 = vmatpush3.bf16.msra.mxu1 %v1362_v51  ;;  %1189 = vmatprep.subr.bf16.mxu0 %v1363_v52 }
  0x69   :  { %1211 = vmatprep.subr.bf16.mxu1 %v1373_v47 }
  0x6b   :  { %1190 = vmatpush3.bf16.msra.mxu0 %v1364_v53 }
  0x6c   :  { %1212 = vmatpush3.bf16.msra.mxu1 %v1365_v54  ;;  %1191 = vmatprep.subr.bf16.mxu0 %v1366_v55 }
  0x6d   :  { %1213 = vmatprep.subr.bf16.mxu1 %v1373_v47 }
  0x6f   :  { %1192 = vmatpush3.bf16.msra.mxu0 %v1367_v56 }
  0x70   :  { %1214 = vmatpush3.bf16.msra.mxu1 %v1368_v57  ;;  %1193 = vmatprep.subr.bf16.mxu0 %v1369_v58 }
  0x71   :  { %1215 = vmatprep.subr.bf16.mxu1 %v1373_v47 }
  0x73   :  { %1194 = vmatpush3.bf16.msra.mxu0 %v1370_v59 }
  0x74   :  { %1216 = vmatpush3.bf16.msra.mxu1 %v1371_v60 }
  0x76   :  { %989 = vmatmul.mubr.bf16.vlgmr.msra.gmra.mxu0 %v1619_v11  ;;  %v182_v11 = vrot.slane %v173_v8, %v181_v9 }
  0x77   :  { %1218 = vmatmul.mubr.msk.bf16.vlgmr.msra.gmra.mxu1 %vm779_vm1, %v1686_v34 }
 0x102   :  { %v827_v62 = vpop.f32.mrf.mxu0 }
 0x103   :  { %v868_v63 = vpop.f32.mrf.mxu1  ;;  %v828_v12 = vadd.f32 %v827_v62, %v178_v10 }
 0x104   :  { %v829_v0 = vpop.f32.mrf.mxu0 }
 0x105   :  { %v870_v1 = vpop.f32.mrf.mxu1  ;;  %v830_v13 = vadd.f32 %v829_v0, %v182_v11  ;;  %v869_v14 = vadd.f32 %v868_v63, %v828_v12 }
 0x106   :  { %v831_v3 = vpop.f32.mrf.mxu0 }
 0x107   :  { %v872_v4 = vpop.f32.mrf.mxu1  ;;  %v871_v16 = vadd.f32 %v870_v1, %v830_v13 }
 0x108   :  { %v832_v5 = vpop.f32.mrf.mxu0 }
 0x109   :  { %v873_v6 = vpop.f32.mrf.mxu1 }
 0x116   :  { %v909_v15 = vpop.f32.mrf.mxu0 }
 0x117   :  { %v910_v17 = vadd.f32 %v909_v15, %v869_v14 }
 0x118   :  { %v911_v18 = vpop.f32.mrf.mxu0 }
 0x119   :  { %1036 = vst [vmem:[%s1783_s3] sm:$0xff] %v910_v17  ;;  %v912_v19 = vadd.f32 %v911_v18, %v871_v16 }
 0x11a   :  { %v913_v20 = vpop.f32.mrf.mxu0 }
 0x11b   :  { %1037 = vst [vmem:[%s1783_s3 + $0x8] sm:$0xff] %v912_v19 }
 0x11c   :  { %v914_v21 = vpop.f32.mrf.mxu0 }
 0x123   :  { %v1173_v22 = vpop.f32.mrf.mxu1 }
 0x125   :  { %v1174_v23 = vpop.f32.mrf.mxu1 }
 0x126   :  { %v1175_v28 = vadd.f32 %v1174_v23, %v1173_v22 }
 0x127   :  { %v1176_v24 = vpop.f32.mrf.mxu1 }
 0x128   :  { %v951_v33 = vadd.f32 %v1175_v28, %v186_v27 }
 0x129   :  { %v1177_v25 = vpop.f32.mrf.mxu1 }
 0x136   :  { %v1195_v29 = vpop.f32.mrf.mxu0 }
 0x137   :  { %v1030_v30 = vpop.f32.mrf.mxu1 }
 0x138   :  { %v1196_v31 = vpop.f32.mrf.mxu0 }
 0x139   :  { %v1219_v32 = vpop.f32.mrf.mxu1  ;;  %v1197_v34 = vadd.f32 %v1196_v31, %v1195_v29 }
 0x13a   :  { %v1198_v35 = vpop.f32.mrf.mxu0 }
 0x13b   :  { %v1033_v36 = vpop.f32.mrf.mxu1  ;;  %v991_v37 = vadd.f32 %v1197_v34, %v951_v33 }
 0x13c   :  { %v1199_v38 = vpop.f32.mrf.mxu0 }
 0x13d   :  { %v1220_v39 = vpop.f32.mrf.mxu1  ;;  %v1031_v40 = vadd.f32 %v1030_v30, %v991_v37 }
 0x13f   :  { %1038 = vst [vmem:[%s1783_s3 + $0x10] sm:$0xff] %v1031_v40 }

// kernel: dino_feature_pyramid.63
= control target key start
LH: loop header
LB: loop body
LE: loop exit
PB: predicated region body
PF: predicated region fallthrough
CT: control target
= control target key end

     0   :  { %vm33_vm0 = vcmask 1041408   ;;  %v2557_v60 = vmov 0   ;;  %vm2559_vm1 = vmmov 0   ;;  %s3424_s0 = inlined_call_operand.vmem [shape: f32[10,384], index: 0, kind: input, shape index: {}]   ;;  %s3425_s3 = inlined_call_operand.vmem [shape: bf16[384,1152], index: 3, kind: input, shape index: {}]   ;;  %s3426_s1 = inlined_call_operand.vmem [shape: f32[1,384], index: 1, kind: input, shape index: {}]   ;;  %s3427_s2 = inlined_call_operand.vmem [shape: f32[1,384], index: 2, kind: input, shape index: {}]   ;;  %s3428_s4 = inlined_call_operand.vmem [shape: f32[1,1152], index: 4, kind: input, shape index: {}]   ;;  %s3429_s5 = inlined_call_operand.vmem [shape: f32[10,1152], index: 5, kind: output, shape index: {}]  }
   0x1   :  { %v2593_v0 = vld [vmem:[%s3424_s0] sm:$0xff]  ;;  %v2598_v1 = vld [vmem:[%s3424_s0 + $0x8] sm:$0xff]  ;;  %v2603_v2 = vld [vmem:[%s3424_s0 + $0x10] sm:$0xff]  ;;  %1597 = vmatprep.mubr.bf16.mxu1 %v2557_v60 }
   0x2   :  { %v29_v3 = vadd.f32 %v2598_v1, %v2593_v0  ;;  %v41_v4 = vmul.f32 %v2593_v0, %v2593_v0  ;;  %v42_v5 = vmul.f32 %v2598_v1, %v2598_v1  ;;  %v43_v6 = vmul.f32 %v2603_v2, %v2603_v2  ;;  %v2616_v7 = vld [vmem:[%s3424_s0 + $0x18] sm:$0x3]  ;;  %v2621_v8 = vld [vmem:[%s3424_s0 + $0x20] sm:$0x3]  ;;  %v2626_v9 = vld [vmem:[%s3424_s0 + $0x28] sm:$0x3] }
   0x3   :  { %v34_v10 = vsel %vm33_vm0, %v2616_v7, 0.0  ;;  %v35_v11 = vsel %vm33_vm0, %v2621_v8, 0.0  ;;  %v37_v12 = vsel %vm33_vm0, %v2626_v9, 0.0  ;;  %v44_v13 = vmul.f32 %v2616_v7, %v2616_v7  ;;  %v2241_v18 = vld [vmem:[%s3425_s3 + $0x1fc] ss:$36 sps:$4 sm:$0xff]  }
   0x4   :  { %v30_v14 = vadd.f32 %v29_v3, %v2603_v2  ;;  %v47_v15 = vadd.f32 %v42_v5, %v41_v4  ;;  %v36_v16 = vadd.f32 %v35_v11, %v34_v10  ;;  %v45_v17 = vmul.f32 %v2621_v8, %v2621_v8  ;;  %v2243_v19 = vld [vmem:[%s3425_s3 + $0x1f8] ss:$36 sps:$4 sm:$0xff]   ;;  %1522 = vmatprep.subr.bf16.mxu0 %v2241_v18  ;;  %v2246_v28 = vld [vmem:[%s3425_s3 + $0x1b0] ss:$36 sps:$4 sm:$0xff]   ;;  %v2249_v31 = vld [vmem:[%s3425_s3 + $0x168] ss:$36 sps:$4 sm:$0xff]  }
   0x5   :  { %v46_v20 = vmul.f32 %v2626_v9, %v2626_v9  ;;  %v51_v21 = vsel %vm33_vm0, %v44_v13, 0.0  ;;  %v2244_v22 = vld [vmem:[%s3425_s3 + $0x1b4] ss:$36 sps:$4 sm:$0xff]   ;;  %1523 = vmatpush1.bf16.msra.mxu0 %v2243_v19  ;;  %v2247_v29 = vld [vmem:[%s3425_s3 + $0x16c] ss:$36 sps:$4 sm:$0xff]  }
   0x6   :  { %31 = vadd.xlane.f32.xlu0 %v30_v14  ;;  %v48_v23 = vadd.f32 %v47_v15, %v43_v6  ;;  %v38_v24 = vadd.f32 %v37_v12, %v36_v16  ;;  %v52_v25 = vsel %vm33_vm0, %v45_v17, 0.0  ;;  %1524 = vmatprep.subr.bf16.mxu0 %v2244_v22  ;;  %v2250_v32 = vld [vmem:[%s3425_s3 + $0x124] ss:$36 sps:$4 sm:$0xff]   ;;  %v2253_v34 = vld [vmem:[%s3425_s3 + $0xdc] ss:$36 sps:$4 sm:$0xff]  }
   0x7   :  { %v53_v26 = vadd.f32 %v52_v25, %v51_v21  ;;  %v54_v27 = vsel %vm33_vm0, %v46_v20, 0.0  ;;  %v2252_v33 = vld [vmem:[%s3425_s3 + $0x120] ss:$36 sps:$4 sm:$0xff]   ;;  %v2255_v36 = vld [vmem:[%s3425_s3 + $0xd8] ss:$36 sps:$4 sm:$0xff]  }
   0x8   :  { %49 = vadd.xlane.f32.xlu1 %v48_v23  ;;  %v2265_v35 = vld [vmem:[%s3425_s3 + $0x67c] ss:$36 sps:$4 sm:$0xff]   ;;  %v2256_v38 = vld [vmem:[%s3425_s3 + $0x94] ss:$36 sps:$4 sm:$0xff]   ;;  %v2259_v42 = vld [vmem:[%s3425_s3 + $0x4c] ss:$36 sps:$4 sm:$0xff]  }
   0x9   :  { %v55_v30 = vadd.f32 %v54_v27, %v53_v26  ;;  %1525 = vmatpush1.bf16.msra.mxu0 %v2246_v28  ;;  %1565 = vmatprep.subr.bf16.mxu1 %v2265_v35  ;;  %v2269_v37 = vld [vmem:[%s3425_s3 + $0x678] ss:$36 sps:$4 sm:$0xff]   ;;  %v2258_v40 = vld [vmem:[%s3425_s3 + $0x90] ss:$36 sps:$4 sm:$0xff]   ;;  %v2261_v44 = vld [vmem:[%s3425_s3 + $0x48] ss:$36 sps:$4 sm:$0xff]  }
   0xa   :  { %39 = vadd.xlane.f32.xlu0 %v38_v24  ;;  %1526 = vmatprep.subr.bf16.mxu0 %v2247_v29  ;;  %v2271_v39 = vld [vmem:[%s3425_s3 + $0x634] ss:$36 sps:$4 sm:$0xff]   ;;  %v2277_v43 = vld [vmem:[%s3425_s3 + $0x5ec] ss:$36 sps:$4 sm:$0xff]   ;;  %v2262_v46 = vld [vmem:[%s3425_s3 + $0x4] ss:$36 sps:$4 sm:$0xff]  }
   0xb   :  { %1566 = vmatpush1.bf16.msra.mxu1 %v2269_v37  ;;  %v2275_v41 = vld [vmem:[%s3425_s3 + $0x630] ss:$36 sps:$4 sm:$0xff]   ;;  %v2281_v45 = vld [vmem:[%s3425_s3 + $0x5e8] ss:$36 sps:$4 sm:$0xff]   ;;  %v2287_v48 = vld [vmem:[%s3425_s3 + $0x5a0] ss:$36 sps:$4 sm:$0xff]  }
   0xc   :  { %56 = vadd.xlane.f32.xlu1 %v55_v30  ;;  %1567 = vmatprep.subr.bf16.mxu1 %v2271_v39  ;;  %v2283_v47 = vld [vmem:[%s3425_s3 + $0x5a4] ss:$36 sps:$4 sm:$0xff]   ;;  %v2289_v49 = vld [vmem:[%s3425_s3 + $0x55c] ss:$36 sps:$4 sm:$0xff]   ;;  %v2295_v53 = vld [vmem:[%s3425_s3 + $0x514] ss:$36 sps:$4 sm:$0xff]  }
   0xd   :  { %1527 = vmatpush1.bf16.msra.mxu0 %v2249_v31  ;;  %v2264_v50 = vld [vmem:[%s3425_s3] ss:$36 sps:$4 sm:$0xff]   ;;  %v2293_v51 = vld [vmem:[%s3425_s3 + $0x558] ss:$36 sps:$4 sm:$0xff]   ;;  %v2299_v55 = vld [vmem:[%s3425_s3 + $0x510] ss:$36 sps:$4 sm:$0xff]  }
   0xe   :  { %1528 = vmatprep.subr.bf16.mxu0 %v2250_v32  ;;  %v2267_v52 = vld [vmem:[%s3425_s3 + $0x43c] ss:$36 sps:$4 sm:$0xff]   ;;  %v2273_v56 = vld [vmem:[%s3425_s3 + $0x3f4] ss:$36 sps:$4 sm:$0xff]   ;;  %v2301_v57 = vld [vmem:[%s3425_s3 + $0x4cc] ss:$36 sps:$4 sm:$0xff]  }
   0xf   :  { %1568 = vmatpush1.bf16.msra.mxu1 %v2275_v41  ;;  %v2270_v54 = vld [vmem:[%s3425_s3 + $0x438] ss:$36 sps:$4 sm:$0xff]   ;;  %v2276_v58 = vld [vmem:[%s3425_s3 + $0x3f0] ss:$36 sps:$4 sm:$0xff]   ;;  %v2305_v59 = vld [vmem:[%s3425_s3 + $0x4c8] ss:$36 sps:$4 sm:$0xff]  }
  0x10   :  { %1569 = vmatprep.subr.bf16.mxu1 %v2277_v43  ;;  %v2279_v61 = vld [vmem:[%s3425_s3 + $0x3ac] ss:$36 sps:$4 sm:$0xff]   ;;  %v2307_v62 = vld [vmem:[%s3425_s3 + $0x484] ss:$36 sps:$4 sm:$0xff]   ;;  %v2291_v10 = vld [vmem:[%s3425_s3 + $0x31c] ss:$36 sps:$4 sm:$0xff]  }
  0x11   :  { %1529 = vmatpush1.bf16.msra.mxu0 %v2252_v33  ;;  %v2282_v63 = vld [vmem:[%s3425_s3 + $0x3a8] ss:$36 sps:$4 sm:$0xff]   ;;  %v2311_v3 = vld [vmem:[%s3425_s3 + $0x480] ss:$36 sps:$4 sm:$0xff]   ;;  %v2294_v11 = vld [vmem:[%s3425_s3 + $0x318] ss:$36 sps:$4 sm:$0xff]   ;;  %v83_v33 = vlaneseq }
  0x12   :  { %1530 = vmatprep.subr.bf16.mxu0 %v2253_v34  ;;  %v2285_v4 = vld [vmem:[%s3425_s3 + $0x364] ss:$36 sps:$4 sm:$0xff]   ;;  %v2297_v12 = vld [vmem:[%s3425_s3 + $0x2d4] ss:$36 sps:$4 sm:$0xff]   ;;  %v2303_v14 = vld [vmem:[%s3425_s3 + $0x28c] ss:$36 sps:$4 sm:$0xff]  }
  0x13   :  { %1570 = vmatpush1.bf16.msra.mxu1 %v2281_v45  ;;  %v2315_v5 = vld [vmem:[%s3425_s3 + $0x204] ss:$36 sps:$4 sm:$0xff]   ;;  %v2300_v13 = vld [vmem:[%s3425_s3 + $0x2d0] ss:$36 sps:$4 sm:$0xff]   ;;  %v2795_v34 = vshrl.u32 %v83_v33, 7 }
  0x14   :  { %1571 = vmatprep.subr.bf16.mxu1 %v2283_v47  ;;  %v2288_v6 = vld [vmem:[%s3425_s3 + $0x360] ss:$36 sps:$4 sm:$0xff]   ;;  %v2306_v15 = vld [vmem:[%s3425_s3 + $0x288] ss:$36 sps:$4 sm:$0xff]   ;;  %v2346_v33 = vld [vmem:[%s3425_s3 + $0x518] ss:$36 sps:$4 sm:$0xff]  }
  0x15   :  { %1531 = vmatpush1.bf16.msra.mxu0 %v2255_v36  ;;  %v2309_v16 = vld [vmem:[%s3425_s3 + $0x244] ss:$36 sps:$4 sm:$0xff]   ;;  %v2798_v35 = vsub.s32 1, %v2795_v34  ;;  %v2801_v36 = vsub.s32 2, %v2795_v34  ;;  %v27_v37 = vld [vmem:[%s3426_s1] sm:$0x7] }
  0x16   :  { %1532 = vmatprep.subr.bf16.mxu0 %v2256_v38  ;;  %v2312_v17 = vld [vmem:[%s3425_s3 + $0x240] ss:$36 sps:$4 sm:$0xff]   ;;  %v2807_v38 = vsub.s32 0, %v2795_v34 }
  0x17   :  { %1572 = vmatpush1.bf16.msra.mxu1 %v2287_v48  ;;  %v2318_v18 = vld [vmem:[%s3425_s3 + $0x684] ss:$36 sps:$4 sm:$0xff]   ;;  %v28_v43 = vld [vmem:[%s3427_s2] sm:$0x7]  ;;  %v90_v45 = vrot.slane %v27_v37, %v2798_v35  ;;  %v94_v47 = vrot.slane %v27_v37, %v2801_v36 }
  0x18   :  { %1573 = vmatprep.subr.bf16.mxu1 %v2289_v49  ;;  %v86_v49 = vrot.slane %v27_v37, %v2807_v38  ;;  %v2351_v37 = vld [vmem:[%s3425_s3 + $0x54] ss:$36 sps:$4 sm:$0xff]  }
  0x19   :  { %1533 = vmatpush1.bf16.msra.mxu0 %v2258_v40 }
  0x1a   :  { %1534 = vmatprep.subr.bf16.mxu0 %v2259_v42 }
  0x1b   :  { %1574 = vmatpush1.bf16.msra.mxu1 %v2293_v51  ;;  %v112_v51 = vrot.slane %v28_v43, %v2798_v35 }
  0x1c   :  { %1575 = vmatprep.subr.bf16.mxu1 %v2295_v53 }
  0x1d   :  { %1535 = vmatpush1.bf16.msra.mxu0 %v2261_v44 }
  0x1e   :  { %1536 = vmatprep.subr.bf16.mxu0 %v2262_v46 }
  0x1f   :  { %1576 = vmatpush1.bf16.msra.mxu1 %v2299_v55 }
  0x20   :  { %1577 = vmatprep.subr.bf16.mxu1 %v2301_v57 }
  0x21   :  { %1537 = vmatpush1.bf16.msra.mxu0 %v2264_v50 }
  0x22   :  { %1538 = vmatprep.subr.bf16.mxu0 %v2267_v52  ;;  %v116_v52 = vrot.slane %v28_v43, %v2801_v36 }
  0x23   :  { %1578 = vmatpush1.bf16.msra.mxu1 %v2305_v59  ;;  %v108_v59 = vrot.slane %v28_v43, %v2807_v38  ;;  %v2360_v43 = vld [vmem:[%s3425_s3 + $0x48c] ss:$36 sps:$4 sm:$0xff]  }
  0x24   :  { %1579 = vmatprep.subr.bf16.mxu1 %v2307_v62 }
  0x25   :  { %1539 = vmatpush2.bf16.msra.mxu0 %v2270_v54 }
  0x26   :  { %1540 = vmatprep.subr.bf16.mxu0 %v2273_v56 }
  0x27   :  { %1580 = vmatpush1.bf16.msra.mxu1 %v2311_v3 }
  0x28   :  { %1608 = vmatprep.subr.bf16.mxu1 %v2315_v5 }
  0x29   :  { %1541 = vmatpush2.bf16.msra.mxu0 %v2276_v58 }
  0x2a   :  { %1542 = vmatprep.subr.bf16.mxu0 %v2279_v61 }
  0x2d   :  { %1543 = vmatpush2.bf16.msra.mxu0 %v2282_v63 }
  0x2e   :  { %1544 = vmatprep.subr.bf16.mxu0 %v2285_v4 }
  0x31   :  { %1545 = vmatpush2.bf16.msra.mxu0 %v2288_v6 }
  0x32   :  { %1546 = vmatprep.subr.bf16.mxu0 %v2291_v10 }
  0x35   :  { %1547 = vmatpush2.bf16.msra.mxu0 %v2294_v11 }
  0x36   :  { %1548 = vmatprep.subr.bf16.mxu0 %v2297_v12  ;;  %v2316_v12 = vld [vmem:[%s3425_s3 + $0x680] ss:$36 sps:$4 sm:$0xff]  }
  0x39   :  { %1549 = vmatpush2.bf16.msra.mxu0 %v2300_v13 }
  0x3a   :  { %1550 = vmatprep.subr.bf16.mxu0 %v2303_v14  ;;  %v2321_v14 = vld [vmem:[%s3425_s3 + $0x1bc] ss:$36 sps:$4 sm:$0xff]  }
  0x3d   :  { %1551 = vmatpush2.bf16.msra.mxu0 %v2306_v15  ;;  %v2324_v15 = vld [vmem:[%s3425_s3 + $0x63c] ss:$36 sps:$4 sm:$0xff]  }
  0x3e   :  { %1552 = vmatprep.subr.bf16.mxu0 %v2309_v16  ;;  %v2319_v16 = vld [vmem:[%s3425_s3 + $0x1b8] ss:$36 sps:$4 sm:$0xff]  }
  0x41   :  { %1553 = vmatpush2.bf16.msra.mxu0 %v2312_v17  ;;  %v2322_v17 = vld [vmem:[%s3425_s3 + $0x638] ss:$36 sps:$4 sm:$0xff]  }
  0x42   :  { %1651 = vmatprep.subr.bf16.mxu0 %v2318_v18  ;;  %v2327_v18 = vld [vmem:[%s3425_s3 + $0x174] ss:$36 sps:$4 sm:$0xff]  }
  0x8f   :  { %v32_v19 = vpop.xlane.xlu0 %31 }
  0x90   :  { %v58_v20 = vmul.f32 0.0026041667, %v32_v19  ;;  %v2330_v19 = vld [vmem:[%s3425_s3 + $0x5f4] ss:$36 sps:$4 sm:$0xff]  }
  0x91   :  { %v50_v21 = vpop.xlane.xlu1 %49 }
  0x92   :  { %v60_v22 = vmul.f32 0.0026041667, %v50_v21  ;;  %v62_v23 = vmul.f32 %v58_v20, %v58_v20  ;;  %v67_v39 = vsub.f32 %v2598_v1, %v58_v20  ;;  %v68_v40 = vsub.f32 %v2603_v2, %v58_v20  ;;  %v2328_v21 = vld [vmem:[%s3425_s3 + $0x5f0] ss:$36 sps:$4 sm:$0xff]  }
  0x93   :  { %v40_v24 = vpop.xlane.xlu0 %39  ;;  %v66_v42 = vsub.f32 %v2593_v0, %v58_v20  ;;  %v2325_v20 = vld [vmem:[%s3425_s3 + $0x170] ss:$36 sps:$4 sm:$0xff]  }
  0x94   :  { %v59_v25 = vmul.f32 0.0026041667, %v40_v24  ;;  %v64_v26 = vsub.f32 %v60_v22, %v62_v23  ;;  %v2333_v22 = vld [vmem:[%s3425_s3 + $0x12c] ss:$36 sps:$4 sm:$0xff]  }
  0x95   :  { %v57_v27 = vpop.xlane.xlu1 %56  ;;  %v2336_v23 = vld [vmem:[%s3425_s3 + $0x5ac] ss:$36 sps:$4 sm:$0xff]  }
  0x96   :  { %v61_v28 = vmul.f32 0.0026041667, %v57_v27  ;;  %v72_v29 = vadd.f32 1e-06, %v64_v26  ;;  %v63_v30 = vmul.f32 %v59_v25, %v59_v25  ;;  %v70_v1 = vsub.f32 %v2621_v8, %v59_v25  ;;  %v2331_v24 = vld [vmem:[%s3425_s3 + $0x128] ss:$36 sps:$4 sm:$0xff]  }
  0x97   :  { %v71_v2 = vsub.f32 %v2626_v9, %v59_v25  ;;  %v69_v0 = vsub.f32 %v2616_v7, %v59_v25  ;;  %v2313_v7 = vld [vmem:[%s3425_s3 + $0x200] ss:$36 sps:$4 sm:$0xff]   ;;  %v2334_v25 = vld [vmem:[%s3425_s3 + $0x5a8] ss:$36 sps:$4 sm:$0xff]  }
  0x98   :  { %2553 = vrsqrt.f32 %v72_v29  ;;  %v65_v31 = vsub.f32 %v61_v28, %v63_v30  ;;  %v2339_v26 = vld [vmem:[%s3425_s3 + $0xe4] ss:$36 sps:$4 sm:$0xff]   ;;  %v2345_v30 = vld [vmem:[%s3425_s3 + $0x9c] ss:$36 sps:$4 sm:$0xff]  }
  0x99   :  { %v2342_v27 = vld [vmem:[%s3425_s3 + $0x564] ss:$36 sps:$4 sm:$0xff]  }
  0x9a   :  { %v73_v32 = vadd.f32 1e-06, %v65_v31  ;;  %v2337_v28 = vld [vmem:[%s3425_s3 + $0xe0] ss:$36 sps:$4 sm:$0xff]  }
  0x9b   :  { %v2340_v29 = vld [vmem:[%s3425_s3 + $0x560] ss:$36 sps:$4 sm:$0xff]  }
  0x9c   :  { %2555 = vrsqrt.f32 %v73_v32  ;;  %v2348_v31 = vld [vmem:[%s3425_s3 + $0x51c] ss:$36 sps:$4 sm:$0xff]  }
  0x9d   :  { %v2343_v32 = vld [vmem:[%s3425_s3 + $0x98] ss:$36 sps:$4 sm:$0xff]  }
  0xa5   :  { %v2554_v41 = vpop.eup %2553 }
  0xa6   :  { %v77_v44 = vmul.f32 %v2554_v41, %v67_v39  ;;  %v78_v46 = vmul.f32 %v2554_v41, %v68_v40  ;;  %v76_v48 = vmul.f32 %v2554_v41, %v66_v42  ;;  %v2354_v39 = vld [vmem:[%s3425_s3 + $0x4d4] ss:$36 sps:$4 sm:$0xff]   ;;  %v2357_v42 = vld [vmem:[%s3425_s3 + $0xc] ss:$36 sps:$4 sm:$0xff]  }
  0xa7   :  { %v2349_v40 = vld [vmem:[%s3425_s3 + $0x50] ss:$36 sps:$4 sm:$0xff]  }
  0xa8   :  { %v99_v54 = vmul.f32 %v90_v45, %v77_v44  ;;  %v100_v56 = vmul.f32 %v94_v47, %v78_v46  ;;  %v98_v58 = vmul.f32 %v86_v49, %v76_v48  ;;  %v2352_v41 = vld [vmem:[%s3425_s3 + $0x4d0] ss:$36 sps:$4 sm:$0xff]   ;;  %v2355_v44 = vld [vmem:[%s3425_s3 + $0x8] ss:$36 sps:$4 sm:$0xff]   ;;  %v2361_v48 = vld [vmem:[%s3425_s3 + $0x440] ss:$36 sps:$4 sm:$0xff]  }
  0xa9   :  { %v2556_v50 = vpop.eup %2555  ;;  %v2363_v46 = vld [vmem:[%s3425_s3 + $0x444] ss:$36 sps:$4 sm:$0xff]  }
  0xaa   :  { %v80_v53 = vmul.f32 %v2556_v50, %v70_v1  ;;  %v81_v55 = vmul.f32 %v2556_v50, %v71_v2  ;;  %v79_v57 = vmul.f32 %v2556_v50, %v69_v0  ;;  %v121_v63 = vadd.f32 %v112_v51, %v99_v54  ;;  %v2369_v1 = vld [vmem:[%s3425_s3 + $0x3fc] ss:$36 sps:$4 sm:$0xff]   ;;  %v2372_v2 = vld [vmem:[%s3425_s3 + $0x1c4] ss:$36 sps:$4 sm:$0xff]  }
  0xab   :  { %v122_v3 = vadd.f32 %v116_v52, %v100_v56  ;;  %v120_v5 = vadd.f32 %v108_v59, %v98_v58  ;;  %v2367_v50 = vld [vmem:[%s3425_s3 + $0x3f8] ss:$36 sps:$4 sm:$0xff]   ;;  %v2370_v0 = vld [vmem:[%s3425_s3 + $0x1c0] ss:$36 sps:$4 sm:$0xff]   ;;  %v2382_v58 = vld [vmem:[%s3425_s3 + $0x130] ss:$36 sps:$4 sm:$0xff]  }
  0xac   :  { %v102_v61 = vmul.f32 %v90_v45, %v80_v53  ;;  %v103_v62 = vmul.f32 %v94_v47, %v81_v55  ;;  %v101_v8 = vmul.f32 %v86_v49, %v79_v57  ;;  %v2358_v45 = vld [vmem:[%s3425_s3 + $0x488] ss:$36 sps:$4 sm:$0xff]   ;;  %v2373_v53 = vld [vmem:[%s3425_s3 + $0x3b0] ss:$36 sps:$4 sm:$0xff]   ;;  %v2376_v54 = vld [vmem:[%s3425_s3 + $0x178] ss:$36 sps:$4 sm:$0xff]  }
  0xad   :  { %v2366_v47 = vld [vmem:[%s3425_s3 + $0x20c] ss:$36 sps:$4 sm:$0xff]   ;;  %v2384_v56 = vld [vmem:[%s3425_s3 + $0x134] ss:$36 sps:$4 sm:$0xff]  }
  0xae   :  { %v124_v9 = vadd.f32 %v112_v51, %v102_v61  ;;  %v125_v4 = vadd.f32 %v116_v52, %v103_v62  ;;  %v123_v6 = vadd.f32 %v108_v59, %v101_v8  ;;  %v2364_v49 = vld [vmem:[%s3425_s3 + $0x208] ss:$36 sps:$4 sm:$0xff]   ;;  %v2375_v51 = vld [vmem:[%s3425_s3 + $0x3b4] ss:$36 sps:$4 sm:$0xff]   ;;  %v2378_v52 = vld [vmem:[%s3425_s3 + $0x17c] ss:$36 sps:$4 sm:$0xff]  }
  0xaf   :  { %v2381_v55 = vld [vmem:[%s3425_s3 + $0x36c] ss:$36 sps:$4 sm:$0xff]   ;;  %v2387_v59 = vld [vmem:[%s3425_s3 + $0x324] ss:$36 sps:$4 sm:$0xff]  }
  0xb0   :  { %v2827_v10 = vpack.c.bf16 %v124_v9, %v121_v63  ;;  %v2829_v11 = vpack.c.bf16 %v125_v4, %v122_v3  ;;  %v2834_v13 = vpack.c.bf16 %v123_v6, %v120_v5  ;;  %v2379_v57 = vld [vmem:[%s3425_s3 + $0x368] ss:$36 sps:$4 sm:$0xff]   ;;  %v2385_v62 = vld [vmem:[%s3425_s3 + $0x320] ss:$36 sps:$4 sm:$0xff]   ;;  %v2391_v3 = vld [vmem:[%s3425_s3 + $0x2d8] ss:$36 sps:$4 sm:$0xff]  }
  0xb1   :  { %v2390_v61 = vld [vmem:[%s3425_s3 + $0xec] ss:$36 sps:$4 sm:$0xff]   ;;  %v2393_v63 = vld [vmem:[%s3425_s3 + $0x2dc] ss:$36 sps:$4 sm:$0xff]   ;;  %v2396_v9 = vld [vmem:[%s3425_s3 + $0xa4] ss:$36 sps:$4 sm:$0xff]  }
  0xb2   :  { %1554 = vmatprep.mubr.bf16.mxu0 %v2827_v10  ;;  %1598 = vmatmul.mubr.bf16.vlgmr.msra.gmra.mxu1 %v2829_v11  ;;  %v2388_v8 = vld [vmem:[%s3425_s3 + $0xe8] ss:$36 sps:$4 sm:$0xff]   ;;  %v2394_v4 = vld [vmem:[%s3425_s3 + $0xa0] ss:$36 sps:$4 sm:$0xff]   ;;  %v2397_v6 = vld [vmem:[%s3425_s3 + $0x290] ss:$36 sps:$4 sm:$0xff]  }
  0xb3   :  { %1609 = vmatpush1.bf16.msra.mxu1 %v2313_v7  ;;  %1555 = vmatmul.mubr.bf16.vlgmr.msra.gmra.mxu0 %v2834_v13  ;;  %v2399_v7 = vld [vmem:[%s3425_s3 + $0x294] ss:$36 sps:$4 sm:$0xff]   ;;  %v2402_v5 = vld [vmem:[%s3425_s3 + $0x5c] ss:$36 sps:$4 sm:$0xff]  }
  0xb4   :  { %1640 = vmatprep.mubr.bf16.mxu1 %v2827_v10  ;;  %1652 = vmatpush1.bf16.msra.mxu0 %v2316_v12  ;;  %v2400_v12 = vld [vmem:[%s3425_s3 + $0x58] ss:$36 sps:$4 sm:$0xff]  }
  0xb5   :  { %1610 = vmatprep.subr.bf16.mxu1 %v2321_v14  ;;  %1653 = vmatprep.subr.bf16.mxu0 %v2324_v15  ;;  %v2405_v14 = vld [vmem:[%s3425_s3 + $0x24c] ss:$36 sps:$4 sm:$0xff]   ;;  %v2408_v15 = vld [vmem:[%s3425_s3 + $0x14] ss:$36 sps:$4 sm:$0xff]  }
  0xb6   :  { %1683 = vmatprep.mubr.bf16.mxu0 %v2557_v60 }
  0xb7   :  { %1611 = vmatpush1.bf16.msra.mxu1 %v2319_v16  ;;  %v2403_v16 = vld [vmem:[%s3425_s3 + $0x248] ss:$36 sps:$4 sm:$0xff]  }
  0xb8   :  { %1654 = vmatpush1.bf16.msra.mxu0 %v2322_v17  ;;  %1612 = vmatprep.subr.bf16.mxu1 %v2327_v18  ;;  %v2406_v17 = vld [vmem:[%s3425_s3 + $0x10] ss:$36 sps:$4 sm:$0xff]  }
  0xb9   :  { %1655 = vmatprep.subr.bf16.mxu0 %v2330_v19  ;;  %v2411_v18 = vld [vmem:[%s3425_s3 + $0x68c] ss:$36 sps:$4 sm:$0xff]  }
  0xba   :  { %v2414_v19 = vld [vmem:[%s3425_s3 + $0x44c] ss:$36 sps:$4 sm:$0xff]  }
  0xbb   :  { %1613 = vmatpush1.bf16.msra.mxu1 %v2325_v20  ;;  %v2409_v20 = vld [vmem:[%s3425_s3 + $0x688] ss:$36 sps:$4 sm:$0xff]  }
  0xbc   :  { %1656 = vmatpush1.bf16.msra.mxu0 %v2328_v21  ;;  %1614 = vmatprep.subr.bf16.mxu1 %v2333_v22  ;;  %v2412_v21 = vld [vmem:[%s3425_s3 + $0x448] ss:$36 sps:$4 sm:$0xff]  }
  0xbd   :  { %1657 = vmatprep.subr.bf16.mxu0 %v2336_v23  ;;  %v2417_v22 = vld [vmem:[%s3425_s3 + $0x644] ss:$36 sps:$4 sm:$0xff]  }
  0xbe   :  { %v2420_v23 = vld [vmem:[%s3425_s3 + $0x404] ss:$36 sps:$4 sm:$0xff]  }
  0xbf   :  { %1615 = vmatpush1.bf16.msra.mxu1 %v2331_v24  ;;  %v2415_v24 = vld [vmem:[%s3425_s3 + $0x640] ss:$36 sps:$4 sm:$0xff]  }
  0xc0   :  { %1658 = vmatpush1.bf16.msra.mxu0 %v2334_v25  ;;  %1616 = vmatprep.subr.bf16.mxu1 %v2339_v26  ;;  %v2418_v25 = vld [vmem:[%s3425_s3 + $0x400] ss:$36 sps:$4 sm:$0xff]  }
  0xc1   :  { %1659 = vmatprep.subr.bf16.mxu0 %v2342_v27  ;;  %v2423_v26 = vld [vmem:[%s3425_s3 + $0x5fc] ss:$36 sps:$4 sm:$0xff]  }
  0xc2   :  { %v2426_v27 = vld [vmem:[%s3425_s3 + $0x3bc] ss:$36 sps:$4 sm:$0xff]  }
  0xc3   :  { %1617 = vmatpush1.bf16.msra.mxu1 %v2337_v28  ;;  %v2421_v28 = vld [vmem:[%s3425_s3 + $0x5f8] ss:$36 sps:$4 sm:$0xff]  }
  0xc4   :  { %1660 = vmatpush1.bf16.msra.mxu0 %v2340_v29  ;;  %1618 = vmatprep.subr.bf16.mxu1 %v2345_v30  ;;  %v2424_v29 = vld [vmem:[%s3425_s3 + $0x3b8] ss:$36 sps:$4 sm:$0xff]  }
  0xc5   :  { %1661 = vmatprep.subr.bf16.mxu0 %v2348_v31  ;;  %v2429_v30 = vld [vmem:[%s3425_s3 + $0x5b4] ss:$36 sps:$4 sm:$0xff]  }
  0xc6   :  { %v2432_v31 = vld [vmem:[%s3425_s3 + $0x374] ss:$36 sps:$4 sm:$0xff]  }
  0xc7   :  { %1619 = vmatpush1.bf16.msra.mxu1 %v2343_v32  ;;  %v2427_v32 = vld [vmem:[%s3425_s3 + $0x5b0] ss:$36 sps:$4 sm:$0xff]  }
  0xc8   :  { %1662 = vmatpush1.bf16.msra.mxu0 %v2346_v33  ;;  %1620 = vmatprep.subr.bf16.mxu1 %v2351_v37  ;;  %v2430_v33 = vld [vmem:[%s3425_s3 + $0x370] ss:$36 sps:$4 sm:$0xff]  }
  0xc9   :  { %1663 = vmatprep.subr.bf16.mxu0 %v2354_v39  ;;  %v2435_v37 = vld [vmem:[%s3425_s3 + $0x56c] ss:$36 sps:$4 sm:$0xff]  }
  0xca   :  { %v2438_v39 = vld [vmem:[%s3425_s3 + $0x32c] ss:$36 sps:$4 sm:$0xff]  }
  0xcb   :  { %1621 = vmatpush1.bf16.msra.mxu1 %v2349_v40  ;;  %v2433_v40 = vld [vmem:[%s3425_s3 + $0x568] ss:$36 sps:$4 sm:$0xff]  }
  0xcc   :  { %1664 = vmatpush1.bf16.msra.mxu0 %v2352_v41  ;;  %1622 = vmatprep.subr.bf16.mxu1 %v2357_v42  ;;  %v2436_v41 = vld [vmem:[%s3425_s3 + $0x328] ss:$36 sps:$4 sm:$0xff]  }
  0xcd   :  { %1665 = vmatprep.subr.bf16.mxu0 %v2360_v43  ;;  %v2441_v42 = vld [vmem:[%s3425_s3 + $0x524] ss:$36 sps:$4 sm:$0xff]  }
  0xce   :  { %v2444_v43 = vld [vmem:[%s3425_s3 + $0x2e4] ss:$36 sps:$4 sm:$0xff]  }
  0xcf   :  { %1623 = vmatpush1.bf16.msra.mxu1 %v2355_v44  ;;  %v2439_v44 = vld [vmem:[%s3425_s3 + $0x520] ss:$36 sps:$4 sm:$0xff]  }
  0xd0   :  { %1666 = vmatpush1.bf16.msra.mxu0 %v2358_v45  ;;  %1624 = vmatprep.subr.bf16.mxu1 %v2363_v46  ;;  %v2442_v45 = vld [vmem:[%s3425_s3 + $0x2e0] ss:$36 sps:$4 sm:$0xff]  }
  0xd1   :  { %1694 = vmatprep.subr.bf16.mxu0 %v2366_v47  ;;  %v2447_v46 = vld [vmem:[%s3425_s3 + $0x4dc] ss:$36 sps:$4 sm:$0xff]  }
  0xd2   :  { %v2450_v47 = vld [vmem:[%s3425_s3 + $0x29c] ss:$36 sps:$4 sm:$0xff]  }
  0xd3   :  { %1625 = vmatpush2.bf16.msra.mxu1 %v2361_v48  ;;  %1684 = vmatmul.mubr.bf16.vlgmr.msra.gmra.mxu0 %v2829_v11  ;;  %v2445_v48 = vld [vmem:[%s3425_s3 + $0x4d8] ss:$36 sps:$4 sm:$0xff]  }
  0xd4   :  { %1695 = vmatpush1.bf16.msra.mxu0 %v2364_v49  ;;  %1726 = vmatprep.mubr.bf16.mxu0 %v2827_v10  ;;  %v2448_v49 = vld [vmem:[%s3425_s3 + $0x298] ss:$36 sps:$4 sm:$0xff]  }
  0xd5   :  { %1626 = vmatprep.subr.bf16.mxu1 %v2369_v1  ;;  %1696 = vmatprep.subr.bf16.mxu0 %v2372_v2  ;;  %v2453_v1 = vld [vmem:[%s3425_s3 + $0x494] ss:$36 sps:$4 sm:$0xff]  }
  0xd6   :  { %v2456_v2 = vld [vmem:[%s3425_s3 + $0x254] ss:$36 sps:$4 sm:$0xff]  }
  0xd7   :  { %1627 = vmatpush2.bf16.msra.mxu1 %v2367_v50  ;;  %v2451_v50 = vld [vmem:[%s3425_s3 + $0x490] ss:$36 sps:$4 sm:$0xff]  }
  0xd8   :  { %1697 = vmatpush1.bf16.msra.mxu0 %v2370_v0  ;;  %1628 = vmatprep.subr.bf16.mxu1 %v2375_v51  ;;  %v2454_v0 = vld [vmem:[%s3425_s3 + $0x250] ss:$36 sps:$4 sm:$0xff]  }
  0xd9   :  { %1698 = vmatprep.subr.bf16.mxu0 %v2378_v52  ;;  %v2459_v51 = vld [vmem:[%s3425_s3 + $0x214] ss:$36 sps:$4 sm:$0xff]  }
  0xda   :  { %v2462_v52 = vld [vmem:[%s3425_s3 + $0x694] ss:$36 sps:$4 sm:$0xff]  }
  0xdb   :  { %1629 = vmatpush2.bf16.msra.mxu1 %v2373_v53  ;;  %v2457_v53 = vld [vmem:[%s3425_s3 + $0x210] ss:$36 sps:$4 sm:$0xff]  }
  0xdc   :  { %1699 = vmatpush1.bf16.msra.mxu0 %v2376_v54  ;;  %1630 = vmatprep.subr.bf16.mxu1 %v2381_v55  ;;  %v2460_v54 = vld [vmem:[%s3425_s3 + $0x690] ss:$36 sps:$4 sm:$0xff]  }
  0xdd   :  { %1700 = vmatprep.subr.bf16.mxu0 %v2384_v56  ;;  %v2465_v55 = vld [vmem:[%s3425_s3 + $0x1cc] ss:$36 sps:$4 sm:$0xff]  }
  0xde   :  { %v2468_v56 = vld [vmem:[%s3425_s3 + $0x64c] ss:$36 sps:$4 sm:$0xff]  }
  0xdf   :  { %1631 = vmatpush2.bf16.msra.mxu1 %v2379_v57  ;;  %v2463_v57 = vld [vmem:[%s3425_s3 + $0x1c8] ss:$36 sps:$4 sm:$0xff]  }
  0xe0   :  { %1701 = vmatpush1.bf16.msra.mxu0 %v2382_v58  ;;  %1632 = vmatprep.subr.bf16.mxu1 %v2387_v59  ;;  %v2466_v58 = vld [vmem:[%s3425_s3 + $0x648] ss:$36 sps:$4 sm:$0xff]  }
  0xe1   :  { %1702 = vmatprep.subr.bf16.mxu0 %v2390_v61  ;;  %v2471_v59 = vld [vmem:[%s3425_s3 + $0x184] ss:$36 sps:$4 sm:$0xff]  }
  0xe2   :  { %v2474_v61 = vld [vmem:[%s3425_s3 + $0x604] ss:$36 sps:$4 sm:$0xff]  }
  0xe3   :  { %1633 = vmatpush2.bf16.msra.mxu1 %v2385_v62  ;;  %v2469_v62 = vld [vmem:[%s3425_s3 + $0x180] ss:$36 sps:$4 sm:$0xff]  }
  0xe4   :  { %1703 = vmatpush1.bf16.msra.mxu0 %v2388_v8  ;;  %1634 = vmatprep.subr.bf16.mxu1 %v2393_v63  ;;  %v2472_v8 = vld [vmem:[%s3425_s3 + $0x600] ss:$36 sps:$4 sm:$0xff]  }
  0xe5   :  { %1704 = vmatprep.subr.bf16.mxu0 %v2396_v9  ;;  %v2477_v63 = vld [vmem:[%s3425_s3 + $0x13c] ss:$36 sps:$4 sm:$0xff]  }
  0xe6   :  { %v2475_v9 = vld [vmem:[%s3425_s3 + $0x138] ss:$36 sps:$4 sm:$0xff]  }
  0xe7   :  { %1635 = vmatpush2.bf16.msra.mxu1 %v2391_v3  ;;  %v2478_v3 = vld [vmem:[%s3425_s3 + $0x5b8] ss:$36 sps:$4 sm:$0xff]  }
  0xe8   :  { %1705 = vmatpush1.bf16.msra.mxu0 %v2394_v4  ;;  %1636 = vmatprep.subr.bf16.mxu1 %v2399_v7  ;;  %v2483_v4 = vld [vmem:[%s3425_s3 + $0xf4] ss:$36 sps:$4 sm:$0xff]  }
  0xe9   :  { %1706 = vmatprep.subr.bf16.mxu0 %v2402_v5  ;;  %v2486_v7 = vld [vmem:[%s3425_s3 + $0x574] ss:$36 sps:$4 sm:$0xff]  }
  0xea   :  { %v2481_v5 = vld [vmem:[%s3425_s3 + $0xf0] ss:$36 sps:$4 sm:$0xff]  }
  0xeb   :  { %1637 = vmatpush2.bf16.msra.mxu1 %v2397_v6  ;;  %v2484_v6 = vld [vmem:[%s3425_s3 + $0x570] ss:$36 sps:$4 sm:$0xff]  }
  0xec   :  { %1707 = vmatpush1.bf16.msra.mxu0 %v2400_v12  ;;  %1638 = vmatprep.subr.bf16.mxu1 %v2405_v14  ;;  %v2489_v12 = vld [vmem:[%s3425_s3 + $0xac] ss:$36 sps:$4 sm:$0xff]  }
  0xed   :  { %1708 = vmatprep.subr.bf16.mxu0 %v2408_v15  ;;  %v2492_v14 = vld [vmem:[%s3425_s3 + $0x52c] ss:$36 sps:$4 sm:$0xff]  }
  0xee   :  { %v2487_v15 = vld [vmem:[%s3425_s3 + $0xa8] ss:$36 sps:$4 sm:$0xff]  }
  0xef   :  { %1639 = vmatpush2.bf16.msra.mxu1 %v2403_v16  ;;  %v2490_v16 = vld [vmem:[%s3425_s3 + $0x528] ss:$36 sps:$4 sm:$0xff]  }
  0xf0   :  { %1709 = vmatpush1.bf16.msra.mxu0 %v2406_v17  ;;  %1737 = vmatprep.subr.bf16.mxu1 %v2411_v18  ;;  %v2495_v17 = vld [vmem:[%s3425_s3 + $0x64] ss:$36 sps:$4 sm:$0xff]  }
  0xf1   :  { %1710 = vmatprep.subr.bf16.mxu0 %v2414_v19  ;;  %v2498_v18 = vld [vmem:[%s3425_s3 + $0x4e4] ss:$36 sps:$4 sm:$0xff]  }
  0xf2   :  { %1641 = vmatmul.mubr.bf16.vlgmr.msra.gmra.mxu1 %v2834_v13  ;;  %v2493_v19 = vld [vmem:[%s3425_s3 + $0x60] ss:$36 sps:$4 sm:$0xff]  }
  0xf3   :  { %1738 = vmatpush1.bf16.msra.mxu1 %v2409_v20  ;;  %1769 = vmatprep.mubr.bf16.mxu1 %v2557_v60  ;;  %v2496_v20 = vld [vmem:[%s3425_s3 + $0x4e0] ss:$36 sps:$4 sm:$0xff]  }
  0xf4   :  { %1711 = vmatpush2.bf16.msra.mxu0 %v2412_v21  ;;  %1739 = vmatprep.subr.bf16.mxu1 %v2417_v22  ;;  %v2501_v21 = vld [vmem:[%s3425_s3 + $0x1c] ss:$36 sps:$4 sm:$0xff]  }
  0xf5   :  { %1712 = vmatprep.subr.bf16.mxu0 %v2420_v23  ;;  %v2504_v22 = vld [vmem:[%s3425_s3 + $0x49c] ss:$36 sps:$4 sm:$0xff]  }
  0xf6   :  { %v2499_v23 = vld [vmem:[%s3425_s3 + $0x18] ss:$36 sps:$4 sm:$0xff]  }
  0xf7   :  { %1740 = vmatpush1.bf16.msra.mxu1 %v2415_v24  ;;  %v2502_v24 = vld [vmem:[%s3425_s3 + $0x498] ss:$36 sps:$4 sm:$0xff]  }
  0xf8   :  { %1713 = vmatpush2.bf16.msra.mxu0 %v2418_v25  ;;  %1741 = vmatprep.subr.bf16.mxu1 %v2423_v26  ;;  %v2507_v25 = vld [vmem:[%s3425_s3 + $0x454] ss:$36 sps:$4 sm:$0xff]  }
  0xf9   :  { %1714 = vmatprep.subr.bf16.mxu0 %v2426_v27  ;;  %v2508_v26 = vld [vmem:[%s3425_s3 + $0x458] ss:$36 sps:$4 sm:$0xff]   ;;  %v2505_v27 = vld [vmem:[%s3425_s3 + $0x450] ss:$36 sps:$4 sm:$0xff]  }
  0xfb   :  { %1742 = vmatpush1.bf16.msra.mxu1 %v2421_v28  ;;  %v2509_v28 = vld [vmem:[%s3425_s3 + $0x218] ss:$36 sps:$4 sm:$0xff]  }
  0xfc   :  { %1715 = vmatpush2.bf16.msra.mxu0 %v2424_v29  ;;  %1743 = vmatprep.subr.bf16.mxu1 %v2429_v30  ;;  %v2512_v29 = vld [vmem:[%s3425_s3 + $0x40c] ss:$36 sps:$4 sm:$0xff]  }
  0xfd   :  { %1716 = vmatprep.subr.bf16.mxu0 %v2432_v31  ;;  %v2513_v30 = vld [vmem:[%s3425_s3 + $0x410] ss:$36 sps:$4 sm:$0xff]   ;;  %v2510_v31 = vld [vmem:[%s3425_s3 + $0x408] ss:$36 sps:$4 sm:$0xff]  }
  0xff   :  { %1744 = vmatpush1.bf16.msra.mxu1 %v2427_v32  ;;  %v2514_v32 = vld [vmem:[%s3425_s3 + $0x1d0] ss:$36 sps:$4 sm:$0xff]  }
 0x100   :  { %1717 = vmatpush2.bf16.msra.mxu0 %v2430_v33  ;;  %1745 = vmatprep.subr.bf16.mxu1 %v2435_v37  ;;  %v2517_v33 = vld [vmem:[%s3425_s3 + $0x3c4] ss:$36 sps:$4 sm:$0xff]  }
 0x101   :  { %1718 = vmatprep.subr.bf16.mxu0 %v2438_v39  ;;  %v2518_v37 = vld [vmem:[%s3425_s3 + $0x3c8] ss:$36 sps:$4 sm:$0xff]   ;;  %v2515_v39 = vld [vmem:[%s3425_s3 + $0x3c0] ss:$36 sps:$4 sm:$0xff]  }
 0x103   :  { %1746 = vmatpush1.bf16.msra.mxu1 %v2433_v40  ;;  %v2522_v40 = vld [vmem:[%s3425_s3 + $0x37c] ss:$36 sps:$4 sm:$0xff]  }
 0x104   :  { %1719 = vmatpush2.bf16.msra.mxu0 %v2436_v41  ;;  %1747 = vmatprep.subr.bf16.mxu1 %v2441_v42  ;;  %v2523_v41 = vld [vmem:[%s3425_s3 + $0x380] ss:$36 sps:$4 sm:$0xff]   ;;  %v2520_v42 = vld [vmem:[%s3425_s3 + $0x378] ss:$36 sps:$4 sm:$0xff]  }
 0x105   :  { %1720 = vmatprep.subr.bf16.mxu0 %v2444_v43  ;;  %v2524_v43 = vld [vmem:[%s3425_s3 + $0x140] ss:$36 sps:$4 sm:$0xff]  }
 0x107   :  { %1748 = vmatpush1.bf16.msra.mxu1 %v2439_v44  ;;  %v2527_v44 = vld [vmem:[%s3425_s3 + $0x334] ss:$36 sps:$4 sm:$0xff]  }
 0x108   :  { %1721 = vmatpush2.bf16.msra.mxu0 %v2442_v45  ;;  %1749 = vmatprep.subr.bf16.mxu1 %v2447_v46  ;;  %v2528_v45 = vld [vmem:[%s3425_s3 + $0x338] ss:$36 sps:$4 sm:$0xff]   ;;  %v2525_v46 = vld [vmem:[%s3425_s3 + $0x330] ss:$36 sps:$4 sm:$0xff]  }
 0x109   :  { %1722 = vmatprep.subr.bf16.mxu0 %v2450_v47  ;;  %v2529_v47 = vld [vmem:[%s3425_s3 + $0xf8] ss:$36 sps:$4 sm:$0xff]  }
 0x10b   :  { %1750 = vmatpush1.bf16.msra.mxu1 %v2445_v48  ;;  %v2532_v48 = vld [vmem:[%s3425_s3 + $0x2ec] ss:$36 sps:$4 sm:$0xff]  }
 0x10c   :  { %1723 = vmatpush2.bf16.msra.mxu0 %v2448_v49  ;;  %1751 = vmatprep.subr.bf16.mxu1 %v2453_v1  ;;  %v2533_v49 = vld [vmem:[%s3425_s3 + $0x2f0] ss:$36 sps:$4 sm:$0xff]   ;;  %v2530_v1 = vld [vmem:[%s3425_s3 + $0x2e8] ss:$36 sps:$4 sm:$0xff]  }
 0x10d   :  { %1724 = vmatprep.subr.bf16.mxu0 %v2456_v2  ;;  %v2534_v2 = vld [vmem:[%s3425_s3 + $0xb0] ss:$36 sps:$4 sm:$0xff]  }
 0x10f   :  { %1752 = vmatpush1.bf16.msra.mxu1 %v2451_v50  ;;  %v2537_v50 = vld [vmem:[%s3425_s3 + $0x2a4] ss:$36 sps:$4 sm:$0xff]  }
 0x110   :  { %1725 = vmatpush2.bf16.msra.mxu0 %v2454_v0  ;;  %1780 = vmatprep.subr.bf16.mxu1 %v2459_v51  ;;  %v2538_v0 = vld [vmem:[%s3425_s3 + $0x2a8] ss:$36 sps:$4 sm:$0xff]   ;;  %v2535_v51 = vld [vmem:[%s3425_s3 + $0x2a0] ss:$36 sps:$4 sm:$0xff]  }
 0x111   :  { %1823 = vmatprep.subr.bf16.mxu0 %v2462_v52  ;;  %v2539_v52 = vld [vmem:[%s3425_s3 + $0x68] ss:$36 sps:$4 sm:$0xff]  }
 0x112   :  { %1770 = vmatmul.mubr.bf16.vlgmr.msra.gmra.mxu1 %v2829_v11 }
 0x113   :  { %1727 = vmatmul.mubr.bf16.vlgmr.msra.gmra.mxu0 %v2834_v13  ;;  %1781 = vmatpush1.bf16.msra.mxu1 %v2457_v53  ;;  %v2542_v53 = vld [vmem:[%s3425_s3 + $0x25c] ss:$36 sps:$4 sm:$0xff]  }
 0x114   :  { %1812 = vmatprep.mubr.bf16.mxu1 %v2827_v10  ;;  %1824 = vmatpush1.bf16.msra.mxu0 %v2460_v54  ;;  %v2543_v54 = vld [vmem:[%s3425_s3 + $0x260] ss:$36 sps:$4 sm:$0xff]  }
 0x115   :  { %1782 = vmatprep.subr.bf16.mxu1 %v2465_v55  ;;  %1825 = vmatprep.subr.bf16.mxu0 %v2468_v56  ;;  %v2540_v55 = vld [vmem:[%s3425_s3 + $0x258] ss:$36 sps:$4 sm:$0xff]   ;;  %v2544_v56 = vld [vmem:[%s3425_s3 + $0x20] ss:$36 sps:$4 sm:$0xff]  }
 0x116   :  { %1855 = vmatprep.mubr.bf16.mxu0 %v2557_v60  ;;  %v2480_v60 = vld [vmem:[%s3425_s3 + $0x5bc] ss:$36 sps:$4 sm:$0xff]  }
 0x117   :  { %1783 = vmatpush1.bf16.msra.mxu1 %v2463_v57  ;;  %v2545_v57 = vld [vmem:[%s3425_s3 + $0x698] ss:$36 sps:$4 sm:$0xff]  }
 0x118   :  { %1826 = vmatpush1.bf16.msra.mxu0 %v2466_v58  ;;  %1784 = vmatprep.subr.bf16.mxu1 %v2471_v59  ;;  %v2558_v58 = vmov 0.0   ;;  %v2546_v59 = vld [vmem:[%s3425_s3 + $0x650] ss:$36 sps:$4 sm:$0xff]  }
 0x119   :  { %1827 = vmatprep.subr.bf16.mxu0 %v2474_v61  ;;  %v2547_v61 = vld [vmem:[%s3425_s3 + $0x608] ss:$36 sps:$4 sm:$0xff]  }
 0x11b   :  { %1785 = vmatpush1.bf16.msra.mxu1 %v2469_v62  ;;  %v2548_v62 = vld [vmem:[%s3425_s3 + $0x5c0] ss:$36 sps:$4 sm:$0xff]  }
 0x11c   :  { %1828 = vmatpush1.bf16.msra.mxu0 %v2472_v8  ;;  %1786 = vmatprep.subr.bf16.mxu1 %v2477_v63  ;;  %v2550_v8 = vld [vmem:[%s3425_s3 + $0x530] ss:$36 sps:$4 sm:$0xff]   ;;  %v2551_v63 = vld [vmem:[%s3425_s3 + $0x4e8] ss:$36 sps:$4 sm:$0xff]  }
 0x11d   :  { %1829 = vmatprep.subr.bf16.mxu0 %v2480_v60  ;;  %v2552_v60 = vld [vmem:[%s3425_s3 + $0x4a0] ss:$36 sps:$4 sm:$0xff]  }
 0x11f   :  { %1787 = vmatpush1.bf16.msra.mxu1 %v2475_v9  ;;  %v3348_v9 = vld [vmem:[%s3428_s4] sm:$0xff] }
 0x120   :  { %1830 = vmatpush1.bf16.msra.mxu0 %v2478_v3  ;;  %1788 = vmatprep.subr.bf16.mxu1 %v2483_v4  ;;  %v376_v3 = vrot.slane %v3348_v9, %v2807_v38 }
 0x121   :  { %1831 = vmatprep.subr.bf16.mxu0 %v2486_v7  ;;  %v380_v7 = vrot.slane %v3348_v9, %v2798_v35 }
 0x123   :  { %1789 = vmatpush1.bf16.msra.mxu1 %v2481_v5 }
 0x124   :  { %1832 = vmatpush1.bf16.msra.mxu0 %v2484_v6  ;;  %1790 = vmatprep.subr.bf16.mxu1 %v2489_v12 }
 0x125   :  { %1833 = vmatprep.subr.bf16.mxu0 %v2492_v14 }
 0x127   :  { %1791 = vmatpush1.bf16.msra.mxu1 %v2487_v15 }
 0x128   :  { %1834 = vmatpush1.bf16.msra.mxu0 %v2490_v16  ;;  %1792 = vmatprep.subr.bf16.mxu1 %v2495_v17 }
 0x129   :  { %1835 = vmatprep.subr.bf16.mxu0 %v2498_v18 }
 0x12b   :  { %1793 = vmatpush1.bf16.msra.mxu1 %v2493_v19 }
 0x12c   :  { %1836 = vmatpush1.bf16.msra.mxu0 %v2496_v20  ;;  %1794 = vmatprep.subr.bf16.mxu1 %v2501_v21 }
 0x12d   :  { %1837 = vmatprep.subr.bf16.mxu0 %v2504_v22 }
 0x12f   :  { %1795 = vmatpush1.bf16.msra.mxu1 %v2499_v23  ;;  %v387_v23 = vsub.s32 3, %v2795_v34 }
 0x130   :  { %1838 = vmatpush1.bf16.msra.mxu0 %v2502_v24  ;;  %1796 = vmatprep.subr.bf16.mxu1 %v2507_v25  ;;  %v384_v25 = vrot.slane %v3348_v9, %v2801_v36 }
 0x131   :  { %2187 = vmatprep.subr.bf16.mxu0 %v2508_v26  ;;  %v388_v26 = vrot.slane %v3348_v9, %v387_v23  ;;  %v1970_v23 = vld [vmem:[%s3428_s4 + $0x8] ss:$0 sm:$0xff] }
 0x133   :  { %1797 = vmatpush2.bf16.msra.mxu1 %v2505_v27  ;;  %1856 = vmatmul.mubr.bf16.vlgmr.msra.gmra.mxu0 %v2829_v11 }
 0x134   :  { %2188 = vmatpush3.bf16.msra.mxu0 %v2509_v28  ;;  %1898 = vmatprep.mubr.bf16.mxu0 %v2827_v10  ;;  %v2519_v10 = vld [vmem:[%s3425_s3 + $0x188] ss:$36 sps:$4 sm:$0xff]  }
 0x135   :  { %1798 = vmatprep.subr.bf16.mxu1 %v2512_v29  ;;  %2189 = vmatprep.subr.bf16.mxu0 %v2513_v30 }
 0x137   :  { %1799 = vmatpush2.bf16.msra.mxu1 %v2510_v31 }
 0x138   :  { %2190 = vmatpush3.bf16.msra.mxu0 %v2514_v32  ;;  %1800 = vmatprep.subr.bf16.mxu1 %v2517_v33 }
 0x139   :  { %2191 = vmatprep.subr.bf16.mxu0 %v2518_v37 }
 0x13b   :  { %1801 = vmatpush2.bf16.msra.mxu1 %v2515_v39 }
 0x13c   :  { %2192 = vmatpush3.bf16.msra.mxu0 %v2519_v10  ;;  %1802 = vmatprep.subr.bf16.mxu1 %v2522_v40 }
 0x13d   :  { %2193 = vmatprep.subr.bf16.mxu0 %v2523_v41 }
 0x13f   :  { %1803 = vmatpush2.bf16.msra.mxu1 %v2520_v42 }
 0x140   :  { %2194 = vmatpush3.bf16.msra.mxu0 %v2524_v43  ;;  %1804 = vmatprep.subr.bf16.mxu1 %v2527_v44  ;;  %v391_v44 = vsub.s32 4, %v2795_v34 }
 0x141   :  { %2195 = vmatprep.subr.bf16.mxu0 %v2528_v45  ;;  %v395_v45 = vsub.s32 5, %v2795_v34 }
 0x143   :  { %1805 = vmatpush2.bf16.msra.mxu1 %v2525_v46  ;;  %v392_v46 = vrot.slane %v3348_v9, %v391_v44 }
 0x144   :  { %2196 = vmatpush3.bf16.msra.mxu0 %v2529_v47  ;;  %1806 = vmatprep.subr.bf16.mxu1 %v2532_v48  ;;  %v396_v48 = vrot.slane %v3348_v9, %v395_v45 }
 0x145   :  { %2197 = vmatprep.subr.bf16.mxu0 %v2533_v49 }
 0x147   :  { %1807 = vmatpush2.bf16.msra.mxu1 %v2530_v1 }
 0x148   :  { %2198 = vmatpush3.bf16.msra.mxu0 %v2534_v2  ;;  %1808 = vmatprep.subr.bf16.mxu1 %v2537_v50 }
 0x149   :  { %2199 = vmatprep.subr.bf16.mxu0 %v2538_v0 }
 0x14b   :  { %1809 = vmatpush2.bf16.msra.mxu1 %v2535_v51 }
 0x14c   :  { %2200 = vmatpush3.bf16.msra.mxu0 %v2539_v52  ;;  %1810 = vmatprep.subr.bf16.mxu1 %v2542_v53 }
 0x14d   :  { %2201 = vmatprep.subr.bf16.mxu0 %v2543_v54 }
 0x14f   :  { %1811 = vmatpush2.bf16.msra.mxu1 %v2540_v55 }
 0x150   :  { %2202 = vmatpush3.bf16.msra.mxu0 %v2544_v56  ;;  %2218 = vmatprep.subr.bf16.mxu1 %v2558_v58 }
 0x152   :  { %1813 = vmatmul.mubr.bf16.vlgmr.msra.gmra.mxu1 %v2834_v13 }
 0x153   :  { %1899 = vmatmul.mubr.bf16.vlgmr.msra.gmra.mxu0 %v2834_v13  ;;  %2219 = vmatpush3.bf16.msra.mxu1 %v2545_v57  ;;  %v2549_v13 = vld [vmem:[%s3425_s3 + $0x578] ss:$36 sps:$4 sm:$0xff]  }
 0x154   :  { %2220 = vmatprep.subr.bf16.mxu1 %v2558_v58  ;;  %2234 = vmatprep.mubr.msk.bf16.mxu1 %vm2559_vm1, %v2558_v58 }
 0x157   :  { %2221 = vmatpush3.bf16.msra.mxu1 %v2546_v59 }
 0x158   :  { %2222 = vmatprep.subr.bf16.mxu1 %v2558_v58 }
 0x15b   :  { %2223 = vmatpush3.bf16.msra.mxu1 %v2547_v61 }
 0x15c   :  { %2224 = vmatprep.subr.bf16.mxu1 %v2558_v58 }
 0x15f   :  { %2225 = vmatpush3.bf16.msra.mxu1 %v2548_v62  ;;  %v399_v62 = vsub.s32 6, %v2795_v34 }
 0x160   :  { %2226 = vmatprep.subr.bf16.mxu1 %v2558_v58 }
 0x163   :  { %2227 = vmatpush3.bf16.msra.mxu1 %v2549_v13  ;;  %v403_v13 = vsub.s32 7, %v2795_v34 }
 0x164   :  { %2228 = vmatprep.subr.bf16.mxu1 %v2558_v58 }
 0x167   :  { %2229 = vmatpush3.bf16.msra.mxu1 %v2550_v8 }
 0x168   :  { %2230 = vmatprep.subr.bf16.mxu1 %v2558_v58 }
 0x16b   :  { %2231 = vmatpush3.bf16.msra.mxu1 %v2551_v63  ;;  %v400_v63 = vrot.slane %v3348_v9, %v399_v62 }
 0x16c   :  { %2232 = vmatprep.subr.bf16.mxu1 %v2558_v58 }
 0x16f   :  { %2233 = vmatpush3.bf16.msra.mxu1 %v2552_v60  ;;  %v404_v60 = vrot.slane %v3348_v9, %v403_v13 }
 0x172   :  { %2235 = vmatmul.mubr.bf16.vlgmr.msra.gmra.mxu1 %v2829_v11  ;;  %v1599_v4 = vpop.f32.mrf.mxu1 }
 0x173   :  { %v1556_v5 = vpop.f32.mrf.mxu0 }
 0x174   :  { %v1557_v6 = vadd.f32 %v1556_v5, %v376_v3  ;;  %v1601_v12 = vpop.f32.mrf.mxu1 }
 0x175   :  { %v1558_v14 = vpop.f32.mrf.mxu0 }
 0x176   :  { %v1600_v15 = vadd.f32 %v1599_v4, %v1557_v6  ;;  %v1559_v16 = vadd.f32 %v1558_v14, %v380_v7  ;;  %v1603_v17 = vpop.f32.mrf.mxu1 }
 0x177   :  { %v1560_v18 = vpop.f32.mrf.mxu0 }
 0x178   :  { %1948 = vst [vmem:[%s3429_s5] sm:$0xff] %v1600_v15  ;;  %v1602_v19 = vadd.f32 %v1601_v12, %v1559_v16  ;;  %v1561_v38 = vadd.f32 %v1560_v18, %v376_v3  ;;  %v1605_v21 = vpop.f32.mrf.mxu1 }
 0x179   :  { %v1562_v20 = vpop.f32.mrf.mxu0 }
 0x17a   :  { %1949 = vst [vmem:[%s3429_s5 + $0x8] sm:$0xff] %v1602_v19  ;;  %v1604_v35 = vadd.f32 %v1603_v17, %v1561_v38  ;;  %v1563_v11 = vadd.f32 %v1562_v20, %v380_v7 }
 0x17c   :  { %1957 = vst [vmem:[%s3429_s5 + $0x48] sm:$0x3] %v1604_v35  ;;  %v1606_v22 = vadd.f32 %v1605_v21, %v1563_v11 }
 0x17e   :  { %1958 = vst [vmem:[%s3429_s5 + $0x50] sm:$0x3] %v1606_v22 }
 0x193   :  { %v1685_v24 = vpop.f32.mrf.mxu0 }
 0x195   :  { %v1687_v27 = vpop.f32.mrf.mxu0 }
 0x197   :  { %v1689_v33 = vpop.f32.mrf.mxu0 }
 0x199   :  { %v1691_v42 = vpop.f32.mrf.mxu0 }
 0x1b2   :  { %v1642_v28 = vpop.f32.mrf.mxu1 }
 0x1b3   :  { %v1643_v29 = vadd.f32 %v1642_v28, %v384_v25 }
 0x1b4   :  { %v1644_v30 = vpop.f32.mrf.mxu1 }
 0x1b5   :  { %v1686_v31 = vadd.f32 %v1685_v24, %v1643_v29  ;;  %v1645_v32 = vadd.f32 %v1644_v30, %v388_v26 }
 0x1b6   :  { %v1646_v37 = vpop.f32.mrf.mxu1 }
 0x1b7   :  { %1950 = vst [vmem:[%s3429_s5 + $0x10] sm:$0xff] %v1686_v31  ;;  %v1688_v39 = vadd.f32 %v1687_v27, %v1645_v32  ;;  %v1647_v10 = vadd.f32 %v1646_v37, %v384_v25 }
 0x1b8   :  { %v1648_v40 = vpop.f32.mrf.mxu1 }
 0x1b9   :  { %1951 = vst [vmem:[%s3429_s5 + $0x18] sm:$0xff] %v1688_v39  ;;  %v1690_v36 = vadd.f32 %v1689_v33, %v1647_v10  ;;  %v1649_v41 = vadd.f32 %v1648_v40, %v388_v26 }
 0x1bb   :  { %1959 = vst [vmem:[%s3429_s5 + $0x58] sm:$0x3] %v1690_v36  ;;  %v1692_v43 = vadd.f32 %v1691_v42, %v1649_v41 }
 0x1bd   :  { %1960 = vst [vmem:[%s3429_s5 + $0x60] sm:$0x3] %v1692_v43 }
 0x1d2   :  { %v1771_v47 = vpop.f32.mrf.mxu1 }
 0x1d3   :  { %v1728_v49 = vpop.f32.mrf.mxu0 }
 0x1d4   :  { %v1729_v1 = vadd.f32 %v1728_v49, %v392_v46  ;;  %v1773_v2 = vpop.f32.mrf.mxu1 }
 0x1d5   :  { %v1730_v50 = vpop.f32.mrf.mxu0 }
 0x1d6   :  { %v1772_v0 = vadd.f32 %v1771_v47, %v1729_v1  ;;  %v1731_v51 = vadd.f32 %v1730_v50, %v396_v48  ;;  %v1775_v52 = vpop.f32.mrf.mxu1 }
 0x1d7   :  { %v1732_v53 = vpop.f32.mrf.mxu0 }
 0x1d8   :  { %1952 = vst [vmem:[%s3429_s5 + $0x20] sm:$0xff] %v1772_v0  ;;  %v1774_v54 = vadd.f32 %v1773_v2, %v1731_v51  ;;  %v1733_v55 = vadd.f32 %v1732_v53, %v392_v46  ;;  %v1777_v59 = vpop.f32.mrf.mxu1 }
 0x1d9   :  { %v1734_v56 = vpop.f32.mrf.mxu0 }
 0x1da   :  { %1953 = vst [vmem:[%s3429_s5 + $0x28] sm:$0xff] %v1774_v54  ;;  %v1776_v57 = vadd.f32 %v1775_v52, %v1733_v55  ;;  %v1735_v58 = vadd.f32 %v1734_v56, %v396_v48 }
 0x1dc   :  { %1961 = vst [vmem:[%s3429_s5 + $0x68] sm:$0x3] %v1776_v57  ;;  %v1778_v61 = vadd.f32 %v1777_v59, %v1735_v58 }
 0x1de   :  { %1962 = vst [vmem:[%s3429_s5 + $0x70] sm:$0x3] %v1778_v61 }
 0x1f3   :  { %v1857_v8 = vpop.f32.mrf.mxu0 }
 0x1f5   :  { %v1859_v3 = vpop.f32.mrf.mxu0 }
 0x1f7   :  { %v1861_v14 = vpop.f32.mrf.mxu0 }
 0x1f9   :  { %v1863_v19 = vpop.f32.mrf.mxu0 }
 0x212   :  { %v1814_v4 = vpop.f32.mrf.mxu1 }
 0x213   :  { %v1815_v7 = vadd.f32 %v1814_v4, %v400_v63  ;;  %v2203_v20 = vpop.f32.mrf.mxu0 }
 0x214   :  { %v1816_v5 = vpop.f32.mrf.mxu1 }
 0x215   :  { %v1858_v6 = vadd.f32 %v1857_v8, %v1815_v7  ;;  %v1817_v12 = vadd.f32 %v1816_v5, %v404_v60  ;;  %v2204_v35 = vpop.f32.mrf.mxu0 }
 0x216   :  { %v1818_v15 = vpop.f32.mrf.mxu1  ;;  %v2205_v21 = vadd.f32 %v2204_v35, %v2203_v20 }
 0x217   :  { %1954 = vst [vmem:[%s3429_s5 + $0x30] sm:$0xff] %v1858_v6  ;;  %v1860_v16 = vadd.f32 %v1859_v3, %v1817_v12  ;;  %v1819_v17 = vadd.f32 %v1818_v15, %v400_v63  ;;  %v2206_v11 = vpop.f32.mrf.mxu0 }
 0x218   :  { %v1820_v34 = vpop.f32.mrf.mxu1  ;;  %v1901_v25 = vadd.f32 %v2205_v21, %v1970_v23 }
 0x219   :  { %1955 = vst [vmem:[%s3429_s5 + $0x38] sm:$0xff] %v1860_v16  ;;  %v1862_v9 = vadd.f32 %v1861_v14, %v1819_v17  ;;  %v1821_v18 = vadd.f32 %v1820_v34, %v404_v60  ;;  %v2207_v22 = vpop.f32.mrf.mxu0 }
 0x21a   :  { %v2208_v24 = vadd.f32 %v2207_v22, %v2206_v11 }
 0x21b   :  { %1963 = vst [vmem:[%s3429_s5 + $0x78] sm:$0x3] %v1862_v9  ;;  %v1864_v38 = vadd.f32 %v1863_v19, %v1821_v18 }
 0x21c   :  { %v1904_v29 = vadd.f32 %v2208_v24, %v1970_v23 }
 0x21d   :  { %1964 = vst [vmem:[%s3429_s5 + $0x80] sm:$0x3] %v1864_v38 }
 0x232   :  { %v1941_v26 = vpop.f32.mrf.mxu1 }
 0x233   :  { %v1942_v27 = vadd.f32 %v1941_v26, %v1901_v25 }
 0x234   :  { %v2236_v28 = vpop.f32.mrf.mxu1 }
 0x235   :  { %1956 = vst [vmem:[%s3429_s5 + $0x40] sm:$0xff] %v1942_v27 }
 0x236   :  { %v1944_v30 = vpop.f32.mrf.mxu1 }
 0x237   :  { %v1945_v31 = vadd.f32 %v1944_v30, %v1904_v29 }
 0x238   :  { %v2237_v32 = vpop.f32.mrf.mxu1 }
 0x239   :  { %1965 = vst [vmem:[%s3429_s5 + $0x88] sm:$0x3] %v1945_v31 }

// kernel: dino_feature_pyramid.123
= control target key start
LH: loop header
LB: loop body
LE: loop exit
PB: predicated region body
PF: predicated region fallthrough
CT: control target
= control target key end

     0   :  { %vm26_vm0 = vcmask 1041408   ;;  %v76_v38 = vlaneseq  ;;  %s237_s0 = inlined_call_operand.vmem [shape: f32[10,384], index: 0, kind: input, shape index: {}]   ;;  %s238_s1 = inlined_call_operand.vmem [shape: f32[1,384], index: 1, kind: input, shape index: {}]   ;;  %s239_s2 = inlined_call_operand.vmem [shape: f32[1,384], index: 2, kind: input, shape index: {}]   ;;  %s240_s3 = inlined_call_operand.vmem [shape: f32[10,384], index: 3, kind: output, shape index: {}]  }
   0x1   :  { %v156_v0 = vld [vmem:[%s237_s0] sm:$0xff]  ;;  %v161_v1 = vld [vmem:[%s237_s0 + $0x8] sm:$0xff]  ;;  %v166_v2 = vld [vmem:[%s237_s0 + $0x10] sm:$0xff] }
   0x2   :  { %v22_v3 = vadd.f32 %v161_v1, %v156_v0  ;;  %v34_v4 = vmul.f32 %v156_v0, %v156_v0  ;;  %v35_v5 = vmul.f32 %v161_v1, %v161_v1  ;;  %v36_v6 = vmul.f32 %v166_v2, %v166_v2  ;;  %v179_v7 = vld [vmem:[%s237_s0 + $0x18] sm:$0x3]  ;;  %v184_v8 = vld [vmem:[%s237_s0 + $0x20] sm:$0x3]  ;;  %v189_v9 = vld [vmem:[%s237_s0 + $0x28] sm:$0x3] }
   0x3   :  { %v27_v10 = vsel %vm26_vm0, %v179_v7, 0.0  ;;  %v28_v11 = vsel %vm26_vm0, %v184_v8, 0.0  ;;  %v30_v12 = vsel %vm26_vm0, %v189_v9, 0.0  ;;  %v37_v13 = vmul.f32 %v179_v7, %v179_v7  ;;  %v20_v44 = vld [vmem:[%s238_s1] sm:$0x7] }
   0x4   :  { %v23_v14 = vadd.f32 %v22_v3, %v166_v2  ;;  %v40_v15 = vadd.f32 %v35_v5, %v34_v4  ;;  %v29_v16 = vadd.f32 %v28_v11, %v27_v10  ;;  %v38_v17 = vmul.f32 %v184_v8, %v184_v8  ;;  %v21_v46 = vld [vmem:[%s239_s2] sm:$0x7] }
   0x5   :  { %v39_v18 = vmul.f32 %v189_v9, %v189_v9  ;;  %v44_v19 = vsel %vm26_vm0, %v37_v13, 0.0  ;;  %v77_v41 = vshrl.u32 %v76_v38, 7 }
   0x6   :  { %24 = vadd.xlane.f32.xlu0 %v23_v14  ;;  %v41_v20 = vadd.f32 %v40_v15, %v36_v6  ;;  %v31_v21 = vadd.f32 %v30_v12, %v29_v16  ;;  %v45_v22 = vsel %vm26_vm0, %v38_v17, 0.0 }
   0x7   :  { %v46_v23 = vadd.f32 %v45_v22, %v44_v19  ;;  %v47_v24 = vsel %vm26_vm0, %v39_v18, 0.0  ;;  %v78_v42 = vsub.s32 0, %v77_v41  ;;  %v82_v43 = vsub.s32 1, %v77_v41 }
   0x8   :  { %42 = vadd.xlane.f32.xlu1 %v41_v20  ;;  %v86_v45 = vsub.s32 2, %v77_v41 }
   0x9   :  { %v48_v25 = vadd.f32 %v47_v24, %v46_v23  ;;  %v79_v47 = vrot.slane %v20_v44, %v78_v42  ;;  %v83_v48 = vrot.slane %v20_v44, %v82_v43  ;;  %v101_v54 = vrot.slane %v21_v46, %v78_v42 }
   0xa   :  { %32 = vadd.xlane.f32.xlu0 %v31_v21  ;;  %v87_v52 = vrot.slane %v20_v44, %v86_v45  ;;  %v105_v55 = vrot.slane %v21_v46, %v82_v43  ;;  %v109_v56 = vrot.slane %v21_v46, %v86_v45 }
   0xc   :  { %49 = vadd.xlane.f32.xlu1 %v48_v25 }
  0x8f   :  { %v25_v26 = vpop.xlane.xlu0 %24 }
  0x90   :  { %v51_v27 = vmul.f32 0.0026041667, %v25_v26 }
  0x91   :  { %v43_v28 = vpop.xlane.xlu1 %42 }
  0x92   :  { %v53_v29 = vmul.f32 0.0026041667, %v43_v28  ;;  %v55_v30 = vmul.f32 %v51_v27, %v51_v27  ;;  %v59_v49 = vsub.f32 %v156_v0, %v51_v27  ;;  %v60_v50 = vsub.f32 %v161_v1, %v51_v27 }
  0x93   :  { %v33_v31 = vpop.xlane.xlu0 %32  ;;  %v61_v51 = vsub.f32 %v166_v2, %v51_v27 }
  0x94   :  { %v52_v32 = vmul.f32 0.0026041667, %v33_v31  ;;  %v57_v33 = vsub.f32 %v53_v29, %v55_v30 }
  0x95   :  { %v50_v34 = vpop.xlane.xlu1 %49 }
  0x96   :  { %v54_v35 = vmul.f32 0.0026041667, %v50_v34  ;;  %v65_v36 = vadd.f32 1e-06, %v57_v33  ;;  %v56_v37 = vmul.f32 %v52_v32, %v52_v32  ;;  %v62_v63 = vsub.f32 %v179_v7, %v52_v32 }
  0x97   :  { %v63_v0 = vsub.f32 %v184_v8, %v52_v32  ;;  %v64_v1 = vsub.f32 %v189_v9, %v52_v32 }
  0x98   :  { %129 = vrsqrt.f32 %v65_v36  ;;  %v58_v39 = vsub.f32 %v54_v35, %v56_v37 }
  0x9a   :  { %v66_v40 = vadd.f32 1e-06, %v58_v39 }
  0x9c   :  { %131 = vrsqrt.f32 %v66_v40 }
  0xa5   :  { %v130_v53 = vpop.eup %129 }
  0xa6   :  { %v69_v57 = vmul.f32 %v130_v53, %v59_v49  ;;  %v70_v58 = vmul.f32 %v130_v53, %v60_v50  ;;  %v71_v59 = vmul.f32 %v130_v53, %v61_v51 }
  0xa8   :  { %v91_v60 = vmul.f32 %v79_v47, %v69_v57  ;;  %v92_v61 = vmul.f32 %v83_v48, %v70_v58  ;;  %v93_v62 = vmul.f32 %v87_v52, %v71_v59 }
  0xa9   :  { %v132_v3 = vpop.eup %131 }
  0xaa   :  { %v113_v4 = vadd.f32 %v101_v54, %v91_v60  ;;  %v114_v2 = vadd.f32 %v105_v55, %v92_v61  ;;  %v115_v5 = vadd.f32 %v109_v56, %v93_v62  ;;  %v72_v6 = vmul.f32 %v132_v3, %v62_v63 }
  0xab   :  { %v73_v10 = vmul.f32 %v132_v3, %v63_v0  ;;  %v74_v11 = vmul.f32 %v132_v3, %v64_v1 }
  0xac   :  { %119 = vst [vmem:[%s240_s3] sm:$0xff] %v113_v4  ;;  %120 = vst [vmem:[%s240_s3 + $0x8] sm:$0xff] %v114_v2  ;;  %v94_v7 = vmul.f32 %v79_v47, %v72_v6 }
  0xad   :  { %121 = vst [vmem:[%s240_s3 + $0x10] sm:$0xff] %v115_v5  ;;  %v95_v8 = vmul.f32 %v83_v48, %v73_v10  ;;  %v96_v9 = vmul.f32 %v87_v52, %v74_v11 }
  0xae   :  { %v116_v12 = vadd.f32 %v101_v54, %v94_v7 }
  0xaf   :  { %v117_v13 = vadd.f32 %v105_v55, %v95_v8  ;;  %v118_v14 = vadd.f32 %v109_v56, %v96_v9 }
  0xb0   :  { %122 = vst [vmem:[%s240_s3 + $0x18] sm:$0x3] %v116_v12 }
  0xb1   :  { %123 = vst [vmem:[%s240_s3 + $0x20] sm:$0x3] %v117_v13  ;;  %124 = vst [vmem:[%s240_s3 + $0x28] sm:$0x3] %v118_v14 }

// kernel: dino_feature_pyramid.67
= control target key start
LH: loop header
LB: loop body
LE: loop exit
PB: predicated region body
PF: predicated region fallthrough
CT: control target
= control target key end

     0   :  { %s4418_s1 = inlined_call_operand.vmem [shape: bf16[1536,384], index: 1, kind: input, shape index: {}]   ;;  %s4419_s0 = inlined_call_operand.vmem [shape: f32[10,1536], index: 0, kind: input, shape index: {}]   ;;  %s4420_s2 = inlined_call_operand.vmem [shape: f32[1,384], index: 2, kind: input, shape index: {}]   ;;  %s4421_s3 = inlined_call_operand.vmem [shape: f32[1,384], index: 3, kind: input, shape index: {}]   ;;  %s4422_s4 = inlined_call_operand.vmem [shape: f32[10,384], index: 4, kind: input, shape index: {}]   ;;  %s4423_s5 = inlined_call_operand.vmem [shape: f32[10,384], index: 5, kind: output, shape index: {}]  }
   0x1   :  { %v2963_v0 = vld [vmem:[%s4418_s1 + $0xac] ss:$12 sps:$4 sm:$0xff]   ;;  %v2967_v2 = vld [vmem:[%s4418_s1 + $0xa8] ss:$12 sps:$4 sm:$0xff]   ;;  %v2973_v6 = vld [vmem:[%s4418_s1 + $0x90] ss:$12 sps:$4 sm:$0xff]  }
   0x2   :  { %v2965_v1 = vld [vmem:[%s4418_s1 + $0x22c] ss:$12 sps:$4 sm:$0xff]   ;;  %1994 = vmatprep.subr.bf16.mxu0 %v2963_v0  ;;  %v2968_v3 = vld [vmem:[%s4418_s1 + $0x228] ss:$12 sps:$4 sm:$0xff]   ;;  %v2974_v7 = vld [vmem:[%s4418_s1 + $0x210] ss:$12 sps:$4 sm:$0xff]  }
   0x3   :  { %2037 = vmatprep.subr.bf16.mxu1 %v2965_v1  ;;  %v2969_v4 = vld [vmem:[%s4418_s1 + $0x94] ss:$12 sps:$4 sm:$0xff]   ;;  %1995 = vmatpush1.bf16.msra.mxu0 %v2967_v2  ;;  %v2975_v8 = vld [vmem:[%s4418_s1 + $0x7c] ss:$12 sps:$4 sm:$0xff]   ;;  %v2979_v10 = vld [vmem:[%s4418_s1 + $0x78] ss:$12 sps:$4 sm:$0xff]  }
   0x4   :  { %2038 = vmatpush1.bf16.msra.mxu1 %v2968_v3  ;;  %v2971_v5 = vld [vmem:[%s4418_s1 + $0x214] ss:$12 sps:$4 sm:$0xff]   ;;  %1996 = vmatprep.subr.bf16.mxu0 %v2969_v4  ;;  %v2977_v9 = vld [vmem:[%s4418_s1 + $0x1fc] ss:$12 sps:$4 sm:$0xff]   ;;  %v2980_v11 = vld [vmem:[%s4418_s1 + $0x1f8] ss:$12 sps:$4 sm:$0xff]  }
   0x5   :  { %2039 = vmatprep.subr.bf16.mxu1 %v2971_v5  ;;  %v2981_v12 = vld [vmem:[%s4418_s1 + $0x64] ss:$12 sps:$4 sm:$0xff]   ;;  %v2985_v14 = vld [vmem:[%s4418_s1 + $0x60] ss:$12 sps:$4 sm:$0xff]   ;;  %v2991_v18 = vld [vmem:[%s4418_s1 + $0x48] ss:$12 sps:$4 sm:$0xff]  }
   0x6   :  { %v2983_v13 = vld [vmem:[%s4418_s1 + $0x1e4] ss:$12 sps:$4 sm:$0xff]   ;;  %v2986_v15 = vld [vmem:[%s4418_s1 + $0x1e0] ss:$12 sps:$4 sm:$0xff]   ;;  %v2992_v19 = vld [vmem:[%s4418_s1 + $0x1c8] ss:$12 sps:$4 sm:$0xff]  }
   0x7   :  { %1997 = vmatpush1.bf16.msra.mxu0 %v2973_v6  ;;  %v2987_v16 = vld [vmem:[%s4418_s1 + $0x4c] ss:$12 sps:$4 sm:$0xff]   ;;  %v2993_v20 = vld [vmem:[%s4418_s1 + $0x34] ss:$12 sps:$4 sm:$0xff]   ;;  %v2997_v22 = vld [vmem:[%s4418_s1 + $0x30] ss:$12 sps:$4 sm:$0xff]  }
   0x8   :  { %2040 = vmatpush1.bf16.msra.mxu1 %v2974_v7  ;;  %1998 = vmatprep.subr.bf16.mxu0 %v2975_v8  ;;  %v2989_v17 = vld [vmem:[%s4418_s1 + $0x1cc] ss:$12 sps:$4 sm:$0xff]   ;;  %v2995_v21 = vld [vmem:[%s4418_s1 + $0x1b4] ss:$12 sps:$4 sm:$0xff]   ;;  %v2998_v23 = vld [vmem:[%s4418_s1 + $0x1b0] ss:$12 sps:$4 sm:$0xff]  }
   0x9   :  { %2041 = vmatprep.subr.bf16.mxu1 %v2977_v9  ;;  %v2999_v24 = vld [vmem:[%s4418_s1 + $0x1c] ss:$12 sps:$4 sm:$0xff]   ;;  %v3003_v26 = vld [vmem:[%s4418_s1 + $0x18] ss:$12 sps:$4 sm:$0xff]   ;;  %v3009_v30 = vld [vmem:[%s4418_s1] ss:$12 sps:$4 sm:$0xff]  }
   0xa   :  { %v3001_v25 = vld [vmem:[%s4418_s1 + $0x19c] ss:$12 sps:$4 sm:$0xff]   ;;  %v3004_v27 = vld [vmem:[%s4418_s1 + $0x198] ss:$12 sps:$4 sm:$0xff]   ;;  %v3010_v31 = vld [vmem:[%s4418_s1 + $0x180] ss:$12 sps:$4 sm:$0xff]  }
   0xb   :  { %1999 = vmatpush1.bf16.msra.mxu0 %v2979_v10  ;;  %v3005_v28 = vld [vmem:[%s4418_s1 + $0x4] ss:$12 sps:$4 sm:$0xff]   ;;  %v3011_v32 = vld [vmem:[%s4418_s1 + $0x16c] ss:$12 sps:$4 sm:$0xff]   ;;  %v3015_v34 = vld [vmem:[%s4418_s1 + $0x168] ss:$12 sps:$4 sm:$0xff]  }
   0xc   :  { %2042 = vmatpush1.bf16.msra.mxu1 %v2980_v11  ;;  %2000 = vmatprep.subr.bf16.mxu0 %v2981_v12  ;;  %v3007_v29 = vld [vmem:[%s4418_s1 + $0x184] ss:$12 sps:$4 sm:$0xff]   ;;  %v3013_v33 = vld [vmem:[%s4418_s1 + $0x2ec] ss:$12 sps:$4 sm:$0xff]   ;;  %v3016_v35 = vld [vmem:[%s4418_s1 + $0x2e8] ss:$12 sps:$4 sm:$0xff]  }
   0xd   :  { %2043 = vmatprep.subr.bf16.mxu1 %v2983_v13  ;;  %v3017_v36 = vld [vmem:[%s4418_s1 + $0x154] ss:$12 sps:$4 sm:$0xff]   ;;  %v3021_v38 = vld [vmem:[%s4418_s1 + $0x150] ss:$12 sps:$4 sm:$0xff]   ;;  %v3027_v42 = vld [vmem:[%s4418_s1 + $0x138] ss:$12 sps:$4 sm:$0xff]  }
   0xe   :  { %v3019_v37 = vld [vmem:[%s4418_s1 + $0x2d4] ss:$12 sps:$4 sm:$0xff]   ;;  %v3022_v39 = vld [vmem:[%s4418_s1 + $0x2d0] ss:$12 sps:$4 sm:$0xff]   ;;  %v3028_v43 = vld [vmem:[%s4418_s1 + $0x2b8] ss:$12 sps:$4 sm:$0xff]  }
   0xf   :  { %2001 = vmatpush1.bf16.msra.mxu0 %v2985_v14  ;;  %v3023_v40 = vld [vmem:[%s4418_s1 + $0x13c] ss:$12 sps:$4 sm:$0xff]   ;;  %v3029_v44 = vld [vmem:[%s4418_s1 + $0x124] ss:$12 sps:$4 sm:$0xff]   ;;  %v36_v49 = vld [vmem:[%s4419_s0 + $0x78] sm:$0x3] }
  0x10   :  { %2044 = vmatpush1.bf16.msra.mxu1 %v2986_v15  ;;  %2002 = vmatprep.subr.bf16.mxu0 %v2987_v16  ;;  %v3025_v41 = vld [vmem:[%s4418_s1 + $0x2bc] ss:$12 sps:$4 sm:$0xff]   ;;  %v3031_v45 = vld [vmem:[%s4418_s1 + $0x2a4] ss:$12 sps:$4 sm:$0xff]   ;;  %v3033_v50 = vld [vmem:[%s4418_s1 + $0x120] ss:$12 sps:$4 sm:$0xff]  }
  0x11   :  { %2045 = vmatprep.subr.bf16.mxu1 %v2989_v17  ;;  %v22_v46 = vld [vmem:[%s4419_s0 + $0x8] sm:$0xff]  ;;  %v24_v48 = vld [vmem:[%s4419_s0 + $0x18] sm:$0xff]  ;;  %v3041_v58 = vld [vmem:[%s4418_s1 + $0xf4] ss:$12 sps:$4 sm:$0xff]  }
  0x12   :  { %v34_v47 = vld [vmem:[%s4419_s0 + $0x68] sm:$0x3]  ;;  %v3034_v51 = vld [vmem:[%s4418_s1 + $0x2a0] ss:$12 sps:$4 sm:$0xff]   ;;  %v3538_v54 = vpack.c.bf16 %v36_v49, %v24_v48  ;;  %v3045_v60 = vld [vmem:[%s4418_s1 + $0xf0] ss:$12 sps:$4 sm:$0xff]  }
  0x13   :  { %2003 = vmatpush1.bf16.msra.mxu0 %v2991_v18  ;;  %v3035_v52 = vld [vmem:[%s4418_s1 + $0x10c] ss:$12 sps:$4 sm:$0xff]   ;;  %v3536_v53 = vpack.c.bf16 %v34_v47, %v22_v46  ;;  %v3039_v56 = vld [vmem:[%s4418_s1 + $0x108] ss:$12 sps:$4 sm:$0xff]   ;;  %v3046_v61 = vld [vmem:[%s4418_s1 + $0x270] ss:$12 sps:$4 sm:$0xff]  }
  0x14   :  { %2046 = vmatpush1.bf16.msra.mxu1 %v2992_v19  ;;  %2004 = vmatprep.subr.bf16.mxu0 %v2993_v20  ;;  %v3037_v55 = vld [vmem:[%s4418_s1 + $0x28c] ss:$12 sps:$4 sm:$0xff]   ;;  %v3040_v57 = vld [vmem:[%s4418_s1 + $0x288] ss:$12 sps:$4 sm:$0xff]   ;;  %v3053_v2 = vld [vmem:[%s4418_s1 + $0xc4] ss:$12 sps:$4 sm:$0xff]  }
  0x15   :  { %2047 = vmatprep.subr.bf16.mxu1 %v2995_v21  ;;  %2026 = vmatprep.mubr.bf16.mxu0 %v3536_v53  ;;  %v3043_v59 = vld [vmem:[%s4418_s1 + $0x274] ss:$12 sps:$4 sm:$0xff]   ;;  %v3047_v62 = vld [vmem:[%s4418_s1 + $0xdc] ss:$12 sps:$4 sm:$0xff]   ;;  %v3051_v0 = vld [vmem:[%s4418_s1 + $0xd8] ss:$12 sps:$4 sm:$0xff]  }
  0x16   :  { %2069 = vmatprep.mubr.bf16.mxu1 %v3538_v54  ;;  %v3049_v63 = vld [vmem:[%s4418_s1 + $0x25c] ss:$12 sps:$4 sm:$0xff]   ;;  %v3052_v1 = vld [vmem:[%s4418_s1 + $0x258] ss:$12 sps:$4 sm:$0xff]   ;;  %v3057_v4 = vld [vmem:[%s4418_s1 + $0xc0] ss:$12 sps:$4 sm:$0xff]  }
  0x17   :  { %2005 = vmatpush1.bf16.msra.mxu0 %v2997_v22  ;;  %v3055_v3 = vld [vmem:[%s4418_s1 + $0x244] ss:$12 sps:$4 sm:$0xff]   ;;  %v3058_v5 = vld [vmem:[%s4418_s1 + $0x240] ss:$12 sps:$4 sm:$0xff]   ;;  %v3059_v14 = vld [vmem:[%s4418_s1 + $0x3a8] ss:$12 sps:$4 sm:$0xff]  }
  0x18   :  { %2048 = vmatpush1.bf16.msra.mxu1 %v2998_v23  ;;  %2006 = vmatprep.subr.bf16.mxu0 %v2999_v24  ;;  %v21_v6 = vld [vmem:[%s4419_s0] sm:$0xff]  ;;  %v23_v8 = vld [vmem:[%s4419_s0 + $0x10] sm:$0xff]  ;;  %v3061_v10 = vld [vmem:[%s4418_s1 + $0x3ac] ss:$12 sps:$4 sm:$0xff]  }
  0x19   :  { %2049 = vmatprep.subr.bf16.mxu1 %v3001_v25  ;;  %v33_v7 = vld [vmem:[%s4419_s0 + $0x60] sm:$0x3]  ;;  %v35_v9 = vld [vmem:[%s4419_s0 + $0x70] sm:$0x3]  ;;  %v3064_v11 = vld [vmem:[%s4418_s1 + $0x52c] ss:$12 sps:$4 sm:$0xff]  }
  0x1a   :  { %v3605_v12 = vpack.c.bf16 %v33_v7, %v21_v6  ;;  %v3607_v13 = vpack.c.bf16 %v35_v9, %v23_v8  ;;  %v3062_v15 = vld [vmem:[%s4418_s1 + $0x528] ss:$12 sps:$4 sm:$0xff]   ;;  %v3065_v18 = vld [vmem:[%s4418_s1 + $0x390] ss:$12 sps:$4 sm:$0xff]   ;;  %v3071_v22 = vld [vmem:[%s4418_s1 + $0x378] ss:$12 sps:$4 sm:$0xff]  }
  0x1b   :  { %2007 = vmatpush1.bf16.msra.mxu0 %v3003_v26  ;;  %v3067_v16 = vld [vmem:[%s4418_s1 + $0x394] ss:$12 sps:$4 sm:$0xff]   ;;  %v3068_v19 = vld [vmem:[%s4418_s1 + $0x510] ss:$12 sps:$4 sm:$0xff]   ;;  %v3074_v23 = vld [vmem:[%s4418_s1 + $0x4f8] ss:$12 sps:$4 sm:$0xff]  }
  0x1c   :  { %2050 = vmatpush1.bf16.msra.mxu1 %v3004_v27  ;;  %2008 = vmatprep.subr.bf16.mxu0 %v3005_v28  ;;  %v3070_v17 = vld [vmem:[%s4418_s1 + $0x514] ss:$12 sps:$4 sm:$0xff]   ;;  %v3073_v20 = vld [vmem:[%s4418_s1 + $0x37c] ss:$12 sps:$4 sm:$0xff]   ;;  %v3079_v24 = vld [vmem:[%s4418_s1 + $0x364] ss:$12 sps:$4 sm:$0xff]  }
  0x1d   :  { %2051 = vmatprep.subr.bf16.mxu1 %v3007_v29  ;;  %v3076_v21 = vld [vmem:[%s4418_s1 + $0x4fc] ss:$12 sps:$4 sm:$0xff]   ;;  %v3082_v25 = vld [vmem:[%s4418_s1 + $0x4e4] ss:$12 sps:$4 sm:$0xff]   ;;  %v3077_v26 = vld [vmem:[%s4418_s1 + $0x360] ss:$12 sps:$4 sm:$0xff]  }
  0x1e   :  { %v3080_v27 = vld [vmem:[%s4418_s1 + $0x4e0] ss:$12 sps:$4 sm:$0xff]   ;;  %v40_v46 = vld [vmem:[%s4419_s0 + $0x98] sm:$0x3]  ;;  %v3131_v6 = vld [vmem:[%s4418_s1 + $0x408] ss:$12 sps:$4 sm:$0xff]  }
  0x1f   :  { %2009 = vmatpush1.bf16.msra.mxu0 %v3009_v30  ;;  %v3085_v28 = vld [vmem:[%s4418_s1 + $0x34c] ss:$12 sps:$4 sm:$0xff]   ;;  %v3083_v30 = vld [vmem:[%s4418_s1 + $0x348] ss:$12 sps:$4 sm:$0xff]  }
  0x20   :  { %2052 = vmatpush1.bf16.msra.mxu1 %v3010_v31  ;;  %2010 = vmatprep.subr.bf16.mxu0 %v3011_v32  ;;  %v3088_v29 = vld [vmem:[%s4418_s1 + $0x4cc] ss:$12 sps:$4 sm:$0xff]   ;;  %v3086_v31 = vld [vmem:[%s4418_s1 + $0x4c8] ss:$12 sps:$4 sm:$0xff]  }
  0x21   :  { %2053 = vmatprep.subr.bf16.mxu1 %v3013_v33  ;;  %v3091_v32 = vld [vmem:[%s4418_s1 + $0x334] ss:$12 sps:$4 sm:$0xff]  }
  0x22   :  { %v3094_v33 = vld [vmem:[%s4418_s1 + $0x4b4] ss:$12 sps:$4 sm:$0xff]  }
  0x23   :  { %2011 = vmatpush2.bf16.msra.mxu0 %v3015_v34  ;;  %v3089_v34 = vld [vmem:[%s4418_s1 + $0x330] ss:$12 sps:$4 sm:$0xff]   ;;  %v3101_v48 = vld [vmem:[%s4418_s1 + $0x300] ss:$12 sps:$4 sm:$0xff]   ;;  %v3134_v7 = vld [vmem:[%s4418_s1 + $0x588] ss:$12 sps:$4 sm:$0xff]  }
  0x24   :  { %2054 = vmatpush2.bf16.msra.mxu1 %v3016_v35  ;;  %2012 = vmatprep.subr.bf16.mxu0 %v3017_v36  ;;  %v3092_v35 = vld [vmem:[%s4418_s1 + $0x4b0] ss:$12 sps:$4 sm:$0xff]   ;;  %v3104_v49 = vld [vmem:[%s4418_s1 + $0x480] ss:$12 sps:$4 sm:$0xff]  }
  0x25   :  { %2055 = vmatprep.subr.bf16.mxu1 %v3019_v37  ;;  %v3097_v36 = vld [vmem:[%s4418_s1 + $0x31c] ss:$12 sps:$4 sm:$0xff]   ;;  %v3139_v8 = vld [vmem:[%s4418_s1 + $0x3f4] ss:$12 sps:$4 sm:$0xff]  }
  0x26   :  { %v3100_v37 = vld [vmem:[%s4418_s1 + $0x49c] ss:$12 sps:$4 sm:$0xff]   ;;  %v3142_v9 = vld [vmem:[%s4418_s1 + $0x574] ss:$12 sps:$4 sm:$0xff]  }
  0x27   :  { %2013 = vmatpush2.bf16.msra.mxu0 %v3021_v38  ;;  %v3095_v38 = vld [vmem:[%s4418_s1 + $0x318] ss:$12 sps:$4 sm:$0xff]  }
  0x28   :  { %2056 = vmatpush2.bf16.msra.mxu1 %v3022_v39  ;;  %2014 = vmatprep.subr.bf16.mxu0 %v3023_v40  ;;  %v3098_v39 = vld [vmem:[%s4418_s1 + $0x498] ss:$12 sps:$4 sm:$0xff]   ;;  %v26_v40 = vld [vmem:[%s4419_s0 + $0x28] sm:$0xff] }
  0x29   :  { %2057 = vmatprep.subr.bf16.mxu1 %v3025_v41  ;;  %v38_v41 = vld [vmem:[%s4419_s0 + $0x88] sm:$0x3] }
  0x2b   :  { %2015 = vmatpush2.bf16.msra.mxu0 %v3027_v42  ;;  %v28_v42 = vld [vmem:[%s4419_s0 + $0x38] sm:$0xff] }
  0x2c   :  { %2058 = vmatpush2.bf16.msra.mxu1 %v3028_v43  ;;  %2016 = vmatprep.subr.bf16.mxu0 %v3029_v44  ;;  %v3103_v43 = vld [vmem:[%s4418_s1 + $0x304] ss:$12 sps:$4 sm:$0xff]   ;;  %v3709_v47 = vpack.c.bf16 %v40_v46, %v28_v42  ;;  %v44_v42 = vld [vmem:[%s4419_s0 + $0xb8] sm:$0x3] }
  0x2d   :  { %2059 = vmatprep.subr.bf16.mxu1 %v3031_v45  ;;  %v3106_v44 = vld [vmem:[%s4418_s1 + $0x484] ss:$12 sps:$4 sm:$0xff]   ;;  %v3704_v45 = vpack.c.bf16 %v38_v41, %v26_v40  ;;  %v32_v41 = vld [vmem:[%s4419_s0 + $0x58] sm:$0xff] }
  0x2e   :  { %v3883_v46 = vpack.c.bf16 %v44_v42, %v32_v41  ;;  %v3245_v41 = vld [vmem:[%s4418_s1 + $0x6c0] ss:$12 sps:$4 sm:$0xff]  }
  0x2f   :  { %2017 = vmatpush2.bf16.msra.mxu0 %v3033_v50  ;;  %v3109_v50 = vld [vmem:[%s4418_s1 + $0x46c] ss:$12 sps:$4 sm:$0xff]  }
  0x30   :  { %2060 = vmatpush2.bf16.msra.mxu1 %v3034_v51  ;;  %2018 = vmatprep.subr.bf16.mxu0 %v3035_v52  ;;  %v3112_v51 = vld [vmem:[%s4418_s1 + $0x5ec] ss:$12 sps:$4 sm:$0xff]   ;;  %v3107_v52 = vld [vmem:[%s4418_s1 + $0x468] ss:$12 sps:$4 sm:$0xff]  }
  0x31   :  { %2061 = vmatprep.subr.bf16.mxu1 %v3037_v55  ;;  %v3110_v55 = vld [vmem:[%s4418_s1 + $0x5e8] ss:$12 sps:$4 sm:$0xff]   ;;  %v3248_v42 = vld [vmem:[%s4418_s1 + $0x840] ss:$12 sps:$4 sm:$0xff]  }
  0x33   :  { %2019 = vmatpush2.bf16.msra.mxu0 %v3039_v56  ;;  %v3115_v56 = vld [vmem:[%s4418_s1 + $0x454] ss:$12 sps:$4 sm:$0xff]  }
  0x34   :  { %2062 = vmatpush2.bf16.msra.mxu1 %v3040_v57  ;;  %2020 = vmatprep.subr.bf16.mxu0 %v3041_v58  ;;  %v3118_v57 = vld [vmem:[%s4418_s1 + $0x5d4] ss:$12 sps:$4 sm:$0xff]   ;;  %v3113_v58 = vld [vmem:[%s4418_s1 + $0x450] ss:$12 sps:$4 sm:$0xff]  }
  0x35   :  { %2063 = vmatprep.subr.bf16.mxu1 %v3043_v59  ;;  %v3116_v59 = vld [vmem:[%s4418_s1 + $0x5d0] ss:$12 sps:$4 sm:$0xff]  }
  0x37   :  { %2021 = vmatpush2.bf16.msra.mxu0 %v3045_v60  ;;  %v3121_v60 = vld [vmem:[%s4418_s1 + $0x43c] ss:$12 sps:$4 sm:$0xff]  }
  0x38   :  { %2064 = vmatpush2.bf16.msra.mxu1 %v3046_v61  ;;  %2022 = vmatprep.subr.bf16.mxu0 %v3047_v62  ;;  %v3124_v61 = vld [vmem:[%s4418_s1 + $0x5bc] ss:$12 sps:$4 sm:$0xff]   ;;  %v3119_v62 = vld [vmem:[%s4418_s1 + $0x438] ss:$12 sps:$4 sm:$0xff]  }
  0x39   :  { %2065 = vmatprep.subr.bf16.mxu1 %v3049_v63  ;;  %v3122_v63 = vld [vmem:[%s4418_s1 + $0x5b8] ss:$12 sps:$4 sm:$0xff]  }
  0x3b   :  { %2023 = vmatpush2.bf16.msra.mxu0 %v3051_v0  ;;  %v3127_v0 = vld [vmem:[%s4418_s1 + $0x424] ss:$12 sps:$4 sm:$0xff]  }
  0x3c   :  { %2066 = vmatpush2.bf16.msra.mxu1 %v3052_v1  ;;  %2024 = vmatprep.subr.bf16.mxu0 %v3053_v2  ;;  %v3130_v1 = vld [vmem:[%s4418_s1 + $0x5a4] ss:$12 sps:$4 sm:$0xff]   ;;  %v3125_v2 = vld [vmem:[%s4418_s1 + $0x420] ss:$12 sps:$4 sm:$0xff]  }
  0x3d   :  { %2067 = vmatprep.subr.bf16.mxu1 %v3055_v3  ;;  %v3128_v3 = vld [vmem:[%s4418_s1 + $0x5a0] ss:$12 sps:$4 sm:$0xff]  }
  0x3f   :  { %2025 = vmatpush2.bf16.msra.mxu0 %v3057_v4  ;;  %v3133_v4 = vld [vmem:[%s4418_s1 + $0x40c] ss:$12 sps:$4 sm:$0xff]  }
  0x40   :  { %2068 = vmatpush2.bf16.msra.mxu1 %v3058_v5  ;;  %2080 = vmatprep.subr.bf16.mxu0 %v3061_v10  ;;  %v3136_v5 = vld [vmem:[%s4418_s1 + $0x58c] ss:$12 sps:$4 sm:$0xff]   ;;  %v3137_v10 = vld [vmem:[%s4418_s1 + $0x3f0] ss:$12 sps:$4 sm:$0xff]  }
  0x41   :  { %2123 = vmatprep.subr.bf16.mxu1 %v3064_v11  ;;  %v3140_v11 = vld [vmem:[%s4418_s1 + $0x570] ss:$12 sps:$4 sm:$0xff]  }
  0x42   :  { %2027 = vmatmul.mubr.bf16.vlgmr.msra.gmra.mxu0 %v3605_v12 }
  0x43   :  { %2070 = vmatmul.mubr.bf16.vlgmr.msra.gmra.mxu1 %v3607_v13  ;;  %2081 = vmatpush1.bf16.msra.mxu0 %v3059_v14  ;;  %v3145_v14 = vld [vmem:[%s4418_s1 + $0x3dc] ss:$12 sps:$4 sm:$0xff]  }
  0x44   :  { %2124 = vmatpush1.bf16.msra.mxu1 %v3062_v15  ;;  %2082 = vmatprep.subr.bf16.mxu0 %v3067_v16  ;;  %v3148_v15 = vld [vmem:[%s4418_s1 + $0x55c] ss:$12 sps:$4 sm:$0xff]   ;;  %v3143_v16 = vld [vmem:[%s4418_s1 + $0x3d8] ss:$12 sps:$4 sm:$0xff]  }
  0x45   :  { %2125 = vmatprep.subr.bf16.mxu1 %v3070_v17  ;;  %2112 = vmatprep.mubr.bf16.mxu0 %v3704_v45  ;;  %v3146_v17 = vld [vmem:[%s4418_s1 + $0x558] ss:$12 sps:$4 sm:$0xff]  }
  0x46   :  { %2155 = vmatprep.mubr.bf16.mxu1 %v3709_v47 }
  0x47   :  { %2083 = vmatpush1.bf16.msra.mxu0 %v3065_v18  ;;  %v3151_v18 = vld [vmem:[%s4418_s1 + $0x3c4] ss:$12 sps:$4 sm:$0xff]  }
  0x48   :  { %2126 = vmatpush1.bf16.msra.mxu1 %v3068_v19  ;;  %2084 = vmatprep.subr.bf16.mxu0 %v3073_v20  ;;  %v3154_v19 = vld [vmem:[%s4418_s1 + $0x544] ss:$12 sps:$4 sm:$0xff]   ;;  %v3149_v20 = vld [vmem:[%s4418_s1 + $0x3c0] ss:$12 sps:$4 sm:$0xff]  }
  0x49   :  { %2127 = vmatprep.subr.bf16.mxu1 %v3076_v21  ;;  %v3152_v21 = vld [vmem:[%s4418_s1 + $0x540] ss:$12 sps:$4 sm:$0xff]  }
  0x4b   :  { %2085 = vmatpush1.bf16.msra.mxu0 %v3071_v22  ;;  %v25_v22 = vld [vmem:[%s4419_s0 + $0x20] sm:$0xff] }
  0x4c   :  { %2128 = vmatpush1.bf16.msra.mxu1 %v3074_v23  ;;  %2086 = vmatprep.subr.bf16.mxu0 %v3079_v24  ;;  %v37_v23 = vld [vmem:[%s4419_s0 + $0x80] sm:$0x3]  ;;  %v27_v24 = vld [vmem:[%s4419_s0 + $0x30] sm:$0xff] }
  0x4d   :  { %2129 = vmatprep.subr.bf16.mxu1 %v3082_v25  ;;  %v39_v25 = vld [vmem:[%s4419_s0 + $0x90] sm:$0x3] }
  0x4f   :  { %2087 = vmatpush1.bf16.msra.mxu0 %v3077_v26  ;;  %v3157_v26 = vld [vmem:[%s4418_s1 + $0x6ac] ss:$12 sps:$4 sm:$0xff]  }
  0x50   :  { %2130 = vmatpush1.bf16.msra.mxu1 %v3080_v27  ;;  %2088 = vmatprep.subr.bf16.mxu0 %v3085_v28  ;;  %v3160_v27 = vld [vmem:[%s4418_s1 + $0x82c] ss:$12 sps:$4 sm:$0xff]   ;;  %v3833_v28 = vpack.c.bf16 %v37_v23, %v25_v22 }
  0x51   :  { %2131 = vmatprep.subr.bf16.mxu1 %v3088_v29  ;;  %v3835_v29 = vpack.c.bf16 %v39_v25, %v27_v24  ;;  %v3221_v22 = vld [vmem:[%s4418_s1 + $0x720] ss:$12 sps:$4 sm:$0xff]  }
  0x52   :  { %v3224_v23 = vld [vmem:[%s4418_s1 + $0x8a0] ss:$12 sps:$4 sm:$0xff]  }
  0x53   :  { %2089 = vmatpush1.bf16.msra.mxu0 %v3083_v30  ;;  %v3155_v30 = vld [vmem:[%s4418_s1 + $0x6a8] ss:$12 sps:$4 sm:$0xff]   ;;  %v3229_v24 = vld [vmem:[%s4418_s1 + $0x70c] ss:$12 sps:$4 sm:$0xff]  }
  0x54   :  { %2132 = vmatpush1.bf16.msra.mxu1 %v3086_v31  ;;  %2090 = vmatprep.subr.bf16.mxu0 %v3091_v32  ;;  %v3158_v31 = vld [vmem:[%s4418_s1 + $0x828] ss:$12 sps:$4 sm:$0xff]   ;;  %v3232_v25 = vld [vmem:[%s4418_s1 + $0x88c] ss:$12 sps:$4 sm:$0xff]  }
  0x55   :  { %2133 = vmatprep.subr.bf16.mxu1 %v3094_v33  ;;  %v3163_v32 = vld [vmem:[%s4418_s1 + $0x694] ss:$12 sps:$4 sm:$0xff]  }
  0x56   :  { %v3166_v33 = vld [vmem:[%s4418_s1 + $0x814] ss:$12 sps:$4 sm:$0xff]  }
  0x57   :  { %2091 = vmatpush1.bf16.msra.mxu0 %v3089_v34  ;;  %v3161_v34 = vld [vmem:[%s4418_s1 + $0x690] ss:$12 sps:$4 sm:$0xff]  }
  0x58   :  { %2134 = vmatpush1.bf16.msra.mxu1 %v3092_v35  ;;  %2092 = vmatprep.subr.bf16.mxu0 %v3097_v36  ;;  %v3164_v35 = vld [vmem:[%s4418_s1 + $0x810] ss:$12 sps:$4 sm:$0xff]  }
  0x59   :  { %2135 = vmatprep.subr.bf16.mxu1 %v3100_v37  ;;  %v3169_v36 = vld [vmem:[%s4418_s1 + $0x67c] ss:$12 sps:$4 sm:$0xff]  }
  0x5a   :  { %v3172_v37 = vld [vmem:[%s4418_s1 + $0x7fc] ss:$12 sps:$4 sm:$0xff]  }
  0x5b   :  { %2093 = vmatpush1.bf16.msra.mxu0 %v3095_v38  ;;  %v30_v38 = vld [vmem:[%s4419_s0 + $0x48] sm:$0xff] }
  0x5c   :  { %2136 = vmatpush1.bf16.msra.mxu1 %v3098_v39  ;;  %2094 = vmatprep.subr.bf16.mxu0 %v3103_v43  ;;  %v42_v39 = vld [vmem:[%s4419_s0 + $0xa8] sm:$0x3]  ;;  %v3167_v43 = vld [vmem:[%s4418_s1 + $0x678] ss:$12 sps:$4 sm:$0xff]  }
  0x5d   :  { %2137 = vmatprep.subr.bf16.mxu1 %v3106_v44  ;;  %v3869_v40 = vpack.c.bf16 %v42_v39, %v30_v38  ;;  %v3170_v44 = vld [vmem:[%s4418_s1 + $0x7f8] ss:$12 sps:$4 sm:$0xff]  }
  0x5e   :  { %v3247_v38 = vld [vmem:[%s4418_s1 + $0x6c4] ss:$12 sps:$4 sm:$0xff]  }
  0x5f   :  { %2095 = vmatpush1.bf16.msra.mxu0 %v3101_v48  ;;  %v3175_v48 = vld [vmem:[%s4418_s1 + $0x664] ss:$12 sps:$4 sm:$0xff]  }
  0x60   :  { %2138 = vmatpush1.bf16.msra.mxu1 %v3104_v49  ;;  %2096 = vmatprep.subr.bf16.mxu0 %v3109_v50  ;;  %v3178_v49 = vld [vmem:[%s4418_s1 + $0x7e4] ss:$12 sps:$4 sm:$0xff]   ;;  %v3173_v50 = vld [vmem:[%s4418_s1 + $0x660] ss:$12 sps:$4 sm:$0xff]  }
  0x61   :  { %2139 = vmatprep.subr.bf16.mxu1 %v3112_v51  ;;  %v3176_v51 = vld [vmem:[%s4418_s1 + $0x7e0] ss:$12 sps:$4 sm:$0xff]   ;;  %v3250_v39 = vld [vmem:[%s4418_s1 + $0x844] ss:$12 sps:$4 sm:$0xff]  }
  0x63   :  { %2097 = vmatpush2.bf16.msra.mxu0 %v3107_v52  ;;  %v3181_v52 = vld [vmem:[%s4418_s1 + $0x64c] ss:$12 sps:$4 sm:$0xff]  }
  0x64   :  { %2140 = vmatpush2.bf16.msra.mxu1 %v3110_v55  ;;  %2098 = vmatprep.subr.bf16.mxu0 %v3115_v56  ;;  %v3184_v55 = vld [vmem:[%s4418_s1 + $0x7cc] ss:$12 sps:$4 sm:$0xff]   ;;  %v3179_v56 = vld [vmem:[%s4418_s1 + $0x648] ss:$12 sps:$4 sm:$0xff]  }
  0x65   :  { %2141 = vmatprep.subr.bf16.mxu1 %v3118_v57  ;;  %v3182_v57 = vld [vmem:[%s4418_s1 + $0x7c8] ss:$12 sps:$4 sm:$0xff]  }
  0x67   :  { %2099 = vmatpush2.bf16.msra.mxu0 %v3113_v58  ;;  %v3187_v58 = vld [vmem:[%s4418_s1 + $0x634] ss:$12 sps:$4 sm:$0xff]  }
  0x68   :  { %2142 = vmatpush2.bf16.msra.mxu1 %v3116_v59  ;;  %2100 = vmatprep.subr.bf16.mxu0 %v3121_v60  ;;  %v3190_v59 = vld [vmem:[%s4418_s1 + $0x7b4] ss:$12 sps:$4 sm:$0xff]   ;;  %v3185_v60 = vld [vmem:[%s4418_s1 + $0x630] ss:$12 sps:$4 sm:$0xff]  }
  0x69   :  { %2143 = vmatprep.subr.bf16.mxu1 %v3124_v61  ;;  %v3188_v61 = vld [vmem:[%s4418_s1 + $0x7b0] ss:$12 sps:$4 sm:$0xff]  }
  0x6b   :  { %2101 = vmatpush2.bf16.msra.mxu0 %v3119_v62  ;;  %v3193_v62 = vld [vmem:[%s4418_s1 + $0x61c] ss:$12 sps:$4 sm:$0xff]  }
  0x6c   :  { %2144 = vmatpush2.bf16.msra.mxu1 %v3122_v63  ;;  %2102 = vmatprep.subr.bf16.mxu0 %v3127_v0  ;;  %v3196_v63 = vld [vmem:[%s4418_s1 + $0x79c] ss:$12 sps:$4 sm:$0xff]   ;;  %v3191_v0 = vld [vmem:[%s4418_s1 + $0x618] ss:$12 sps:$4 sm:$0xff]  }
  0x6d   :  { %2145 = vmatprep.subr.bf16.mxu1 %v3130_v1  ;;  %v3194_v1 = vld [vmem:[%s4418_s1 + $0x798] ss:$12 sps:$4 sm:$0xff]  }
  0x6f   :  { %2103 = vmatpush2.bf16.msra.mxu0 %v3125_v2  ;;  %v3199_v2 = vld [vmem:[%s4418_s1 + $0x604] ss:$12 sps:$4 sm:$0xff]  }
  0x70   :  { %2146 = vmatpush2.bf16.msra.mxu1 %v3128_v3  ;;  %2104 = vmatprep.subr.bf16.mxu0 %v3133_v4  ;;  %v3202_v3 = vld [vmem:[%s4418_s1 + $0x784] ss:$12 sps:$4 sm:$0xff]   ;;  %v3197_v4 = vld [vmem:[%s4418_s1 + $0x600] ss:$12 sps:$4 sm:$0xff]  }
  0x71   :  { %2147 = vmatprep.subr.bf16.mxu1 %v3136_v5  ;;  %v3200_v5 = vld [vmem:[%s4418_s1 + $0x780] ss:$12 sps:$4 sm:$0xff]  }
  0x73   :  { %2105 = vmatpush2.bf16.msra.mxu0 %v3131_v6  ;;  %v3205_v6 = vld [vmem:[%s4418_s1 + $0x76c] ss:$12 sps:$4 sm:$0xff]  }
  0x74   :  { %2148 = vmatpush2.bf16.msra.mxu1 %v3134_v7  ;;  %2106 = vmatprep.subr.bf16.mxu0 %v3139_v8  ;;  %v3208_v7 = vld [vmem:[%s4418_s1 + $0x8ec] ss:$12 sps:$4 sm:$0xff]   ;;  %v3203_v8 = vld [vmem:[%s4418_s1 + $0x768] ss:$12 sps:$4 sm:$0xff]  }
  0x75   :  { %2149 = vmatprep.subr.bf16.mxu1 %v3142_v9  ;;  %v3206_v9 = vld [vmem:[%s4418_s1 + $0x8e8] ss:$12 sps:$4 sm:$0xff]  }
  0x77   :  { %2107 = vmatpush2.bf16.msra.mxu0 %v3137_v10  ;;  %v3211_v10 = vld [vmem:[%s4418_s1 + $0x754] ss:$12 sps:$4 sm:$0xff]  }
  0x78   :  { %2150 = vmatpush2.bf16.msra.mxu1 %v3140_v11  ;;  %2108 = vmatprep.subr.bf16.mxu0 %v3145_v14  ;;  %v3214_v11 = vld [vmem:[%s4418_s1 + $0x8d4] ss:$12 sps:$4 sm:$0xff]   ;;  %v3209_v14 = vld [vmem:[%s4418_s1 + $0x750] ss:$12 sps:$4 sm:$0xff]  }
  0x79   :  { %2151 = vmatprep.subr.bf16.mxu1 %v3148_v15  ;;  %v3212_v15 = vld [vmem:[%s4418_s1 + $0x8d0] ss:$12 sps:$4 sm:$0xff]  }
  0x7b   :  { %2109 = vmatpush2.bf16.msra.mxu0 %v3143_v16  ;;  %v3217_v16 = vld [vmem:[%s4418_s1 + $0x73c] ss:$12 sps:$4 sm:$0xff]  }
  0x7c   :  { %2152 = vmatpush2.bf16.msra.mxu1 %v3146_v17  ;;  %2110 = vmatprep.subr.bf16.mxu0 %v3151_v18  ;;  %v3220_v17 = vld [vmem:[%s4418_s1 + $0x8bc] ss:$12 sps:$4 sm:$0xff]   ;;  %v3215_v18 = vld [vmem:[%s4418_s1 + $0x738] ss:$12 sps:$4 sm:$0xff]  }
  0x7d   :  { %2153 = vmatprep.subr.bf16.mxu1 %v3154_v19  ;;  %v3218_v19 = vld [vmem:[%s4418_s1 + $0x8b8] ss:$12 sps:$4 sm:$0xff]  }
  0x7f   :  { %2111 = vmatpush2.bf16.msra.mxu0 %v3149_v20  ;;  %v3223_v20 = vld [vmem:[%s4418_s1 + $0x724] ss:$12 sps:$4 sm:$0xff]  }
  0x80   :  { %2154 = vmatpush2.bf16.msra.mxu1 %v3152_v21  ;;  %2166 = vmatprep.subr.bf16.mxu0 %v3157_v26  ;;  %v3226_v21 = vld [vmem:[%s4418_s1 + $0x8a4] ss:$12 sps:$4 sm:$0xff]   ;;  %v3227_v26 = vld [vmem:[%s4418_s1 + $0x708] ss:$12 sps:$4 sm:$0xff]  }
  0x81   :  { %2209 = vmatprep.subr.bf16.mxu1 %v3160_v27  ;;  %v3230_v27 = vld [vmem:[%s4418_s1 + $0x888] ss:$12 sps:$4 sm:$0xff]  }
  0x82   :  { %2113 = vmatmul.mubr.bf16.vlgmr.msra.gmra.mxu0 %v3833_v28 }
  0x83   :  { %2156 = vmatmul.mubr.bf16.vlgmr.msra.gmra.mxu1 %v3835_v29  ;;  %2167 = vmatpush1.bf16.msra.mxu0 %v3155_v30  ;;  %v3235_v30 = vld [vmem:[%s4418_s1 + $0x6f4] ss:$12 sps:$4 sm:$0xff]  }
  0x84   :  { %2210 = vmatpush1.bf16.msra.mxu1 %v3158_v31  ;;  %2168 = vmatprep.subr.bf16.mxu0 %v3163_v32  ;;  %v3238_v31 = vld [vmem:[%s4418_s1 + $0x874] ss:$12 sps:$4 sm:$0xff]   ;;  %v3233_v32 = vld [vmem:[%s4418_s1 + $0x6f0] ss:$12 sps:$4 sm:$0xff]  }
  0x85   :  { %2211 = vmatprep.subr.bf16.mxu1 %v3166_v33  ;;  %2198 = vmatprep.mubr.bf16.mxu0 %v3869_v40  ;;  %v3236_v33 = vld [vmem:[%s4418_s1 + $0x870] ss:$12 sps:$4 sm:$0xff]  }
  0x86   :  { %2241 = vmatprep.mubr.bf16.mxu1 %v3883_v46 }
  0x87   :  { %2169 = vmatpush1.bf16.msra.mxu0 %v3161_v34  ;;  %v3241_v34 = vld [vmem:[%s4418_s1 + $0x6dc] ss:$12 sps:$4 sm:$0xff]  }
  0x88   :  { %2212 = vmatpush1.bf16.msra.mxu1 %v3164_v35  ;;  %2170 = vmatprep.subr.bf16.mxu0 %v3169_v36  ;;  %v3244_v35 = vld [vmem:[%s4418_s1 + $0x85c] ss:$12 sps:$4 sm:$0xff]   ;;  %v3239_v36 = vld [vmem:[%s4418_s1 + $0x6d8] ss:$12 sps:$4 sm:$0xff]  }
  0x89   :  { %2213 = vmatprep.subr.bf16.mxu1 %v3172_v37  ;;  %v3242_v37 = vld [vmem:[%s4418_s1 + $0x858] ss:$12 sps:$4 sm:$0xff]  }
  0x8b   :  { %2171 = vmatpush1.bf16.msra.mxu0 %v3167_v43  ;;  %v29_v43 = vld [vmem:[%s4419_s0 + $0x40] sm:$0xff] }
  0x8c   :  { %2214 = vmatpush1.bf16.msra.mxu1 %v3170_v44  ;;  %2172 = vmatprep.subr.bf16.mxu0 %v3175_v48  ;;  %v41_v44 = vld [vmem:[%s4419_s0 + $0xa0] sm:$0x3]  ;;  %v31_v48 = vld [vmem:[%s4419_s0 + $0x50] sm:$0xff] }
  0x8d   :  { %2215 = vmatprep.subr.bf16.mxu1 %v3178_v49  ;;  %v43_v49 = vld [vmem:[%s4419_s0 + $0xb0] sm:$0x3] }
  0x8f   :  { %2173 = vmatpush1.bf16.msra.mxu0 %v3173_v50  ;;  %v3251_v50 = vld [vmem:[%s4418_s1 + $0x170] ss:$12 sps:$4 sm:$0xff]  }
  0x90   :  { %2216 = vmatpush1.bf16.msra.mxu1 %v3176_v51  ;;  %2174 = vmatprep.subr.bf16.mxu0 %v3181_v52  ;;  %v3252_v51 = vld [vmem:[%s4418_s1 + $0x2f0] ss:$12 sps:$4 sm:$0xff]  }
  0x91   :  { %2217 = vmatprep.subr.bf16.mxu1 %v3184_v55  ;;  %v3253_v52 = vld [vmem:[%s4418_s1 + $0xb0] ss:$12 sps:$4 sm:$0xff]   ;;  %v4064_v55 = vpack.c.bf16 %v41_v44, %v29_v43  ;;  %v3305_v43 = vld [vmem:[%s4418_s1 + $0x338] ss:$12 sps:$4 sm:$0xff]  }
  0x92   :  { %v3306_v44 = vld [vmem:[%s4418_s1 + $0x4b8] ss:$12 sps:$4 sm:$0xff]  }
  0x93   :  { %2175 = vmatpush1.bf16.msra.mxu0 %v3179_v56  ;;  %v4066_v56 = vpack.c.bf16 %v43_v49, %v31_v48  ;;  %v3307_v48 = vld [vmem:[%s4418_s1 + $0x3e0] ss:$12 sps:$4 sm:$0xff]  }
  0x94   :  { %2218 = vmatpush1.bf16.msra.mxu1 %v3182_v57  ;;  %2176 = vmatprep.subr.bf16.mxu0 %v3187_v58  ;;  %v3254_v57 = vld [vmem:[%s4418_s1 + $0x230] ss:$12 sps:$4 sm:$0xff]   ;;  %v3255_v58 = vld [vmem:[%s4418_s1 + $0x158] ss:$12 sps:$4 sm:$0xff]   ;;  %v3308_v49 = vld [vmem:[%s4418_s1 + $0x560] ss:$12 sps:$4 sm:$0xff]  }
  0x95   :  { %2219 = vmatprep.subr.bf16.mxu1 %v3190_v59  ;;  %v3256_v59 = vld [vmem:[%s4418_s1 + $0x2d8] ss:$12 sps:$4 sm:$0xff]  }
  0x97   :  { %2177 = vmatpush1.bf16.msra.mxu0 %v3185_v60  ;;  %v3257_v60 = vld [vmem:[%s4418_s1 + $0x98] ss:$12 sps:$4 sm:$0xff]  }
  0x98   :  { %2220 = vmatpush1.bf16.msra.mxu1 %v3188_v61  ;;  %2178 = vmatprep.subr.bf16.mxu0 %v3193_v62  ;;  %v3258_v61 = vld [vmem:[%s4418_s1 + $0x218] ss:$12 sps:$4 sm:$0xff]   ;;  %v3259_v62 = vld [vmem:[%s4418_s1 + $0x140] ss:$12 sps:$4 sm:$0xff]  }
  0x99   :  { %2221 = vmatprep.subr.bf16.mxu1 %v3196_v63  ;;  %v3260_v63 = vld [vmem:[%s4418_s1 + $0x2c0] ss:$12 sps:$4 sm:$0xff]  }
  0x9b   :  { %2179 = vmatpush1.bf16.msra.mxu0 %v3191_v0  ;;  %v3261_v0 = vld [vmem:[%s4418_s1 + $0x80] ss:$12 sps:$4 sm:$0xff]  }
  0x9c   :  { %2222 = vmatpush1.bf16.msra.mxu1 %v3194_v1  ;;  %2180 = vmatprep.subr.bf16.mxu0 %v3199_v2  ;;  %v3262_v1 = vld [vmem:[%s4418_s1 + $0x200] ss:$12 sps:$4 sm:$0xff]   ;;  %v3263_v2 = vld [vmem:[%s4418_s1 + $0x128] ss:$12 sps:$4 sm:$0xff]  }
  0x9d   :  { %2223 = vmatprep.subr.bf16.mxu1 %v3202_v3  ;;  %v3264_v3 = vld [vmem:[%s4418_s1 + $0x2a8] ss:$12 sps:$4 sm:$0xff]  }
  0x9f   :  { %2181 = vmatpush1.bf16.msra.mxu0 %v3197_v4  ;;  %v3267_v4 = vld [vmem:[%s4418_s1 + $0x110] ss:$12 sps:$4 sm:$0xff]  }
  0xa0   :  { %2224 = vmatpush1.bf16.msra.mxu1 %v3200_v5  ;;  %2182 = vmatprep.subr.bf16.mxu0 %v3205_v6  ;;  %v3268_v5 = vld [vmem:[%s4418_s1 + $0x290] ss:$12 sps:$4 sm:$0xff]  }
  0xa1   :  { %2225 = vmatprep.subr.bf16.mxu1 %v3208_v7  ;;  %v3269_v6 = vld [vmem:[%s4418_s1 + $0x50] ss:$12 sps:$4 sm:$0xff]  }
  0xa2   :  { %v3270_v7 = vld [vmem:[%s4418_s1 + $0x1d0] ss:$12 sps:$4 sm:$0xff]  }
  0xa3   :  { %2183 = vmatpush2.bf16.msra.mxu0 %v3203_v8  ;;  %v3271_v8 = vld [vmem:[%s4418_s1 + $0xf8] ss:$12 sps:$4 sm:$0xff]  }
  0xa4   :  { %2226 = vmatpush2.bf16.msra.mxu1 %v3206_v9  ;;  %2184 = vmatprep.subr.bf16.mxu0 %v3211_v10  ;;  %v3272_v9 = vld [vmem:[%s4418_s1 + $0x278] ss:$12 sps:$4 sm:$0xff]  }
  0xa5   :  { %2227 = vmatprep.subr.bf16.mxu1 %v3214_v11  ;;  %v3273_v10 = vld [vmem:[%s4418_s1 + $0x38] ss:$12 sps:$4 sm:$0xff]  }
  0xa6   :  { %v3274_v11 = vld [vmem:[%s4418_s1 + $0x1b8] ss:$12 sps:$4 sm:$0xff]  }
  0xa7   :  { %2185 = vmatpush2.bf16.msra.mxu0 %v3209_v14  ;;  %v3275_v14 = vld [vmem:[%s4418_s1 + $0xe0] ss:$12 sps:$4 sm:$0xff]  }
  0xa8   :  { %2228 = vmatpush2.bf16.msra.mxu1 %v3212_v15  ;;  %2186 = vmatprep.subr.bf16.mxu0 %v3217_v16  ;;  %v3276_v15 = vld [vmem:[%s4418_s1 + $0x260] ss:$12 sps:$4 sm:$0xff]  }
  0xa9   :  { %2229 = vmatprep.subr.bf16.mxu1 %v3220_v17  ;;  %v3277_v16 = vld [vmem:[%s4418_s1 + $0x20] ss:$12 sps:$4 sm:$0xff]  }
  0xaa   :  { %v3278_v17 = vld [vmem:[%s4418_s1 + $0x1a0] ss:$12 sps:$4 sm:$0xff]  }
  0xab   :  { %2187 = vmatpush2.bf16.msra.mxu0 %v3215_v18  ;;  %v3279_v18 = vld [vmem:[%s4418_s1 + $0xc8] ss:$12 sps:$4 sm:$0xff]  }
  0xac   :  { %2230 = vmatpush2.bf16.msra.mxu1 %v3218_v19  ;;  %2188 = vmatprep.subr.bf16.mxu0 %v3223_v20  ;;  %v3280_v19 = vld [vmem:[%s4418_s1 + $0x248] ss:$12 sps:$4 sm:$0xff]  }
  0xad   :  { %2231 = vmatprep.subr.bf16.mxu1 %v3226_v21  ;;  %v3281_v20 = vld [vmem:[%s4418_s1 + $0x8] ss:$12 sps:$4 sm:$0xff]  }
  0xae   :  { %v3282_v21 = vld [vmem:[%s4418_s1 + $0x188] ss:$12 sps:$4 sm:$0xff]  }
  0xaf   :  { %2189 = vmatpush2.bf16.msra.mxu0 %v3221_v22  ;;  %v3283_v22 = vld [vmem:[%s4418_s1 + $0x470] ss:$12 sps:$4 sm:$0xff]  }
  0xb0   :  { %2232 = vmatpush2.bf16.msra.mxu1 %v3224_v23  ;;  %2190 = vmatprep.subr.bf16.mxu0 %v3229_v24  ;;  %v3284_v23 = vld [vmem:[%s4418_s1 + $0x5f0] ss:$12 sps:$4 sm:$0xff]  }
  0xb1   :  { %2233 = vmatprep.subr.bf16.mxu1 %v3232_v25  ;;  %v3285_v24 = vld [vmem:[%s4418_s1 + $0x3b0] ss:$12 sps:$4 sm:$0xff]  }
  0xb2   :  { %v3286_v25 = vld [vmem:[%s4418_s1 + $0x530] ss:$12 sps:$4 sm:$0xff]  }
  0xb3   :  { %2191 = vmatpush2.bf16.msra.mxu0 %v3227_v26  ;;  %v3287_v26 = vld [vmem:[%s4418_s1 + $0x458] ss:$12 sps:$4 sm:$0xff]  }
  0xb4   :  { %2234 = vmatpush2.bf16.msra.mxu1 %v3230_v27  ;;  %2192 = vmatprep.subr.bf16.mxu0 %v3235_v30  ;;  %v3288_v27 = vld [vmem:[%s4418_s1 + $0x5d8] ss:$12 sps:$4 sm:$0xff]  }
  0xb5   :  { %2235 = vmatprep.subr.bf16.mxu1 %v3238_v31  ;;  %v3289_v30 = vld [vmem:[%s4418_s1 + $0x398] ss:$12 sps:$4 sm:$0xff]  }
  0xb6   :  { %v3290_v31 = vld [vmem:[%s4418_s1 + $0x518] ss:$12 sps:$4 sm:$0xff]  }
  0xb7   :  { %2193 = vmatpush2.bf16.msra.mxu0 %v3233_v32  ;;  %v3291_v32 = vld [vmem:[%s4418_s1 + $0x440] ss:$12 sps:$4 sm:$0xff]  }
  0xb8   :  { %2236 = vmatpush2.bf16.msra.mxu1 %v3236_v33  ;;  %2194 = vmatprep.subr.bf16.mxu0 %v3241_v34  ;;  %v3292_v33 = vld [vmem:[%s4418_s1 + $0x5c0] ss:$12 sps:$4 sm:$0xff]   ;;  %v3295_v34 = vld [vmem:[%s4418_s1 + $0x428] ss:$12 sps:$4 sm:$0xff]  }
  0xb9   :  { %2237 = vmatprep.subr.bf16.mxu1 %v3244_v35  ;;  %v3298_v35 = vld [vmem:[%s4418_s1 + $0x4e8] ss:$12 sps:$4 sm:$0xff]  }
  0xbb   :  { %2195 = vmatpush2.bf16.msra.mxu0 %v3239_v36  ;;  %v3299_v36 = vld [vmem:[%s4418_s1 + $0x410] ss:$12 sps:$4 sm:$0xff]  }
  0xbc   :  { %2238 = vmatpush2.bf16.msra.mxu1 %v3242_v37  ;;  %2196 = vmatprep.subr.bf16.mxu0 %v3247_v38  ;;  %v3300_v37 = vld [vmem:[%s4418_s1 + $0x590] ss:$12 sps:$4 sm:$0xff]  }
  0xbd   :  { %2239 = vmatprep.subr.bf16.mxu1 %v3250_v39  ;;  %v3301_v38 = vld [vmem:[%s4418_s1 + $0x350] ss:$12 sps:$4 sm:$0xff]  }
  0xbe   :  { %v3302_v39 = vld [vmem:[%s4418_s1 + $0x4d0] ss:$12 sps:$4 sm:$0xff]  }
  0xbf   :  { %2197 = vmatpush2.bf16.msra.mxu0 %v3245_v41  ;;  %v3303_v41 = vld [vmem:[%s4418_s1 + $0x3f8] ss:$12 sps:$4 sm:$0xff]  }
  0xc0   :  { %2240 = vmatpush2.bf16.msra.mxu1 %v3248_v42  ;;  %2831 = vmatprep.subr.bf16.mxu0 %v3251_v50  ;;  %v3304_v42 = vld [vmem:[%s4418_s1 + $0x578] ss:$12 sps:$4 sm:$0xff]   ;;  %v3309_v50 = vld [vmem:[%s4418_s1 + $0x320] ss:$12 sps:$4 sm:$0xff]  }
  0xc1   :  { %2853 = vmatprep.subr.bf16.mxu1 %v3252_v51  ;;  %v3310_v51 = vld [vmem:[%s4418_s1 + $0x4a0] ss:$12 sps:$4 sm:$0xff]  }
  0xc2   :  { %2199 = vmatmul.mubr.bf16.vlgmr.msra.gmra.mxu0 %v4064_v55 }
  0xc3   :  { %2242 = vmatmul.mubr.bf16.vlgmr.msra.gmra.mxu1 %v4066_v56  ;;  %2832 = vmatpush3.bf16.msra.mxu0 %v3253_v52  ;;  %v3311_v52 = vld [vmem:[%s4418_s1 + $0x3c8] ss:$12 sps:$4 sm:$0xff]  }
  0xc4   :  { %2854 = vmatpush3.bf16.msra.mxu1 %v3254_v57  ;;  %2833 = vmatprep.subr.bf16.mxu0 %v3255_v58  ;;  %v3312_v57 = vld [vmem:[%s4418_s1 + $0x548] ss:$12 sps:$4 sm:$0xff]  }
  0xc5   :  { %2855 = vmatprep.subr.bf16.mxu1 %v3256_v59  ;;  %2284 = vmatprep.mubr.bf16.mxu0 %v3536_v53  ;;  %v3265_v53 = vld [vmem:[%s4418_s1 + $0x68] ss:$12 sps:$4 sm:$0xff]  }
  0xc6   :  { %2325 = vmatprep.mubr.bf16.mxu1 %v3538_v54  ;;  %v3266_v54 = vld [vmem:[%s4418_s1 + $0x1e8] ss:$12 sps:$4 sm:$0xff]  }
  0xc7   :  { %2834 = vmatpush3.bf16.msra.mxu0 %v3257_v60  ;;  %v3313_v58 = vld [vmem:[%s4418_s1 + $0x308] ss:$12 sps:$4 sm:$0xff]   ;;  %v3315_v60 = vld [vmem:[%s4418_s1 + $0x770] ss:$12 sps:$4 sm:$0xff]  }
  0xc8   :  { %2856 = vmatpush3.bf16.msra.mxu1 %v3258_v61  ;;  %2835 = vmatprep.subr.bf16.mxu0 %v3259_v62  ;;  %v3314_v59 = vld [vmem:[%s4418_s1 + $0x488] ss:$12 sps:$4 sm:$0xff]   ;;  %v3316_v61 = vld [vmem:[%s4418_s1 + $0x8f0] ss:$12 sps:$4 sm:$0xff]  }
  0xc9   :  { %2857 = vmatprep.subr.bf16.mxu1 %v3260_v63  ;;  %v3317_v62 = vld [vmem:[%s4418_s1 + $0x6b0] ss:$12 sps:$4 sm:$0xff]  }
  0xca   :  { %v3318_v63 = vld [vmem:[%s4418_s1 + $0x830] ss:$12 sps:$4 sm:$0xff]  }
  0xcb   :  { %2836 = vmatpush3.bf16.msra.mxu0 %v3261_v0  ;;  %v3319_v0 = vld [vmem:[%s4418_s1 + $0x758] ss:$12 sps:$4 sm:$0xff]  }
  0xcc   :  { %2858 = vmatpush3.bf16.msra.mxu1 %v3262_v1  ;;  %2837 = vmatprep.subr.bf16.mxu0 %v3263_v2  ;;  %v3320_v1 = vld [vmem:[%s4418_s1 + $0x8d8] ss:$12 sps:$4 sm:$0xff]  }
  0xcd   :  { %2859 = vmatprep.subr.bf16.mxu1 %v3264_v3  ;;  %v3321_v2 = vld [vmem:[%s4418_s1 + $0x698] ss:$12 sps:$4 sm:$0xff]  }
  0xce   :  { %v3322_v3 = vld [vmem:[%s4418_s1 + $0x818] ss:$12 sps:$4 sm:$0xff]  }
  0xcf   :  { %2838 = vmatpush3.bf16.msra.mxu0 %v3265_v53  ;;  %v3323_v53 = vld [vmem:[%s4418_s1 + $0x740] ss:$12 sps:$4 sm:$0xff]  }
  0xd0   :  { %2860 = vmatpush3.bf16.msra.mxu1 %v3266_v54  ;;  %2839 = vmatprep.subr.bf16.mxu0 %v3267_v4  ;;  %v3326_v54 = vld [vmem:[%s4418_s1 + $0x800] ss:$12 sps:$4 sm:$0xff]   ;;  %v3327_v4 = vld [vmem:[%s4418_s1 + $0x728] ss:$12 sps:$4 sm:$0xff]  }
  0xd1   :  { %2861 = vmatprep.subr.bf16.mxu1 %v3268_v5  ;;  %v3330_v5 = vld [vmem:[%s4418_s1 + $0x7e8] ss:$12 sps:$4 sm:$0xff]  }
  0xd3   :  { %2840 = vmatpush3.bf16.msra.mxu0 %v3269_v6  ;;  %v3331_v6 = vld [vmem:[%s4418_s1 + $0x710] ss:$12 sps:$4 sm:$0xff]  }
  0xd4   :  { %2862 = vmatpush3.bf16.msra.mxu1 %v3270_v7  ;;  %2841 = vmatprep.subr.bf16.mxu0 %v3271_v8  ;;  %v3332_v7 = vld [vmem:[%s4418_s1 + $0x890] ss:$12 sps:$4 sm:$0xff]  }
  0xd5   :  { %2863 = vmatprep.subr.bf16.mxu1 %v3272_v9  ;;  %v3333_v8 = vld [vmem:[%s4418_s1 + $0x650] ss:$12 sps:$4 sm:$0xff]  }
  0xd6   :  { %v3334_v9 = vld [vmem:[%s4418_s1 + $0x7d0] ss:$12 sps:$4 sm:$0xff]  }
  0xd7   :  { %2842 = vmatpush3.bf16.msra.mxu0 %v3273_v10  ;;  %v3335_v10 = vld [vmem:[%s4418_s1 + $0x6f8] ss:$12 sps:$4 sm:$0xff]  }
  0xd8   :  { %2864 = vmatpush3.bf16.msra.mxu1 %v3274_v11  ;;  %2843 = vmatprep.subr.bf16.mxu0 %v3275_v14  ;;  %v3336_v11 = vld [vmem:[%s4418_s1 + $0x878] ss:$12 sps:$4 sm:$0xff]  }
  0xd9   :  { %2865 = vmatprep.subr.bf16.mxu1 %v3276_v15  ;;  %v3337_v14 = vld [vmem:[%s4418_s1 + $0x638] ss:$12 sps:$4 sm:$0xff]  }
  0xda   :  { %v3338_v15 = vld [vmem:[%s4418_s1 + $0x7b8] ss:$12 sps:$4 sm:$0xff]  }
  0xdb   :  { %2844 = vmatpush3.bf16.msra.mxu0 %v3277_v16  ;;  %v3339_v16 = vld [vmem:[%s4418_s1 + $0x6e0] ss:$12 sps:$4 sm:$0xff]  }
  0xdc   :  { %2866 = vmatpush3.bf16.msra.mxu1 %v3278_v17  ;;  %2845 = vmatprep.subr.bf16.mxu0 %v3279_v18  ;;  %v3340_v17 = vld [vmem:[%s4418_s1 + $0x860] ss:$12 sps:$4 sm:$0xff]  }
  0xdd   :  { %2867 = vmatprep.subr.bf16.mxu1 %v3280_v19  ;;  %v3341_v18 = vld [vmem:[%s4418_s1 + $0x620] ss:$12 sps:$4 sm:$0xff]  }
  0xde   :  { %v3342_v19 = vld [vmem:[%s4418_s1 + $0x7a0] ss:$12 sps:$4 sm:$0xff]  }
  0xdf   :  { %2846 = vmatpush3.bf16.msra.mxu0 %v3281_v20  ;;  %v3343_v20 = vld [vmem:[%s4418_s1 + $0x6c8] ss:$12 sps:$4 sm:$0xff]  }
  0xe0   :  { %2868 = vmatpush3.bf16.msra.mxu1 %v3282_v21  ;;  %2875 = vmatprep.subr.bf16.mxu0 %v3283_v22  ;;  %v3344_v21 = vld [vmem:[%s4418_s1 + $0x848] ss:$12 sps:$4 sm:$0xff]  }
  0xe1   :  { %2897 = vmatprep.subr.bf16.mxu1 %v3284_v23  ;;  %v3345_v22 = vld [vmem:[%s4418_s1 + $0x608] ss:$12 sps:$4 sm:$0xff]  }
  0xe2   :  { %2285 = vmatmul.mubr.bf16.vlgmr.msra.gmra.mxu0 %v3605_v12  ;;  %v3293_v12 = vld [vmem:[%s4418_s1 + $0x380] ss:$12 sps:$4 sm:$0xff]   ;;  %v3346_v23 = vld [vmem:[%s4418_s1 + $0x788] ss:$12 sps:$4 sm:$0xff]  }
  0xe3   :  { %2326 = vmatmul.mubr.bf16.vlgmr.msra.gmra.mxu1 %v3607_v13  ;;  %2876 = vmatpush3.bf16.msra.mxu0 %v3285_v24  ;;  %v3294_v13 = vld [vmem:[%s4418_s1 + $0x500] ss:$12 sps:$4 sm:$0xff]  }
  0xe4   :  { %2898 = vmatpush3.bf16.msra.mxu1 %v3286_v25  ;;  %2877 = vmatprep.subr.bf16.mxu0 %v3287_v26  ;;  %v443_v26 = vlaneseq }
  0xe5   :  { %2899 = vmatprep.subr.bf16.mxu1 %v3288_v27  ;;  %2366 = vmatprep.mubr.bf16.mxu0 %v3704_v45  ;;  %v3296_v45 = vld [vmem:[%s4418_s1 + $0x5a8] ss:$12 sps:$4 sm:$0xff]  }
  0xe6   :  { %2407 = vmatprep.mubr.bf16.mxu1 %v3709_v47  ;;  %v3297_v47 = vld [vmem:[%s4418_s1 + $0x368] ss:$12 sps:$4 sm:$0xff]  }
  0xe7   :  { %2878 = vmatpush3.bf16.msra.mxu0 %v3289_v30 }
  0xe8   :  { %2900 = vmatpush3.bf16.msra.mxu1 %v3290_v31  ;;  %2879 = vmatprep.subr.bf16.mxu0 %v3291_v32  ;;  %v4361_v31 = vshrl.u32 %v443_v26, 7  ;;  %v2502_v26 = vld [vmem:[%s4422_s4 + $0x20] sm:$0x3] }
  0xe9   :  { %2901 = vmatprep.subr.bf16.mxu1 %v3292_v33 }
  0xeb   :  { %2880 = vmatpush3.bf16.msra.mxu0 %v3293_v12  ;;  %v445_v12 = vsub.s32 0, %v4361_v31 }
  0xec   :  { %2902 = vmatpush3.bf16.msra.mxu1 %v3294_v13  ;;  %2881 = vmatprep.subr.bf16.mxu0 %v3295_v34  ;;  %v4367_v13 = vld [vmem:[%s4420_s2] sm:$0x7] }
  0xed   :  { %2903 = vmatprep.subr.bf16.mxu1 %v3296_v45  ;;  %v446_v45 = vrot.slane %v4367_v13, %v445_v12 }
  0xef   :  { %2882 = vmatpush3.bf16.msra.mxu0 %v3297_v47 }
  0xf0   :  { %2904 = vmatpush3.bf16.msra.mxu1 %v3298_v35  ;;  %2883 = vmatprep.subr.bf16.mxu0 %v3299_v36 }
  0xf1   :  { %2905 = vmatprep.subr.bf16.mxu1 %v3300_v37 }
  0xf3   :  { %2884 = vmatpush3.bf16.msra.mxu0 %v3301_v38 }
  0xf4   :  { %2906 = vmatpush3.bf16.msra.mxu1 %v3302_v39  ;;  %2885 = vmatprep.subr.bf16.mxu0 %v3303_v41 }
  0xf5   :  { %2907 = vmatprep.subr.bf16.mxu1 %v3304_v42 }
  0xf7   :  { %2886 = vmatpush3.bf16.msra.mxu0 %v3305_v43 }
  0xf8   :  { %2908 = vmatpush3.bf16.msra.mxu1 %v3306_v44  ;;  %2887 = vmatprep.subr.bf16.mxu0 %v3307_v48 }
  0xf9   :  { %2909 = vmatprep.subr.bf16.mxu1 %v3308_v49 }
  0xfb   :  { %2888 = vmatpush3.bf16.msra.mxu0 %v3309_v50 }
  0xfc   :  { %2910 = vmatpush3.bf16.msra.mxu1 %v3310_v51  ;;  %2889 = vmatprep.subr.bf16.mxu0 %v3311_v52 }
  0xfd   :  { %2911 = vmatprep.subr.bf16.mxu1 %v3312_v57 }
  0xff   :  { %2890 = vmatpush3.bf16.msra.mxu0 %v3313_v58 }
 0x100   :  { %2912 = vmatpush3.bf16.msra.mxu1 %v3314_v59  ;;  %2919 = vmatprep.subr.bf16.mxu0 %v3315_v60  ;;  %v4375_v60 = vld [vmem:[%s4421_s3] sm:$0x7] }
 0x101   :  { %2941 = vmatprep.subr.bf16.mxu1 %v3316_v61 }
 0x102   :  { %2367 = vmatmul.mubr.bf16.vlgmr.msra.gmra.mxu0 %v3833_v28  ;;  %v3324_v28 = vld [vmem:[%s4418_s1 + $0x8c0] ss:$12 sps:$4 sm:$0xff]   ;;  %v2028_v24 = vpop.f32.mrf.mxu0 }
 0x103   :  { %2408 = vmatmul.mubr.bf16.vlgmr.msra.gmra.mxu1 %v3835_v29  ;;  %2920 = vmatpush3.bf16.msra.mxu0 %v3317_v62  ;;  %v3325_v29 = vld [vmem:[%s4418_s1 + $0x680] ss:$12 sps:$4 sm:$0xff]   ;;  %v2071_v25 = vpop.f32.mrf.mxu1  ;;  %v2029_v37 = vadd.f32 %v2028_v24, %v446_v45 }
 0x104   :  { %2942 = vmatpush3.bf16.msra.mxu1 %v3318_v63  ;;  %2921 = vmatprep.subr.bf16.mxu0 %v3319_v0  ;;  %v2030_v27 = vpop.f32.mrf.mxu0 }
 0x105   :  { %2943 = vmatprep.subr.bf16.mxu1 %v3320_v1  ;;  %2448 = vmatprep.mubr.bf16.mxu0 %v3869_v40  ;;  %v3328_v40 = vld [vmem:[%s4418_s1 + $0x8a8] ss:$12 sps:$4 sm:$0xff]   ;;  %v2073_v30 = vpop.f32.mrf.mxu1  ;;  %v2072_v42 = vadd.f32 %v2071_v25, %v2029_v37  ;;  %v453_v37 = vsub.s32 2, %v4361_v31 }
 0x106   :  { %2489 = vmatprep.mubr.bf16.mxu1 %v3883_v46  ;;  %v3329_v46 = vld [vmem:[%s4418_s1 + $0x668] ss:$12 sps:$4 sm:$0xff]   ;;  %v2032_v32 = vpop.f32.mrf.mxu0 }
 0x107   :  { %2922 = vmatpush3.bf16.msra.mxu0 %v3321_v2  ;;  %v2075_v33 = vpop.f32.mrf.mxu1  ;;  %v2033_v43 = vadd.f32 %v2032_v32, %v446_v45 }
 0x108   :  { %2944 = vmatpush3.bf16.msra.mxu1 %v3322_v3  ;;  %2923 = vmatprep.subr.bf16.mxu0 %v3323_v53  ;;  %v2034_v34 = vpop.f32.mrf.mxu0 }
 0x109   :  { %2945 = vmatprep.subr.bf16.mxu1 %v3324_v28  ;;  %v2076_v52 = vadd.f32 %v2075_v33, %v2033_v43  ;;  %v2509_v28 = vrot.slane %v4375_v60, %v445_v12 }
 0x10b   :  { %2924 = vmatpush3.bf16.msra.mxu0 %v3325_v29 }
 0x10c   :  { %2946 = vmatpush3.bf16.msra.mxu1 %v3326_v54  ;;  %2925 = vmatprep.subr.bf16.mxu0 %v3327_v4 }
 0x10d   :  { %2947 = vmatprep.subr.bf16.mxu1 %v3328_v40 }
 0x10f   :  { %2926 = vmatpush3.bf16.msra.mxu0 %v3329_v46 }
 0x110   :  { %2948 = vmatpush3.bf16.msra.mxu1 %v3330_v5  ;;  %2927 = vmatprep.subr.bf16.mxu0 %v3331_v6  ;;  %v2498_v6 = vld [vmem:[%s4422_s4] sm:$0xff] }
 0x111   :  { %2949 = vmatprep.subr.bf16.mxu1 %v3332_v7 }
 0x113   :  { %2928 = vmatpush3.bf16.msra.mxu0 %v3333_v8 }
 0x114   :  { %2950 = vmatpush3.bf16.msra.mxu1 %v3334_v9  ;;  %2929 = vmatprep.subr.bf16.mxu0 %v3335_v10 }
 0x115   :  { %2951 = vmatprep.subr.bf16.mxu1 %v3336_v11 }
 0x117   :  { %2930 = vmatpush3.bf16.msra.mxu0 %v3337_v14 }
 0x118   :  { %2952 = vmatpush3.bf16.msra.mxu1 %v3338_v15  ;;  %2931 = vmatprep.subr.bf16.mxu0 %v3339_v16  ;;  %v2499_v15 = vld [vmem:[%s4422_s4 + $0x8] sm:$0xff] }
 0x119   :  { %2953 = vmatprep.subr.bf16.mxu1 %v3340_v17 }
 0x11b   :  { %2932 = vmatpush3.bf16.msra.mxu0 %v3341_v18 }
 0x11c   :  { %2954 = vmatpush3.bf16.msra.mxu1 %v3342_v19  ;;  %2933 = vmatprep.subr.bf16.mxu0 %v3343_v20 }
 0x11d   :  { %2955 = vmatprep.subr.bf16.mxu1 %v3344_v21  ;;  %v2501_v21 = vld [vmem:[%s4422_s4 + $0x18] sm:$0x3] }
 0x11f   :  { %2934 = vmatpush3.bf16.msra.mxu0 %v3345_v22 }
 0x120   :  { %2956 = vmatpush3.bf16.msra.mxu1 %v3346_v23 }
 0x122   :  { %2449 = vmatmul.mubr.bf16.vlgmr.msra.gmra.mxu0 %v4064_v55  ;;  %v449_v55 = vsub.s32 1, %v4361_v31 }
 0x123   :  { %2490 = vmatmul.mubr.bf16.vlgmr.msra.gmra.mxu1 %v4066_v56  ;;  %v2077_v56 = vpop.f32.mrf.mxu1 }
 0x124   :  { %v450_v36 = vrot.slane %v4367_v13, %v449_v55  ;;  %v2513_v5 = vrot.slane %v4375_v60, %v449_v55 }
 0x126   :  { %v2031_v41 = vadd.f32 %v2030_v27, %v450_v36  ;;  %v2035_v50 = vadd.f32 %v2034_v34, %v450_v36 }
 0x128   :  { %v2074_v49 = vadd.f32 %v2073_v30, %v2031_v41  ;;  %v2078_v61 = vadd.f32 %v2077_v56, %v2035_v50  ;;  %v454_v41 = vrot.slane %v4367_v13, %v453_v37 }
 0x142   :  { %v2114_v47 = vpop.f32.mrf.mxu0 }
 0x143   :  { %v2157_v35 = vpop.f32.mrf.mxu1  ;;  %v2115_v51 = vadd.f32 %v2114_v47, %v2072_v42 }
 0x144   :  { %v2116_v38 = vpop.f32.mrf.mxu0 }
 0x145   :  { %v2159_v39 = vpop.f32.mrf.mxu1  ;;  %v2117_v57 = vadd.f32 %v2116_v38, %v2074_v49  ;;  %v2158_v62 = vadd.f32 %v2157_v35, %v2115_v51 }
 0x146   :  { %v2118_v44 = vpop.f32.mrf.mxu0 }
 0x147   :  { %v2161_v48 = vpop.f32.mrf.mxu1  ;;  %v2119_v63 = vadd.f32 %v2118_v44, %v2076_v52  ;;  %v2160_v2 = vadd.f32 %v2159_v39, %v2117_v57 }
 0x148   :  { %v2120_v58 = vpop.f32.mrf.mxu0 }
 0x149   :  { %v2163_v59 = vpop.f32.mrf.mxu1  ;;  %v2121_v3 = vadd.f32 %v2120_v58, %v2078_v61  ;;  %v2162_v4 = vadd.f32 %v2161_v48, %v2119_v63 }
 0x14b   :  { %v2164_v9 = vadd.f32 %v2163_v59, %v2121_v3 }
 0x182   :  { %v2200_v0 = vpop.f32.mrf.mxu0 }
 0x183   :  { %v2243_v1 = vpop.f32.mrf.mxu1  ;;  %v2201_v53 = vadd.f32 %v2200_v0, %v2158_v62 }
 0x184   :  { %v2202_v29 = vpop.f32.mrf.mxu0 }
 0x185   :  { %v2245_v54 = vpop.f32.mrf.mxu1  ;;  %v2244_v40 = vadd.f32 %v2243_v1, %v2201_v53  ;;  %v2203_v46 = vadd.f32 %v2202_v29, %v2160_v2 }
 0x186   :  { %v2204_v7 = vpop.f32.mrf.mxu0 }
 0x187   :  { %v2247_v8 = vpop.f32.mrf.mxu1  ;;  %v2521_v10 = vmul.f32 %v2509_v28, %v2244_v40  ;;  %v2246_v11 = vadd.f32 %v2245_v54, %v2203_v46  ;;  %v2205_v14 = vadd.f32 %v2204_v7, %v2162_v4  ;;  %v2517_v7 = vrot.slane %v4375_v60, %v453_v37 }
 0x188   :  { %v2206_v16 = vpop.f32.mrf.mxu0 }
 0x189   :  { %v2527_v17 = vadd.f32 %v2521_v10, %v2498_v6  ;;  %v2522_v18 = vmul.f32 %v2513_v5, %v2246_v11  ;;  %v2248_v19 = vadd.f32 %v2247_v8, %v2205_v14  ;;  %v2207_v20 = vadd.f32 %v2206_v16, %v2164_v9  ;;  %v2249_v22 = vpop.f32.mrf.mxu1 }
 0x18b   :  { %2533 = vst [vmem:[%s4423_s5] sm:$0xff] %v2527_v17  ;;  %v2528_v23 = vadd.f32 %v2522_v18, %v2499_v15  ;;  %v2524_v24 = vmul.f32 %v2509_v28, %v2248_v19  ;;  %v2250_v25 = vadd.f32 %v2249_v22, %v2207_v20  ;;  %v2500_v15 = vld [vmem:[%s4422_s4 + $0x10] sm:$0xff] }
 0x18d   :  { %2534 = vst [vmem:[%s4423_s5 + $0x8] sm:$0xff] %v2528_v23  ;;  %v2530_v27 = vadd.f32 %v2524_v24, %v2501_v21  ;;  %v2525_v30 = vmul.f32 %v2513_v5, %v2250_v25  ;;  %v2503_v21 = vld [vmem:[%s4422_s4 + $0x28] sm:$0x3] }
 0x18f   :  { %2536 = vst [vmem:[%s4423_s5 + $0x18] sm:$0x3] %v2530_v27  ;;  %v2531_v32 = vadd.f32 %v2525_v30, %v2502_v26 }
 0x191   :  { %2537 = vst [vmem:[%s4423_s5 + $0x20] sm:$0x3] %v2531_v32 }
 0x1a2   :  { %v2847_v33 = vpop.f32.mrf.mxu0 }
 0x1a3   :  { %v2869_v12 = vpop.f32.mrf.mxu1 }
 0x1a4   :  { %v2848_v55 = vpop.f32.mrf.mxu0 }
 0x1a5   :  { %v2870_v34 = vpop.f32.mrf.mxu1  ;;  %v2849_v42 = vadd.f32 %v2848_v55, %v2847_v33 }
 0x1a6   :  { %v2850_v56 = vpop.f32.mrf.mxu0  ;;  %v2871_v49 = vadd.f32 %v2870_v34, %v2869_v12 }
 0x1a7   :  { %v2872_v45 = vpop.f32.mrf.mxu1  ;;  %v2287_v48 = vadd.f32 %v2849_v42, %v454_v41 }
 0x1a8   :  { %v2851_v47 = vpop.f32.mrf.mxu0 }
 0x1a9   :  { %v2873_v35 = vpop.f32.mrf.mxu1  ;;  %v2852_v50 = vadd.f32 %v2851_v47, %v2850_v56  ;;  %v2328_v58 = vadd.f32 %v2871_v49, %v2287_v48 }
 0x1aa   :  { %v2874_v62 = vadd.f32 %v2873_v35, %v2872_v45 }
 0x1ab   :  { %v2290_v59 = vadd.f32 %v2852_v50, %v454_v41 }
 0x1ad   :  { %v2331_v3 = vadd.f32 %v2874_v62, %v2290_v59 }
 0x1c2   :  { %v2891_v36 = vpop.f32.mrf.mxu0 }
 0x1c3   :  { %v2913_v38 = vpop.f32.mrf.mxu1 }
 0x1c4   :  { %v2892_v39 = vpop.f32.mrf.mxu0 }
 0x1c5   :  { %v2914_v43 = vpop.f32.mrf.mxu1  ;;  %v2893_v52 = vadd.f32 %v2892_v39, %v2891_v36 }
 0x1c6   :  { %v2894_v44 = vpop.f32.mrf.mxu0  ;;  %v2915_v0 = vadd.f32 %v2914_v43, %v2913_v38 }
 0x1c7   :  { %v2916_v51 = vpop.f32.mrf.mxu1  ;;  %v2369_v63 = vadd.f32 %v2893_v52, %v2328_v58 }
 0x1c8   :  { %v2895_v57 = vpop.f32.mrf.mxu0 }
 0x1c9   :  { %v2917_v61 = vpop.f32.mrf.mxu1  ;;  %v2896_v31 = vadd.f32 %v2895_v57, %v2894_v44  ;;  %v2410_v28 = vadd.f32 %v2915_v0, %v2369_v63 }
 0x1ca   :  { %v2918_v46 = vadd.f32 %v2917_v61, %v2916_v51 }
 0x1cb   :  { %v2372_v29 = vadd.f32 %v2896_v31, %v2331_v3 }
 0x1cd   :  { %v2413_v10 = vadd.f32 %v2918_v46, %v2372_v29 }
 0x1e2   :  { %v2935_v1 = vpop.f32.mrf.mxu0 }
 0x1e3   :  { %v2957_v2 = vpop.f32.mrf.mxu1 }
 0x1e4   :  { %v2936_v13 = vpop.f32.mrf.mxu0 }
 0x1e5   :  { %v2958_v53 = vpop.f32.mrf.mxu1  ;;  %v2937_v54 = vadd.f32 %v2936_v13, %v2935_v1 }
 0x1e6   :  { %v2938_v4 = vpop.f32.mrf.mxu0  ;;  %v2959_v6 = vadd.f32 %v2958_v53, %v2957_v2 }
 0x1e7   :  { %v2960_v40 = vpop.f32.mrf.mxu1  ;;  %v2451_v5 = vadd.f32 %v2937_v54, %v2410_v28 }
 0x1e8   :  { %v2939_v8 = vpop.f32.mrf.mxu0 }
 0x1e9   :  { %v2961_v9 = vpop.f32.mrf.mxu1  ;;  %v2492_v11 = vadd.f32 %v2959_v6, %v2451_v5  ;;  %v2940_v14 = vadd.f32 %v2939_v8, %v2938_v4 }
 0x1ea   :  { %v2962_v18 = vadd.f32 %v2961_v9, %v2960_v40 }
 0x1eb   :  { %v2523_v16 = vmul.f32 %v2517_v7, %v2492_v11  ;;  %v2454_v17 = vadd.f32 %v2940_v14, %v2413_v10 }
 0x1ed   :  { %v2529_v19 = vadd.f32 %v2523_v16, %v2500_v15  ;;  %v2495_v20 = vadd.f32 %v2962_v18, %v2454_v17 }
 0x1ef   :  { %2535 = vst [vmem:[%s4423_s5 + $0x10] sm:$0xff] %v2529_v19  ;;  %v2526_v60 = vmul.f32 %v2517_v7, %v2495_v20 }
 0x1f1   :  { %v2532_v22 = vadd.f32 %v2526_v60, %v2503_v21 }
 0x1f3   :  { %2538 = vst [vmem:[%s4423_s5 + $0x28] sm:$0x3] %v2532_v22 }

// kernel: dino_feature_pyramid.66
= control target key start
LH: loop header
LB: loop body
LE: loop exit
PB: predicated region body
PF: predicated region fallthrough
CT: control target
= control target key end

     0   :  { %vm33_vm0 = vcmask 1041408   ;;  %v3358_v60 = vmov 0   ;;  %s4469_s0 = inlined_call_operand.vmem [shape: f32[10,384], index: 0, kind: input, shape index: {}]   ;;  %s4470_s3 = inlined_call_operand.vmem [shape: bf16[384,1536], index: 3, kind: input, shape index: {}]   ;;  %s4471_s1 = inlined_call_operand.vmem [shape: f32[1,384], index: 1, kind: input, shape index: {}]   ;;  %s4472_s2 = inlined_call_operand.vmem [shape: f32[1,384], index: 2, kind: input, shape index: {}]   ;;  %s4473_s4 = inlined_call_operand.vmem [shape: f32[1,1536], index: 4, kind: input, shape index: {}]   ;;  %s4474_s5 = inlined_call_operand.vmem [shape: f32[10,1536], index: 5, kind: output, shape index: {}]  }
   0x1   :  { %v3392_v0 = vld [vmem:[%s4469_s0] sm:$0xff]  ;;  %v3397_v1 = vld [vmem:[%s4469_s0 + $0x8] sm:$0xff]  ;;  %v3402_v2 = vld [vmem:[%s4469_s0 + $0x10] sm:$0xff]  ;;  %1996 = vmatprep.mubr.bf16.mxu1 %v3358_v60 }
   0x2   :  { %v29_v3 = vadd.f32 %v3397_v1, %v3392_v0  ;;  %v41_v4 = vmul.f32 %v3392_v0, %v3392_v0  ;;  %v42_v5 = vmul.f32 %v3397_v1, %v3397_v1  ;;  %v43_v6 = vmul.f32 %v3402_v2, %v3402_v2  ;;  %v3415_v7 = vld [vmem:[%s4469_s0 + $0x18] sm:$0x3]  ;;  %v3420_v8 = vld [vmem:[%s4469_s0 + $0x20] sm:$0x3]  ;;  %v3425_v9 = vld [vmem:[%s4469_s0 + $0x28] sm:$0x3] }
   0x3   :  { %v34_v10 = vsel %vm33_vm0, %v3415_v7, 0.0  ;;  %v35_v11 = vsel %vm33_vm0, %v3420_v8, 0.0  ;;  %v37_v12 = vsel %vm33_vm0, %v3425_v9, 0.0  ;;  %v44_v13 = vmul.f32 %v3415_v7, %v3415_v7  ;;  %v2874_v18 = vld [vmem:[%s4470_s3 + $0x2a4] ss:$48 sps:$4 sm:$0xff]  }
   0x4   :  { %v30_v14 = vadd.f32 %v29_v3, %v3402_v2  ;;  %v47_v15 = vadd.f32 %v42_v5, %v41_v4  ;;  %v36_v16 = vadd.f32 %v35_v11, %v34_v10  ;;  %v45_v17 = vmul.f32 %v3420_v8, %v3420_v8  ;;  %v2876_v19 = vld [vmem:[%s4470_s3 + $0x2a0] ss:$48 sps:$4 sm:$0xff]   ;;  %v2877_v22 = vld [vmem:[%s4470_s3 + $0x244] ss:$48 sps:$4 sm:$0xff]   ;;  %1921 = vmatprep.subr.bf16.mxu0 %v2874_v18  ;;  %v2948_v5 = vld [vmem:[%s4470_s3 + $0x2ac] ss:$48 sps:$4 sm:$0xff]  }
   0x5   :  { %v46_v20 = vmul.f32 %v3425_v9, %v3425_v9  ;;  %v51_v21 = vsel %vm33_vm0, %v44_v13, 0.0  ;;  %1922 = vmatpush1.bf16.msra.mxu0 %v2876_v19  ;;  %v2879_v28 = vld [vmem:[%s4470_s3 + $0x240] ss:$48 sps:$4 sm:$0xff]   ;;  %v2880_v29 = vld [vmem:[%s4470_s3 + $0x1e4] ss:$48 sps:$4 sm:$0xff]  }
   0x6   :  { %31 = vadd.xlane.f32.xlu0 %v30_v14  ;;  %v48_v23 = vadd.f32 %v47_v15, %v43_v6  ;;  %v38_v24 = vadd.f32 %v37_v12, %v36_v16  ;;  %v52_v25 = vsel %vm33_vm0, %v45_v17, 0.0  ;;  %1923 = vmatprep.subr.bf16.mxu0 %v2877_v22  ;;  %v2882_v31 = vld [vmem:[%s4470_s3 + $0x1e0] ss:$48 sps:$4 sm:$0xff]   ;;  %v2883_v32 = vld [vmem:[%s4470_s3 + $0x184] ss:$48 sps:$4 sm:$0xff]  }
   0x7   :  { %v53_v26 = vadd.f32 %v52_v25, %v51_v21  ;;  %v54_v27 = vsel %vm33_vm0, %v46_v20, 0.0  ;;  %v2885_v33 = vld [vmem:[%s4470_s3 + $0x180] ss:$48 sps:$4 sm:$0xff]   ;;  %v2886_v34 = vld [vmem:[%s4470_s3 + $0x124] ss:$48 sps:$4 sm:$0xff]  }
   0x8   :  { %49 = vadd.xlane.f32.xlu1 %v48_v23  ;;  %v2898_v35 = vld [vmem:[%s4470_s3 + $0x8a4] ss:$48 sps:$4 sm:$0xff]   ;;  %v2888_v36 = vld [vmem:[%s4470_s3 + $0x120] ss:$48 sps:$4 sm:$0xff]   ;;  %v2951_v18 = vld [vmem:[%s4470_s3 + $0x8ac] ss:$48 sps:$4 sm:$0xff]  }
   0x9   :  { %v55_v30 = vadd.f32 %v54_v27, %v53_v26  ;;  %1924 = vmatpush1.bf16.msra.mxu0 %v2879_v28  ;;  %1964 = vmatprep.subr.bf16.mxu1 %v2898_v35  ;;  %v2902_v37 = vld [vmem:[%s4470_s3 + $0x8a0] ss:$48 sps:$4 sm:$0xff]   ;;  %v2889_v38 = vld [vmem:[%s4470_s3 + $0xc4] ss:$48 sps:$4 sm:$0xff]  }
   0xa   :  { %39 = vadd.xlane.f32.xlu0 %v38_v24  ;;  %1925 = vmatprep.subr.bf16.mxu0 %v2880_v29  ;;  %v2904_v39 = vld [vmem:[%s4470_s3 + $0x844] ss:$48 sps:$4 sm:$0xff]   ;;  %v2891_v40 = vld [vmem:[%s4470_s3 + $0xc0] ss:$48 sps:$4 sm:$0xff]  }
   0xb   :  { %1965 = vmatpush1.bf16.msra.mxu1 %v2902_v37  ;;  %v2908_v41 = vld [vmem:[%s4470_s3 + $0x840] ss:$48 sps:$4 sm:$0xff]   ;;  %v2892_v42 = vld [vmem:[%s4470_s3 + $0x64] ss:$48 sps:$4 sm:$0xff]  }
   0xc   :  { %56 = vadd.xlane.f32.xlu1 %v55_v30  ;;  %1966 = vmatprep.subr.bf16.mxu1 %v2904_v39  ;;  %v2910_v43 = vld [vmem:[%s4470_s3 + $0x7e4] ss:$48 sps:$4 sm:$0xff]   ;;  %v2894_v44 = vld [vmem:[%s4470_s3 + $0x60] ss:$48 sps:$4 sm:$0xff]  }
   0xd   :  { %1926 = vmatpush1.bf16.msra.mxu0 %v2882_v31  ;;  %v2914_v45 = vld [vmem:[%s4470_s3 + $0x7e0] ss:$48 sps:$4 sm:$0xff]   ;;  %v2895_v46 = vld [vmem:[%s4470_s3 + $0x4] ss:$48 sps:$4 sm:$0xff]  }
   0xe   :  { %1927 = vmatprep.subr.bf16.mxu0 %v2883_v32  ;;  %v2916_v47 = vld [vmem:[%s4470_s3 + $0x784] ss:$48 sps:$4 sm:$0xff]   ;;  %v2920_v48 = vld [vmem:[%s4470_s3 + $0x780] ss:$48 sps:$4 sm:$0xff]  }
   0xf   :  { %1967 = vmatpush1.bf16.msra.mxu1 %v2908_v41  ;;  %v2922_v49 = vld [vmem:[%s4470_s3 + $0x724] ss:$48 sps:$4 sm:$0xff]   ;;  %v2897_v50 = vld [vmem:[%s4470_s3] ss:$48 sps:$4 sm:$0xff]  }
  0x10   :  { %1968 = vmatprep.subr.bf16.mxu1 %v2910_v43  ;;  %v2926_v51 = vld [vmem:[%s4470_s3 + $0x720] ss:$48 sps:$4 sm:$0xff]   ;;  %v2900_v52 = vld [vmem:[%s4470_s3 + $0x5a4] ss:$48 sps:$4 sm:$0xff]  }
  0x11   :  { %1928 = vmatpush1.bf16.msra.mxu0 %v2885_v33  ;;  %v2928_v53 = vld [vmem:[%s4470_s3 + $0x6c4] ss:$48 sps:$4 sm:$0xff]   ;;  %v2903_v54 = vld [vmem:[%s4470_s3 + $0x5a0] ss:$48 sps:$4 sm:$0xff]   ;;  %v83_v33 = vlaneseq }
  0x12   :  { %1929 = vmatprep.subr.bf16.mxu0 %v2886_v34  ;;  %v2932_v55 = vld [vmem:[%s4470_s3 + $0x6c0] ss:$48 sps:$4 sm:$0xff]   ;;  %v2906_v56 = vld [vmem:[%s4470_s3 + $0x544] ss:$48 sps:$4 sm:$0xff]  }
  0x13   :  { %1969 = vmatpush1.bf16.msra.mxu1 %v2914_v45  ;;  %v2934_v57 = vld [vmem:[%s4470_s3 + $0x664] ss:$48 sps:$4 sm:$0xff]   ;;  %v2909_v58 = vld [vmem:[%s4470_s3 + $0x540] ss:$48 sps:$4 sm:$0xff]   ;;  %v3594_v34 = vshrl.u32 %v83_v33, 7 }
  0x14   :  { %1970 = vmatprep.subr.bf16.mxu1 %v2916_v47  ;;  %v2938_v59 = vld [vmem:[%s4470_s3 + $0x660] ss:$48 sps:$4 sm:$0xff]   ;;  %v2912_v61 = vld [vmem:[%s4470_s3 + $0x4e4] ss:$48 sps:$4 sm:$0xff]   ;;  %v2979_v33 = vld [vmem:[%s4470_s3 + $0x6c8] ss:$48 sps:$4 sm:$0xff]  }
  0x15   :  { %1930 = vmatpush1.bf16.msra.mxu0 %v2888_v36  ;;  %v2940_v62 = vld [vmem:[%s4470_s3 + $0x604] ss:$48 sps:$4 sm:$0xff]   ;;  %v2915_v63 = vld [vmem:[%s4470_s3 + $0x4e0] ss:$48 sps:$4 sm:$0xff]   ;;  %v3597_v35 = vsub.s32 1, %v3594_v34  ;;  %v3600_v36 = vsub.s32 2, %v3594_v34 }
  0x16   :  { %1931 = vmatprep.subr.bf16.mxu0 %v2889_v38  ;;  %v2944_v3 = vld [vmem:[%s4470_s3 + $0x600] ss:$48 sps:$4 sm:$0xff]   ;;  %v2918_v4 = vld [vmem:[%s4470_s3 + $0x484] ss:$48 sps:$4 sm:$0xff]   ;;  %v3606_v38 = vsub.s32 0, %v3594_v34 }
  0x17   :  { %1971 = vmatpush1.bf16.msra.mxu1 %v2920_v48  ;;  %v2921_v6 = vld [vmem:[%s4470_s3 + $0x480] ss:$48 sps:$4 sm:$0xff]   ;;  %v2924_v10 = vld [vmem:[%s4470_s3 + $0x424] ss:$48 sps:$4 sm:$0xff]  }
  0x18   :  { %1972 = vmatprep.subr.bf16.mxu1 %v2922_v49  ;;  %v2927_v11 = vld [vmem:[%s4470_s3 + $0x420] ss:$48 sps:$4 sm:$0xff]   ;;  %v2930_v12 = vld [vmem:[%s4470_s3 + $0x3c4] ss:$48 sps:$4 sm:$0xff]  }
  0x19   :  { %1932 = vmatpush1.bf16.msra.mxu0 %v2891_v40  ;;  %v2933_v13 = vld [vmem:[%s4470_s3 + $0x3c0] ss:$48 sps:$4 sm:$0xff]   ;;  %v2936_v14 = vld [vmem:[%s4470_s3 + $0x364] ss:$48 sps:$4 sm:$0xff]  }
  0x1a   :  { %1933 = vmatprep.subr.bf16.mxu0 %v2892_v42  ;;  %v2939_v15 = vld [vmem:[%s4470_s3 + $0x360] ss:$48 sps:$4 sm:$0xff]   ;;  %v2942_v16 = vld [vmem:[%s4470_s3 + $0x304] ss:$48 sps:$4 sm:$0xff]  }
  0x1b   :  { %1973 = vmatpush1.bf16.msra.mxu1 %v2926_v51  ;;  %v2945_v17 = vld [vmem:[%s4470_s3 + $0x300] ss:$48 sps:$4 sm:$0xff]  }
  0x1c   :  { %1974 = vmatprep.subr.bf16.mxu1 %v2928_v53  ;;  %v27_v37 = vld [vmem:[%s4471_s1] sm:$0x7] }
  0x1d   :  { %1934 = vmatpush1.bf16.msra.mxu0 %v2894_v44  ;;  %v28_v43 = vld [vmem:[%s4472_s2] sm:$0x7]  ;;  %v90_v45 = vrot.slane %v27_v37, %v3597_v35  ;;  %v94_v47 = vrot.slane %v27_v37, %v3600_v36  ;;  %v86_v49 = vrot.slane %v27_v37, %v3606_v38  ;;  %v2984_v37 = vld [vmem:[%s4470_s3 + $0x6c] ss:$48 sps:$4 sm:$0xff]  }
  0x1e   :  { %1935 = vmatprep.subr.bf16.mxu0 %v2895_v46  ;;  %v112_v51 = vrot.slane %v28_v43, %v3597_v35 }
  0x1f   :  { %1975 = vmatpush1.bf16.msra.mxu1 %v2932_v55 }
  0x20   :  { %1976 = vmatprep.subr.bf16.mxu1 %v2934_v57 }
  0x21   :  { %1936 = vmatpush1.bf16.msra.mxu0 %v2897_v50 }
  0x22   :  { %1937 = vmatprep.subr.bf16.mxu0 %v2900_v52  ;;  %v116_v52 = vrot.slane %v28_v43, %v3600_v36 }
  0x23   :  { %1977 = vmatpush1.bf16.msra.mxu1 %v2938_v59  ;;  %v108_v59 = vrot.slane %v28_v43, %v3606_v38  ;;  %v2993_v43 = vld [vmem:[%s4470_s3 + $0x60c] ss:$48 sps:$4 sm:$0xff]  }
  0x24   :  { %1978 = vmatprep.subr.bf16.mxu1 %v2940_v62 }
  0x25   :  { %1938 = vmatpush2.bf16.msra.mxu0 %v2903_v54 }
  0x26   :  { %1939 = vmatprep.subr.bf16.mxu0 %v2906_v56 }
  0x27   :  { %1979 = vmatpush1.bf16.msra.mxu1 %v2944_v3 }
  0x28   :  { %2007 = vmatprep.subr.bf16.mxu1 %v2948_v5 }
  0x29   :  { %1940 = vmatpush2.bf16.msra.mxu0 %v2909_v58 }
  0x2a   :  { %1941 = vmatprep.subr.bf16.mxu0 %v2912_v61 }
  0x2d   :  { %1942 = vmatpush2.bf16.msra.mxu0 %v2915_v63 }
  0x2e   :  { %1943 = vmatprep.subr.bf16.mxu0 %v2918_v4 }
  0x31   :  { %1944 = vmatpush2.bf16.msra.mxu0 %v2921_v6 }
  0x32   :  { %1945 = vmatprep.subr.bf16.mxu0 %v2924_v10 }
  0x35   :  { %1946 = vmatpush2.bf16.msra.mxu0 %v2927_v11 }
  0x36   :  { %1947 = vmatprep.subr.bf16.mxu0 %v2930_v12  ;;  %v2949_v12 = vld [vmem:[%s4470_s3 + $0x8a8] ss:$48 sps:$4 sm:$0xff]  }
  0x39   :  { %1948 = vmatpush2.bf16.msra.mxu0 %v2933_v13 }
  0x3a   :  { %1949 = vmatprep.subr.bf16.mxu0 %v2936_v14  ;;  %v2954_v14 = vld [vmem:[%s4470_s3 + $0x24c] ss:$48 sps:$4 sm:$0xff]  }
  0x3d   :  { %1950 = vmatpush2.bf16.msra.mxu0 %v2939_v15  ;;  %v2957_v15 = vld [vmem:[%s4470_s3 + $0x84c] ss:$48 sps:$4 sm:$0xff]  }
  0x3e   :  { %1951 = vmatprep.subr.bf16.mxu0 %v2942_v16  ;;  %v2952_v16 = vld [vmem:[%s4470_s3 + $0x248] ss:$48 sps:$4 sm:$0xff]  }
  0x41   :  { %1952 = vmatpush2.bf16.msra.mxu0 %v2945_v17  ;;  %v2955_v17 = vld [vmem:[%s4470_s3 + $0x848] ss:$48 sps:$4 sm:$0xff]  }
  0x42   :  { %2050 = vmatprep.subr.bf16.mxu0 %v2951_v18  ;;  %v2960_v18 = vld [vmem:[%s4470_s3 + $0x1ec] ss:$48 sps:$4 sm:$0xff]  }
  0x8f   :  { %v32_v19 = vpop.xlane.xlu0 %31 }
  0x90   :  { %v58_v20 = vmul.f32 0.0026041667, %v32_v19  ;;  %v2963_v19 = vld [vmem:[%s4470_s3 + $0x7ec] ss:$48 sps:$4 sm:$0xff]  }
  0x91   :  { %v50_v21 = vpop.xlane.xlu1 %49 }
  0x92   :  { %v60_v22 = vmul.f32 0.0026041667, %v50_v21  ;;  %v62_v23 = vmul.f32 %v58_v20, %v58_v20  ;;  %v67_v39 = vsub.f32 %v3397_v1, %v58_v20  ;;  %v68_v40 = vsub.f32 %v3402_v2, %v58_v20  ;;  %v2961_v21 = vld [vmem:[%s4470_s3 + $0x7e8] ss:$48 sps:$4 sm:$0xff]  }
  0x93   :  { %v40_v24 = vpop.xlane.xlu0 %39  ;;  %v66_v42 = vsub.f32 %v3392_v0, %v58_v20  ;;  %v2958_v20 = vld [vmem:[%s4470_s3 + $0x1e8] ss:$48 sps:$4 sm:$0xff]  }
  0x94   :  { %v59_v25 = vmul.f32 0.0026041667, %v40_v24  ;;  %v64_v26 = vsub.f32 %v60_v22, %v62_v23  ;;  %v2966_v22 = vld [vmem:[%s4470_s3 + $0x18c] ss:$48 sps:$4 sm:$0xff]   ;;  %v2964_v24 = vld [vmem:[%s4470_s3 + $0x188] ss:$48 sps:$4 sm:$0xff]  }
  0x95   :  { %v57_v27 = vpop.xlane.xlu1 %56  ;;  %v2969_v23 = vld [vmem:[%s4470_s3 + $0x78c] ss:$48 sps:$4 sm:$0xff]  }
  0x96   :  { %v61_v28 = vmul.f32 0.0026041667, %v57_v27  ;;  %v72_v29 = vadd.f32 1e-06, %v64_v26  ;;  %v63_v30 = vmul.f32 %v59_v25, %v59_v25  ;;  %v70_v1 = vsub.f32 %v3420_v8, %v59_v25  ;;  %v2972_v26 = vld [vmem:[%s4470_s3 + $0x12c] ss:$48 sps:$4 sm:$0xff]  }
  0x97   :  { %v71_v2 = vsub.f32 %v3425_v9, %v59_v25  ;;  %v69_v0 = vsub.f32 %v3415_v7, %v59_v25  ;;  %v2946_v7 = vld [vmem:[%s4470_s3 + $0x2a8] ss:$48 sps:$4 sm:$0xff]   ;;  %v2975_v27 = vld [vmem:[%s4470_s3 + $0x72c] ss:$48 sps:$4 sm:$0xff]  }
  0x98   :  { %3306 = vrsqrt.f32 %v72_v29  ;;  %v65_v31 = vsub.f32 %v61_v28, %v63_v30  ;;  %v2967_v25 = vld [vmem:[%s4470_s3 + $0x788] ss:$48 sps:$4 sm:$0xff]   ;;  %v2978_v30 = vld [vmem:[%s4470_s3 + $0xcc] ss:$48 sps:$4 sm:$0xff]  }
  0x99   :  { %v2970_v28 = vld [vmem:[%s4470_s3 + $0x128] ss:$48 sps:$4 sm:$0xff]  }
  0x9a   :  { %v73_v32 = vadd.f32 1e-06, %v65_v31  ;;  %v2973_v29 = vld [vmem:[%s4470_s3 + $0x728] ss:$48 sps:$4 sm:$0xff]   ;;  %v2981_v31 = vld [vmem:[%s4470_s3 + $0x6cc] ss:$48 sps:$4 sm:$0xff]  }
  0x9c   :  { %3308 = vrsqrt.f32 %v73_v32  ;;  %v2976_v32 = vld [vmem:[%s4470_s3 + $0xc8] ss:$48 sps:$4 sm:$0xff]  }
  0xa5   :  { %v3307_v41 = vpop.eup %3306 }
  0xa6   :  { %v77_v44 = vmul.f32 %v3307_v41, %v67_v39  ;;  %v78_v46 = vmul.f32 %v3307_v41, %v68_v40  ;;  %v76_v48 = vmul.f32 %v3307_v41, %v66_v42  ;;  %v2987_v39 = vld [vmem:[%s4470_s3 + $0x66c] ss:$48 sps:$4 sm:$0xff]   ;;  %v2982_v40 = vld [vmem:[%s4470_s3 + $0x68] ss:$48 sps:$4 sm:$0xff]  }
  0xa7   :  { %v2985_v41 = vld [vmem:[%s4470_s3 + $0x668] ss:$48 sps:$4 sm:$0xff]   ;;  %v2990_v42 = vld [vmem:[%s4470_s3 + $0xc] ss:$48 sps:$4 sm:$0xff]  }
  0xa8   :  { %v99_v54 = vmul.f32 %v90_v45, %v77_v44  ;;  %v100_v56 = vmul.f32 %v94_v47, %v78_v46  ;;  %v98_v58 = vmul.f32 %v86_v49, %v76_v48  ;;  %v2988_v44 = vld [vmem:[%s4470_s3 + $0x8] ss:$48 sps:$4 sm:$0xff]   ;;  %v2996_v46 = vld [vmem:[%s4470_s3 + $0x5ac] ss:$48 sps:$4 sm:$0xff]  }
  0xa9   :  { %v3309_v50 = vpop.eup %3308  ;;  %v2994_v48 = vld [vmem:[%s4470_s3 + $0x5a8] ss:$48 sps:$4 sm:$0xff]  }
  0xaa   :  { %v80_v53 = vmul.f32 %v3309_v50, %v70_v1  ;;  %v81_v55 = vmul.f32 %v3309_v50, %v71_v2  ;;  %v79_v57 = vmul.f32 %v3309_v50, %v69_v0  ;;  %v121_v63 = vadd.f32 %v112_v51, %v99_v54  ;;  %v3002_v1 = vld [vmem:[%s4470_s3 + $0x54c] ss:$48 sps:$4 sm:$0xff]   ;;  %v3005_v2 = vld [vmem:[%s4470_s3 + $0x254] ss:$48 sps:$4 sm:$0xff]   ;;  %v3000_v50 = vld [vmem:[%s4470_s3 + $0x548] ss:$48 sps:$4 sm:$0xff]  }
  0xab   :  { %v122_v3 = vadd.f32 %v116_v52, %v100_v56  ;;  %v120_v5 = vadd.f32 %v108_v59, %v98_v58  ;;  %v3003_v0 = vld [vmem:[%s4470_s3 + $0x250] ss:$48 sps:$4 sm:$0xff]   ;;  %v3017_v56 = vld [vmem:[%s4470_s3 + $0x194] ss:$48 sps:$4 sm:$0xff]  }
  0xac   :  { %v102_v61 = vmul.f32 %v90_v45, %v80_v53  ;;  %v103_v62 = vmul.f32 %v94_v47, %v81_v55  ;;  %v101_v8 = vmul.f32 %v86_v49, %v79_v57  ;;  %v2991_v45 = vld [vmem:[%s4470_s3 + $0x608] ss:$48 sps:$4 sm:$0xff]   ;;  %v2999_v47 = vld [vmem:[%s4470_s3 + $0x2b4] ss:$48 sps:$4 sm:$0xff]   ;;  %v2997_v49 = vld [vmem:[%s4470_s3 + $0x2b0] ss:$48 sps:$4 sm:$0xff]  }
  0xad   :  { %v3006_v53 = vld [vmem:[%s4470_s3 + $0x4e8] ss:$48 sps:$4 sm:$0xff]   ;;  %v3009_v54 = vld [vmem:[%s4470_s3 + $0x1f0] ss:$48 sps:$4 sm:$0xff]   ;;  %v3014_v55 = vld [vmem:[%s4470_s3 + $0x48c] ss:$48 sps:$4 sm:$0xff]  }
  0xae   :  { %v124_v9 = vadd.f32 %v112_v51, %v102_v61  ;;  %v125_v4 = vadd.f32 %v116_v52, %v103_v62  ;;  %v123_v6 = vadd.f32 %v108_v59, %v101_v8  ;;  %v3008_v51 = vld [vmem:[%s4470_s3 + $0x4ec] ss:$48 sps:$4 sm:$0xff]   ;;  %v3011_v52 = vld [vmem:[%s4470_s3 + $0x1f4] ss:$48 sps:$4 sm:$0xff]   ;;  %v3012_v57 = vld [vmem:[%s4470_s3 + $0x488] ss:$48 sps:$4 sm:$0xff]  }
  0xaf   :  { %v3015_v58 = vld [vmem:[%s4470_s3 + $0x190] ss:$48 sps:$4 sm:$0xff]   ;;  %v3020_v59 = vld [vmem:[%s4470_s3 + $0x42c] ss:$48 sps:$4 sm:$0xff]   ;;  %v3023_v61 = vld [vmem:[%s4470_s3 + $0x134] ss:$48 sps:$4 sm:$0xff]  }
  0xb0   :  { %v3626_v10 = vpack.c.bf16 %v124_v9, %v121_v63  ;;  %v3628_v11 = vpack.c.bf16 %v125_v4, %v122_v3  ;;  %v3633_v13 = vpack.c.bf16 %v123_v6, %v120_v5  ;;  %v3018_v62 = vld [vmem:[%s4470_s3 + $0x428] ss:$48 sps:$4 sm:$0xff]   ;;  %v3021_v8 = vld [vmem:[%s4470_s3 + $0x130] ss:$48 sps:$4 sm:$0xff]   ;;  %v3026_v63 = vld [vmem:[%s4470_s3 + $0x3cc] ss:$48 sps:$4 sm:$0xff]  }
  0xb1   :  { %v3029_v9 = vld [vmem:[%s4470_s3 + $0xd4] ss:$48 sps:$4 sm:$0xff]   ;;  %v3024_v3 = vld [vmem:[%s4470_s3 + $0x3c8] ss:$48 sps:$4 sm:$0xff]   ;;  %v3027_v4 = vld [vmem:[%s4470_s3 + $0xd0] ss:$48 sps:$4 sm:$0xff]  }
  0xb2   :  { %1953 = vmatprep.mubr.bf16.mxu0 %v3626_v10  ;;  %1997 = vmatmul.mubr.bf16.vlgmr.msra.gmra.mxu1 %v3628_v11  ;;  %v3035_v5 = vld [vmem:[%s4470_s3 + $0x74] ss:$48 sps:$4 sm:$0xff]   ;;  %v3030_v6 = vld [vmem:[%s4470_s3 + $0x368] ss:$48 sps:$4 sm:$0xff]  }
  0xb3   :  { %2008 = vmatpush1.bf16.msra.mxu1 %v2946_v7  ;;  %1954 = vmatmul.mubr.bf16.vlgmr.msra.gmra.mxu0 %v3633_v13  ;;  %v3032_v7 = vld [vmem:[%s4470_s3 + $0x36c] ss:$48 sps:$4 sm:$0xff]  }
  0xb4   :  { %2039 = vmatprep.mubr.bf16.mxu1 %v3626_v10  ;;  %2051 = vmatpush1.bf16.msra.mxu0 %v2949_v12  ;;  %v3033_v12 = vld [vmem:[%s4470_s3 + $0x70] ss:$48 sps:$4 sm:$0xff]  }
  0xb5   :  { %2009 = vmatprep.subr.bf16.mxu1 %v2954_v14  ;;  %2052 = vmatprep.subr.bf16.mxu0 %v2957_v15  ;;  %v3038_v14 = vld [vmem:[%s4470_s3 + $0x30c] ss:$48 sps:$4 sm:$0xff]   ;;  %v3041_v15 = vld [vmem:[%s4470_s3 + $0x14] ss:$48 sps:$4 sm:$0xff]  }
  0xb6   :  { %2082 = vmatprep.mubr.bf16.mxu0 %v3358_v60 }
  0xb7   :  { %2010 = vmatpush1.bf16.msra.mxu1 %v2952_v16  ;;  %v3036_v16 = vld [vmem:[%s4470_s3 + $0x308] ss:$48 sps:$4 sm:$0xff]  }
  0xb8   :  { %2053 = vmatpush1.bf16.msra.mxu0 %v2955_v17  ;;  %2011 = vmatprep.subr.bf16.mxu1 %v2960_v18  ;;  %v3039_v17 = vld [vmem:[%s4470_s3 + $0x10] ss:$48 sps:$4 sm:$0xff]   ;;  %v3044_v18 = vld [vmem:[%s4470_s3 + $0x8b4] ss:$48 sps:$4 sm:$0xff]  }
  0xb9   :  { %2054 = vmatprep.subr.bf16.mxu0 %v2963_v19  ;;  %v3047_v19 = vld [vmem:[%s4470_s3 + $0x5b4] ss:$48 sps:$4 sm:$0xff]  }
  0xbb   :  { %2012 = vmatpush1.bf16.msra.mxu1 %v2958_v20  ;;  %v3042_v20 = vld [vmem:[%s4470_s3 + $0x8b0] ss:$48 sps:$4 sm:$0xff]  }
  0xbc   :  { %2055 = vmatpush1.bf16.msra.mxu0 %v2961_v21  ;;  %2013 = vmatprep.subr.bf16.mxu1 %v2966_v22  ;;  %v3045_v21 = vld [vmem:[%s4470_s3 + $0x5b0] ss:$48 sps:$4 sm:$0xff]   ;;  %v3050_v22 = vld [vmem:[%s4470_s3 + $0x854] ss:$48 sps:$4 sm:$0xff]  }
  0xbd   :  { %2056 = vmatprep.subr.bf16.mxu0 %v2969_v23  ;;  %v3053_v23 = vld [vmem:[%s4470_s3 + $0x554] ss:$48 sps:$4 sm:$0xff]  }
  0xbf   :  { %2014 = vmatpush1.bf16.msra.mxu1 %v2964_v24  ;;  %v3048_v24 = vld [vmem:[%s4470_s3 + $0x850] ss:$48 sps:$4 sm:$0xff]  }
  0xc0   :  { %2057 = vmatpush1.bf16.msra.mxu0 %v2967_v25  ;;  %2015 = vmatprep.subr.bf16.mxu1 %v2972_v26  ;;  %v3051_v25 = vld [vmem:[%s4470_s3 + $0x550] ss:$48 sps:$4 sm:$0xff]   ;;  %v3056_v26 = vld [vmem:[%s4470_s3 + $0x7f4] ss:$48 sps:$4 sm:$0xff]  }
  0xc1   :  { %2058 = vmatprep.subr.bf16.mxu0 %v2975_v27  ;;  %v3059_v27 = vld [vmem:[%s4470_s3 + $0x4f4] ss:$48 sps:$4 sm:$0xff]  }
  0xc3   :  { %2016 = vmatpush1.bf16.msra.mxu1 %v2970_v28  ;;  %v3054_v28 = vld [vmem:[%s4470_s3 + $0x7f0] ss:$48 sps:$4 sm:$0xff]  }
  0xc4   :  { %2059 = vmatpush1.bf16.msra.mxu0 %v2973_v29  ;;  %2017 = vmatprep.subr.bf16.mxu1 %v2978_v30  ;;  %v3057_v29 = vld [vmem:[%s4470_s3 + $0x4f0] ss:$48 sps:$4 sm:$0xff]   ;;  %v3062_v30 = vld [vmem:[%s4470_s3 + $0x794] ss:$48 sps:$4 sm:$0xff]  }
  0xc5   :  { %2060 = vmatprep.subr.bf16.mxu0 %v2981_v31  ;;  %v3065_v31 = vld [vmem:[%s4470_s3 + $0x494] ss:$48 sps:$4 sm:$0xff]  }
  0xc7   :  { %2018 = vmatpush1.bf16.msra.mxu1 %v2976_v32  ;;  %v3060_v32 = vld [vmem:[%s4470_s3 + $0x790] ss:$48 sps:$4 sm:$0xff]  }
  0xc8   :  { %2061 = vmatpush1.bf16.msra.mxu0 %v2979_v33  ;;  %2019 = vmatprep.subr.bf16.mxu1 %v2984_v37  ;;  %v3063_v33 = vld [vmem:[%s4470_s3 + $0x490] ss:$48 sps:$4 sm:$0xff]   ;;  %v3068_v37 = vld [vmem:[%s4470_s3 + $0x734] ss:$48 sps:$4 sm:$0xff]  }
  0xc9   :  { %2062 = vmatprep.subr.bf16.mxu0 %v2987_v39  ;;  %v3071_v39 = vld [vmem:[%s4470_s3 + $0x434] ss:$48 sps:$4 sm:$0xff]  }
  0xcb   :  { %2020 = vmatpush1.bf16.msra.mxu1 %v2982_v40  ;;  %v3066_v40 = vld [vmem:[%s4470_s3 + $0x730] ss:$48 sps:$4 sm:$0xff]  }
  0xcc   :  { %2063 = vmatpush1.bf16.msra.mxu0 %v2985_v41  ;;  %2021 = vmatprep.subr.bf16.mxu1 %v2990_v42  ;;  %v3069_v41 = vld [vmem:[%s4470_s3 + $0x430] ss:$48 sps:$4 sm:$0xff]   ;;  %v3074_v42 = vld [vmem:[%s4470_s3 + $0x6d4] ss:$48 sps:$4 sm:$0xff]  }
  0xcd   :  { %2064 = vmatprep.subr.bf16.mxu0 %v2993_v43  ;;  %v3077_v43 = vld [vmem:[%s4470_s3 + $0x3d4] ss:$48 sps:$4 sm:$0xff]  }
  0xcf   :  { %2022 = vmatpush1.bf16.msra.mxu1 %v2988_v44  ;;  %v3072_v44 = vld [vmem:[%s4470_s3 + $0x6d0] ss:$48 sps:$4 sm:$0xff]  }
  0xd0   :  { %2065 = vmatpush1.bf16.msra.mxu0 %v2991_v45  ;;  %2023 = vmatprep.subr.bf16.mxu1 %v2996_v46  ;;  %v3075_v45 = vld [vmem:[%s4470_s3 + $0x3d0] ss:$48 sps:$4 sm:$0xff]   ;;  %v3080_v46 = vld [vmem:[%s4470_s3 + $0x674] ss:$48 sps:$4 sm:$0xff]  }
  0xd1   :  { %2093 = vmatprep.subr.bf16.mxu0 %v2999_v47  ;;  %v3083_v47 = vld [vmem:[%s4470_s3 + $0x374] ss:$48 sps:$4 sm:$0xff]  }
  0xd3   :  { %2024 = vmatpush2.bf16.msra.mxu1 %v2994_v48  ;;  %2083 = vmatmul.mubr.bf16.vlgmr.msra.gmra.mxu0 %v3628_v11  ;;  %v3078_v48 = vld [vmem:[%s4470_s3 + $0x670] ss:$48 sps:$4 sm:$0xff]  }
  0xd4   :  { %2094 = vmatpush1.bf16.msra.mxu0 %v2997_v49  ;;  %2125 = vmatprep.mubr.bf16.mxu0 %v3626_v10  ;;  %v3081_v49 = vld [vmem:[%s4470_s3 + $0x370] ss:$48 sps:$4 sm:$0xff]  }
  0xd5   :  { %2025 = vmatprep.subr.bf16.mxu1 %v3002_v1  ;;  %2095 = vmatprep.subr.bf16.mxu0 %v3005_v2  ;;  %v3086_v1 = vld [vmem:[%s4470_s3 + $0x614] ss:$48 sps:$4 sm:$0xff]  }
  0xd6   :  { %v3089_v2 = vld [vmem:[%s4470_s3 + $0x314] ss:$48 sps:$4 sm:$0xff]  }
  0xd7   :  { %2026 = vmatpush2.bf16.msra.mxu1 %v3000_v50  ;;  %v3084_v50 = vld [vmem:[%s4470_s3 + $0x610] ss:$48 sps:$4 sm:$0xff]  }
  0xd8   :  { %2096 = vmatpush1.bf16.msra.mxu0 %v3003_v0  ;;  %2027 = vmatprep.subr.bf16.mxu1 %v3008_v51  ;;  %v3087_v0 = vld [vmem:[%s4470_s3 + $0x310] ss:$48 sps:$4 sm:$0xff]   ;;  %v3092_v51 = vld [vmem:[%s4470_s3 + $0x2bc] ss:$48 sps:$4 sm:$0xff]  }
  0xd9   :  { %2097 = vmatprep.subr.bf16.mxu0 %v3011_v52  ;;  %v3095_v52 = vld [vmem:[%s4470_s3 + $0x8bc] ss:$48 sps:$4 sm:$0xff]  }
  0xdb   :  { %2028 = vmatpush2.bf16.msra.mxu1 %v3006_v53  ;;  %v3090_v53 = vld [vmem:[%s4470_s3 + $0x2b8] ss:$48 sps:$4 sm:$0xff]  }
  0xdc   :  { %2098 = vmatpush1.bf16.msra.mxu0 %v3009_v54  ;;  %2029 = vmatprep.subr.bf16.mxu1 %v3014_v55  ;;  %v3093_v54 = vld [vmem:[%s4470_s3 + $0x8b8] ss:$48 sps:$4 sm:$0xff]   ;;  %v3098_v55 = vld [vmem:[%s4470_s3 + $0x25c] ss:$48 sps:$4 sm:$0xff]  }
  0xdd   :  { %2099 = vmatprep.subr.bf16.mxu0 %v3017_v56  ;;  %v3101_v56 = vld [vmem:[%s4470_s3 + $0x85c] ss:$48 sps:$4 sm:$0xff]  }
  0xdf   :  { %2030 = vmatpush2.bf16.msra.mxu1 %v3012_v57  ;;  %v3096_v57 = vld [vmem:[%s4470_s3 + $0x258] ss:$48 sps:$4 sm:$0xff]  }
  0xe0   :  { %2100 = vmatpush1.bf16.msra.mxu0 %v3015_v58  ;;  %2031 = vmatprep.subr.bf16.mxu1 %v3020_v59  ;;  %v3099_v58 = vld [vmem:[%s4470_s3 + $0x858] ss:$48 sps:$4 sm:$0xff]   ;;  %v3104_v59 = vld [vmem:[%s4470_s3 + $0x1fc] ss:$48 sps:$4 sm:$0xff]  }
  0xe1   :  { %2101 = vmatprep.subr.bf16.mxu0 %v3023_v61  ;;  %v3107_v61 = vld [vmem:[%s4470_s3 + $0x7fc] ss:$48 sps:$4 sm:$0xff]  }
  0xe3   :  { %2032 = vmatpush2.bf16.msra.mxu1 %v3018_v62  ;;  %v3102_v62 = vld [vmem:[%s4470_s3 + $0x1f8] ss:$48 sps:$4 sm:$0xff]  }
  0xe4   :  { %2102 = vmatpush1.bf16.msra.mxu0 %v3021_v8  ;;  %2033 = vmatprep.subr.bf16.mxu1 %v3026_v63  ;;  %v3105_v8 = vld [vmem:[%s4470_s3 + $0x7f8] ss:$48 sps:$4 sm:$0xff]   ;;  %v3110_v63 = vld [vmem:[%s4470_s3 + $0x19c] ss:$48 sps:$4 sm:$0xff]  }
  0xe5   :  { %2103 = vmatprep.subr.bf16.mxu0 %v3029_v9  ;;  %v3113_v9 = vld [vmem:[%s4470_s3 + $0x79c] ss:$48 sps:$4 sm:$0xff]  }
  0xe7   :  { %2034 = vmatpush2.bf16.msra.mxu1 %v3024_v3  ;;  %v3108_v3 = vld [vmem:[%s4470_s3 + $0x198] ss:$48 sps:$4 sm:$0xff]  }
  0xe8   :  { %2104 = vmatpush1.bf16.msra.mxu0 %v3027_v4  ;;  %2035 = vmatprep.subr.bf16.mxu1 %v3032_v7  ;;  %v3111_v4 = vld [vmem:[%s4470_s3 + $0x798] ss:$48 sps:$4 sm:$0xff]   ;;  %v3116_v7 = vld [vmem:[%s4470_s3 + $0x13c] ss:$48 sps:$4 sm:$0xff]  }
  0xe9   :  { %2105 = vmatprep.subr.bf16.mxu0 %v3035_v5  ;;  %v3119_v5 = vld [vmem:[%s4470_s3 + $0x73c] ss:$48 sps:$4 sm:$0xff]  }
  0xeb   :  { %2036 = vmatpush2.bf16.msra.mxu1 %v3030_v6  ;;  %v3114_v6 = vld [vmem:[%s4470_s3 + $0x138] ss:$48 sps:$4 sm:$0xff]  }
  0xec   :  { %2106 = vmatpush1.bf16.msra.mxu0 %v3033_v12  ;;  %2037 = vmatprep.subr.bf16.mxu1 %v3038_v14  ;;  %v3117_v12 = vld [vmem:[%s4470_s3 + $0x738] ss:$48 sps:$4 sm:$0xff]   ;;  %v3122_v14 = vld [vmem:[%s4470_s3 + $0xdc] ss:$48 sps:$4 sm:$0xff]  }
  0xed   :  { %2107 = vmatprep.subr.bf16.mxu0 %v3041_v15  ;;  %v3125_v15 = vld [vmem:[%s4470_s3 + $0x6dc] ss:$48 sps:$4 sm:$0xff]  }
  0xef   :  { %2038 = vmatpush2.bf16.msra.mxu1 %v3036_v16  ;;  %v3120_v16 = vld [vmem:[%s4470_s3 + $0xd8] ss:$48 sps:$4 sm:$0xff]  }
  0xf0   :  { %2108 = vmatpush1.bf16.msra.mxu0 %v3039_v17  ;;  %2136 = vmatprep.subr.bf16.mxu1 %v3044_v18  ;;  %v3123_v17 = vld [vmem:[%s4470_s3 + $0x6d8] ss:$48 sps:$4 sm:$0xff]   ;;  %v3128_v18 = vld [vmem:[%s4470_s3 + $0x7c] ss:$48 sps:$4 sm:$0xff]  }
  0xf1   :  { %2109 = vmatprep.subr.bf16.mxu0 %v3047_v19  ;;  %v3131_v19 = vld [vmem:[%s4470_s3 + $0x67c] ss:$48 sps:$4 sm:$0xff]  }
  0xf2   :  { %2040 = vmatmul.mubr.bf16.vlgmr.msra.gmra.mxu1 %v3633_v13 }
  0xf3   :  { %2137 = vmatpush1.bf16.msra.mxu1 %v3042_v20  ;;  %2168 = vmatprep.mubr.bf16.mxu1 %v3358_v60  ;;  %v3126_v20 = vld [vmem:[%s4470_s3 + $0x78] ss:$48 sps:$4 sm:$0xff]  }
  0xf4   :  { %2110 = vmatpush2.bf16.msra.mxu0 %v3045_v21  ;;  %2138 = vmatprep.subr.bf16.mxu1 %v3050_v22  ;;  %v3129_v21 = vld [vmem:[%s4470_s3 + $0x678] ss:$48 sps:$4 sm:$0xff]   ;;  %v3134_v22 = vld [vmem:[%s4470_s3 + $0x1c] ss:$48 sps:$4 sm:$0xff]  }
  0xf5   :  { %2111 = vmatprep.subr.bf16.mxu0 %v3053_v23  ;;  %v3137_v23 = vld [vmem:[%s4470_s3 + $0x61c] ss:$48 sps:$4 sm:$0xff]  }
  0xf7   :  { %2139 = vmatpush1.bf16.msra.mxu1 %v3048_v24  ;;  %v3132_v24 = vld [vmem:[%s4470_s3 + $0x18] ss:$48 sps:$4 sm:$0xff]  }
  0xf8   :  { %2112 = vmatpush2.bf16.msra.mxu0 %v3051_v25  ;;  %2140 = vmatprep.subr.bf16.mxu1 %v3056_v26  ;;  %v3135_v25 = vld [vmem:[%s4470_s3 + $0x618] ss:$48 sps:$4 sm:$0xff]   ;;  %v3140_v26 = vld [vmem:[%s4470_s3 + $0x5bc] ss:$48 sps:$4 sm:$0xff]  }
  0xf9   :  { %2113 = vmatprep.subr.bf16.mxu0 %v3059_v27  ;;  %v3143_v27 = vld [vmem:[%s4470_s3 + $0x2c4] ss:$48 sps:$4 sm:$0xff]  }
  0xfb   :  { %2141 = vmatpush1.bf16.msra.mxu1 %v3054_v28  ;;  %v3138_v28 = vld [vmem:[%s4470_s3 + $0x5b8] ss:$48 sps:$4 sm:$0xff]  }
  0xfc   :  { %2114 = vmatpush2.bf16.msra.mxu0 %v3057_v29  ;;  %2142 = vmatprep.subr.bf16.mxu1 %v3062_v30  ;;  %v3141_v29 = vld [vmem:[%s4470_s3 + $0x2c0] ss:$48 sps:$4 sm:$0xff]   ;;  %v3146_v30 = vld [vmem:[%s4470_s3 + $0x55c] ss:$48 sps:$4 sm:$0xff]  }
  0xfd   :  { %2115 = vmatprep.subr.bf16.mxu0 %v3065_v31  ;;  %v3149_v31 = vld [vmem:[%s4470_s3 + $0x264] ss:$48 sps:$4 sm:$0xff]  }
  0xff   :  { %2143 = vmatpush1.bf16.msra.mxu1 %v3060_v32  ;;  %v3144_v32 = vld [vmem:[%s4470_s3 + $0x558] ss:$48 sps:$4 sm:$0xff]  }
 0x100   :  { %2116 = vmatpush2.bf16.msra.mxu0 %v3063_v33  ;;  %2144 = vmatprep.subr.bf16.mxu1 %v3068_v37  ;;  %v3147_v33 = vld [vmem:[%s4470_s3 + $0x260] ss:$48 sps:$4 sm:$0xff]   ;;  %v3152_v37 = vld [vmem:[%s4470_s3 + $0x4fc] ss:$48 sps:$4 sm:$0xff]  }
 0x101   :  { %2117 = vmatprep.subr.bf16.mxu0 %v3071_v39  ;;  %v3155_v39 = vld [vmem:[%s4470_s3 + $0x204] ss:$48 sps:$4 sm:$0xff]  }
 0x103   :  { %2145 = vmatpush1.bf16.msra.mxu1 %v3066_v40  ;;  %v3150_v40 = vld [vmem:[%s4470_s3 + $0x4f8] ss:$48 sps:$4 sm:$0xff]  }
 0x104   :  { %2118 = vmatpush2.bf16.msra.mxu0 %v3069_v41  ;;  %2146 = vmatprep.subr.bf16.mxu1 %v3074_v42  ;;  %v3153_v41 = vld [vmem:[%s4470_s3 + $0x200] ss:$48 sps:$4 sm:$0xff]   ;;  %v3158_v42 = vld [vmem:[%s4470_s3 + $0x49c] ss:$48 sps:$4 sm:$0xff]  }
 0x105   :  { %2119 = vmatprep.subr.bf16.mxu0 %v3077_v43  ;;  %v3161_v43 = vld [vmem:[%s4470_s3 + $0x1a4] ss:$48 sps:$4 sm:$0xff]  }
 0x107   :  { %2147 = vmatpush1.bf16.msra.mxu1 %v3072_v44  ;;  %v3156_v44 = vld [vmem:[%s4470_s3 + $0x498] ss:$48 sps:$4 sm:$0xff]  }
 0x108   :  { %2120 = vmatpush2.bf16.msra.mxu0 %v3075_v45  ;;  %2148 = vmatprep.subr.bf16.mxu1 %v3080_v46  ;;  %v3159_v45 = vld [vmem:[%s4470_s3 + $0x1a0] ss:$48 sps:$4 sm:$0xff]   ;;  %v3164_v46 = vld [vmem:[%s4470_s3 + $0x43c] ss:$48 sps:$4 sm:$0xff]  }
 0x109   :  { %2121 = vmatprep.subr.bf16.mxu0 %v3083_v47  ;;  %v3167_v47 = vld [vmem:[%s4470_s3 + $0x144] ss:$48 sps:$4 sm:$0xff]  }
 0x10b   :  { %2149 = vmatpush1.bf16.msra.mxu1 %v3078_v48  ;;  %v3162_v48 = vld [vmem:[%s4470_s3 + $0x438] ss:$48 sps:$4 sm:$0xff]  }
 0x10c   :  { %2122 = vmatpush2.bf16.msra.mxu0 %v3081_v49  ;;  %2150 = vmatprep.subr.bf16.mxu1 %v3086_v1  ;;  %v3165_v49 = vld [vmem:[%s4470_s3 + $0x140] ss:$48 sps:$4 sm:$0xff]   ;;  %v3170_v1 = vld [vmem:[%s4470_s3 + $0x3dc] ss:$48 sps:$4 sm:$0xff]  }
 0x10d   :  { %2123 = vmatprep.subr.bf16.mxu0 %v3089_v2  ;;  %v3173_v2 = vld [vmem:[%s4470_s3 + $0xe4] ss:$48 sps:$4 sm:$0xff]  }
 0x10f   :  { %2151 = vmatpush1.bf16.msra.mxu1 %v3084_v50  ;;  %v3168_v50 = vld [vmem:[%s4470_s3 + $0x3d8] ss:$48 sps:$4 sm:$0xff]  }
 0x110   :  { %2124 = vmatpush2.bf16.msra.mxu0 %v3087_v0  ;;  %2179 = vmatprep.subr.bf16.mxu1 %v3092_v51  ;;  %v3171_v0 = vld [vmem:[%s4470_s3 + $0xe0] ss:$48 sps:$4 sm:$0xff]   ;;  %v3176_v51 = vld [vmem:[%s4470_s3 + $0x37c] ss:$48 sps:$4 sm:$0xff]  }
 0x111   :  { %2222 = vmatprep.subr.bf16.mxu0 %v3095_v52  ;;  %v3179_v52 = vld [vmem:[%s4470_s3 + $0x84] ss:$48 sps:$4 sm:$0xff]  }
 0x112   :  { %2169 = vmatmul.mubr.bf16.vlgmr.msra.gmra.mxu1 %v3628_v11 }
 0x113   :  { %2126 = vmatmul.mubr.bf16.vlgmr.msra.gmra.mxu0 %v3633_v13  ;;  %2180 = vmatpush1.bf16.msra.mxu1 %v3090_v53  ;;  %v3174_v53 = vld [vmem:[%s4470_s3 + $0x378] ss:$48 sps:$4 sm:$0xff]  }
 0x114   :  { %2211 = vmatprep.mubr.bf16.mxu1 %v3626_v10  ;;  %2223 = vmatpush1.bf16.msra.mxu0 %v3093_v54  ;;  %v3177_v54 = vld [vmem:[%s4470_s3 + $0x80] ss:$48 sps:$4 sm:$0xff]  }
 0x115   :  { %2181 = vmatprep.subr.bf16.mxu1 %v3098_v55  ;;  %2224 = vmatprep.subr.bf16.mxu0 %v3101_v56  ;;  %v3182_v55 = vld [vmem:[%s4470_s3 + $0x31c] ss:$48 sps:$4 sm:$0xff]   ;;  %v3185_v56 = vld [vmem:[%s4470_s3 + $0x24] ss:$48 sps:$4 sm:$0xff]  }
 0x116   :  { %2254 = vmatprep.mubr.bf16.mxu0 %v3358_v60 }
 0x117   :  { %2182 = vmatpush1.bf16.msra.mxu1 %v3096_v57  ;;  %v3180_v57 = vld [vmem:[%s4470_s3 + $0x318] ss:$48 sps:$4 sm:$0xff]  }
 0x118   :  { %2225 = vmatpush1.bf16.msra.mxu0 %v3099_v58  ;;  %2183 = vmatprep.subr.bf16.mxu1 %v3104_v59  ;;  %v3183_v58 = vld [vmem:[%s4470_s3 + $0x20] ss:$48 sps:$4 sm:$0xff]   ;;  %v3188_v59 = vld [vmem:[%s4470_s3 + $0x8c4] ss:$48 sps:$4 sm:$0xff]  }
 0x119   :  { %2226 = vmatprep.subr.bf16.mxu0 %v3107_v61  ;;  %v3191_v61 = vld [vmem:[%s4470_s3 + $0x5c4] ss:$48 sps:$4 sm:$0xff]  }
 0x11b   :  { %2184 = vmatpush1.bf16.msra.mxu1 %v3102_v62  ;;  %v3186_v62 = vld [vmem:[%s4470_s3 + $0x8c0] ss:$48 sps:$4 sm:$0xff]  }
 0x11c   :  { %2227 = vmatpush1.bf16.msra.mxu0 %v3105_v8  ;;  %2185 = vmatprep.subr.bf16.mxu1 %v3110_v63  ;;  %v3189_v8 = vld [vmem:[%s4470_s3 + $0x5c0] ss:$48 sps:$4 sm:$0xff]   ;;  %v3194_v63 = vld [vmem:[%s4470_s3 + $0x864] ss:$48 sps:$4 sm:$0xff]  }
 0x11d   :  { %2228 = vmatprep.subr.bf16.mxu0 %v3113_v9  ;;  %v3197_v9 = vld [vmem:[%s4470_s3 + $0x564] ss:$48 sps:$4 sm:$0xff]  }
 0x11f   :  { %2186 = vmatpush1.bf16.msra.mxu1 %v3108_v3  ;;  %v3192_v3 = vld [vmem:[%s4470_s3 + $0x860] ss:$48 sps:$4 sm:$0xff]  }
 0x120   :  { %2229 = vmatpush1.bf16.msra.mxu0 %v3111_v4  ;;  %2187 = vmatprep.subr.bf16.mxu1 %v3116_v7  ;;  %v3195_v4 = vld [vmem:[%s4470_s3 + $0x560] ss:$48 sps:$4 sm:$0xff]   ;;  %v3200_v7 = vld [vmem:[%s4470_s3 + $0x804] ss:$48 sps:$4 sm:$0xff]  }
 0x121   :  { %2230 = vmatprep.subr.bf16.mxu0 %v3119_v5  ;;  %v3203_v5 = vld [vmem:[%s4470_s3 + $0x504] ss:$48 sps:$4 sm:$0xff]  }
 0x123   :  { %2188 = vmatpush1.bf16.msra.mxu1 %v3114_v6  ;;  %v3198_v6 = vld [vmem:[%s4470_s3 + $0x800] ss:$48 sps:$4 sm:$0xff]  }
 0x124   :  { %2231 = vmatpush1.bf16.msra.mxu0 %v3117_v12  ;;  %2189 = vmatprep.subr.bf16.mxu1 %v3122_v14  ;;  %v3201_v12 = vld [vmem:[%s4470_s3 + $0x500] ss:$48 sps:$4 sm:$0xff]   ;;  %v3206_v14 = vld [vmem:[%s4470_s3 + $0x7a4] ss:$48 sps:$4 sm:$0xff]  }
 0x125   :  { %2232 = vmatprep.subr.bf16.mxu0 %v3125_v15  ;;  %v3209_v15 = vld [vmem:[%s4470_s3 + $0x4a4] ss:$48 sps:$4 sm:$0xff]  }
 0x127   :  { %2190 = vmatpush1.bf16.msra.mxu1 %v3120_v16  ;;  %v3204_v16 = vld [vmem:[%s4470_s3 + $0x7a0] ss:$48 sps:$4 sm:$0xff]  }
 0x128   :  { %2233 = vmatpush1.bf16.msra.mxu0 %v3123_v17  ;;  %2191 = vmatprep.subr.bf16.mxu1 %v3128_v18  ;;  %v3207_v17 = vld [vmem:[%s4470_s3 + $0x4a0] ss:$48 sps:$4 sm:$0xff]   ;;  %v3212_v18 = vld [vmem:[%s4470_s3 + $0x744] ss:$48 sps:$4 sm:$0xff]  }
 0x129   :  { %2234 = vmatprep.subr.bf16.mxu0 %v3131_v19  ;;  %v3215_v19 = vld [vmem:[%s4470_s3 + $0x444] ss:$48 sps:$4 sm:$0xff]  }
 0x12b   :  { %2192 = vmatpush1.bf16.msra.mxu1 %v3126_v20  ;;  %v3210_v20 = vld [vmem:[%s4470_s3 + $0x740] ss:$48 sps:$4 sm:$0xff]  }
 0x12c   :  { %2235 = vmatpush1.bf16.msra.mxu0 %v3129_v21  ;;  %2193 = vmatprep.subr.bf16.mxu1 %v3134_v22  ;;  %v3213_v21 = vld [vmem:[%s4470_s3 + $0x440] ss:$48 sps:$4 sm:$0xff]   ;;  %v3218_v22 = vld [vmem:[%s4470_s3 + $0x6e4] ss:$48 sps:$4 sm:$0xff]  }
 0x12d   :  { %2236 = vmatprep.subr.bf16.mxu0 %v3137_v23  ;;  %v3221_v23 = vld [vmem:[%s4470_s3 + $0x3e4] ss:$48 sps:$4 sm:$0xff]  }
 0x12f   :  { %2194 = vmatpush1.bf16.msra.mxu1 %v3132_v24  ;;  %v3216_v24 = vld [vmem:[%s4470_s3 + $0x6e0] ss:$48 sps:$4 sm:$0xff]  }
 0x130   :  { %2237 = vmatpush1.bf16.msra.mxu0 %v3135_v25  ;;  %2195 = vmatprep.subr.bf16.mxu1 %v3140_v26  ;;  %v3219_v25 = vld [vmem:[%s4470_s3 + $0x3e0] ss:$48 sps:$4 sm:$0xff]   ;;  %v3224_v26 = vld [vmem:[%s4470_s3 + $0x684] ss:$48 sps:$4 sm:$0xff]  }
 0x131   :  { %2265 = vmatprep.subr.bf16.mxu0 %v3143_v27  ;;  %v3227_v27 = vld [vmem:[%s4470_s3 + $0x384] ss:$48 sps:$4 sm:$0xff]  }
 0x133   :  { %2196 = vmatpush2.bf16.msra.mxu1 %v3138_v28  ;;  %2255 = vmatmul.mubr.bf16.vlgmr.msra.gmra.mxu0 %v3628_v11  ;;  %v3222_v28 = vld [vmem:[%s4470_s3 + $0x680] ss:$48 sps:$4 sm:$0xff]  }
 0x134   :  { %2266 = vmatpush1.bf16.msra.mxu0 %v3141_v29  ;;  %2297 = vmatprep.mubr.bf16.mxu0 %v3626_v10  ;;  %v3225_v29 = vld [vmem:[%s4470_s3 + $0x380] ss:$48 sps:$4 sm:$0xff]  }
 0x135   :  { %2197 = vmatprep.subr.bf16.mxu1 %v3146_v30  ;;  %2267 = vmatprep.subr.bf16.mxu0 %v3149_v31  ;;  %v3230_v30 = vld [vmem:[%s4470_s3 + $0x624] ss:$48 sps:$4 sm:$0xff]  }
 0x136   :  { %v3233_v31 = vld [vmem:[%s4470_s3 + $0x324] ss:$48 sps:$4 sm:$0xff]  }
 0x137   :  { %2198 = vmatpush2.bf16.msra.mxu1 %v3144_v32  ;;  %v3228_v32 = vld [vmem:[%s4470_s3 + $0x620] ss:$48 sps:$4 sm:$0xff]  }
 0x138   :  { %2268 = vmatpush1.bf16.msra.mxu0 %v3147_v33  ;;  %2199 = vmatprep.subr.bf16.mxu1 %v3152_v37  ;;  %v3231_v33 = vld [vmem:[%s4470_s3 + $0x320] ss:$48 sps:$4 sm:$0xff]   ;;  %v3236_v37 = vld [vmem:[%s4470_s3 + $0x2cc] ss:$48 sps:$4 sm:$0xff]  }
 0x139   :  { %2269 = vmatprep.subr.bf16.mxu0 %v3155_v39  ;;  %v3239_v39 = vld [vmem:[%s4470_s3 + $0x8cc] ss:$48 sps:$4 sm:$0xff]  }
 0x13b   :  { %2200 = vmatpush2.bf16.msra.mxu1 %v3150_v40  ;;  %v4225_v40 = vld [vmem:[%s4473_s4] sm:$0xff] }
 0x13c   :  { %2270 = vmatpush1.bf16.msra.mxu0 %v3153_v41  ;;  %2201 = vmatprep.subr.bf16.mxu1 %v3158_v42  ;;  %v3234_v41 = vld [vmem:[%s4470_s3 + $0x2c8] ss:$48 sps:$4 sm:$0xff]  }
 0x13d   :  { %2271 = vmatprep.subr.bf16.mxu0 %v3161_v43  ;;  %v3237_v42 = vld [vmem:[%s4470_s3 + $0x8c8] ss:$48 sps:$4 sm:$0xff]   ;;  %v424_v43 = vrot.slane %v4225_v40, %v3606_v38 }
 0x13f   :  { %2202 = vmatpush2.bf16.msra.mxu1 %v3156_v44  ;;  %v3242_v44 = vld [vmem:[%s4470_s3 + $0x26c] ss:$48 sps:$4 sm:$0xff]  }
 0x140   :  { %2272 = vmatpush1.bf16.msra.mxu0 %v3159_v45  ;;  %2203 = vmatprep.subr.bf16.mxu1 %v3164_v46  ;;  %v3245_v45 = vld [vmem:[%s4470_s3 + $0x86c] ss:$48 sps:$4 sm:$0xff]  }
 0x141   :  { %2273 = vmatprep.subr.bf16.mxu0 %v3167_v47  ;;  %v428_v47 = vrot.slane %v4225_v40, %v3597_v35 }
 0x143   :  { %2204 = vmatpush2.bf16.msra.mxu1 %v3162_v48 }
 0x144   :  { %2274 = vmatpush1.bf16.msra.mxu0 %v3165_v49  ;;  %2205 = vmatprep.subr.bf16.mxu1 %v3170_v1  ;;  %v3240_v49 = vld [vmem:[%s4470_s3 + $0x268] ss:$48 sps:$4 sm:$0xff]  }
 0x145   :  { %2275 = vmatprep.subr.bf16.mxu0 %v3173_v2 }
 0x147   :  { %2206 = vmatpush2.bf16.msra.mxu1 %v3168_v50  ;;  %v3243_v50 = vld [vmem:[%s4470_s3 + $0x868] ss:$48 sps:$4 sm:$0xff]  }
 0x148   :  { %2276 = vmatpush1.bf16.msra.mxu0 %v3171_v0  ;;  %2207 = vmatprep.subr.bf16.mxu1 %v3176_v51  ;;  %v3248_v0 = vld [vmem:[%s4470_s3 + $0x20c] ss:$48 sps:$4 sm:$0xff]  }
 0x149   :  { %2277 = vmatprep.subr.bf16.mxu0 %v3179_v52  ;;  %v3251_v52 = vld [vmem:[%s4470_s3 + $0x80c] ss:$48 sps:$4 sm:$0xff]  }
 0x14b   :  { %2208 = vmatpush2.bf16.msra.mxu1 %v3174_v53 }
 0x14c   :  { %2278 = vmatpush1.bf16.msra.mxu0 %v3177_v54  ;;  %2209 = vmatprep.subr.bf16.mxu1 %v3182_v55  ;;  %v3246_v55 = vld [vmem:[%s4470_s3 + $0x208] ss:$48 sps:$4 sm:$0xff]  }
 0x14d   :  { %2279 = vmatprep.subr.bf16.mxu0 %v3185_v56 }
 0x14f   :  { %2210 = vmatpush2.bf16.msra.mxu1 %v3180_v57 }
 0x150   :  { %2280 = vmatpush1.bf16.msra.mxu0 %v3183_v58  ;;  %2308 = vmatprep.subr.bf16.mxu1 %v3188_v59 }
 0x151   :  { %2281 = vmatprep.subr.bf16.mxu0 %v3191_v61  ;;  %v3249_v61 = vld [vmem:[%s4470_s3 + $0x808] ss:$48 sps:$4 sm:$0xff]  }
 0x152   :  { %2212 = vmatmul.mubr.bf16.vlgmr.msra.gmra.mxu1 %v3633_v13 }
 0x153   :  { %2309 = vmatpush1.bf16.msra.mxu1 %v3186_v62  ;;  %2340 = vmatprep.mubr.bf16.mxu1 %v3358_v60 }
 0x154   :  { %2282 = vmatpush2.bf16.msra.mxu0 %v3189_v8  ;;  %2310 = vmatprep.subr.bf16.mxu1 %v3194_v63  ;;  %v3257_v8 = vld [vmem:[%s4470_s3 + $0x7ac] ss:$48 sps:$4 sm:$0xff]  }
 0x155   :  { %2283 = vmatprep.subr.bf16.mxu0 %v3197_v9 }
 0x157   :  { %2311 = vmatpush1.bf16.msra.mxu1 %v3192_v3 }
 0x158   :  { %2284 = vmatpush2.bf16.msra.mxu0 %v3195_v4  ;;  %2312 = vmatprep.subr.bf16.mxu1 %v3200_v7  ;;  %v3252_v4 = vld [vmem:[%s4470_s3 + $0x1a8] ss:$48 sps:$4 sm:$0xff]  }
 0x159   :  { %2285 = vmatprep.subr.bf16.mxu0 %v3203_v5 }
 0x15b   :  { %2313 = vmatpush1.bf16.msra.mxu1 %v3198_v6  ;;  %v3255_v6 = vld [vmem:[%s4470_s3 + $0x7a8] ss:$48 sps:$4 sm:$0xff]  }
 0x15c   :  { %2286 = vmatpush2.bf16.msra.mxu0 %v3201_v12  ;;  %2314 = vmatprep.subr.bf16.mxu1 %v3206_v14  ;;  %v3260_v12 = vld [vmem:[%s4470_s3 + $0x14c] ss:$48 sps:$4 sm:$0xff]  }
 0x15d   :  { %2287 = vmatprep.subr.bf16.mxu0 %v3209_v15  ;;  %v3263_v15 = vld [vmem:[%s4470_s3 + $0x74c] ss:$48 sps:$4 sm:$0xff]  }
 0x15f   :  { %2315 = vmatpush1.bf16.msra.mxu1 %v3204_v16 }
 0x160   :  { %2288 = vmatpush2.bf16.msra.mxu0 %v3207_v17  ;;  %2316 = vmatprep.subr.bf16.mxu1 %v3212_v18  ;;  %v3258_v17 = vld [vmem:[%s4470_s3 + $0x148] ss:$48 sps:$4 sm:$0xff]  }
 0x161   :  { %2289 = vmatprep.subr.bf16.mxu0 %v3215_v19  ;;  %v3261_v18 = vld [vmem:[%s4470_s3 + $0x748] ss:$48 sps:$4 sm:$0xff]   ;;  %v3266_v19 = vld [vmem:[%s4470_s3 + $0xec] ss:$48 sps:$4 sm:$0xff]  }
 0x163   :  { %2317 = vmatpush1.bf16.msra.mxu1 %v3210_v20  ;;  %v3269_v20 = vld [vmem:[%s4470_s3 + $0x6ec] ss:$48 sps:$4 sm:$0xff]  }
 0x164   :  { %2290 = vmatpush2.bf16.msra.mxu0 %v3213_v21  ;;  %2318 = vmatprep.subr.bf16.mxu1 %v3218_v22  ;;  %v3264_v21 = vld [vmem:[%s4470_s3 + $0xe8] ss:$48 sps:$4 sm:$0xff]  }
 0x165   :  { %2291 = vmatprep.subr.bf16.mxu0 %v3221_v23  ;;  %v3267_v22 = vld [vmem:[%s4470_s3 + $0x6e8] ss:$48 sps:$4 sm:$0xff]   ;;  %v3272_v23 = vld [vmem:[%s4470_s3 + $0x8c] ss:$48 sps:$4 sm:$0xff]  }
 0x167   :  { %2319 = vmatpush1.bf16.msra.mxu1 %v3216_v24  ;;  %v3275_v24 = vld [vmem:[%s4470_s3 + $0x68c] ss:$48 sps:$4 sm:$0xff]  }
 0x168   :  { %2292 = vmatpush2.bf16.msra.mxu0 %v3219_v25  ;;  %2320 = vmatprep.subr.bf16.mxu1 %v3224_v26  ;;  %v3270_v26 = vld [vmem:[%s4470_s3 + $0x88] ss:$48 sps:$4 sm:$0xff]  }
 0x169   :  { %2293 = vmatprep.subr.bf16.mxu0 %v3227_v27 }
 0x16b   :  { %2321 = vmatpush1.bf16.msra.mxu1 %v3222_v28 }
 0x16c   :  { %2294 = vmatpush2.bf16.msra.mxu0 %v3225_v29  ;;  %2322 = vmatprep.subr.bf16.mxu1 %v3230_v30  ;;  %v3273_v29 = vld [vmem:[%s4470_s3 + $0x688] ss:$48 sps:$4 sm:$0xff]   ;;  %v3278_v30 = vld [vmem:[%s4470_s3 + $0x2c] ss:$48 sps:$4 sm:$0xff]  }
 0x16d   :  { %2295 = vmatprep.subr.bf16.mxu0 %v3233_v31 }
 0x16f   :  { %2323 = vmatpush1.bf16.msra.mxu1 %v3228_v32  ;;  %v3281_v32 = vld [vmem:[%s4470_s3 + $0x62c] ss:$48 sps:$4 sm:$0xff]  }
 0x170   :  { %2296 = vmatpush2.bf16.msra.mxu0 %v3231_v33  ;;  %2351 = vmatprep.subr.bf16.mxu1 %v3236_v37 }
 0x171   :  { %2394 = vmatprep.subr.bf16.mxu0 %v3239_v39 }
 0x172   :  { %2341 = vmatmul.mubr.bf16.vlgmr.msra.gmra.mxu1 %v3628_v11  ;;  %v1998_v46 = vpop.f32.mrf.mxu1 }
 0x173   :  { %2298 = vmatmul.mubr.bf16.vlgmr.msra.gmra.mxu0 %v3633_v13  ;;  %2352 = vmatpush1.bf16.msra.mxu1 %v3234_v41  ;;  %v1955_v48 = vpop.f32.mrf.mxu0 }
 0x174   :  { %2383 = vmatprep.mubr.bf16.mxu1 %v3626_v10  ;;  %v1956_v1 = vadd.f32 %v1955_v48, %v424_v43  ;;  %2395 = vmatpush1.bf16.msra.mxu0 %v3237_v42  ;;  %v2000_v2 = vpop.f32.mrf.mxu1  ;;  %v3276_v42 = vld [vmem:[%s4470_s3 + $0x28] ss:$48 sps:$4 sm:$0xff]  }
 0x175   :  { %v1957_v51 = vpop.f32.mrf.mxu0  ;;  %2353 = vmatprep.subr.bf16.mxu1 %v3242_v44  ;;  %2396 = vmatprep.subr.bf16.mxu0 %v3245_v45 }
 0x176   :  { %v1999_v53 = vadd.f32 %v1998_v46, %v1956_v1  ;;  %v1958_v10 = vadd.f32 %v1957_v51, %v428_v47  ;;  %2426 = vmatprep.mubr.bf16.mxu0 %v3358_v60  ;;  %v2002_v58 = vpop.f32.mrf.mxu1  ;;  %v3254_v60 = vld [vmem:[%s4470_s3 + $0x1ac] ss:$48 sps:$4 sm:$0xff]   ;;  %v3279_v46 = vld [vmem:[%s4470_s3 + $0x628] ss:$48 sps:$4 sm:$0xff]  }
 0x177   :  { %2354 = vmatpush1.bf16.msra.mxu1 %v3240_v49  ;;  %v1959_v54 = vpop.f32.mrf.mxu0 }
 0x178   :  { %v2461_v56 = vmul.f32 0.70710677, %v1999_v53  ;;  %v2001_v57 = vadd.f32 %v2000_v2, %v1958_v10  ;;  %v1960_v59 = vadd.f32 %v1959_v54, %v424_v43  ;;  %2397 = vmatpush1.bf16.msra.mxu0 %v3243_v50  ;;  %2355 = vmatprep.subr.bf16.mxu1 %v3248_v0  ;;  %v2004_v5 = vpop.f32.mrf.mxu1  ;;  %v2437_v27 = vmul.f32 0.5, %v1999_v53  ;;  %v3282_v50 = vld [vmem:[%s4470_s3 + $0x5c8] ss:$48 sps:$4 sm:$0xff]  }
 0x179   :  { %v1961_v62 = vpop.f32.mrf.mxu0  ;;  %2398 = vmatprep.subr.bf16.mxu0 %v3251_v52  ;;  %v3287_v0 = vld [vmem:[%s4470_s3 + $0x56c] ss:$48 sps:$4 sm:$0xff]   ;;  %v3285_v52 = vld [vmem:[%s4470_s3 + $0x568] ss:$48 sps:$4 sm:$0xff]  }
 0x17a   :  { %3310 = verf.f32 %v2461_v56  ;;  %v2462_v63 = vmul.f32 0.70710677, %v2001_v57  ;;  %v2003_v9 = vadd.f32 %v2002_v58, %v1960_v59  ;;  %v1962_v3 = vadd.f32 %v1961_v62, %v428_v47  ;;  %v3284_v47 = vld [vmem:[%s4470_s3 + $0x5cc] ss:$48 sps:$4 sm:$0xff]   ;;  %v3288_v10 = vld [vmem:[%s4470_s3 + $0x508] ss:$48 sps:$4 sm:$0xff]  }
 0x17b   :  { %2356 = vmatpush1.bf16.msra.mxu1 %v3246_v55  ;;  %v2438_v37 = vmul.f32 0.5, %v2001_v57  ;;  %v3290_v53 = vld [vmem:[%s4470_s3 + $0x50c] ss:$48 sps:$4 sm:$0xff]   ;;  %v3294_v56 = vld [vmem:[%s4470_s3 + $0x448] ss:$48 sps:$4 sm:$0xff]  }
 0x17c   :  { %3312 = verf.f32 %v2462_v63  ;;  %v2473_v7 = vmul.f32 0.70710677, %v2003_v9  ;;  %2399 = vmatpush1.bf16.msra.mxu0 %v3249_v61  ;;  %2357 = vmatprep.subr.bf16.mxu1 %v3254_v60  ;;  %v2005_v14 = vadd.f32 %v2004_v5, %v1962_v3  ;;  %v2449_v44 = vmul.f32 0.5, %v2003_v9  ;;  %v3293_v54 = vld [vmem:[%s4470_s3 + $0x4ac] ss:$48 sps:$4 sm:$0xff]  }
 0x17d   :  { %2400 = vmatprep.subr.bf16.mxu0 %v3257_v8  ;;  %v3296_v55 = vld [vmem:[%s4470_s3 + $0x44c] ss:$48 sps:$4 sm:$0xff]   ;;  %v3297_v58 = vld [vmem:[%s4470_s3 + $0x3e8] ss:$48 sps:$4 sm:$0xff]   ;;  %v435_v8 = vsub.s32 3, %v3594_v34  ;;  %v432_v9 = vrot.slane %v4225_v40, %v3600_v36 }
 0x17e   :  { %3314 = verf.f32 %v2473_v7  ;;  %v2474_v16 = vmul.f32 0.70710677, %v2005_v14  ;;  %v2450_v1 = vmul.f32 0.5, %v2005_v14  ;;  %v3299_v57 = vld [vmem:[%s4470_s3 + $0x3ec] ss:$48 sps:$4 sm:$0xff]  }
 0x17f   :  { %2358 = vmatpush1.bf16.msra.mxu1 %v3252_v4  ;;  %v3302_v59 = vld [vmem:[%s4470_s3 + $0x38c] ss:$48 sps:$4 sm:$0xff]   ;;  %v3300_v61 = vld [vmem:[%s4470_s3 + $0x388] ss:$48 sps:$4 sm:$0xff]   ;;  %v436_v3 = vrot.slane %v4225_v40, %v435_v8 }
 0x180   :  { %2401 = vmatpush1.bf16.msra.mxu0 %v3255_v6  ;;  %2359 = vmatprep.subr.bf16.mxu1 %v3260_v12  ;;  %3316 = verf.f32 %v2474_v16  ;;  %v3305_v60 = vld [vmem:[%s4470_s3 + $0x32c] ss:$48 sps:$4 sm:$0xff]   ;;  %v3303_v62 = vld [vmem:[%s4470_s3 + $0x328] ss:$48 sps:$4 sm:$0xff]  }
 0x181   :  { %2402 = vmatprep.subr.bf16.mxu0 %v3263_v15 }
 0x183   :  { %2360 = vmatpush1.bf16.msra.mxu1 %v3258_v17 }
 0x184   :  { %2403 = vmatpush1.bf16.msra.mxu0 %v3261_v18  ;;  %2361 = vmatprep.subr.bf16.mxu1 %v3266_v19 }
 0x185   :  { %2404 = vmatprep.subr.bf16.mxu0 %v3269_v20 }
 0x187   :  { %v3311_v25 = vpop.eup %3310  ;;  %2362 = vmatpush1.bf16.msra.mxu1 %v3264_v21 }
 0x188   :  { %v2509_v28 = vadd.f32 1.0, %v3311_v25  ;;  %2405 = vmatpush1.bf16.msra.mxu0 %v3267_v22  ;;  %2363 = vmatprep.subr.bf16.mxu1 %v3272_v23 }
 0x189   :  { %v3313_v31 = vpop.eup %3312  ;;  %2406 = vmatprep.subr.bf16.mxu0 %v3275_v24 }
 0x18a   :  { %v2533_v33 = vmul.f32 %v2509_v28, %v2437_v27  ;;  %v2510_v39 = vadd.f32 1.0, %v3313_v31 }
 0x18b   :  { %v3315_v41 = vpop.eup %3314  ;;  %2364 = vmatpush1.bf16.msra.mxu1 %v3270_v26 }
 0x18c   :  { %2557 = vst [vmem:[%s4474_s5] sm:$0xff] %v2533_v33  ;;  %v2534_v43 = vmul.f32 %v2510_v39, %v2438_v37  ;;  %v2521_v45 = vadd.f32 1.0, %v3315_v41  ;;  %2407 = vmatpush1.bf16.msra.mxu0 %v3273_v29  ;;  %2365 = vmatprep.subr.bf16.mxu1 %v3278_v30 }
 0x18d   :  { %2408 = vmatprep.subr.bf16.mxu0 %v3281_v32  ;;  %v3317_v48 = vpop.eup %3316 }
 0x18e   :  { %2558 = vst [vmem:[%s4474_s5 + $0x8] sm:$0xff] %v2534_v43  ;;  %v2545_v49 = vmul.f32 %v2521_v45, %v2449_v44  ;;  %v2522_v2 = vadd.f32 1.0, %v3317_v48  ;;  %v439_v43 = vsub.s32 4, %v3594_v34  ;;  %v443_v48 = vsub.s32 5, %v3594_v34 }
 0x18f   :  { %2366 = vmatpush1.bf16.msra.mxu1 %v3276_v42 }
 0x190   :  { %2569 = vst [vmem:[%s4474_s5 + $0x60] sm:$0x3] %v2545_v49  ;;  %2409 = vmatpush1.bf16.msra.mxu0 %v3279_v46  ;;  %2367 = vmatprep.subr.bf16.mxu1 %v3284_v47  ;;  %v2546_v51 = vmul.f32 %v2522_v2, %v2450_v1  ;;  %v440_v1 = vrot.slane %v4225_v40, %v439_v43 }
 0x192   :  { %2570 = vst [vmem:[%s4474_s5 + $0x68] sm:$0x3] %v2546_v51 }
 0x193   :  { %2368 = vmatpush2.bf16.msra.mxu1 %v3282_v50  ;;  %2427 = vmatmul.mubr.bf16.vlgmr.msra.gmra.mxu0 %v3628_v11  ;;  %v3291_v11 = vld [vmem:[%s4470_s3 + $0x4a8] ss:$48 sps:$4 sm:$0xff]   ;;  %v2084_v63 = vpop.f32.mrf.mxu0  ;;  %v444_v50 = vrot.slane %v4225_v40, %v443_v48 }
 0x194   :  { %2369 = vmatprep.subr.bf16.mxu1 %v3287_v0 }
 0x195   :  { %v2086_v7 = vpop.f32.mrf.mxu0 }
 0x197   :  { %2370 = vmatpush2.bf16.msra.mxu1 %v3285_v52  ;;  %v2088_v16 = vpop.f32.mrf.mxu0 }
 0x198   :  { %2371 = vmatprep.subr.bf16.mxu1 %v3290_v53 }
 0x199   :  { %v2090_v24 = vpop.f32.mrf.mxu0 }
 0x19b   :  { %2372 = vmatpush2.bf16.msra.mxu1 %v3288_v10 }
 0x19c   :  { %2373 = vmatprep.subr.bf16.mxu1 %v3293_v54 }
 0x19f   :  { %2374 = vmatpush2.bf16.msra.mxu1 %v3291_v11 }
 0x1a0   :  { %2375 = vmatprep.subr.bf16.mxu1 %v3296_v55 }
 0x1a3   :  { %2376 = vmatpush2.bf16.msra.mxu1 %v3294_v56 }
 0x1a4   :  { %2377 = vmatprep.subr.bf16.mxu1 %v3299_v57 }
 0x1a7   :  { %2378 = vmatpush2.bf16.msra.mxu1 %v3297_v58 }
 0x1a8   :  { %2379 = vmatprep.subr.bf16.mxu1 %v3302_v59 }
 0x1ab   :  { %2380 = vmatpush2.bf16.msra.mxu1 %v3300_v61 }
 0x1ac   :  { %2381 = vmatprep.subr.bf16.mxu1 %v3305_v60 }
 0x1af   :  { %2382 = vmatpush2.bf16.msra.mxu1 %v3303_v62 }
 0x1b2   :  { %v2041_v4 = vpop.f32.mrf.mxu1  ;;  %2384 = vmatmul.mubr.bf16.vlgmr.msra.gmra.mxu1 %v3633_v13 }
 0x1b3   :  { %v2042_v5 = vadd.f32 %v2041_v4, %v432_v9 }
 0x1b4   :  { %v2043_v6 = vpop.f32.mrf.mxu1 }
 0x1b5   :  { %v2085_v12 = vadd.f32 %v2084_v63, %v2042_v5  ;;  %v2044_v14 = vadd.f32 %v2043_v6, %v436_v3 }
 0x1b6   :  { %v2045_v15 = vpop.f32.mrf.mxu1 }
 0x1b7   :  { %v2463_v17 = vmul.f32 0.70710677, %v2085_v12  ;;  %v2087_v18 = vadd.f32 %v2086_v7, %v2044_v14  ;;  %v2046_v19 = vadd.f32 %v2045_v15, %v432_v9  ;;  %v2439_v28 = vmul.f32 0.5, %v2085_v12 }
 0x1b8   :  { %v2047_v20 = vpop.f32.mrf.mxu1 }
 0x1b9   :  { %3318 = verf.f32 %v2463_v17  ;;  %v2464_v21 = vmul.f32 0.70710677, %v2087_v18  ;;  %v2089_v22 = vadd.f32 %v2088_v16, %v2046_v19  ;;  %v2048_v23 = vadd.f32 %v2047_v20, %v436_v3 }
 0x1ba   :  { %v2440_v32 = vmul.f32 0.5, %v2087_v18 }
 0x1bb   :  { %3320 = verf.f32 %v2464_v21  ;;  %v2475_v25 = vmul.f32 0.70710677, %v2089_v22  ;;  %v2091_v26 = vadd.f32 %v2090_v24, %v2048_v23  ;;  %v2451_v41 = vmul.f32 0.5, %v2089_v22 }
 0x1bd   :  { %3322 = verf.f32 %v2475_v25  ;;  %v2476_v13 = vmul.f32 0.70710677, %v2091_v26  ;;  %v2452_v46 = vmul.f32 0.5, %v2091_v26  ;;  %v447_v26 = vsub.s32 6, %v3594_v34 }
 0x1bf   :  { %3324 = verf.f32 %v2476_v13  ;;  %v451_v13 = vsub.s32 7, %v3594_v34 }
 0x1c6   :  { %v3319_v27 = vpop.eup %3318 }
 0x1c7   :  { %v2511_v29 = vadd.f32 1.0, %v3319_v27 }
 0x1c8   :  { %v3321_v30 = vpop.eup %3320 }
 0x1c9   :  { %v2535_v31 = vmul.f32 %v2511_v29, %v2439_v28  ;;  %v2512_v33 = vadd.f32 1.0, %v3321_v30  ;;  %v448_v28 = vrot.slane %v4225_v40, %v447_v26  ;;  %v452_v29 = vrot.slane %v4225_v40, %v451_v13 }
 0x1ca   :  { %v3323_v37 = vpop.eup %3322 }
 0x1cb   :  { %2559 = vst [vmem:[%s4474_s5 + $0x10] sm:$0xff] %v2535_v31  ;;  %v2536_v39 = vmul.f32 %v2512_v33, %v2440_v32  ;;  %v2523_v42 = vadd.f32 1.0, %v3323_v37 }
 0x1cc   :  { %v3325_v44 = vpop.eup %3324 }
 0x1cd   :  { %2560 = vst [vmem:[%s4474_s5 + $0x18] sm:$0xff] %v2536_v39  ;;  %v2547_v45 = vmul.f32 %v2523_v42, %v2451_v41  ;;  %v2524_v47 = vadd.f32 1.0, %v3325_v44 }
 0x1cf   :  { %2571 = vst [vmem:[%s4474_s5 + $0x70] sm:$0x3] %v2547_v45  ;;  %v2548_v49 = vmul.f32 %v2524_v47, %v2452_v46 }
 0x1d1   :  { %2572 = vst [vmem:[%s4474_s5 + $0x78] sm:$0x3] %v2548_v49 }
 0x1d2   :  { %v2170_v2 = vpop.f32.mrf.mxu1 }
 0x1d3   :  { %v2127_v0 = vpop.f32.mrf.mxu0 }
 0x1d4   :  { %v2128_v51 = vadd.f32 %v2127_v0, %v440_v1  ;;  %v2172_v52 = vpop.f32.mrf.mxu1 }
 0x1d5   :  { %v2129_v53 = vpop.f32.mrf.mxu0 }
 0x1d6   :  { %v2171_v10 = vadd.f32 %v2170_v2, %v2128_v51  ;;  %v2130_v54 = vadd.f32 %v2129_v53, %v444_v50  ;;  %v2174_v57 = vpop.f32.mrf.mxu1 }
 0x1d7   :  { %v2131_v11 = vpop.f32.mrf.mxu0 }
 0x1d8   :  { %v2465_v55 = vmul.f32 0.70710677, %v2171_v10  ;;  %v2173_v56 = vadd.f32 %v2172_v52, %v2130_v54  ;;  %v2132_v58 = vadd.f32 %v2131_v11, %v440_v1  ;;  %v2176_v9 = vpop.f32.mrf.mxu1  ;;  %v2441_v5 = vmul.f32 0.5, %v2171_v10 }
 0x1d9   :  { %v2133_v59 = vpop.f32.mrf.mxu0 }
 0x1da   :  { %3326 = verf.f32 %v2465_v55  ;;  %v2466_v61 = vmul.f32 0.70710677, %v2173_v56  ;;  %v2175_v60 = vadd.f32 %v2174_v57, %v2132_v58  ;;  %v2134_v62 = vadd.f32 %v2133_v59, %v444_v50 }
 0x1db   :  { %v2442_v15 = vmul.f32 0.5, %v2173_v56 }
 0x1dc   :  { %3328 = verf.f32 %v2466_v61  ;;  %v2477_v63 = vmul.f32 0.70710677, %v2175_v60  ;;  %v2177_v3 = vadd.f32 %v2176_v9, %v2134_v62  ;;  %v2453_v19 = vmul.f32 0.5, %v2175_v60  ;;  %v418_v60 = vld [vmem:[%s4473_s4 + $0x8] sm:$0xf] }
 0x1de   :  { %3330 = verf.f32 %v2477_v63  ;;  %v2478_v4 = vmul.f32 0.70710677, %v2177_v3  ;;  %v2454_v23 = vmul.f32 0.5, %v2177_v3  ;;  %v456_v3 = vrot.slane %v418_v60, %v3606_v38 }
 0x1e0   :  { %3332 = verf.f32 %v2478_v4 }
 0x1e7   :  { %v3327_v7 = vpop.eup %3326 }
 0x1e8   :  { %v2513_v6 = vadd.f32 1.0, %v3327_v7  ;;  %v460_v7 = vrot.slane %v418_v60, %v3597_v35 }
 0x1e9   :  { %v3329_v12 = vpop.eup %3328 }
 0x1ea   :  { %v2537_v14 = vmul.f32 %v2513_v6, %v2441_v5  ;;  %v2514_v16 = vadd.f32 1.0, %v3329_v12 }
 0x1eb   :  { %v3331_v17 = vpop.eup %3330 }
 0x1ec   :  { %2561 = vst [vmem:[%s4474_s5 + $0x20] sm:$0xff] %v2537_v14  ;;  %v2538_v18 = vmul.f32 %v2514_v16, %v2442_v15  ;;  %v2525_v20 = vadd.f32 1.0, %v3331_v17 }
 0x1ed   :  { %v3333_v21 = vpop.eup %3332 }
 0x1ee   :  { %2562 = vst [vmem:[%s4474_s5 + $0x28] sm:$0xff] %v2538_v18  ;;  %v2549_v22 = vmul.f32 %v2525_v20, %v2453_v19  ;;  %v2526_v24 = vadd.f32 1.0, %v3333_v21 }
 0x1f0   :  { %2573 = vst [vmem:[%s4474_s5 + $0x80] sm:$0x3] %v2549_v22  ;;  %v2550_v25 = vmul.f32 %v2526_v24, %v2454_v23 }
 0x1f2   :  { %2574 = vst [vmem:[%s4474_s5 + $0x88] sm:$0x3] %v2550_v25 }
 0x1f3   :  { %v2256_v27 = vpop.f32.mrf.mxu0 }
 0x1f5   :  { %v2258_v31 = vpop.f32.mrf.mxu0 }
 0x1f7   :  { %v2260_v42 = vpop.f32.mrf.mxu0 }
 0x1f9   :  { %v2262_v1 = vpop.f32.mrf.mxu0 }
 0x212   :  { %v2213_v30 = vpop.f32.mrf.mxu1 }
 0x213   :  { %v2214_v32 = vadd.f32 %v2213_v30, %v448_v28 }
 0x214   :  { %v2215_v33 = vpop.f32.mrf.mxu1 }
 0x215   :  { %v2257_v37 = vadd.f32 %v2256_v27, %v2214_v32  ;;  %v2216_v39 = vadd.f32 %v2215_v33, %v452_v29 }
 0x216   :  { %v2217_v41 = vpop.f32.mrf.mxu1 }
 0x217   :  { %v2467_v43 = vmul.f32 0.70710677, %v2257_v37  ;;  %v2259_v44 = vadd.f32 %v2258_v31, %v2216_v39  ;;  %v2218_v45 = vadd.f32 %v2217_v41, %v448_v28  ;;  %v2443_v51 = vmul.f32 0.5, %v2257_v37 }
 0x218   :  { %v2219_v46 = vpop.f32.mrf.mxu1 }
 0x219   :  { %3334 = verf.f32 %v2467_v43  ;;  %v2468_v47 = vmul.f32 0.70710677, %v2259_v44  ;;  %v2261_v48 = vadd.f32 %v2260_v42, %v2218_v45  ;;  %v2220_v49 = vadd.f32 %v2219_v46, %v452_v29 }
 0x21a   :  { %v2444_v54 = vmul.f32 0.5, %v2259_v44 }
 0x21b   :  { %3336 = verf.f32 %v2468_v47  ;;  %v2479_v2 = vmul.f32 0.70710677, %v2261_v48  ;;  %v2263_v40 = vadd.f32 %v2262_v1, %v2220_v49  ;;  %v2455_v57 = vmul.f32 0.5, %v2261_v48 }
 0x21c   :  { %v464_v49 = vrot.slane %v418_v60, %v3600_v36  ;;  %v468_v1 = vrot.slane %v418_v60, %v435_v8 }
 0x21d   :  { %3338 = verf.f32 %v2479_v2  ;;  %v2480_v50 = vmul.f32 0.70710677, %v2263_v40  ;;  %v2456_v62 = vmul.f32 0.5, %v2263_v40 }
 0x21f   :  { %3340 = verf.f32 %v2480_v50 }
 0x226   :  { %v3335_v0 = vpop.eup %3334 }
 0x227   :  { %v2515_v52 = vadd.f32 1.0, %v3335_v0 }
 0x228   :  { %v3337_v53 = vpop.eup %3336 }
 0x229   :  { %v2539_v10 = vmul.f32 %v2515_v52, %v2443_v51  ;;  %v2516_v11 = vadd.f32 1.0, %v3337_v53 }
 0x22a   :  { %v3339_v55 = vpop.eup %3338 }
 0x22b   :  { %2563 = vst [vmem:[%s4474_s5 + $0x30] sm:$0xff] %v2539_v10  ;;  %v2540_v56 = vmul.f32 %v2516_v11, %v2444_v54  ;;  %v2527_v58 = vadd.f32 1.0, %v3339_v55 }
 0x22c   :  { %v3341_v59 = vpop.eup %3340 }
 0x22d   :  { %2564 = vst [vmem:[%s4474_s5 + $0x38] sm:$0xff] %v2540_v56  ;;  %v2551_v61 = vmul.f32 %v2527_v58, %v2455_v57  ;;  %v2528_v63 = vadd.f32 1.0, %v3341_v59 }
 0x22f   :  { %2575 = vst [vmem:[%s4474_s5 + $0x90] sm:$0x3] %v2551_v61  ;;  %v2552_v9 = vmul.f32 %v2528_v63, %v2456_v62 }
 0x231   :  { %2576 = vst [vmem:[%s4474_s5 + $0x98] sm:$0x3] %v2552_v9 }
 0x232   :  { %v2342_v4 = vpop.f32.mrf.mxu1 }
 0x233   :  { %v2299_v5 = vpop.f32.mrf.mxu0 }
 0x234   :  { %v2300_v6 = vadd.f32 %v2299_v5, %v456_v3  ;;  %v2344_v12 = vpop.f32.mrf.mxu1 }
 0x235   :  { %v2301_v14 = vpop.f32.mrf.mxu0 }
 0x236   :  { %v2343_v15 = vadd.f32 %v2342_v4, %v2300_v6  ;;  %v2302_v16 = vadd.f32 %v2301_v14, %v460_v7  ;;  %v2346_v20 = vpop.f32.mrf.mxu1 }
 0x237   :  { %v2303_v17 = vpop.f32.mrf.mxu0 }
 0x238   :  { %v2469_v18 = vmul.f32 0.70710677, %v2343_v15  ;;  %v2345_v19 = vadd.f32 %v2344_v12, %v2302_v16  ;;  %v2304_v21 = vadd.f32 %v2303_v17, %v456_v3  ;;  %v2348_v26 = vpop.f32.mrf.mxu1  ;;  %v2445_v28 = vmul.f32 0.5, %v2343_v15 }
 0x239   :  { %v2305_v22 = vpop.f32.mrf.mxu0 }
 0x23a   :  { %3342 = verf.f32 %v2469_v18  ;;  %v2470_v38 = vmul.f32 0.70710677, %v2345_v19  ;;  %v2347_v23 = vadd.f32 %v2346_v20, %v2304_v21  ;;  %v2306_v24 = vadd.f32 %v2305_v22, %v460_v7 }
 0x23b   :  { %v2446_v32 = vmul.f32 0.5, %v2345_v19 }
 0x23c   :  { %3344 = verf.f32 %v2470_v38  ;;  %v2481_v25 = vmul.f32 0.70710677, %v2347_v23  ;;  %v2349_v35 = vadd.f32 %v2348_v26, %v2306_v24  ;;  %v2457_v41 = vmul.f32 0.5, %v2347_v23 }
 0x23e   :  { %3346 = verf.f32 %v2481_v25  ;;  %v2482_v13 = vmul.f32 0.70710677, %v2349_v35  ;;  %v2458_v45 = vmul.f32 0.5, %v2349_v35 }
 0x240   :  { %3348 = verf.f32 %v2482_v13 }
 0x247   :  { %v3343_v27 = vpop.eup %3342 }
 0x248   :  { %v2517_v29 = vadd.f32 1.0, %v3343_v27 }
 0x249   :  { %v3345_v30 = vpop.eup %3344 }
 0x24a   :  { %v2541_v31 = vmul.f32 %v2517_v29, %v2445_v28  ;;  %v2518_v33 = vadd.f32 1.0, %v3345_v30 }
 0x24b   :  { %v3347_v37 = vpop.eup %3346 }
 0x24c   :  { %2565 = vst [vmem:[%s4474_s5 + $0x40] sm:$0xff] %v2541_v31  ;;  %v2542_v39 = vmul.f32 %v2518_v33, %v2446_v32  ;;  %v2529_v42 = vadd.f32 1.0, %v3347_v37 }
 0x24d   :  { %v3349_v43 = vpop.eup %3348 }
 0x24e   :  { %2566 = vst [vmem:[%s4474_s5 + $0x48] sm:$0xff] %v2542_v39  ;;  %v2553_v44 = vmul.f32 %v2529_v42, %v2457_v41  ;;  %v2530_v46 = vadd.f32 1.0, %v3349_v43 }
 0x250   :  { %2577 = vst [vmem:[%s4474_s5 + $0xa0] sm:$0x3] %v2553_v44  ;;  %v2554_v47 = vmul.f32 %v2530_v46, %v2458_v45 }
 0x252   :  { %2578 = vst [vmem:[%s4474_s5 + $0xa8] sm:$0x3] %v2554_v47 }
 0x253   :  { %v2428_v48 = vpop.f32.mrf.mxu0 }
 0x255   :  { %v2430_v40 = vpop.f32.mrf.mxu0 }
 0x257   :  { %v2432_v10 = vpop.f32.mrf.mxu0 }
 0x259   :  { %v2434_v36 = vpop.f32.mrf.mxu0 }
 0x272   :  { %v2385_v2 = vpop.f32.mrf.mxu1 }
 0x273   :  { %v2386_v50 = vadd.f32 %v2385_v2, %v464_v49 }
 0x274   :  { %v2387_v0 = vpop.f32.mrf.mxu1 }
 0x275   :  { %v2429_v51 = vadd.f32 %v2428_v48, %v2386_v50  ;;  %v2388_v52 = vadd.f32 %v2387_v0, %v468_v1 }
 0x276   :  { %v2389_v53 = vpop.f32.mrf.mxu1 }
 0x277   :  { %v2471_v54 = vmul.f32 0.70710677, %v2429_v51  ;;  %v2431_v11 = vadd.f32 %v2430_v40, %v2388_v52  ;;  %v2390_v55 = vadd.f32 %v2389_v53, %v464_v49  ;;  %v2447_v62 = vmul.f32 0.5, %v2429_v51 }
 0x278   :  { %v2391_v56 = vpop.f32.mrf.mxu1 }
 0x279   :  { %3350 = verf.f32 %v2471_v54  ;;  %v2472_v57 = vmul.f32 0.70710677, %v2431_v11  ;;  %v2433_v58 = vadd.f32 %v2432_v10, %v2390_v55  ;;  %v2392_v59 = vadd.f32 %v2391_v56, %v468_v1 }
 0x27a   :  { %v2448_v4 = vmul.f32 0.5, %v2431_v11 }
 0x27b   :  { %3352 = verf.f32 %v2472_v57  ;;  %v2483_v34 = vmul.f32 0.70710677, %v2433_v58  ;;  %v2435_v8 = vadd.f32 %v2434_v36, %v2392_v59  ;;  %v2459_v12 = vmul.f32 0.5, %v2433_v58 }
 0x27d   :  { %3354 = verf.f32 %v2483_v34  ;;  %v2484_v61 = vmul.f32 0.70710677, %v2435_v8  ;;  %v2460_v17 = vmul.f32 0.5, %v2435_v8 }
 0x27f   :  { %3356 = verf.f32 %v2484_v61 }
 0x286   :  { %v3351_v60 = vpop.eup %3350 }
 0x287   :  { %v2519_v63 = vadd.f32 1.0, %v3351_v60 }
 0x288   :  { %v3353_v9 = vpop.eup %3352 }
 0x289   :  { %v2543_v3 = vmul.f32 %v2519_v63, %v2447_v62  ;;  %v2520_v7 = vadd.f32 1.0, %v3353_v9 }
 0x28a   :  { %v3355_v5 = vpop.eup %3354 }
 0x28b   :  { %2567 = vst [vmem:[%s4474_s5 + $0x50] sm:$0xff] %v2543_v3  ;;  %v2544_v6 = vmul.f32 %v2520_v7, %v2448_v4  ;;  %v2531_v14 = vadd.f32 1.0, %v3355_v5 }
 0x28c   :  { %v3357_v15 = vpop.eup %3356 }
 0x28d   :  { %2568 = vst [vmem:[%s4474_s5 + $0x58] sm:$0xff] %v2544_v6  ;;  %v2555_v16 = vmul.f32 %v2531_v14, %v2459_v12  ;;  %v2532_v18 = vadd.f32 1.0, %v3357_v15 }
 0x28f   :  { %2579 = vst [vmem:[%s4474_s5 + $0xb0] sm:$0x3] %v2555_v16  ;;  %v2556_v19 = vmul.f32 %v2532_v18, %v2460_v17 }
 0x291   :  { %2580 = vst [vmem:[%s4474_s5 + $0xb8] sm:$0x3] %v2556_v19 }

</bundles_post_ra>
